<compile_context>
chip_gen: v7x
topology: tpu7x:2x2x1
jax: 0.10.0
libtpu: 0.0.40
codegen_flags: <defaults>
</compile_context>

<pallas_src>
import jax
import jax.numpy as jnp
from jax.experimental import pallas as pl
from jax.experimental.pallas import tpu as pltpu

IE_DIM, SE_DIM, TE_DIM = 1536, 1024, 768
HID = 5000
POOL = 5
POOLED = HID // POOL              # 1000
CLS_HID = 100

# TPU-friendly padded sizes (lane dims multiples of 128).
HID_PAD = 5120                    # 40 * 128; multiple of POOL so pool windows stay aligned
POOLED_PAD = HID_PAD // POOL      # 1024
CLS_HID_PAD = 128
CLS_OUT_PAD = 128
B_PAD = 16                        # full bf16 sublane pack (16, 128)
N_TILE = 1280                     # joint-dim tile -> 256 pooled lanes per grid step
N_TILES = HID_PAD // N_TILE       # 4
TILE_POOLED = N_TILE // POOL      # 256


# ---------------------------------------------------------------------------
# Kernel 1: projections -> MFB elementwise product -> AvgPool1d(5)
# (pooling done via pre-permuted weight columns: 5 slices + 4 adds)
# ---------------------------------------------------------------------------
def _mfb_proj_pool_kernel(ie_ref, se_ref, te_ref,
                          wie_ref, wse_ref, wte_ref, b_ref,
                          pooled_ref):
    # bf16 x bf16 MXU dots with f32 accumulation; f32 biases (column-permuted
    # identically to the weights).
    ie = jnp.dot(ie_ref[...], wie_ref[...],
                 preferred_element_type=jnp.float32) + b_ref[0:1, :]
    se = jnp.dot(se_ref[...], wse_ref[...],
                 preferred_element_type=jnp.float32) + b_ref[1:2, :]
    te = jnp.dot(te_ref[...], wte_ref[...],
                 preferred_element_type=jnp.float32) + b_ref[2:3, :]
    o = ie * se * te

    # AvgPool1d(kernel=5, stride=5): columns were permuted offline so that
    # window member k of pooled index j sits at column k*TILE_POOLED + j.
    acc = o[:, 0:TILE_POOLED]
    for k in range(1, POOL):
        acc = acc + o[:, k * TILE_POOLED:(k + 1) * TILE_POOLED]
    pooled_ref[...] = acc * (1.0 / POOL)


# ---------------------------------------------------------------------------
# Kernel 2: p=0.5 / p=2 normalization + Linear -> GELU -> Linear classifier
# (tiny; single invocation, whole arrays in VMEM)
# ---------------------------------------------------------------------------
def _mfb_cls_kernel(pooled_ref, w1_ref, b1_ref, w2_ref, b2_ref, out_ref):
    x = pooled_ref[...]
    # F.normalize(p=0.5, dim=1): norm = (sum |x|^0.5)^2, eps=1e-12 on the norm
    n05 = jnp.sum(jnp.sqrt(jnp.abs(x)), axis=1, keepdims=True)
    x = x / jnp.maximum(n05 * n05, 1e-12)
    # F.normalize(p=2, dim=1)
    n2 = jnp.sqrt(jnp.sum(x * x, axis=1, keepdims=True))
    x = x / jnp.maximum(n2, 1e-12)
    h = jnp.dot(x, w1_ref[...], preferred_element_type=jnp.float32) + b1_ref[...]
    # exact (erf-based) GELU, matching torch.nn.GELU() default
    h = 0.5 * h * (1.0 + jax.lax.erf(h * 0.7071067811865476))
    out_ref[...] = jnp.dot(h, w2_ref[...],
                           preferred_element_type=jnp.float32) + b2_ref[...]


# ---------------------------------------------------------------------------
# One-time parameter preparation
# ---------------------------------------------------------------------------
def _pad_to(x, shape):
    pads = [(0, t - s) for s, t in zip(x.shape, shape)]
    return jnp.pad(x, pads)


def _pool_permutation():
    """perm[new] = old, where within tile n the old local column c = 5*j + k
    moves to new local column k*TILE_POOLED + j."""
    n = jnp.arange(N_TILES)[:, None, None]
    k = jnp.arange(POOL)[None, :, None]
    j = jnp.arange(TILE_POOLED)[None, None, :]
    return (n * N_TILE + POOL * j + k).reshape(HID_PAD)


def prepare_params(params):
    """Pad to TPU-friendly shapes, permute joint-dim columns for slice-based
    pooling, pre-tile weights into contiguous per-step blocks, cast the big
    projection weights to bf16.  Call once; results live in HBM and are reused
    every forward."""
    (w_ie, b_ie, w_se, b_se, w_te, b_te, w1, b1, w2, b2) = params
    num_classes = w2.shape[1]
    perm = _pool_permutation()

    def prep_proj(w, b, k_dim):
        w_p = _pad_to(w, (k_dim, HID_PAD))[:, perm].astype(jnp.bfloat16)
        # (K, HID_PAD) -> (N_TILES, K, N_TILE): each grid step's block is one
        # contiguous HBM region.
        w_t = jnp.transpose(w_p.reshape(k_dim, N_TILES, N_TILE), (1, 0, 2))
        b_p = _pad_to(b.reshape(1, HID), (1, HID_PAD))[:, perm]
        b_t = b_p.reshape(N_TILES, N_TILE)
        return w_t, b_t

    wie_t, bie_t = prep_proj(w_ie, b_ie, IE_DIM)
    wse_t, bse_t = prep_proj(w_se, b_se, SE_DIM)
    wte_t, bte_t = prep_proj(w_te, b_te, TE_DIM)
    b_all = jnp.stack([bie_t, bse_t, bte_t], axis=1)      # (N_TILES, 3, N_TILE)

    prepped = (
        wie_t, wse_t, wte_t, b_all,
        _pad_to(w1, (POOLED_PAD, CLS_HID_PAD)),
        _pad_to(b1.reshape(1, CLS_HID), (1, CLS_HID_PAD)),
        _pad_to(w2, (CLS_HID_PAD, CLS_OUT_PAD)),
        _pad_to(b2.reshape(1, num_classes), (1, CLS_OUT_PAD)),
    )
    prepped = jax.block_until_ready(prepped)               # materialize once
    return prepped, num_classes


# Advisory roofline hint: tiny flops, weight-byte bound.
_COST_MAIN = pl.CostEstimate(
    flops=2 * B_PAD * (IE_DIM + SE_DIM + TE_DIM) * HID_PAD,
    transcendentals=0,
    bytes_accessed=((IE_DIM + SE_DIM + TE_DIM) * HID_PAD * 2    # bf16 weights
                    + 3 * HID_PAD * 4                           # f32 biases
                    + B_PAD * (IE_DIM + SE_DIM + TE_DIM) * 2    # bf16 activations
                    + B_PAD * POOLED_PAD * 4),                  # pooled out
)


@jax.jit
def _forward_impl(ief, sef, tef, wie, wse, wte, b_all, w1, b1, w2, b2):
    B = ief.shape[0]
    # squeeze(1), pad batch to 16 rows, cast activations to bf16 (tiny).
    ie_x = _pad_to(ief.reshape(B, IE_DIM), (B_PAD, IE_DIM)).astype(jnp.bfloat16)
    se_x = _pad_to(sef.reshape(B, SE_DIM), (B_PAD, SE_DIM)).astype(jnp.bfloat16)
    te_x = _pad_to(tef.reshape(B, TE_DIM), (B_PAD, TE_DIM)).astype(jnp.bfloat16)

    pooled = pl.pallas_call(
        _mfb_proj_pool_kernel,
        out_shape=jax.ShapeDtypeStruct((B_PAD, POOLED_PAD), jnp.float32),
        grid_spec=pltpu.PrefetchScalarGridSpec(
            num_scalar_prefetch=0,
            grid=(N_TILES,),
            in_specs=[
                pl.BlockSpec((B_PAD, IE_DIM), lambda n: (0, 0)),
                pl.BlockSpec((B_PAD, SE_DIM), lambda n: (0, 0)),
                pl.BlockSpec((B_PAD, TE_DIM), lambda n: (0, 0)),
                pl.BlockSpec((None, IE_DIM, N_TILE), lambda n: (n, 0, 0)),
                pl.BlockSpec((None, SE_DIM, N_TILE), lambda n: (n, 0, 0)),
                pl.BlockSpec((None, TE_DIM, N_TILE), lambda n: (n, 0, 0)),
                pl.BlockSpec((None, 3, N_TILE), lambda n: (n, 0, 0)),
            ],
            out_specs=pl.BlockSpec((B_PAD, TILE_POOLED), lambda n: (0, n)),
        ),
        compiler_params=pltpu.CompilerParams(
            # No cross-step state anymore -> fully parallel joint-dim axis
            # (sharded across both TensorCores on v7x).
            dimension_semantics=("parallel",),
            vmem_limit_bytes=32 << 20),
        cost_estimate=_COST_MAIN,
    )(ie_x, se_x, te_x, wie, wse, wte, b_all)

    # Tiny epilogue kernel: whole arrays fit comfortably in VMEM.
    logits = pl.pallas_call(
        _mfb_cls_kernel,
        out_shape=jax.ShapeDtypeStruct((B_PAD, CLS_OUT_PAD), jnp.float32),
    )(pooled, w1, b1, w2, b2)
    return logits


def multi_modal_mfb1_forward(ief, sef, tef, prepped, num_classes):
    B = ief.shape[0]
    logits_padded = _forward_impl(ief, sef, tef, *prepped)
    return logits_padded[:B, :num_classes]


if __name__ == "__main__":
    num_classes = 10
    B = 2

    key = jax.random.PRNGKey(0)
    k = jax.random.split(key, 8)

    def linear(kk, fin, fout):
        kw, kb = jax.random.split(kk)
        bound = 1.0 / (fin ** 0.5)
        w = jax.random.uniform(kw, (fin, fout), jnp.float32, -bound, bound)
        b = jax.random.uniform(kb, (fout,), jnp.float32, -bound, bound)
        return w, b

    w_ie, b_ie = linear(k[0], IE_DIM, HID)
    w_se, b_se = linear(k[1], SE_DIM, HID)
    w_te, b_te = linear(k[2], TE_DIM, HID)
    w1, b1 = linear(k[3], POOLED, CLS_HID)
    w2, b2 = linear(k[4], CLS_HID, num_classes)
    params = (w_ie, b_ie, w_se, b_se, w_te, b_te, w1, b1, w2, b2)

    # one-time prep (padding + permutation + bf16 cast) -- not per-call work
    prepped, ncls = prepare_params(params)

    ief = jax.random.normal(k[5], (B, 1, IE_DIM), jnp.float32)
    sef = jax.random.normal(k[6], (B, 1, SE_DIM), jnp.float32)
    tef = jax.random.normal(k[7], (B, 1, TE_DIM), jnp.float32)

    out = multi_modal_mfb1_forward(ief, sef, tef, prepped, ncls)
    out = jax.block_until_ready(out)

    # pure-JAX f32 reference (inference mode: both dropouts are identity)
    def ref(ief, sef, tef):
        ie = ief.reshape(B, IE_DIM) @ w_ie + b_ie
        se = sef.reshape(B, SE_DIM) @ w_se + b_se
        te = tef.reshape(B, TE_DIM) @ w_te + b_te
        o = ie * se * te
        o = o.reshape(B, POOLED, POOL).mean(-1)          # AvgPool1d(5)
        n05 = jnp.sum(jnp.sqrt(jnp.abs(o)), axis=1, keepdims=True) ** 2
        o = o / jnp.maximum(n05, 1e-12)
        n2 = jnp.sqrt(jnp.sum(o * o, axis=1, keepdims=True))
        o = o / jnp.maximum(n2, 1e-12)
        h = o @ w1 + b1
        h = 0.5 * h * (1.0 + jax.lax.erf(h * 0.7071067811865476))
        return h @ w2 + b2

    expected = ref(ief, sef, tef)
    assert out.shape == (B, num_classes)
    # bf16 projection weights/activations (f32 accumulation) vs f32 reference.
    assert jnp.allclose(out, expected, rtol=2e-2, atol=1e-3), (
        float(jnp.max(jnp.abs(out - expected))))
    print("KERNEL_OK")
</pallas_src>

<mosaic_0001>
module attributes {stable_mosaic.version = 11 : i64} {
  func.func @_mfb_proj_pool_kernel(%arg0: i32, %arg1: memref<16x1536xbf16, #tpu.memory_space<vmem>>, %arg2: memref<16x1024xbf16, #tpu.memory_space<vmem>>, %arg3: memref<16x768xbf16, #tpu.memory_space<vmem>>, %arg4: memref<1x1536x1280xbf16, #tpu.memory_space<vmem>>, %arg5: memref<1x1024x1280xbf16, #tpu.memory_space<vmem>>, %arg6: memref<1x768x1280xbf16, #tpu.memory_space<vmem>>, %arg7: memref<1x3x1280xf32, #tpu.memory_space<vmem>>, %arg8: memref<16x256xf32, #tpu.memory_space<vmem>>) attributes {dimension_semantics = [#tpu.dimension_semantics<parallel>], iteration_bounds = array<i64: 4>, scalar_prefetch = 0 : i64, scratch_operands = 0 : i64, tpu.core_type = #tpu.core_type<tc>, window_params = [{pipeline_mode = #tpu.pipeline_mode<synchronous>, transform_indices = @transform_0, window_bounds = array<i64: 16, 1536>}, {pipeline_mode = #tpu.pipeline_mode<synchronous>, transform_indices = @transform_1, window_bounds = array<i64: 16, 1024>}, {pipeline_mode = #tpu.pipeline_mode<synchronous>, transform_indices = @transform_2, window_bounds = array<i64: 16, 768>}, {transform_indices = @transform_3, window_bounds = array<i64: 1, 1536, 1280>}, {transform_indices = @transform_4, window_bounds = array<i64: 1, 1024, 1280>}, {transform_indices = @transform_5, window_bounds = array<i64: 1, 768, 1280>}, {transform_indices = @transform_6, window_bounds = array<i64: 1, 3, 1280>}, {transform_indices = @transform_7, window_bounds = array<i64: 16, 256>}]} {
    %c0 = arith.constant 0 : index
    %c0_0 = arith.constant 0 : index
    %0 = vector.load %arg1[%c0, %c0_0] : memref<16x1536xbf16, #tpu.memory_space<vmem>>, vector<16x1536xbf16>
    %c0_1 = arith.constant 0 : index
    %c0_2 = arith.constant 0 : index
    %c0_3 = arith.constant 0 : index
    %1 = vector.load %arg4[%c0_1, %c0_2, %c0_3] : memref<1x1536x1280xbf16, #tpu.memory_space<vmem>>, vector<1x1536x1280xbf16>
    %2 = vector.shape_cast %1 : vector<1x1536x1280xbf16> to vector<1536x1280xbf16>
    %cst = arith.constant dense<0.000000e+00> : vector<16x1280xf32>
    %3 = tpu.matmul %0, %2, %cst {dimension_numbers = #tpu.dot_dimension_numbers<[1], [0], [0], [1], [0, 0, 1, 1], [], []>} : vector<16x1536xbf16>, vector<1536x1280xbf16>, vector<16x1280xf32> -> vector<16x1280xf32>
    %c0_4 = arith.constant 0 : index
    %c0_5 = arith.constant 0 : index
    %c0_6 = arith.constant 0 : index
    %4 = vector.load %arg7[%c0_4, %c0_5, %c0_6] : memref<1x3x1280xf32, #tpu.memory_space<vmem>>, vector<1x1x1280xf32>
    %5 = vector.shape_cast %4 : vector<1x1x1280xf32> to vector<1x1280xf32>
    %6 = vector.broadcast %5 : vector<1x1280xf32> to vector<16x1280xf32>
    %7 = arith.addf %3, %6 : vector<16x1280xf32>
    %c0_7 = arith.constant 0 : index
    %c0_8 = arith.constant 0 : index
    %8 = vector.load %arg2[%c0_7, %c0_8] : memref<16x1024xbf16, #tpu.memory_space<vmem>>, vector<16x1024xbf16>
    %c0_9 = arith.constant 0 : index
    %c0_10 = arith.constant 0 : index
    %c0_11 = arith.constant 0 : index
    %9 = vector.load %arg5[%c0_9, %c0_10, %c0_11] : memref<1x1024x1280xbf16, #tpu.memory_space<vmem>>, vector<1x1024x1280xbf16>
    %10 = vector.shape_cast %9 : vector<1x1024x1280xbf16> to vector<1024x1280xbf16>
    %cst_12 = arith.constant dense<0.000000e+00> : vector<16x1280xf32>
    %11 = tpu.matmul %8, %10, %cst_12 {dimension_numbers = #tpu.dot_dimension_numbers<[1], [0], [0], [1], [0, 0, 1, 1], [], []>} : vector<16x1024xbf16>, vector<1024x1280xbf16>, vector<16x1280xf32> -> vector<16x1280xf32>
    %c0_13 = arith.constant 0 : index
    %c1 = arith.constant 1 : index
    %c0_14 = arith.constant 0 : index
    %12 = vector.load %arg7[%c0_13, %c1, %c0_14] : memref<1x3x1280xf32, #tpu.memory_space<vmem>>, vector<1x1x1280xf32>
    %13 = vector.shape_cast %12 : vector<1x1x1280xf32> to vector<1x1280xf32>
    %14 = vector.broadcast %13 : vector<1x1280xf32> to vector<16x1280xf32>
    %15 = arith.addf %11, %14 : vector<16x1280xf32>
    %c0_15 = arith.constant 0 : index
    %c0_16 = arith.constant 0 : index
    %16 = vector.load %arg3[%c0_15, %c0_16] : memref<16x768xbf16, #tpu.memory_space<vmem>>, vector<16x768xbf16>
    %c0_17 = arith.constant 0 : index
    %c0_18 = arith.constant 0 : index
    %c0_19 = arith.constant 0 : index
    %17 = vector.load %arg6[%c0_17, %c0_18, %c0_19] : memref<1x768x1280xbf16, #tpu.memory_space<vmem>>, vector<1x768x1280xbf16>
    %18 = vector.shape_cast %17 : vector<1x768x1280xbf16> to vector<768x1280xbf16>
    %cst_20 = arith.constant dense<0.000000e+00> : vector<16x1280xf32>
    %19 = tpu.matmul %16, %18, %cst_20 {dimension_numbers = #tpu.dot_dimension_numbers<[1], [0], [0], [1], [0, 0, 1, 1], [], []>} : vector<16x768xbf16>, vector<768x1280xbf16>, vector<16x1280xf32> -> vector<16x1280xf32>
    %c0_21 = arith.constant 0 : index
    %c2 = arith.constant 2 : index
    %c0_22 = arith.constant 0 : index
    %20 = vector.load %arg7[%c0_21, %c2, %c0_22] : memref<1x3x1280xf32, #tpu.memory_space<vmem>>, vector<1x1x1280xf32>
    %21 = vector.shape_cast %20 : vector<1x1x1280xf32> to vector<1x1280xf32>
    %22 = vector.broadcast %21 : vector<1x1280xf32> to vector<16x1280xf32>
    %23 = arith.addf %19, %22 : vector<16x1280xf32>
    %24 = arith.mulf %7, %15 : vector<16x1280xf32>
    %25 = arith.mulf %24, %23 : vector<16x1280xf32>
    %26 = vector.extract_strided_slice %25 {offsets = [0, 0], sizes = [16, 256], strides = [1, 1]} : vector<16x1280xf32> to vector<16x256xf32>
    %27 = vector.extract_strided_slice %25 {offsets = [0, 256], sizes = [16, 256], strides = [1, 1]} : vector<16x1280xf32> to vector<16x256xf32>
    %28 = arith.addf %26, %27 : vector<16x256xf32>
    %29 = vector.extract_strided_slice %25 {offsets = [0, 512], sizes = [16, 256], strides = [1, 1]} : vector<16x1280xf32> to vector<16x256xf32>
    %30 = arith.addf %28, %29 : vector<16x256xf32>
    %31 = vector.extract_strided_slice %25 {offsets = [0, 768], sizes = [16, 256], strides = [1, 1]} : vector<16x1280xf32> to vector<16x256xf32>
    %32 = arith.addf %30, %31 : vector<16x256xf32>
    %33 = vector.extract_strided_slice %25 {offsets = [0, 1024], sizes = [16, 256], strides = [1, 1]} : vector<16x1280xf32> to vector<16x256xf32>
    %34 = arith.addf %32, %33 : vector<16x256xf32>
    %cst_23 = arith.constant 2.000000e-01 : f32
    %35 = vector.broadcast %cst_23 : f32 to vector<16x256xf32>
    %36 = arith.mulf %34, %35 : vector<16x256xf32>
    %c0_24 = arith.constant 0 : index
    %c0_25 = arith.constant 0 : index
    %37 = vector.load %arg8[%c0_24, %c0_25] : memref<16x256xf32, #tpu.memory_space<vmem>>, vector<16x256xf32>
    tpu.vector_store %arg8[%c0_24, %c0_25], %36 {strides = array<i32>} : memref<16x256xf32, #tpu.memory_space<vmem>>, vector<16x256xf32>,
    return
  }
  func.func @transform_0(%arg0: i32) -> (i32, i32) {
    %c0_i32 = arith.constant 0 : i32
    %c0_i32_0 = arith.constant 0 : i32
    %c0_i32_1 = arith.constant 0 : i32
    return %c0_i32, %c0_i32_0 : i32, i32
  }
  func.func @transform_1(%arg0: i32) -> (i32, i32) {
    %c0_i32 = arith.constant 0 : i32
    %c0_i32_0 = arith.constant 0 : i32
    %c0_i32_1 = arith.constant 0 : i32
    return %c0_i32, %c0_i32_0 : i32, i32
  }
  func.func @transform_2(%arg0: i32) -> (i32, i32) {
    %c0_i32 = arith.constant 0 : i32
    %c0_i32_0 = arith.constant 0 : i32
    %c0_i32_1 = arith.constant 0 : i32
    return %c0_i32, %c0_i32_0 : i32, i32
  }
  func.func @transform_3(%arg0: i32) -> (i32, i32, i32) {
    %c0_i32 = arith.constant 0 : i32
    %c0_i32_0 = arith.constant 0 : i32
    %c0_i32_1 = arith.constant 0 : i32
    return %arg0, %c0_i32, %c0_i32_0 : i32, i32, i32
  }
  func.func @transform_4(%arg0: i32) -> (i32, i32, i32) {
    %c0_i32 = arith.constant 0 : i32
    %c0_i32_0 = arith.constant 0 : i32
    %c0_i32_1 = arith.constant 0 : i32
    return %arg0, %c0_i32, %c0_i32_0 : i32, i32, i32
  }
  func.func @transform_5(%arg0: i32) -> (i32, i32, i32) {
    %c0_i32 = arith.constant 0 : i32
    %c0_i32_0 = arith.constant 0 : i32
    %c0_i32_1 = arith.constant 0 : i32
    return %arg0, %c0_i32, %c0_i32_0 : i32, i32, i32
  }
  func.func @transform_6(%arg0: i32) -> (i32, i32, i32) {
    %c0_i32 = arith.constant 0 : i32
    %c0_i32_0 = arith.constant 0 : i32
    %c0_i32_1 = arith.constant 0 : i32
    return %arg0, %c0_i32, %c0_i32_0 : i32, i32, i32
  }
  func.func @transform_7(%arg0: i32) -> (i32, i32) {
    %c0_i32 = arith.constant 0 : i32
    %c0_i32_0 = arith.constant 0 : i32
    return %c0_i32, %arg0 : i32, i32
  }
}

module attributes {stable_mosaic.version = 11 : i64} {
  func.func @_mfb_cls_kernel(%arg0: memref<16x1024xf32, #tpu.memory_space<vmem>>, %arg1: memref<1024x128xf32, #tpu.memory_space<vmem>>, %arg2: memref<1x128xf32, #tpu.memory_space<vmem>>, %arg3: memref<128x128xf32, #tpu.memory_space<vmem>>, %arg4: memref<1x128xf32, #tpu.memory_space<vmem>>, %arg5: memref<16x128xf32, #tpu.memory_space<vmem>>) attributes {dimension_semantics = [], scalar_prefetch = 0 : i64, scratch_operands = 0 : i64, tpu.core_type = #tpu.core_type<tc>} {
    %c0 = arith.constant 0 : index
    %c0_0 = arith.constant 0 : index
    %0 = vector.load %arg0[%c0, %c0_0] : memref<16x1024xf32, #tpu.memory_space<vmem>>, vector<16x1024xf32>
    %1 = math.absf %0 : vector<16x1024xf32>
    %2 = math.sqrt %1 : vector<16x1024xf32>
    %cst = arith.constant dense<0.000000e+00> : vector<16xf32>
    %3 = vector.multi_reduction <add>, %2, %cst [1] : vector<16x1024xf32> to vector<16xf32>
    %4 = vector.shape_cast %3 : vector<16xf32> to vector<16x1xf32>
    %5 = arith.mulf %4, %4 : vector<16x1xf32>
    %cst_1 = arith.constant 9.99999996E-13 : f32
    %6 = vector.broadcast %cst_1 : f32 to vector<16x1xf32>
    %7 = arith.maximumf %5, %6 : vector<16x1xf32>
    %8 = vector.broadcast %7 : vector<16x1xf32> to vector<16x1024xf32>
    %9 = arith.divf %0, %8 : vector<16x1024xf32>
    %10 = arith.mulf %9, %9 : vector<16x1024xf32>
    %cst_2 = arith.constant dense<0.000000e+00> : vector<16xf32>
    %11 = vector.multi_reduction <add>, %10, %cst_2 [1] : vector<16x1024xf32> to vector<16xf32>
    %12 = vector.shape_cast %11 : vector<16xf32> to vector<16x1xf32>
    %13 = math.sqrt %12 : vector<16x1xf32>
    %cst_3 = arith.constant 9.99999996E-13 : f32
    %14 = vector.broadcast %cst_3 : f32 to vector<16x1xf32>
    %15 = arith.maximumf %13, %14 : vector<16x1xf32>
    %16 = vector.broadcast %15 : vector<16x1xf32> to vector<16x1024xf32>
    %17 = arith.divf %9, %16 : vector<16x1024xf32>
    %c0_4 = arith.constant 0 : index
    %c0_5 = arith.constant 0 : index
    %18 = vector.load %arg1[%c0_4, %c0_5] : memref<1024x128xf32, #tpu.memory_space<vmem>>, vector<1024x128xf32>
    %cst_6 = arith.constant dense<0.000000e+00> : vector<16x128xf32>
    %19 = tpu.matmul %17, %18, %cst_6 {dimension_numbers = #tpu.dot_dimension_numbers<[1], [0], [0], [1], [0, 0, 1, 1], [], []>} : vector<16x1024xf32>, vector<1024x128xf32>, vector<16x128xf32> -> vector<16x128xf32>
    %c0_7 = arith.constant 0 : index
    %c0_8 = arith.constant 0 : index
    %20 = vector.load %arg2[%c0_7, %c0_8] : memref<1x128xf32, #tpu.memory_space<vmem>>, vector<1x128xf32>
    %21 = vector.broadcast %20 : vector<1x128xf32> to vector<16x128xf32>
    %22 = arith.addf %19, %21 : vector<16x128xf32>
    %cst_9 = arith.constant 5.000000e-01 : f32
    %23 = vector.broadcast %cst_9 : f32 to vector<16x128xf32>
    %24 = arith.mulf %23, %22 : vector<16x128xf32>
    %cst_10 = arith.constant 0.707106769 : f32
    %25 = vector.broadcast %cst_10 : f32 to vector<16x128xf32>
    %26 = arith.mulf %22, %25 : vector<16x128xf32>
    %27 = math.erf %26 : vector<16x128xf32>
    %cst_11 = arith.constant 1.000000e+00 : f32
    %28 = vector.broadcast %cst_11 : f32 to vector<16x128xf32>
    %29 = arith.addf %28, %27 : vector<16x128xf32>
    %30 = arith.mulf %24, %29 : vector<16x128xf32>
    %c0_12 = arith.constant 0 : index
    %c0_13 = arith.constant 0 : index
    %31 = vector.load %arg3[%c0_12, %c0_13] : memref<128x128xf32, #tpu.memory_space<vmem>>, vector<128x128xf32>
    %cst_14 = arith.constant dense<0.000000e+00> : vector<16x128xf32>
    %32 = tpu.matmul %30, %31, %cst_14 {dimension_numbers = #tpu.dot_dimension_numbers<[1], [0], [0], [1], [0, 0, 1, 1], [], []>} : vector<16x128xf32>, vector<128x128xf32>, vector<16x128xf32> -> vector<16x128xf32>
    %c0_15 = arith.constant 0 : index
    %c0_16 = arith.constant 0 : index
    %33 = vector.load %arg4[%c0_15, %c0_16] : memref<1x128xf32, #tpu.memory_space<vmem>>, vector<1x128xf32>
    %34 = vector.broadcast %33 : vector<1x128xf32> to vector<16x128xf32>
    %35 = arith.addf %32, %34 : vector<16x128xf32>
    %c0_17 = arith.constant 0 : index
    %c0_18 = arith.constant 0 : index
    %36 = vector.load %arg5[%c0_17, %c0_18] : memref<16x128xf32, #tpu.memory_space<vmem>>, vector<16x128xf32>
    tpu.vector_store %arg5[%c0_17, %c0_18], %35 {strides = array<i32>} : memref<16x128xf32, #tpu.memory_space<vmem>>, vector<16x128xf32>,
    return
  }
}

</mosaic_0001>

<bundles_post_ra>
// kernel: _forward_impl.3
= control target key start
LH: loop header
LB: loop body
LE: loop exit
PB: predicated region body
PF: predicated region fallthrough
CT: control target
= control target key end

     0   :  { %s2133_s0 = inlined_call_operand.vmem [shape: f32[16,1024], index: 0, kind: input, shape index: {}]   ;;  %s2134_s1 = inlined_call_operand.vmem [shape: f32[1024,128], index: 1, kind: input, shape index: {}]   ;;  %s2135_s2 = inlined_call_operand.vmem [shape: f32[1,128], index: 2, kind: input, shape index: {}]   ;;  %s2136_s3 = inlined_call_operand.vmem [shape: f32[128,128], index: 3, kind: input, shape index: {}]   ;;  %s2137_s4 = inlined_call_operand.vmem [shape: f32[1,128], index: 4, kind: input, shape index: {}]   ;;  %s2138_s5 = inlined_call_operand.hbm [shape: f32[16,128], index: 5, kind: output, shape index: {}]  }
   0x1   :  { %v1312_v0 = vld [vmem:[%s2133_s0] sm:$0xff]  ;;  %v1317_v1 = vld [vmem:[%s2133_s0 + $0x8] sm:$0xff]  ;;  %v1322_v2 = vld [vmem:[%s2133_s0 + $0x10] sm:$0xff] }
   0x2   :  { %v1327_v3 = vld [vmem:[%s2133_s0 + $0x18] sm:$0xff]  ;;  %v1332_v4 = vld [vmem:[%s2133_s0 + $0x20] sm:$0xff]  ;;  %v37_v5 = vand.u32 2147483647, %v1312_v0  ;;  %v1338_v6 = vld [vmem:[%s2133_s0 + $0x28] sm:$0xff] }
   0x3   :  { %v1341_v7 = vand.u32 2147483647, %v1317_v1  ;;  %v1344_v8 = vand.u32 2147483647, %v1322_v2  ;;  %v1349_v9 = vld [vmem:[%s2133_s0 + $0x30] sm:$0xff]  ;;  %v1357_v11 = vld [vmem:[%s2133_s0 + $0x38] sm:$0xff] }
   0x4   :  { %v1352_v10 = vand.u32 2147483647, %v1327_v3  ;;  %1204 = vrsqrt.f32 %v37_v5  ;;  %v1360_v12 = vand.u32 2147483647, %v1332_v4  ;;  %v1363_v13 = vand.u32 2147483647, %v1338_v6 }
   0x5   :  { %1206 = vrsqrt.f32 %v1341_v7  ;;  %v1367_v14 = vand.u32 2147483647, %v1349_v9  ;;  %v1371_v15 = vand.u32 2147483647, %v1357_v11 }
   0x6   :  { %1208 = vrsqrt.f32 %v1344_v8 }
   0x7   :  { %1210 = vrsqrt.f32 %v1352_v10 }
   0x8   :  { %1212 = vrsqrt.f32 %v1360_v12 }
   0x9   :  { %10 = vsyncpa [#allocation3], 0  ;;  %vm55_vm0 = vcmp.eq.f32.partialorder %v37_v5, inf  ;;  %vm57_vm1 = vcmp.eq.f32.partialorder %v37_v5, 0.0  ;;  %v58_v16 = vand.u32 2147483648, %v37_v5  ;;  %1214 = vrsqrt.f32 %v1363_v13  ;;  %v1379_v17 = vld [vmem:[%s2133_s0 + $0x40] sm:$0xff] }
   0xa   :  { %v1384_v18 = vld [vmem:[%s2133_s0 + $0x48] sm:$0xff]  ;;  %vm62_vm2 = vcmp.eq.f32.partialorder %v1341_v7, inf  ;;  %vm64_vm3 = vcmp.eq.f32.partialorder %v1341_v7, 0.0  ;;  %v65_v19 = vand.u32 2147483648, %v1341_v7  ;;  %1216 = vrsqrt.f32 %v1367_v14  ;;  %v1397_v21 = vld [vmem:[%s2133_s0 + $0x50] sm:$0xff]  ;;  %v1416_v28 = vld [vmem:[%s2133_s0 + $0x58] sm:$0xff] }
   0xb   :  { %vm69_vm4 = vcmp.eq.f32.partialorder %v1344_v8, inf  ;;  %vm71_vm5 = vcmp.eq.f32.partialorder %v1344_v8, 0.0  ;;  %v72_v20 = vand.u32 2147483648, %v1344_v8  ;;  %1218 = vrsqrt.f32 %v1371_v15  ;;  %v1427_v33 = vld [vmem:[%s2133_s0 + $0x60] sm:$0xff]  ;;  %v1437_v37 = vld [vmem:[%s2133_s0 + $0x68] sm:$0xff]  ;;  %v1454_v46 = vld [vmem:[%s2133_s0 + $0x70] sm:$0xff] }
   0xc   :  { %vm76_vm6 = vcmp.eq.f32.partialorder %v1352_v10, inf  ;;  %vm78_vm7 = vcmp.eq.f32.partialorder %v1352_v10, 0.0  ;;  %v1402_v22 = vand.u32 2147483647, %v1379_v17  ;;  %v1405_v23 = vand.u32 2147483647, %v1384_v18 }
   0xd   :  { %v79_v25 = vand.u32 2147483648, %v1352_v10  ;;  %vm83_vm8 = vcmp.eq.f32.partialorder %v1360_v12, inf  ;;  %vm85_vm9 = vcmp.eq.f32.partialorder %v1360_v12, 0.0  ;;  %v86_v26 = vand.u32 2147483648, %v1360_v12  ;;  %v1469_v52 = vld [vmem:[%s2133_s0 + $0x78] sm:$0xff]  ;;  %s1276_s26 = smov [#allocation2]  }
   0xe   :  { %v1205_v24 = vpop.eup %1204  ;;  %vm90_vm10 = vcmp.eq.f32.partialorder %v1363_v13, inf  ;;  %vm92_vm11 = vcmp.eq.f32.partialorder %v1363_v13, 0.0  ;;  %v1419_v29 = vand.u32 2147483647, %v1397_v21  ;;  %v93_v31 = vand.u32 2147483648, %v1363_v13  ;;  %s823_s27 = sshll.u32 %s1276_s26, 4  ;;  %s824_s27 = int_to_ptr.vmem [resolvable:$true] %s823_s27 }
   0xf   :  { %v54_v27 = vmul.f32 %v1205_v24, %v37_v5  ;;  %v1207_v30 = vpop.eup %1206  ;;  %vm97_vm12 = vcmp.eq.f32.partialorder %v1367_v14, inf  ;;  %v100_v32 = vand.u32 2147483648, %v1367_v14  ;;  %1220 = vrsqrt.f32 %v1402_v22  ;;  %s1252_s28 = scalar_lea.vmem %s824_s27, 256  ;;  %p1257_p1 = scmp.lt.s32.totalorder %s824_s27, %s824_s27 }
  0x10   :  { %v1209_v34 = vpop.eup %1208  ;;  %v61_v36 = vmul.f32 %v1207_v30, %v1341_v7  ;;  %vm99_vm13 = vcmp.eq.f32.partialorder %v1367_v14, 0.0  ;;  %vm104_vm14 = vcmp.eq.f32.partialorder %v1371_v15, inf  ;;  %1222 = vrsqrt.f32 %v1405_v23  ;;  %p1253_p0 = scmp.ne.s32.totalorder %s824_s27, %s1252_s28  ;;  %p1258_p2 = scmp.lt.s32.totalorder %s1252_s28, %s1252_s28 }
  0x11   :  { %v56_v35 = vsel %vm55_vm0, %v37_v5, %v54_v27  ;;  %v1211_v38 = vpop.eup %1210  ;;  %v68_v40 = vmul.f32 %v1209_v34, %v1344_v8  ;;  %v107_v41 = vand.u32 2147483648, %v1371_v15  ;;  %v1444_v42 = vand.u32 2147483647, %v1416_v28 }
  0x12   :  { %v59_v39 = vsel %vm57_vm1, %v58_v16, %v56_v35  ;;  %v1213_v43 = vpop.eup %1212  ;;  %v63_v44 = vsel %vm62_vm2, %v1341_v7, %v61_v36  ;;  %v75_v45 = vmul.f32 %v1211_v38, %v1352_v10  ;;  %vm106_vm15 = vcmp.eq.f32.partialorder %v1371_v15, 0.0  ;;  %p1259_p3 = por %p1258_p2, %p1257_p1 }
  0x13   :  { %v1457_v47 = vand.u32 2147483647, %v1427_v33  ;;  %1224 = vrsqrt.f32 %v1419_v29  ;;  %v1215_v48 = vpop.eup %1214  ;;  %v66_v49 = vsel %vm64_vm3, %v65_v19, %v63_v44  ;;  %v70_v50 = vsel %vm69_vm4, %v1344_v8, %v68_v40 }
  0x14   :  { %v82_v51 = vmul.f32 %v1213_v43, %v1360_v12  ;;  %v1472_v53 = vand.u32 2147483647, %v1437_v37  ;;  %v1217_v54 = vpop.eup %1216  ;;  %v73_v55 = vsel %vm71_vm5, %v72_v20, %v70_v50  ;;  %v77_v56 = vsel %vm76_vm6, %v1352_v10, %v75_v45  ;;  %p1260_p4 = pnand %p1259_p3, %p1253_p0 }
  0x15   :  { %v89_v57 = vmul.f32 %v1215_v48, %v1363_v13  ;;  %v165_v58 = vadd.f32 %v66_v49, %v59_v39  ;;  %v1219_v59 = vpop.eup %1218  ;;  %v80_v60 = vsel %vm78_vm7, %v79_v25, %v77_v56  ;;  %v96_v62 = vmul.f32 %v1217_v54, %v1367_v14 }
  0x16   :  { %v84_v61 = vsel %vm83_vm8, %v1360_v12, %v82_v51  ;;  %v1487_v63 = vand.u32 2147483647, %v1454_v46  ;;  %v103_v7 = vmul.f32 %v1219_v59, %v1371_v15  ;;  %v1494_v16 = vand.u32 2147483647, %v1469_v52 }
  0x17   :  { %v91_v5 = vsel %vm90_vm10, %v1363_v13, %v89_v57  ;;  %v166_v8 = vadd.f32 %v165_v58, %v73_v55  ;;  %v87_v10 = vsel %vm85_vm9, %v86_v26, %v84_v61  ;;  %vm111_vm0 = vcmp.eq.f32.partialorder %v1402_v22, inf }
  0x18   :  { %vm113_vm1 = vcmp.eq.f32.partialorder %v1402_v22, 0.0  ;;  %1226 = vrsqrt.f32 %v1444_v42  ;;  %v98_v19 = vsel %vm97_vm12, %v1367_v14, %v96_v62  ;;  %v114_v24 = vand.u32 2147483648, %v1402_v22 }
  0x19   :  { %v167_v20 = vadd.f32 %v166_v8, %v80_v60  ;;  %vm118_vm2 = vcmp.eq.f32.partialorder %v1405_v23, inf  ;;  %v1221_v25 = vpop.eup %1220  ;;  %v94_v12 = vsel %vm92_vm11, %v93_v31, %v91_v5  ;;  %vm120_vm3 = vcmp.eq.f32.partialorder %v1405_v23, 0.0 }
  0x1a   :  { %v121_v26 = vand.u32 2147483648, %v1405_v23  ;;  %1228 = vrsqrt.f32 %v1457_v47  ;;  %v1223_v27 = vpop.eup %1222  ;;  %v105_v30 = vsel %vm104_vm14, %v1371_v15, %v103_v7  ;;  %v110_v35 = vmul.f32 %v1221_v25, %v1402_v22 }
  0x1b   :  { %v168_v34 = vadd.f32 %v167_v20, %v87_v10  ;;  %vm125_vm4 = vcmp.eq.f32.partialorder %v1419_v29, inf  ;;  %v101_v13 = vsel %vm99_vm13, %v100_v32, %v98_v19  ;;  %v117_v31 = vmul.f32 %v1223_v27, %v1405_v23 }
  0x1c   :  { %vm127_vm5 = vcmp.eq.f32.partialorder %v1419_v29, 0.0  ;;  %1230 = vrsqrt.f32 %v1472_v53  ;;  %v112_v39 = vsel %vm111_vm0, %v1402_v22, %v110_v35  ;;  %v128_v40 = vand.u32 2147483648, %v1419_v29 }
  0x1d   :  { %v1225_v36 = vpop.eup %1224  ;;  %v169_v38 = vadd.f32 %v168_v34, %v94_v12  ;;  %1232 = vrsqrt.f32 %v1487_v63  ;;  %v108_v14 = vsel %vm106_vm15, %v107_v41, %v105_v30  ;;  %v115_v32 = vsel %vm113_vm1, %v114_v24, %v112_v39  ;;  %v273_v39 = vld [vmem:[%s2134_s1] sm:$0xff] }
  0x1e   :  { %v119_v43 = vsel %vm118_vm2, %v1405_v23, %v117_v31  ;;  %v124_v44 = vmul.f32 %v1225_v36, %v1419_v29  ;;  %1234 = vrsqrt.f32 %v1494_v16  ;;  %vm132_vm6 = vcmp.eq.f32.partialorder %v1444_v42, inf  ;;  %v290_v31 = vld [vmem:[%s2134_s1 + $0x88] sm:$0xff]  ;;  %v321_v36 = vld [vmem:[%s2134_s1 + $0x180] sm:$0xff] }
  0x1f   :  { %v170_v45 = vadd.f32 %v169_v38, %v101_v13  ;;  %v122_v48 = vsel %vm120_vm3, %v121_v26, %v119_v43  ;;  %v135_v51 = vand.u32 2147483648, %v1444_v42  ;;  %vm134_vm7 = vcmp.eq.f32.partialorder %v1444_v42, 0.0  ;;  %v305_v43 = vld [vmem:[%s2134_s1 + $0x100] sm:$0xff] }
  0x20   :  { %v126_v49 = vsel %vm125_vm4, %v1419_v29, %v124_v44  ;;  %v174_v41 = vadd.f32 %v122_v48, %v115_v32  ;;  %vm139_vm8 = vcmp.eq.f32.partialorder %v1457_v47, inf  ;;  %v142_v56 = vand.u32 2147483648, %v1457_v47  ;;  %v306_v44 = vld [vmem:[%s2134_s1 + $0x108] sm:$0xff] }
  0x21   :  { %v171_v15 = vadd.f32 %v170_v45, %v108_v14  ;;  %v129_v22 = vsel %vm127_vm5, %v128_v40, %v126_v49  ;;  %vm141_vm9 = vcmp.eq.f32.partialorder %v1457_v47, 0.0  ;;  %vm146_vm10 = vcmp.eq.f32.partialorder %v1472_v53, inf  ;;  %v274_v40 = vld [vmem:[%s2134_s1 + $0x8] sm:$0xff] }
  0x22   :  { %v1227_v50 = vpop.eup %1226  ;;  %v175_v54 = vadd.f32 %v174_v41, %v129_v22  ;;  %vm148_vm11 = vcmp.eq.f32.partialorder %v1472_v53, 0.0  ;;  %v149_v60 = vand.u32 2147483648, %v1472_v53  ;;  %vm153_vm12 = vcmp.eq.f32.partialorder %v1487_v63, inf }
  0x23   :  { %172 = vadd.xlane.f32.xlu0 %v171_v15  ;;  %v131_v23 = vmul.f32 %v1227_v50, %v1444_v42  ;;  %vm155_vm13 = vcmp.eq.f32.partialorder %v1487_v63, 0.0  ;;  %vm160_vm14 = vcmp.eq.f32.partialorder %v1494_v16, inf  ;;  %vm162_vm15 = vcmp.eq.f32.partialorder %v1494_v16, 0.0 }
  0x24   :  { %v1229_v55 = vpop.eup %1228  ;;  %v1043_v32 = vpack.c.bf16 %v274_v40, %v273_v39  ;;  %v1075_v45 = vpack.c.bf16 %v306_v44, %v305_v43  ;;  %v324_v40 = vld [vmem:[%s2134_s1 + $0x198] sm:$0xff] }
  0x25   :  { %v133_v29 = vsel %vm132_vm6, %v1444_v42, %v131_v23  ;;  %v138_v57 = vmul.f32 %v1229_v55, %v1457_v47  ;;  %v156_v42 = vand.u32 2147483648, %v1487_v63 }
  0x26   :  { %v1231_v58 = vpop.eup %1230  ;;  %v136_v59 = vsel %vm134_vm7, %v135_v51, %v133_v29 }
  0x27   :  { %v1233_v61 = vpop.eup %1232  ;;  %v140_v62 = vsel %vm139_vm8, %v1457_v47, %v138_v57  ;;  %v145_v5 = vmul.f32 %v1231_v58, %v1472_v53  ;;  %v176_v7 = vadd.f32 %v175_v54, %v136_v59  ;;  %v163_v47 = vand.u32 2147483648, %v1494_v16 }
  0x28   :  { %v143_v8 = vsel %vm141_vm9, %v142_v56, %v140_v62  ;;  %v152_v10 = vmul.f32 %v1233_v61, %v1487_v63  ;;  %v1235_v24 = vpop.eup %1234 }
  0x29   :  { %v147_v19 = vsel %vm146_vm10, %v1472_v53, %v145_v5  ;;  %v177_v20 = vadd.f32 %v176_v7, %v143_v8  ;;  %v159_v27 = vmul.f32 %v1235_v24, %v1494_v16 }
  0x2a   :  { %v150_v25 = vsel %vm148_vm11, %v149_v60, %v147_v19  ;;  %v154_v12 = vsel %vm153_vm12, %v1487_v63, %v152_v10  ;;  %v289_v63 = vld [vmem:[%s2134_s1 + $0x80] sm:$0xff] }
  0x2b   :  { %v157_v26 = vsel %vm155_vm13, %v156_v42, %v154_v12  ;;  %v178_v30 = vadd.f32 %v177_v20, %v150_v25  ;;  %v161_v34 = vsel %vm160_vm14, %v1494_v16, %v159_v27  ;;  %v1041_v38 = vpack.c.bf16 %v290_v31, %v289_v63  ;;  %v322_v16 = vld [vmem:[%s2134_s1 + $0x188] sm:$0xff] }
  0x2c   :  { %v164_v13 = vsel %vm162_vm15, %v163_v47, %v161_v34  ;;  %v1073_v14 = vpack.c.bf16 %v322_v16, %v321_v36  ;;  %v323_v16 = vld [vmem:[%s2134_s1 + $0x190] sm:$0xff] }
  0x2d   :  { %v179_v35 = vadd.f32 %v178_v30, %v157_v26  ;;  %1042 = vmatprep.subr.bf16.mxu0 %v1041_v38  ;;  %v292_v38 = vld [vmem:[%s2134_s1 + $0x98] sm:$0xff]  ;;  %v1077_v43 = vpack.c.bf16 %v324_v40, %v323_v16  ;;  %v331_v16 = vld [vmem:[%s2134_s1 + $0x1d0] sm:$0xff] }
  0x2e   :  { %1074 = vmatprep.subr.bf16.mxu1 %v1073_v14  ;;  %1044 = vmatpush3.bf16.msra.mxu0 %v1043_v32  ;;  %v275_v14 = vld [vmem:[%s2134_s1 + $0x10] sm:$0xff]  ;;  %v276_v32 = vld [vmem:[%s2134_s1 + $0x18] sm:$0xff] }
  0x2f   :  { %v180_v53 = vadd.f32 %v179_v35, %v164_v13  ;;  %1076 = vmatpush3.bf16.msra.mxu1 %v1075_v45  ;;  %v1047_v44 = vpack.c.bf16 %v276_v32, %v275_v14  ;;  %v307_v45 = vld [vmem:[%s2134_s1 + $0x110] sm:$0xff]  ;;  %v332_v40 = vld [vmem:[%s2134_s1 + $0x1d8] sm:$0xff] }
  0x30   :  { %1078 = vmatprep.subr.bf16.mxu1 %v1077_v43  ;;  %v283_v14 = vld [vmem:[%s2134_s1 + $0x50] sm:$0xff]  ;;  %v284_v32 = vld [vmem:[%s2134_s1 + $0x58] sm:$0xff]  ;;  %v1093_v43 = vpack.c.bf16 %v332_v40, %v331_v16  ;;  %v337_v16 = vld [vmem:[%s2134_s1 + $0x200] sm:$0xff] }
  0x31   :  { %181 = vadd.xlane.f32.xlu0 %v180_v53 }
  0xb0   :  { %v173_v48 = vpop.xlane.xlu0 %172 }
  0xb1   :  { %v183_v49 = vmul.f32 %v173_v48, %v173_v48  ;;  %v308_v48 = vld [vmem:[%s2134_s1 + $0x118] sm:$0xff] }
  0xb3   :  { %v185_v15 = vmax.f32 %v183_v49, 1e-12  ;;  %v1079_v49 = vpack.c.bf16 %v308_v48, %v307_v45  ;;  %v315_v45 = vld [vmem:[%s2134_s1 + $0x150] sm:$0xff]  ;;  %v316_v48 = vld [vmem:[%s2134_s1 + $0x158] sm:$0xff] }
  0xb5   :  { %1236 = vrcp.f32 %v185_v15  ;;  %v293_v15 = vld [vmem:[%s2134_s1 + $0xa0] sm:$0xff]  ;;  %1080 = vmatpush3.bf16.msra.mxu1 %v1079_v49  ;;  %v1095_v49 = vpack.c.bf16 %v316_v48, %v315_v45  ;;  %v355_v45 = vld [vmem:[%s2134_s1 + $0x290] sm:$0xff]  ;;  %v356_v48 = vld [vmem:[%s2134_s1 + $0x298] sm:$0xff] }
  0xbe   :  { %v182_v22 = vpop.xlane.xlu0 %181 }
  0xbf   :  { %v1237_v41 = vpop.eup %1236  ;;  %v184_v50 = vmul.f32 %v182_v22, %v182_v22  ;;  %v294_v22 = vld [vmem:[%s2134_s1 + $0xa8] sm:$0xff] }
  0xc0   :  { %v1592_v51 = vmul.f32 %v1237_v41, %v1312_v0  ;;  %v1595_v23 = vmul.f32 %v1237_v41, %v1317_v1  ;;  %v1598_v54 = vmul.f32 %v1237_v41, %v1322_v2  ;;  %v1601_v56 = vmul.f32 %v1237_v41, %v1327_v3 }
  0xc1   :  { %v186_v55 = vmax.f32 %v184_v50, 1e-12  ;;  %v1608_v0 = vmul.f32 %v1237_v41, %v1332_v4  ;;  %v1613_v2 = vmul.f32 %v1237_v41, %v1338_v6  ;;  %v1618_v60 = vmul.f32 %v1237_v41, %v1349_v9 }
  0xc2   :  { %v205_v29 = vmul.f32 %v1592_v51, %v1592_v51  ;;  %v206_v57 = vmul.f32 %v1595_v23, %v1595_v23  ;;  %v207_v1 = vmul.f32 %v1598_v54, %v1598_v54  ;;  %v208_v3 = vmul.f32 %v1601_v56, %v1601_v56 }
  0xc3   :  { %1238 = vrcp.f32 %v186_v55  ;;  %v209_v61 = vmul.f32 %v1608_v0, %v1608_v0  ;;  %v1623_v4 = vmul.f32 %v1237_v41, %v1357_v11  ;;  %v210_v5 = vmul.f32 %v1613_v2, %v1613_v2  ;;  %v325_v41 = vld [vmem:[%s2134_s1 + $0x1a0] sm:$0xff]  ;;  %v326_v55 = vld [vmem:[%s2134_s1 + $0x1a8] sm:$0xff] }
  0xc4   :  { %v221_v58 = vadd.f32 %v206_v57, %v205_v29  ;;  %v211_v6 = vmul.f32 %v1618_v60, %v1618_v60  ;;  %v1049_v50 = vpack.c.bf16 %v294_v22, %v293_v15  ;;  %v277_v29 = vld [vmem:[%s2134_s1 + $0x20] sm:$0xff]  ;;  %v278_v57 = vld [vmem:[%s2134_s1 + $0x28] sm:$0xff] }
  0xc5   :  { %v212_v9 = vmul.f32 %v1623_v4, %v1623_v4  ;;  %v301_v15 = vld [vmem:[%s2134_s1 + $0xe0] sm:$0xff]  ;;  %v302_v22 = vld [vmem:[%s2134_s1 + $0xe8] sm:$0xff] }
  0xc6   :  { %v222_v59 = vadd.f32 %v221_v58, %v207_v1  ;;  %v1081_v1 = vpack.c.bf16 %v326_v55, %v325_v41  ;;  %v1051_v58 = vpack.c.bf16 %v278_v57, %v277_v29  ;;  %v333_v41 = vld [vmem:[%s2134_s1 + $0x1e0] sm:$0xff]  ;;  %v334_v55 = vld [vmem:[%s2134_s1 + $0x1e8] sm:$0xff] }
  0xc7   :  { %v285_v29 = vld [vmem:[%s2134_s1 + $0x60] sm:$0xff]  ;;  %v286_v57 = vld [vmem:[%s2134_s1 + $0x68] sm:$0xff] }
  0xc8   :  { %v223_v62 = vadd.f32 %v222_v59, %v208_v3  ;;  %v309_v3 = vld [vmem:[%s2134_s1 + $0x120] sm:$0xff]  ;;  %v310_v59 = vld [vmem:[%s2134_s1 + $0x128] sm:$0xff]  ;;  %1082 = vmatprep.subr.bf16.mxu1 %v1081_v1  ;;  %v1097_v1 = vpack.c.bf16 %v334_v55, %v333_v41 }
  0xca   :  { %v224_v42 = vadd.f32 %v223_v62, %v209_v61  ;;  %v1083_v61 = vpack.c.bf16 %v310_v59, %v309_v3  ;;  %v295_v62 = vld [vmem:[%s2134_s1 + $0xb0] sm:$0xff]  ;;  %v317_v3 = vld [vmem:[%s2134_s1 + $0x160] sm:$0xff]  ;;  %v318_v59 = vld [vmem:[%s2134_s1 + $0x168] sm:$0xff] }
  0xcc   :  { %v225_v7 = vadd.f32 %v224_v42, %v210_v5  ;;  %v296_v5 = vld [vmem:[%s2134_s1 + $0xb8] sm:$0xff]  ;;  %v327_v42 = vld [vmem:[%s2134_s1 + $0x1b0] sm:$0xff]  ;;  %1084 = vmatpush3.bf16.msra.mxu1 %v1083_v61 }
  0xcd   :  { %v1239_v8 = vpop.eup %1238  ;;  %v303_v61 = vld [vmem:[%s2134_s1 + $0xf0] sm:$0xff] }
  0xce   :  { %v226_v10 = vadd.f32 %v225_v7, %v211_v6  ;;  %v1632_v19 = vmul.f32 %v1239_v8, %v1379_v17  ;;  %v1635_v20 = vmul.f32 %v1239_v8, %v1384_v18  ;;  %v1638_v11 = vmul.f32 %v1239_v8, %v1397_v21  ;;  %v328_v7 = vld [vmem:[%s2134_s1 + $0x1b8] sm:$0xff] }
  0xcf   :  { %v1641_v24 = vmul.f32 %v1239_v8, %v1416_v28  ;;  %v1644_v12 = vmul.f32 %v1239_v8, %v1427_v33  ;;  %v1653_v21 = vmul.f32 %v1239_v8, %v1437_v37  ;;  %v1658_v33 = vmul.f32 %v1239_v8, %v1454_v46 }
  0xd0   :  { %v227_v25 = vadd.f32 %v226_v10, %v212_v9  ;;  %v213_v47 = vmul.f32 %v1632_v19, %v1632_v19  ;;  %v214_v17 = vmul.f32 %v1635_v20, %v1635_v20  ;;  %v215_v18 = vmul.f32 %v1638_v11, %v1638_v11  ;;  %v280_v9 = vld [vmem:[%s2134_s1 + $0x38] sm:$0xff] }
  0xd1   :  { %v216_v28 = vmul.f32 %v1641_v24, %v1641_v24  ;;  %v217_v27 = vmul.f32 %v1644_v12, %v1644_v12  ;;  %v1663_v34 = vmul.f32 %v1239_v8, %v1469_v52  ;;  %v218_v35 = vmul.f32 %v1653_v21, %v1653_v21  ;;  %v291_v52 = vld [vmem:[%s2134_s1 + $0x90] sm:$0xff] }
  0xd2   :  { %228 = vadd.xlane.f32.xlu1 %v227_v25  ;;  %v230_v26 = vadd.f32 %v214_v17, %v213_v47  ;;  %v219_v37 = vmul.f32 %v1658_v33, %v1658_v33  ;;  %v1045_v39 = vpack.c.bf16 %v292_v38, %v291_v52  ;;  %v1053_v6 = vpack.c.bf16 %v296_v5, %v295_v62  ;;  %v279_v8 = vld [vmem:[%s2134_s1 + $0x30] sm:$0xff]  ;;  %v312_v17 = vld [vmem:[%s2134_s1 + $0x138] sm:$0xff] }
  0xd3   :  { %v220_v63 = vmul.f32 %v1663_v34, %v1663_v34  ;;  %v1085_v10 = vpack.c.bf16 %v328_v7, %v327_v42  ;;  %v1055_v25 = vpack.c.bf16 %v280_v9, %v279_v8  ;;  %v311_v47 = vld [vmem:[%s2134_s1 + $0x130] sm:$0xff]  ;;  %v300_v38 = vld [vmem:[%s2134_s1 + $0xd8] sm:$0xff]  ;;  %v1099_v62 = vpack.c.bf16 %v318_v59, %v317_v3 }
  0xd4   :  { %v231_v30 = vadd.f32 %v230_v26, %v215_v18  ;;  %1046 = vmatprep.subr.bf16.mxu0 %v1045_v39  ;;  %v1087_v18 = vpack.c.bf16 %v312_v17, %v311_v47  ;;  %v298_v26 = vld [vmem:[%s2134_s1 + $0xc8] sm:$0xff]  ;;  %v299_v52 = vld [vmem:[%s2134_s1 + $0xd0] sm:$0xff]  ;;  %v304_v5 = vld [vmem:[%s2134_s1 + $0xf8] sm:$0xff] }
  0xd5   :  { %1048 = vmatpush3.bf16.msra.mxu0 %v1047_v44  ;;  %1086 = vmatprep.subr.bf16.mxu1 %v1085_v10  ;;  %v1061_v39 = vpack.c.bf16 %v300_v38, %v299_v52  ;;  %v1063_v44 = vpack.c.bf16 %v284_v32, %v283_v14  ;;  %v335_v42 = vld [vmem:[%s2134_s1 + $0x1f0] sm:$0xff]  ;;  %v1069_v7 = vpack.c.bf16 %v304_v5, %v303_v61  ;;  %v288_v10 = vld [vmem:[%s2134_s1 + $0x78] sm:$0xff]  ;;  %v338_v14 = vld [vmem:[%s2134_s1 + $0x208] sm:$0xff] }
  0xd6   :  { %v232_v13 = vadd.f32 %v231_v30, %v216_v28  ;;  %1050 = vmatprep.subr.bf16.mxu0 %v1049_v50  ;;  %v297_v28 = vld [vmem:[%s2134_s1 + $0xc0] sm:$0xff]  ;;  %1088 = vmatpush3.bf16.msra.mxu1 %v1087_v18  ;;  %v1065_v50 = vpack.c.bf16 %v302_v22, %v301_v15  ;;  %v287_v9 = vld [vmem:[%s2134_s1 + $0x70] sm:$0xff]  ;;  %v320_v17 = vld [vmem:[%s2134_s1 + $0x178] sm:$0xff]  ;;  %v1109_v5 = vpack.c.bf16 %v356_v48, %v355_v45 }
  0xd7   :  { %v1057_v30 = vpack.c.bf16 %v298_v26, %v297_v28  ;;  %v1071_v47 = vpack.c.bf16 %v288_v10, %v287_v9  ;;  %v353_v18 = vld [vmem:[%s2134_s1 + $0x280] sm:$0xff]  ;;  %v354_v28 = vld [vmem:[%s2134_s1 + $0x288] sm:$0xff]  ;;  %v388_v15 = vld [vmem:[%s2134_s1 + $0x398] sm:$0xff] }
  0xd8   :  { %v233_v53 = vadd.f32 %v232_v13, %v217_v27  ;;  %v329_v27 = vld [vmem:[%s2134_s1 + $0x1c0] sm:$0xff]  ;;  %v339_v3 = vld [vmem:[%s2134_s1 + $0x210] sm:$0xff]  ;;  %v340_v59 = vld [vmem:[%s2134_s1 + $0x218] sm:$0xff] }
  0xd9   :  { %1052 = vmatpush3.bf16.msra.mxu0 %v1051_v58  ;;  %v281_v13 = vld [vmem:[%s2134_s1 + $0x40] sm:$0xff]  ;;  %v1067_v58 = vpack.c.bf16 %v286_v57, %v285_v29 }
  0xda   :  { %v234_v46 = vadd.f32 %v233_v53, %v218_v35  ;;  %1054 = vmatprep.subr.bf16.mxu0 %v1053_v6  ;;  %v330_v35 = vld [vmem:[%s2134_s1 + $0x1c8] sm:$0xff]  ;;  %v336_v6 = vld [vmem:[%s2134_s1 + $0x1f8] sm:$0xff]  ;;  %v369_v32 = vld [vmem:[%s2134_s1 + $0x300] sm:$0xff] }
  0xdb   :  { %v1089_v53 = vpack.c.bf16 %v330_v35, %v329_v27  ;;  %v1101_v8 = vpack.c.bf16 %v336_v6, %v335_v42  ;;  %v1105_v27 = vpack.c.bf16 %v354_v28, %v353_v18  ;;  %v386_v35 = vld [vmem:[%s2134_s1 + $0x388] sm:$0xff]  ;;  %v357_v42 = vld [vmem:[%s2134_s1 + $0x2a0] sm:$0xff] }
  0xdc   :  { %v235_v31 = vadd.f32 %v234_v46, %v219_v37  ;;  %v282_v37 = vld [vmem:[%s2134_s1 + $0x48] sm:$0xff]  ;;  %v313_v46 = vld [vmem:[%s2134_s1 + $0x140] sm:$0xff] }
  0xdd   :  { %1056 = vmatpush3.bf16.msra.mxu0 %v1055_v25  ;;  %1090 = vmatprep.subr.bf16.mxu1 %v1089_v53  ;;  %v319_v25 = vld [vmem:[%s2134_s1 + $0x170] sm:$0xff]  ;;  %v389_v6 = vld [vmem:[%s2134_s1 + $0x3a0] sm:$0xff]  ;;  %v374_v28 = vld [vmem:[%s2134_s1 + $0x328] sm:$0xff] }
  0xde   :  { %v236_v36 = vadd.f32 %v235_v31, %v220_v63  ;;  %v1059_v63 = vpack.c.bf16 %v282_v37, %v281_v13  ;;  %v314_v31 = vld [vmem:[%s2134_s1 + $0x148] sm:$0xff]  ;;  %1058 = vmatprep.subr.bf16.mxu0 %v1057_v30  ;;  %v1103_v26 = vpack.c.bf16 %v320_v17, %v319_v25  ;;  %v385_v30 = vld [vmem:[%s2134_s1 + $0x380] sm:$0xff] }
  0xdf   :  { %v1137_v13 = vpack.c.bf16 %v386_v35, %v385_v30  ;;  %v341_v10 = vld [vmem:[%s2134_s1 + $0x220] sm:$0xff]  ;;  %v342_v25 = vld [vmem:[%s2134_s1 + $0x228] sm:$0xff]  ;;  %v391_v30 = vld [vmem:[%s2134_s1 + $0x3b0] sm:$0xff] }
  0xe0   :  { %237 = vadd.xlane.f32.xlu1 %v236_v36  ;;  %v1091_v36 = vpack.c.bf16 %v314_v31, %v313_v46  ;;  %v373_v18 = vld [vmem:[%s2134_s1 + $0x320] sm:$0xff]  ;;  %v392_v35 = vld [vmem:[%s2134_s1 + $0x3b8] sm:$0xff] }
  0xe1   :  { %1060 = vmatpush3.bf16.msra.mxu0 %v1059_v63 }
  0xe2   :  { %1092 = vmatpush3.bf16.msra.mxu1 %v1091_v36  ;;  %1062 = vmatprep.subr.bf16.mxu0 %v1061_v39 }
  0xe3   :  { %1094 = vmatprep.subr.bf16.mxu1 %v1093_v43  ;;  %v370_v43 = vld [vmem:[%s2134_s1 + $0x308] sm:$0xff] }
  0xe4   :  { %v1139_v55 = vpack.c.bf16 %v370_v43, %v369_v32 }
  0xe5   :  { %1064 = vmatpush3.bf16.msra.mxu0 %v1063_v44 }
  0xe6   :  { %1096 = vmatpush3.bf16.msra.mxu1 %v1095_v49  ;;  %1066 = vmatprep.subr.bf16.mxu0 %v1065_v50  ;;  %v387_v49 = vld [vmem:[%s2134_s1 + $0x390] sm:$0xff]  ;;  %v1107_v50 = vpack.c.bf16 %v338_v14, %v337_v16  ;;  %v362_v16 = vld [vmem:[%s2134_s1 + $0x2c8] sm:$0xff] }
  0xe7   :  { %1098 = vmatprep.subr.bf16.mxu1 %v1097_v1  ;;  %v394_v14 = vld [vmem:[%s2134_s1 + $0x3c8] sm:$0xff] }
  0xe9   :  { %1068 = vmatpush3.bf16.msra.mxu0 %v1067_v58 }
  0xea   :  { %1100 = vmatpush3.bf16.msra.mxu1 %v1099_v62  ;;  %1070 = vmatprep.subr.bf16.mxu0 %v1069_v7  ;;  %v390_v7 = vld [vmem:[%s2134_s1 + $0x3a8] sm:$0xff] }
  0xeb   :  { %1102 = vmatprep.subr.bf16.mxu1 %v1101_v8  ;;  %v1111_v8 = vpack.c.bf16 %v340_v59, %v339_v3  ;;  %v1145_v17 = vpack.c.bf16 %v390_v7, %v389_v6  ;;  %v347_v3 = vld [vmem:[%s2134_s1 + $0x250] sm:$0xff]  ;;  %v348_v59 = vld [vmem:[%s2134_s1 + $0x258] sm:$0xff] }
  0xec   :  { %v1127_v6 = vpack.c.bf16 %v348_v59, %v347_v3  ;;  %v834_v3 = vld [vmem:[%s2135_s2] ss:$0 sm:$0xff] }
  0xed   :  { %1072 = vmatpush3.bf16.msra.mxu0 %v1071_v47 }
  0xee   :  { %1104 = vmatpush3.bf16.msra.mxu1 %v1103_v26  ;;  %1106 = vmatprep.subr.bf16.mxu0 %v1105_v27  ;;  %v359_v26 = vld [vmem:[%s2134_s1 + $0x2b0] sm:$0xff]  ;;  %v360_v27 = vld [vmem:[%s2134_s1 + $0x2b8] sm:$0xff] }
  0xef   :  { %1138 = vmatprep.subr.bf16.mxu1 %v1137_v13  ;;  %v1115_v13 = vpack.c.bf16 %v342_v25, %v341_v10 }
 0x15f   :  { %v229_v37 = vpop.xlane.xlu1 %228 }
 0x160   :  { %1240 = vrsqrt.f32 %v229_v37  ;;  %vm241_vm0 = vcmp.eq.f32.partialorder %v229_v37, inf  ;;  %v244_v46 = vand.u32 2147483648, %v229_v37  ;;  %vm243_vm1 = vcmp.eq.f32.partialorder %v229_v37, 0.0 }
 0x16a   :  { %v1241_v53 = vpop.eup %1240 }
 0x16b   :  { %v240_v63 = vmul.f32 %v1241_v53, %v229_v37  ;;  %v1117_v53 = vpack.c.bf16 %v360_v27, %v359_v26  ;;  %v399_v26 = vld [vmem:[%s2134_s1 + $0x3f0] sm:$0xff]  ;;  %v400_v27 = vld [vmem:[%s2134_s1 + $0x3f8] sm:$0xff] }
 0x16d   :  { %v242_v31 = vsel %vm241_vm0, %v229_v37, %v240_v63  ;;  %v238_v36 = vpop.xlane.xlu1 %237  ;;  %v1147_v37 = vpack.c.bf16 %v374_v28, %v373_v18  ;;  %v1149_v63 = vpack.c.bf16 %v392_v35, %v391_v30  ;;  %v367_v18 = vld [vmem:[%s2134_s1 + $0x2f0] sm:$0xff]  ;;  %v368_v28 = vld [vmem:[%s2134_s1 + $0x2f8] sm:$0xff] }
 0x16e   :  { %v245_v52 = vsel %vm243_vm1, %v244_v46, %v242_v31  ;;  %1242 = vrsqrt.f32 %v238_v36  ;;  %vm248_vm2 = vcmp.eq.f32.partialorder %v238_v36, inf  ;;  %v251_v40 = vand.u32 2147483648, %v238_v36  ;;  %v343_v46 = vld [vmem:[%s2134_s1 + $0x230] sm:$0xff]  ;;  %v344_v31 = vld [vmem:[%s2134_s1 + $0x238] sm:$0xff] }
 0x16f   :  { %v253_v38 = vmax.f32 %v245_v52, 1e-12  ;;  %vm250_vm3 = vcmp.eq.f32.partialorder %v238_v36, 0.0  ;;  %v376_v52 = vld [vmem:[%s2134_s1 + $0x338] sm:$0xff]  ;;  %v1119_v48 = vpack.c.bf16 %v344_v31, %v343_v46  ;;  %v383_v46 = vld [vmem:[%s2134_s1 + $0x370] sm:$0xff] }
 0x170   :  { %v384_v31 = vld [vmem:[%s2134_s1 + $0x378] sm:$0xff] }
 0x171   :  { %1244 = vrcp.f32 %v253_v38  ;;  %v361_v38 = vld [vmem:[%s2134_s1 + $0x2c0] sm:$0xff] }
 0x178   :  { %v1243_v39 = vpop.eup %1242 }
 0x179   :  { %v247_v44 = vmul.f32 %v1243_v39, %v238_v36 }
 0x17b   :  { %v1875_v22 = vpop.eup %1244  ;;  %v249_v41 = vsel %vm248_vm2, %v238_v36, %v247_v44  ;;  %v375_v36 = vld [vmem:[%s2134_s1 + $0x330] sm:$0xff] }
 0x17c   :  { %v252_v29 = vsel %vm250_vm3, %v251_v40, %v249_v41  ;;  %v257_v57 = vmul.f32 %v1875_v22, %v1595_v23  ;;  %v259_v1 = vmul.f32 %v1875_v22, %v1601_v56  ;;  %v256_v58 = vmul.f32 %v1875_v22, %v1592_v51  ;;  %v371_v56 = vld [vmem:[%s2134_s1 + $0x310] sm:$0xff]  ;;  %v372_v51 = vld [vmem:[%s2134_s1 + $0x318] sm:$0xff]  ;;  %v393_v40 = vld [vmem:[%s2134_s1 + $0x3c0] sm:$0xff] }
 0x17d   :  { %v254_v61 = vmax.f32 %v252_v29, 1e-12  ;;  %v258_v62 = vmul.f32 %v1875_v22, %v1598_v54  ;;  %v1141_v23 = vpack.c.bf16 %v388_v15, %v387_v49  ;;  %v358_v54 = vld [vmem:[%s2134_s1 + $0x2a8] sm:$0xff]  ;;  %v1143_v9 = vpack.c.bf16 %v372_v51, %v371_v56  ;;  %v345_v41 = vld [vmem:[%s2134_s1 + $0x240] sm:$0xff]  ;;  %v363_v29 = vld [vmem:[%s2134_s1 + $0x2d0] sm:$0xff] }
 0x17e   :  { %472 = vmatprep.mubr.f32.mxu0 %v257_v57  ;;  %547 = vmatprep.mubr.f32.mxu1 %v259_v1  ;;  %v1113_v47 = vpack.c.bf16 %v358_v54, %v357_v42  ;;  %v1151_v49 = vpack.c.bf16 %v376_v52, %v375_v36  ;;  %v1121_v15 = vpack.c.bf16 %v362_v16, %v361_v38  ;;  %v396_v57 = vld [vmem:[%s2134_s1 + $0x3d8] sm:$0xff]  ;;  %v365_v56 = vld [vmem:[%s2134_s1 + $0x2e0] sm:$0xff]  ;;  %v366_v51 = vld [vmem:[%s2134_s1 + $0x2e8] sm:$0xff] }
 0x17f   :  { %1246 = vrcp.f32 %v254_v61  ;;  %473 = vmatmul.mubr.f32.vlgmr.msra.gmra.mrb[0].mxu0 %v256_v58  ;;  %548 = vmatmul.mubr.f32.vlgmr.msra.gmra.mrb[0].mxu1 %v258_v62  ;;  %v397_v42 = vld [vmem:[%s2134_s1 + $0x3e0] sm:$0xff]  ;;  %v398_v54 = vld [vmem:[%s2134_s1 + $0x3e8] sm:$0xff]  ;;  %v1129_v10 = vpack.c.bf16 %v366_v51, %v365_v56  ;;  %v1167_v52 = vpack.c.bf16 %v384_v31, %v383_v46  ;;  %v260_v38 = vmul.f32 %v1875_v22, %v1608_v0 }
 0x180   :  { %1108 = vmatpush3.bf16.msra.mxu0 %v1107_v50  ;;  %1140 = vmatpush3.bf16.msra.mxu1 %v1139_v55  ;;  %v377_v50 = vld [vmem:[%s2134_s1 + $0x340] sm:$0xff]  ;;  %v378_v55 = vld [vmem:[%s2134_s1 + $0x348] sm:$0xff]  ;;  %v1161_v25 = vpack.c.bf16 %v398_v54, %v397_v42  ;;  %v262_v16 = vmul.f32 %v1875_v22, %v1618_v60 }
 0x181   :  { %1110 = vmatprep.subr.bf16.mxu0 %v1109_v5  ;;  %1142 = vmatprep.subr.bf16.mxu1 %v1141_v23  ;;  %v1155_v58 = vpack.c.bf16 %v378_v55, %v377_v50  ;;  %v379_v5 = vld [vmem:[%s2134_s1 + $0x350] sm:$0xff]  ;;  %v380_v23 = vld [vmem:[%s2134_s1 + $0x358] sm:$0xff]  ;;  %v718_v0 = vld [vmem:[%s2136_s3] sm:$0xff] }
 0x182   :  { %v1159_v7 = vpack.c.bf16 %v380_v23, %v379_v5  ;;  %v719_v60 = vld [vmem:[%s2136_s3 + $0x8] sm:$0xff]  ;;  %v730_v50 = vld [vmem:[%s2136_s3 + $0x60] sm:$0xff] }
 0x183   :  { %v731_v55 = vld [vmem:[%s2136_s3 + $0x68] sm:$0xff] }
 0x184   :  { %1112 = vmatpush3.bf16.msra.mxu0 %v1111_v8  ;;  %1144 = vmatpush3.bf16.msra.mxu1 %v1143_v9  ;;  %v349_v8 = vld [vmem:[%s2134_s1 + $0x260] sm:$0xff]  ;;  %v350_v9 = vld [vmem:[%s2134_s1 + $0x268] sm:$0xff] }
 0x185   :  { %1114 = vmatprep.subr.bf16.mxu0 %v1113_v47  ;;  %1146 = vmatprep.subr.bf16.mxu1 %v1145_v17  ;;  %v381_v47 = vld [vmem:[%s2134_s1 + $0x360] sm:$0xff]  ;;  %v382_v17 = vld [vmem:[%s2134_s1 + $0x368] sm:$0xff]  ;;  %v1131_v30 = vpack.c.bf16 %v350_v9, %v349_v8 }
 0x186   :  { %v1163_v35 = vpack.c.bf16 %v382_v17, %v381_v47 }
 0x188   :  { %1116 = vmatpush3.bf16.msra.mxu0 %v1115_v13  ;;  %1148 = vmatpush3.bf16.msra.mxu1 %v1147_v37  ;;  %v351_v13 = vld [vmem:[%s2134_s1 + $0x270] sm:$0xff]  ;;  %v1133_v37 = vpack.c.bf16 %v368_v28, %v367_v18 }
 0x189   :  { %v1951_v39 = vpop.eup %1246  ;;  %1118 = vmatprep.subr.bf16.mxu0 %v1117_v53  ;;  %1150 = vmatprep.subr.bf16.mxu1 %v1149_v63  ;;  %v1165_v53 = vpack.c.bf16 %v400_v27, %v399_v26  ;;  %v352_v63 = vld [vmem:[%s2134_s1 + $0x278] sm:$0xff] }
 0x18a   :  { %v266_v32 = vmul.f32 %v1951_v39, %v1635_v20  ;;  %v268_v43 = vmul.f32 %v1951_v39, %v1641_v24  ;;  %v265_v44 = vmul.f32 %v1951_v39, %v1632_v19  ;;  %v267_v45 = vmul.f32 %v1951_v39, %v1638_v11  ;;  %v346_v20 = vld [vmem:[%s2134_s1 + $0x248] sm:$0xff] }
 0x18b   :  { %v261_v24 = vmul.f32 %v1875_v22, %v1613_v2  ;;  %v263_v19 = vmul.f32 %v1875_v22, %v1623_v4  ;;  %v1153_v11 = vpack.c.bf16 %v394_v14, %v393_v40  ;;  %v364_v2 = vld [vmem:[%s2134_s1 + $0x2d8] sm:$0xff]  ;;  %v395_v4 = vld [vmem:[%s2134_s1 + $0x3d0] sm:$0xff]  ;;  %v1123_v1 = vpack.c.bf16 %v346_v20, %v345_v41  ;;  %v722_v22 = vld [vmem:[%s2136_s3 + $0x20] sm:$0xff] }
 0x18c   :  { %477 = vmatprep.mubr.f32.mxu0 %v266_v32  ;;  %552 = vmatprep.mubr.f32.mxu1 %v268_v43  ;;  %v1125_v61 = vpack.c.bf16 %v364_v2, %v363_v29  ;;  %v1157_v62 = vpack.c.bf16 %v396_v57, %v395_v4  ;;  %v1135_v36 = vpack.c.bf16 %v352_v63, %v351_v13  ;;  %v727_v41 = vld [vmem:[%s2136_s3 + $0x48] sm:$0xff]  ;;  %v732_v2 = vld [vmem:[%s2136_s3 + $0x70] sm:$0xff]  ;;  %v733_v4 = vld [vmem:[%s2136_s3 + $0x78] sm:$0xff] }
 0x18d   :  { %478 = vmatmul.mubr.f32.gmra.mrb[2].mxu0 %v265_v44  ;;  %553 = vmatmul.mubr.f32.gmra.mrb[2].mxu1 %v267_v45  ;;  %v270_v40 = vmul.f32 %v1951_v39, %v1653_v21  ;;  %v272_v14 = vmul.f32 %v1951_v39, %v1663_v34  ;;  %v269_v32 = vmul.f32 %v1951_v39, %v1644_v12  ;;  %v720_v12 = vld [vmem:[%s2136_s3 + $0x10] sm:$0xff] }
 0x18e   :  { %622 = vmatprep.mubr.f32.mxu0 %v261_v24  ;;  %697 = vmatprep.mubr.f32.mxu1 %v263_v19  ;;  %v271_v43 = vmul.f32 %v1951_v39, %v1658_v33  ;;  %v1169_v21 = vpack.c.bf16 %v719_v60, %v718_v0  ;;  %v721_v33 = vld [vmem:[%s2136_s3 + $0x18] sm:$0xff]  ;;  %v723_v39 = vld [vmem:[%s2136_s3 + $0x28] sm:$0xff]  ;;  %v724_v45 = vld [vmem:[%s2136_s3 + $0x30] sm:$0xff]  ;;  %v1193_v29 = vpack.c.bf16 %v731_v55, %v730_v50 }
 0x18f   :  { %1120 = vmatpush3.bf16.msra.mxu0 %v1119_v48  ;;  %1152 = vmatpush3.bf16.msra.mxu1 %v1151_v49  ;;  %v1173_v34 = vpack.c.bf16 %v721_v33, %v720_v12  ;;  %v1177_v44 = vpack.c.bf16 %v723_v39, %v722_v22  ;;  %v725_v48 = vld [vmem:[%s2136_s3 + $0x38] sm:$0xff]  ;;  %v728_v24 = vld [vmem:[%s2136_s3 + $0x50] sm:$0xff]  ;;  %v1197_v57 = vpack.c.bf16 %v733_v4, %v732_v2  ;;  %v835_v12 = vld [vmem:[%s2137_s4] ss:$0 sm:$0xff] }
 0x190   :  { %1122 = vmatprep.subr.bf16.mxu0 %v1121_v15  ;;  %1154 = vmatprep.subr.bf16.mxu1 %v1153_v11  ;;  %v1181_v49 = vpack.c.bf16 %v725_v48, %v724_v45  ;;  %v726_v15 = vld [vmem:[%s2136_s3 + $0x40] sm:$0xff]  ;;  %v729_v19 = vld [vmem:[%s2136_s3 + $0x58] sm:$0xff] }
 0x191   :  { %v1185_v20 = vpack.c.bf16 %v727_v41, %v726_v15  ;;  %v1189_v11 = vpack.c.bf16 %v729_v19, %v728_v24 }
 0x193   :  { %1124 = vmatpush3.bf16.msra.mxu0 %v1123_v1  ;;  %1156 = vmatpush3.bf16.msra.mxu1 %v1155_v58 }
 0x194   :  { %1126 = vmatprep.subr.bf16.mxu0 %v1125_v61  ;;  %1158 = vmatprep.subr.bf16.mxu1 %v1157_v62 }
 0x197   :  { %1128 = vmatpush3.bf16.msra.mxu0 %v1127_v6  ;;  %1160 = vmatpush3.bf16.msra.mxu1 %v1159_v7 }
 0x198   :  { %1130 = vmatprep.subr.bf16.mxu0 %v1129_v10  ;;  %1162 = vmatprep.subr.bf16.mxu1 %v1161_v25 }
 0x19b   :  { %1132 = vmatpush3.bf16.msra.mxu0 %v1131_v30  ;;  %1164 = vmatpush3.bf16.msra.mxu1 %v1163_v35 }
 0x19c   :  { %1134 = vmatprep.subr.bf16.mxu0 %v1133_v37  ;;  %1166 = vmatprep.subr.bf16.mxu1 %v1165_v53 }
 0x19f   :  { %1136 = vmatpush3.bf16.msra.mxu0 %v1135_v36  ;;  %1168 = vmatpush3.bf16.msra.mxu1 %v1167_v52 }
 0x1a0   :  { %1170 = vmatprep.subr.bf16.mxu0 %v1169_v21 }
 0x1a2   :  { %623 = vmatmul.mubr.f32.vlgmr.msra.gmra.mrb[4].mxu0 %v260_v38  ;;  %698 = vmatmul.mubr.f32.vlgmr.msra.gmra.mrb[4].mxu1 %v262_v16 }
 0x1a3   :  { %627 = vmatprep.mubr.f32.mxu0 %v270_v40  ;;  %702 = vmatprep.mubr.f32.mxu1 %v272_v14 }
 0x1a4   :  { %1172 = vmatpush3.bf16.msra.mxu0 %v1169_v21 }
 0x1a5   :  { %1174 = vmatprep.subr.bf16.mxu0 %v1173_v34 }
 0x1a6   :  { %628 = vmatmul.mubr.f32.gmra.mrb[6].mxu0 %v269_v32  ;;  %703 = vmatmul.mubr.f32.gmra.mrb[6].mxu1 %v271_v43 }
 0x1a8   :  { %1176 = vmatpush3.bf16.msra.mxu0 %v1173_v34 }
 0x1a9   :  { %1178 = vmatprep.subr.bf16.mxu0 %v1177_v44 }
 0x1ac   :  { %1180 = vmatpush3.bf16.msra.mxu0 %v1177_v44 }
 0x1ad   :  { %1182 = vmatprep.subr.bf16.mxu0 %v1181_v49 }
 0x1b0   :  { %1184 = vmatpush3.bf16.msra.mxu0 %v1181_v49 }
 0x1b1   :  { %1186 = vmatprep.subr.bf16.mxu0 %v1185_v20 }
 0x1b4   :  { %1188 = vmatpush3.bf16.msra.mxu0 %v1185_v20 }
 0x1b5   :  { %1190 = vmatprep.subr.bf16.mxu0 %v1189_v11 }
 0x1b8   :  { %1192 = vmatpush3.bf16.msra.mxu0 %v1189_v11 }
 0x1b9   :  { %1194 = vmatprep.subr.bf16.mxu0 %v1193_v29 }
 0x1bc   :  { %1196 = vmatpush3.bf16.msra.mxu0 %v1193_v29 }
 0x1bd   :  { %1198 = vmatprep.subr.bf16.mxu0 %v1197_v57 }
 0x1c0   :  { %1200 = vmatpush3.bf16.msra.mxu0 %v1197_v57 }
 0x252   :  { %v868_v1 = vpop.f32.mrb[0].mxu0  ;;  %v906_v58 = vpop.f32.mrb[0].mxu1 }
 0x253   :  { %v869_v59 = vpop.f32.mrb[1].mxu0  ;;  %v907_v61 = vpop.f32.mrb[1].mxu1 }
 0x254   :  { %v870_v62 = vadd.f32 %v869_v59, %v868_v1  ;;  %v908_v5 = vadd.f32 %v907_v61, %v906_v58 }
 0x256   :  { %v475_v23 = vadd.f32 %v870_v62, %v834_v3 }
 0x258   :  { %v550_v56 = vadd.f32 %v908_v5, %v475_v23 }
 0x260   :  { %v871_v51 = vpop.f32.mrb[2].mxu0  ;;  %v909_v42 = vpop.f32.mrb[2].mxu1 }
 0x261   :  { %v872_v54 = vpop.f32.mrb[3].mxu0  ;;  %v910_v6 = vpop.f32.mrb[3].mxu1 }
 0x262   :  { %v873_v7 = vadd.f32 %v872_v54, %v871_v51  ;;  %v911_v8 = vadd.f32 %v910_v6, %v909_v42 }
 0x264   :  { %v480_v9 = vadd.f32 %v873_v7, %v834_v3 }
 0x266   :  { %v555_v10 = vadd.f32 %v911_v8, %v480_v9 }
 0x275   :  { %v944_v25 = vpop.f32.mrb[4].mxu0  ;;  %v982_v47 = vpop.f32.mrb[4].mxu1 }
 0x276   :  { %v945_v17 = vpop.f32.mrb[5].mxu0  ;;  %v983_v18 = vpop.f32.mrb[5].mxu1 }
 0x277   :  { %v946_v28 = vadd.f32 %v945_v17, %v944_v25  ;;  %v984_v26 = vadd.f32 %v983_v18, %v982_v47 }
 0x279   :  { %v625_v27 = vadd.f32 %v946_v28, %v550_v56  ;;  %v947_v30 = vpop.f32.mrb[6].mxu0  ;;  %v985_v35 = vpop.f32.mrb[6].mxu1 }
 0x27a   :  { %v948_v13 = vpop.f32.mrb[7].mxu0  ;;  %v986_v37 = vpop.f32.mrb[7].mxu1 }
 0x27b   :  { %v700_v53 = vadd.f32 %v984_v26, %v625_v27  ;;  %v949_v63 = vadd.f32 %v948_v13, %v947_v30  ;;  %v987_v46 = vadd.f32 %v986_v37, %v985_v35 }
 0x27d   :  { %v710_v31 = vmul.f32 0.70710677, %v700_v53  ;;  %v630_v36 = vadd.f32 %v949_v63, %v555_v10  ;;  %v708_v40 = vmul.f32 0.5, %v700_v53 }
 0x27f   :  { %1248 = verf.f32 %v710_v31  ;;  %v705_v52 = vadd.f32 %v987_v46, %v630_v36 }
 0x281   :  { %v711_v38 = vmul.f32 0.70710677, %v705_v52  ;;  %v709_v0 = vmul.f32 0.5, %v705_v52 }
 0x283   :  { %1250 = verf.f32 %v711_v38 }
 0x289   :  { %v1249_v16 = vpop.eup %1248 }
 0x28a   :  { %v714_v14 = vadd.f32 1.0, %v1249_v16 }
 0x28c   :  { %v716_v32 = vmul.f32 %v714_v14, %v708_v40 }
 0x28d   :  { %v1251_v43 = vpop.eup %1250 }
 0x28e   :  { %v715_v60 = vadd.f32 1.0, %v1251_v43  ;;  %1038 = vmatprep.mubr.f32.mxu0 %v716_v32 }
 0x290   :  { %v717_v21 = vmul.f32 %v715_v60, %v709_v0 }
 0x292   :  { %1039 = vmatmul.mubr.f32.vlgmr.msra.gmra.mrb[8].mxu0 %v717_v21 }
 0x365   :  { %v1040_v33 = vpop.f32.mrb[8].mxu0 }
 0x366   :  { %v813_v34 = vadd.f32 %v1040_v33, %v835_v12  ;;  %v807_v22 = vpop.f32.mrb[9].mxu0 }
 0x367   :  { %v808_v39 = vadd.f32 %v835_v12, %v807_v22 }
 0x368   :  { %817 = vst [vmem:[#allocation2 + $0x8] sm:$0xff] %v813_v34 }
 0x369   :  { %816 = vst [vmem:[#allocation2] sm:$0xff] %v808_v39 }
 0x36a   :  { %1263 = shalt.err (!%p1260_p4)
}
 0x36b   :  { %s1264_s4 = scalar_lea.hbm %s2138_s5, 256 }
 0x36c   :  { %p1265_p5 = scmp.ne.s32.totalorder %s2138_s5, %s1264_s4  ;;  %p1268_p6 = scmp.lt.u32.totalorder %s1264_s4, %s2138_s5 }
 0x36e   :  { %p1270_p7 = pnand %p1268_p6, %p1265_p5 }
 0x370   :  { %1273 = shalt.err (!%p1270_p7)
}
 0x371   :  { %s1277_s10 = smov 128   ;;  %s1278_s11 = smov 8  }
 0x372   :  { %829 = dma.vmem_to_hbm [thread:$0]  %s824_s27, 256, %s2138_s5, [#allocation3], %s1277_s10, %s1277_s10, %s1278_s11  }
 0x373   :  { %1274 = dma.done.wait [#allocation3], 256  }
 0x374   :  { %1275 = vsyncadd [#allocation3], 4294967040 }
 0x375   :  { %833 = vsyncpa [#allocation3], 1 }

// kernel: _forward_impl.2
= control target key start
LH: loop header
LB: loop body
LE: loop exit
PB: predicated region body
PF: predicated region fallthrough
CT: control target
= control target key end

     0   :  { %s24840_s0 = inlined_call_operand.vmem [shape: bf16[16,1536], index: 0, kind: input, shape index: {}]   ;;  %s24841_s1 = inlined_call_operand.vmem [shape: bf16[16,1024], index: 1, kind: input, shape index: {}]   ;;  %s24842_s2 = inlined_call_operand.vmem [shape: bf16[16,768], index: 2, kind: input, shape index: {}]   ;;  %s24843_s3 = inlined_call_operand.hbm [shape: bf16[4,1536,1280], index: 3, kind: input, shape index: {}]   ;;  %s24844_s4 = inlined_call_operand.hbm [shape: bf16[4,1024,1280], index: 4, kind: input, shape index: {}]   ;;  %s24845_s5 = inlined_call_operand.hbm [shape: bf16[4,768,1280], index: 5, kind: input, shape index: {}]   ;;  %s24846_s6 = inlined_call_operand.vmem [shape: f32[4,3,1280], index: 6, kind: input, shape index: {}]   ;;  %s24847_s7 = inlined_call_operand.vmem [shape: f32[16,1024], index: 7, kind: output, shape index: {}]  }
   0x1   :  { %24852 = sst [smem:[#allocation13_spill]] %s24844_s4 }
   0x2   :  { %12 = vsyncpa [#allocation3], 0 }
   0x3   :  { %14 = vsyncpa [#allocation3 + $0x1], 0 }
   0x4   :  { %15 = vsyncpa [#allocation5], 0 }
   0x5   :  { %17 = vsyncpa [#allocation5 + $0x1], 0  ;;  %s22007_s24 = smov 0   ;;  %s22009_s25 = smov 0  }
   0x6   :  { %s22011_s26 = smov 0   ;;  %s22013_s27 = smov 0  }
   0x7 LB: > { %24853 = sst [smem:[#allocation10_spill]] %s21956_s26  ;;  %s22026_s28 = sadd.s32 4294967295, %s21960_s27   ;;  %s21960_s27 = sphi %s22013_s27, %s24865_s27   ;;  %s21956_s26 = sphi %s22011_s26, %s24867_s26   ;;  %s21952_s25 = sphi %s22009_s25, %s24869_s25   ;;  %s21948_s24 = sphi %s22007_s24, %s24868_s24  }
   0x8   : > { %s22029_s29 = sadd.s32 1, %s21960_s27   ;;  %s93_s8 = sadd.s32 1, %s21956_s26 }
   0x9   : > { %24854 = sst [smem:[#allocation11_spill]] %s22029_s29  ;;  %s90_s30 = ssub.s32 %s21960_s27, %s22029_s29 }
   0xa   : > { %p91_p0 = scmp.eq.s32.totalorder %s90_s30, 0  ;;  %p100_p1 = scmp.ne.s32.totalorder %s21956_s26, %s21952_s25 }
   0xb   : > { %p101_p2 = scmp.eq.s32.totalorder %s21960_s27, 0  ;;  %p106_p3 = scmp.ne.s32.totalorder %s21952_s25, %s21948_s24 }
   0xc   : > { %s22039_s9 = scalar_select %p91_p0, %s21956_s26, %s93_s8  }
   0xd   : > { %p102_p4 = por %p101_p2, %p100_p1  ;;  %p107_p5 = scmp.eq.s32.totalorder %s22026_s28, 0 }
   0xe   : > { %24855 = sst [smem:[#allocation12_spill]] %s22039_s9  ;;  %p208_p6 = scmp.eq.s32.totalorder %s22026_s28, 3 }
   0xf   : > { %p22043_p7 = por %p107_p5, %p106_p3  ;;  %p18615_p8 = scmp.lt.s32.totalorder %s21960_s27, 4 }
  0x10   : > { %p22048_p9 = por %p208_p6, %p100_p1  ;;  %s22053_s12 = sand.u32 1, %s21956_s26  }
  0x11   : > { %s24856_s10 = scalar_select %p22043_p7, 1, 0 }
  0x12   : > { %s24857_s11 = scalar_select %p22048_p9, 1, 0 }
  0x13   : > { %p22055_p10 = pnand %p18615_p8, %p102_p4  ;;  %s264_s14 = sand.u32 1, %s21960_s27  }
  0x14   : > { %s18591_s15 = smul.u32 5120, %s22053_s12  ;;  %p16209_p11 = scmp.ge.s32.totalorder %s21960_s27, 1 }
  0x15   : > { %s18592_s16 = smul.u32 81920, %s21960_s27  ;;  %p312_p12 = scmp.lt.s32.totalorder %s21960_s27, 5 }
  0x16   : > { %s24859_s4 = sld [smem:[#allocation13_spill]]  ;;  %s268_s20 = scalar_lea.vmem [#allocation4], %s18591_s15 }
  0x17   : > { %s275_s21 = sshll.u32 %s268_s20, 4  ;;  %p22071_p13 = pnand %p16209_p11, %p312_p12  ;;  %s22069_s21 = int_to_ptr.vmem [resolvable:$true] %s275_s21 }
  0x18   : > { %s22075_s23 = scalar_lea.sflag [#allocation5], %s264_s14  ;;  %p22081_p1 = pneg %p22055_p10 }
  0x19   : > { %s24860_s22 = scalar_select %p22071_p13, 1, 0 }
  0x1c   : > { %s22067_s19 = scalar_lea.hbm %s24859_s4, %s18592_s16  ;;  %s21837_s16 = scalar_lea.hbm %s24859_s4, 327680 }
  0x1d   : > { %s21832_s24 = scalar_lea.hbm %s22067_s19, 81920  ;;  %p21838_p4 = scmp.lt.u32.totalorder %s22067_s19, %s24859_s4 }
  0x1e   : > { %p21833_p0 = scmp.ne.s32.totalorder %s22067_s19, %s21832_s24  ;;  %p21839_p5 = scmp.lt.u32.totalorder %s21837_s16, %s21832_s24 }
  0x1f   : > { %p21841_p8 = scmp.lt.u32.totalorder %s21832_s24, %s22067_s19 }
  0x20   : > { %p21835_p2 = pnand %p22081_p1, %p21833_p0  ;;  %p21840_p6 = por %p21839_p5, %p21838_p4 }
  0x22   : > { %p21836_p3 = pneg %p21835_p2  ;;  %p21842_p11 = por %p21841_p8, %p21840_p6 }
  0x24   : > { %p21843_p12 = pnand %p21842_p11, %p21836_p3 }
  0x26   : > { %21846 = shalt.err (!%p21843_p12)
}
  0x27   : > { %s21847_s14 = scalar_lea.vmem %s22069_s21, 81920  ;;  %s21962_s20 = smov [#allocation4]  }
  0x28   : > { %p21848_p0 = scmp.ne.s32.totalorder %s22069_s21, %s21847_s14  ;;  %s21852_s8 = sshll.u32 %s21962_s20, 4  ;;  %s21853_s8 = int_to_ptr.vmem [resolvable:$false] %s21852_s8 }
  0x29   : > { %s21854_s15 = scalar_lea.vmem %s21853_s8, 163840  ;;  %p21855_p7 = scmp.lt.s32.totalorder %s22069_s21, %s21853_s8 }
  0x2a   : > { %p21850_p2 = pnand %p21848_p0, %p22081_p1  ;;  %p21856_p13 = scmp.lt.s32.totalorder %s21854_s15, %s21847_s14 }
  0x2c   : > { %p21851_p9 = pneg %p21850_p2  ;;  %p21857_p4 = por %p21856_p13, %p21855_p7 }
  0x2e   : > { %p21858_p5 = pnand %p21857_p4, %p21851_p9 }
  0x30   : > { %21861 = shalt.err (!%p21858_p5)
}
  0x31   : > { %s21963_s24 = smov 640   ;;  %s21964_s16 = smov 40  }
  0x32   : > { %18611 = dma.hbm_to_vmem [thread:$0]  (!%p22055_p10), %s22067_s19, 81920, %s22069_s21, %s22075_s23, %s21963_s24, %s21963_s24, %s21964_s16  }
  0x33   : > { %s18589_s17 = smul.u32 7680, %s22053_s12  ;;  %s244_s26 = scalar_lea.sflag [#allocation3], %s22053_s12 }
  0x34   : > { %s18590_s18 = smul.u32 122880, %s21960_s27  ;;  %s21867_s20 = scalar_lea.hbm %s24843_s3, 491520 }
  0x35   : > { %s18593_s14 = smul.u32 3840, %s22053_s12  ;;  %s247_s4 = scalar_lea.vmem [#allocation2], %s18589_s17 }
  0x36   : > { %s22114_s15 = scalar_lea.hbm %s24843_s3, %s18590_s18  ;;  %s254_s9 = sshll.u32 %s247_s4, 4  ;;  %s22116_s9 = int_to_ptr.vmem [resolvable:$true] %s254_s9 }
  0x37   : > { %s21862_s29 = scalar_lea.hbm %s22114_s15, 122880  ;;  %p21868_p3 = scmp.lt.u32.totalorder %s22114_s15, %s24843_s3 }
  0x38   : > { %p21863_p7 = scmp.ne.s32.totalorder %s22114_s15, %s21862_s29  ;;  %p21869_p6 = scmp.lt.u32.totalorder %s21867_s20, %s21862_s29 }
  0x39   : > { %p21871_p11 = scmp.lt.u32.totalorder %s21862_s29, %s22114_s15 }
  0x3a   : > { %p21865_p9 = pnand %p21863_p7, %p22081_p1  ;;  %p21870_p8 = por %p21869_p6, %p21868_p3 }
  0x3c   : > { %p21866_p13 = pneg %p21865_p9  ;;  %p21872_p12 = por %p21871_p11, %p21870_p8 }
  0x3e   : > { %p21873_p0 = pnand %p21872_p12, %p21866_p13 }
  0x40   : > { %21876 = shalt.err (!%p21873_p0)
}
  0x41   : > { %s21877_s4 = scalar_lea.vmem %s22116_s9, 122880  ;;  %s21965_s17 = smov [#allocation2]  }
  0x42   : > { %p21878_p2 = scmp.ne.s32.totalorder %s22116_s9, %s21877_s4  ;;  %s21882_s19 = sshll.u32 %s21965_s17, 4  ;;  %s21883_s19 = int_to_ptr.vmem [resolvable:$false] %s21882_s19 }
  0x43   : > { %s21884_s21 = scalar_lea.vmem %s21883_s19, 245760  ;;  %p21885_p7 = scmp.lt.s32.totalorder %s22116_s9, %s21883_s19 }
  0x44   : > { %p21880_p4 = pnand %p21878_p2, %p22081_p1  ;;  %p21886_p9 = scmp.lt.s32.totalorder %s21884_s21, %s21877_s4 }
  0x46   : > { %p21881_p5 = pneg %p21880_p4  ;;  %p21887_p3 = por %p21886_p9, %p21885_p7 }
  0x48   : > { %p21888_p6 = pnand %p21887_p3, %p21881_p5 }
  0x4a   : > { %21891 = shalt.err (!%p21888_p6)
}
  0x4b   : > { %18608 = dma.hbm_to_vmem [thread:$0]  (!%p22055_p10), %s22114_s15, 122880, %s22116_s9, %s244_s26, %s21963_s24, %s21963_s24, %s21964_s16  }
  0x4c   : > { %s18594_s29 = smul.u32 61440, %s21960_s27  ;;  %s289_s20 = scalar_lea.vmem [#allocation6], %s18593_s14 }
  0x4d   : > { %s296_s18 = sshll.u32 %s289_s20, 4  ;;  %s21897_s9 = scalar_lea.hbm %s24845_s5, 245760  ;;  %s22148_s18 = int_to_ptr.vmem [resolvable:$true] %s296_s18 }
  0x4e   : > { %s22153_s17 = scalar_lea.hbm %s24845_s5, %s18594_s29 }
  0x4f   : > { %s21892_s19 = scalar_lea.hbm %s22153_s17, 61440  ;;  %p21898_p12 = scmp.lt.u32.totalorder %s22153_s17, %s24845_s5 }
  0x50   : > { %p21893_p13 = scmp.ne.s32.totalorder %s22153_s17, %s21892_s19  ;;  %p21899_p0 = scmp.lt.u32.totalorder %s21897_s9, %s21892_s19 }
  0x51   : > { %p21901_p4 = scmp.lt.u32.totalorder %s21892_s19, %s22153_s17 }
  0x52   : > { %p21895_p8 = pnand %p21893_p13, %p22081_p1  ;;  %p21900_p2 = por %p21899_p0, %p21898_p12 }
  0x54   : > { %p21896_p11 = pneg %p21895_p8  ;;  %p21902_p5 = por %p21901_p4, %p21900_p2 }
  0x56   : > { %p21903_p7 = pnand %p21902_p5, %p21896_p11 }
  0x58   : > { %21906 = shalt.err (!%p21903_p7)
}
  0x59   : > { %s21907_s15 = scalar_lea.vmem %s22148_s18, 61440  ;;  %s21966_s21 = smov [#allocation6]  }
  0x5a   : > { %p21908_p9 = scmp.ne.s32.totalorder %s22148_s18, %s21907_s15  ;;  %s21912_s29 = sshll.u32 %s21966_s21, 4  ;;  %s21913_s29 = int_to_ptr.vmem [resolvable:$false] %s21912_s29 }
  0x5b   : > { %s21914_s20 = scalar_lea.vmem %s21913_s29, 122880  ;;  %p21915_p13 = scmp.lt.s32.totalorder %s22148_s18, %s21913_s29 }
  0x5c   : > { %p21910_p3 = pnand %p21908_p9, %p22081_p1  ;;  %p21916_p8 = scmp.lt.s32.totalorder %s21914_s20, %s21907_s15 }
  0x5e   : > { %p21911_p6 = pneg %p21910_p3  ;;  %p21917_p12 = por %p21916_p8, %p21915_p13 }
  0x60   : > { %p21918_p0 = pnand %p21917_p12, %p21911_p6 }
  0x62   : > { %21921 = shalt.err (!%p21918_p0)
}
  0x63   : > { %18614 = dma.hbm_to_vmem [thread:$0]  (!%p22055_p10), %s22153_s17, 61440, %s22148_s18, %s22075_s23, %s21963_s24, %s21963_s24, %s21964_s16  }
  0x64   : > { %p24862_p1 = scmp.ne.s32.totalorder %s24860_s22, 0 }
  0x65   : > { %s22183_s30 = sand.u32 (!%p24862_p1), 1, %s21952_s25   ;;  %p24863_p11 = scmp.ne.s32.totalorder (!%p24862_p1), %s24856_s10, 0 }
  0x66   : > { %316 = sbr.rel (%p24862_p1) target bundleno = 2460 (0x99c), region = 48  ;;  %s319_s4 = scalar_lea.sflag (!%p24862_p1), [#allocation3], %s22183_s30 }
  0x67   : > { %s18595_s8 = smul.u32 (!%p24862_p1), 7680, %s22183_s30 }
  0x69   : > { %s22187_s19 = scalar_lea.vmem (!%p24862_p1), [#allocation2], %s18595_s8 }
  0x6d   : > { %21939 = dma.done.wait (%p24863_p11), %s319_s4, 122880  }
  0x6e   : > { %21941 = vsyncadd (%p24863_p11), %s319_s4, 4294844416  ;;  %s327_s13 = sand.u32 1, %s22026_s28   ;;  %s18596_s22 = smul.u32 5120, %s22183_s30 }
  0x6f   : > { %s328_s23 = scalar_lea.sflag [#allocation5], %s327_s13 }
  0x70   : > { %s22195_s24 = scalar_lea.vmem [#allocation4], %s18596_s22 }
  0x71   : > { %21943 = dma.done.wait (%p24863_p11), %s328_s23, 143360  }
  0x72   : > { %21945 = vsyncadd (%p24863_p11), %s328_s23, 4294823936  ;;  %v18650_v0 = vld [vmem:[%s22187_s19 + $0x4] ss:$40 sps:$4 sm:$0xff]   ;;  %v18654_v2 = vld [vmem:[%s22187_s19] ss:$40 sps:$4 sm:$0xff]   ;;  %p385_p10 = scmp.lt.s32.totalorder %s22026_s28, 3 }
  0x73   : > { %v18652_v1 = vld [vmem:[%s22187_s19 + $0xc] ss:$40 sps:$4 sm:$0xff]   ;;  %6278 = vmatprep.subr.bf16.mxu0 %v18650_v0  ;;  %v18655_v3 = vld [vmem:[%s22187_s19 + $0x8] ss:$40 sps:$4 sm:$0xff]   ;;  %v18658_v5 = vld [vmem:[%s22187_s19 + $0x5c] ss:$40 sps:$4 sm:$0xff]  }
  0x74   : > { %6536 = vmatprep.subr.bf16.mxu1 %v18652_v1  ;;  %v18656_v4 = vld [vmem:[%s22187_s19 + $0x54] ss:$40 sps:$4 sm:$0xff]   ;;  %6279 = vmatpush1.bf16.msra.mxu0 %v18654_v2  ;;  %v18660_v6 = vld [vmem:[%s22187_s19 + $0x50] ss:$40 sps:$4 sm:$0xff]   ;;  %v18662_v8 = vld [vmem:[%s22187_s19 + $0xa4] ss:$40 sps:$4 sm:$0xff]  }
  0x75   : > { %6537 = vmatpush1.bf16.msra.mxu1 %v18655_v3  ;;  %6280 = vmatprep.subr.bf16.mxu0 %v18656_v4  ;;  %v18661_v7 = vld [vmem:[%s22187_s19 + $0x58] ss:$40 sps:$4 sm:$0xff]   ;;  %v18664_v9 = vld [vmem:[%s22187_s19 + $0xac] ss:$40 sps:$4 sm:$0xff]   ;;  %v18667_v11 = vld [vmem:[%s22187_s19 + $0xa8] ss:$40 sps:$4 sm:$0xff]  }
  0x76   : > { %6538 = vmatprep.subr.bf16.mxu1 %v18658_v5  ;;  %v18666_v10 = vld [vmem:[%s22187_s19 + $0xa0] ss:$40 sps:$4 sm:$0xff]   ;;  %v18668_v12 = vld [vmem:[%s22187_s19 + $0xf4] ss:$40 sps:$4 sm:$0xff]   ;;  %v18672_v14 = vld [vmem:[%s22187_s19 + $0xf0] ss:$40 sps:$4 sm:$0xff]  }
  0x77   : > { %v18670_v13 = vld [vmem:[%s22187_s19 + $0xfc] ss:$40 sps:$4 sm:$0xff]   ;;  %v18673_v15 = vld [vmem:[%s22187_s19 + $0xf8] ss:$40 sps:$4 sm:$0xff]   ;;  %v18676_v17 = vld [vmem:[%s22187_s19 + $0x14c] ss:$40 sps:$4 sm:$0xff]  }
  0x78   : > { %6281 = vmatpush1.bf16.msra.mxu0 %v18660_v6  ;;  %v18674_v16 = vld [vmem:[%s22187_s19 + $0x144] ss:$40 sps:$4 sm:$0xff]   ;;  %v18678_v18 = vld [vmem:[%s22187_s19 + $0x140] ss:$40 sps:$4 sm:$0xff]   ;;  %v18680_v20 = vld [vmem:[%s22187_s19 + $0x194] ss:$40 sps:$4 sm:$0xff]  }
  0x79   : > { %6539 = vmatpush1.bf16.msra.mxu1 %v18661_v7  ;;  %6282 = vmatprep.subr.bf16.mxu0 %v18662_v8  ;;  %v18679_v19 = vld [vmem:[%s22187_s19 + $0x148] ss:$40 sps:$4 sm:$0xff]   ;;  %v18682_v21 = vld [vmem:[%s22187_s19 + $0x19c] ss:$40 sps:$4 sm:$0xff]   ;;  %v18685_v23 = vld [vmem:[%s22187_s19 + $0x198] ss:$40 sps:$4 sm:$0xff]  }
  0x7a   : > { %6540 = vmatprep.subr.bf16.mxu1 %v18664_v9  ;;  %v18684_v22 = vld [vmem:[%s22187_s19 + $0x190] ss:$40 sps:$4 sm:$0xff]   ;;  %v18686_v24 = vld [vmem:[%s22187_s19 + $0x1e4] ss:$40 sps:$4 sm:$0xff]   ;;  %v18690_v26 = vld [vmem:[%s22187_s19 + $0x1e0] ss:$40 sps:$4 sm:$0xff]  }
  0x7b   : > { %v18688_v25 = vld [vmem:[%s22187_s19 + $0x1ec] ss:$40 sps:$4 sm:$0xff]   ;;  %v18691_v27 = vld [vmem:[%s22187_s19 + $0x1e8] ss:$40 sps:$4 sm:$0xff]   ;;  %v18694_v29 = vld [vmem:[%s22187_s19 + $0x23c] ss:$40 sps:$4 sm:$0xff]  }
  0x7c   : > { %6283 = vmatpush1.bf16.msra.mxu0 %v18666_v10  ;;  %v18692_v28 = vld [vmem:[%s22187_s19 + $0x234] ss:$40 sps:$4 sm:$0xff]   ;;  %v18696_v30 = vld [vmem:[%s22187_s19 + $0x230] ss:$40 sps:$4 sm:$0xff]   ;;  %v18698_v32 = vld [vmem:[%s22187_s19 + $0x284] ss:$40 sps:$4 sm:$0xff]  }
  0x7d   : > { %6541 = vmatpush1.bf16.msra.mxu1 %v18667_v11  ;;  %6284 = vmatprep.subr.bf16.mxu0 %v18668_v12  ;;  %v18697_v31 = vld [vmem:[%s22187_s19 + $0x238] ss:$40 sps:$4 sm:$0xff]   ;;  %v18700_v33 = vld [vmem:[%s22187_s19 + $0x28c] ss:$40 sps:$4 sm:$0xff]   ;;  %v18703_v35 = vld [vmem:[%s22187_s19 + $0x288] ss:$40 sps:$4 sm:$0xff]  }
  0x7e   : > { %6542 = vmatprep.subr.bf16.mxu1 %v18670_v13  ;;  %v18702_v34 = vld [vmem:[%s22187_s19 + $0x280] ss:$40 sps:$4 sm:$0xff]   ;;  %v18704_v36 = vld [vmem:[%s22187_s19 + $0x2d4] ss:$40 sps:$4 sm:$0xff]   ;;  %v18708_v38 = vld [vmem:[%s22187_s19 + $0x2d0] ss:$40 sps:$4 sm:$0xff]  }
  0x7f   : > { %v18706_v37 = vld [vmem:[%s22187_s19 + $0x2dc] ss:$40 sps:$4 sm:$0xff]   ;;  %v18709_v39 = vld [vmem:[%s22187_s19 + $0x2d8] ss:$40 sps:$4 sm:$0xff]   ;;  %v18712_v41 = vld [vmem:[%s22187_s19 + $0x32c] ss:$40 sps:$4 sm:$0xff]  }
  0x80   : > { %6285 = vmatpush1.bf16.msra.mxu0 %v18672_v14  ;;  %v18710_v40 = vld [vmem:[%s22187_s19 + $0x324] ss:$40 sps:$4 sm:$0xff]   ;;  %v18714_v42 = vld [vmem:[%s22187_s19 + $0x320] ss:$40 sps:$4 sm:$0xff]   ;;  %v18716_v44 = vld [vmem:[%s22187_s19 + $0x374] ss:$40 sps:$4 sm:$0xff]  }
  0x81   : > { %6543 = vmatpush1.bf16.msra.mxu1 %v18673_v15  ;;  %6286 = vmatprep.subr.bf16.mxu0 %v18674_v16  ;;  %v18715_v43 = vld [vmem:[%s22187_s19 + $0x328] ss:$40 sps:$4 sm:$0xff]   ;;  %v18718_v45 = vld [vmem:[%s22187_s19 + $0x37c] ss:$40 sps:$4 sm:$0xff]   ;;  %v18721_v48 = vld [vmem:[%s22187_s19 + $0x378] ss:$40 sps:$4 sm:$0xff]  }
  0x82   : > { %6544 = vmatprep.subr.bf16.mxu1 %v18676_v17  ;;  %v18720_v46 = vld [vmem:[%s22187_s19 + $0x370] ss:$40 sps:$4 sm:$0xff]   ;;  %v18746_v47 = vld [vmem:[%s24840_s0 + $0x4] ss:$48 sps:$4 sm:$0xff]   ;;  %v18726_v51 = vld [vmem:[%s22187_s19 + $0x3c0] ss:$40 sps:$4 sm:$0xff]  }
  0x83   : > { %v18722_v49 = vld [vmem:[%s22187_s19 + $0x3c4] ss:$40 sps:$4 sm:$0xff]   ;;  %6310 = vmatprep.mubr.bf16.mxu0 %v18746_v47  ;;  %6568 = vmatprep.mubr.bf16.mxu1 %v18746_v47  ;;  %v18727_v52 = vld [vmem:[%s22187_s19 + $0x3c8] ss:$40 sps:$4 sm:$0xff]   ;;  %v18728_v53 = vld [vmem:[%s22187_s19 + $0x414] ss:$40 sps:$4 sm:$0xff]  }
  0x84   : > { %6287 = vmatpush1.bf16.msra.mxu0 %v18678_v18  ;;  %v18724_v50 = vld [vmem:[%s22187_s19 + $0x3cc] ss:$40 sps:$4 sm:$0xff]   ;;  %v18730_v54 = vld [vmem:[%s22187_s19 + $0x41c] ss:$40 sps:$4 sm:$0xff]   ;;  %v18732_v55 = vld [vmem:[%s22187_s19 + $0x410] ss:$40 sps:$4 sm:$0xff]  }
  0x85   : > { %6545 = vmatpush1.bf16.msra.mxu1 %v18679_v19  ;;  %6288 = vmatprep.subr.bf16.mxu0 %v18680_v20  ;;  %v18733_v56 = vld [vmem:[%s22187_s19 + $0x418] ss:$40 sps:$4 sm:$0xff]   ;;  %v18734_v57 = vld [vmem:[%s22187_s19 + $0x464] ss:$40 sps:$4 sm:$0xff]   ;;  %v18739_v60 = vld [vmem:[%s22187_s19 + $0x468] ss:$40 sps:$4 sm:$0xff]  }
  0x86   : > { %6546 = vmatprep.subr.bf16.mxu1 %v18682_v21  ;;  %v18736_v58 = vld [vmem:[%s22187_s19 + $0x46c] ss:$40 sps:$4 sm:$0xff]   ;;  %v18738_v59 = vld [vmem:[%s22187_s19 + $0x460] ss:$40 sps:$4 sm:$0xff]   ;;  %v18742_v62 = vld [vmem:[%s22187_s19 + $0x4bc] ss:$40 sps:$4 sm:$0xff]  }
  0x87   : > { %v18740_v61 = vld [vmem:[%s22187_s19 + $0x4b4] ss:$40 sps:$4 sm:$0xff]   ;;  %v18744_v63 = vld [vmem:[%s22187_s19 + $0x4b0] ss:$40 sps:$4 sm:$0xff]   ;;  %v18750_v1 = vld [vmem:[%s22187_s19 + $0x504] ss:$40 sps:$4 sm:$0xff]  }
  0x88   : > { %6289 = vmatpush1.bf16.msra.mxu0 %v18684_v22  ;;  %v18745_v0 = vld [vmem:[%s22187_s19 + $0x4b8] ss:$40 sps:$4 sm:$0xff]   ;;  %v18753_v2 = vld [vmem:[%s22187_s19 + $0x50c] ss:$40 sps:$4 sm:$0xff]   ;;  %v18751_v4 = vld [vmem:[%s22187_s19 + $0x508] ss:$40 sps:$4 sm:$0xff]  }
  0x89   : > { %6547 = vmatpush1.bf16.msra.mxu1 %v18685_v23  ;;  %6290 = vmatprep.subr.bf16.mxu0 %v18686_v24  ;;  %v18748_v3 = vld [vmem:[%s22187_s19 + $0x500] ss:$40 sps:$4 sm:$0xff]   ;;  %v18757_v6 = vld [vmem:[%s22187_s19 + $0x554] ss:$40 sps:$4 sm:$0xff]   ;;  %v18755_v8 = vld [vmem:[%s22187_s19 + $0x550] ss:$40 sps:$4 sm:$0xff]  }
  0x8a   : > { %6548 = vmatprep.subr.bf16.mxu1 %v18688_v25  ;;  %v18754_v5 = vld [vmem:[%s24840_s0] ss:$48 sps:$4 sm:$0xff]   ;;  %v18760_v7 = vld [vmem:[%s22187_s19 + $0x55c] ss:$40 sps:$4 sm:$0xff]   ;;  %v18766_v11 = vld [vmem:[%s22187_s19 + $0x5ac] ss:$40 sps:$4 sm:$0xff]  }
  0x8b   : > { %v18758_v9 = vld [vmem:[%s22187_s19 + $0x558] ss:$40 sps:$4 sm:$0xff]   ;;  %v18763_v10 = vld [vmem:[%s22187_s19 + $0x5a4] ss:$40 sps:$4 sm:$0xff]   ;;  %v18764_v13 = vld [vmem:[%s22187_s19 + $0x5a8] ss:$40 sps:$4 sm:$0xff]  }
  0x8c   : > { %6291 = vmatpush1.bf16.msra.mxu0 %v18690_v26  ;;  %v18761_v12 = vld [vmem:[%s22187_s19 + $0x5a0] ss:$40 sps:$4 sm:$0xff]   ;;  %v18769_v14 = vld [vmem:[%s22187_s19 + $0x5f4] ss:$40 sps:$4 sm:$0xff]   ;;  %v18767_v16 = vld [vmem:[%s22187_s19 + $0x5f0] ss:$40 sps:$4 sm:$0xff]  }
  0x8d   : > { %6549 = vmatpush1.bf16.msra.mxu1 %v18691_v27  ;;  %6292 = vmatprep.subr.bf16.mxu0 %v18692_v28  ;;  %v18772_v15 = vld [vmem:[%s22187_s19 + $0x5fc] ss:$40 sps:$4 sm:$0xff]   ;;  %v18770_v17 = vld [vmem:[%s22187_s19 + $0x5f8] ss:$40 sps:$4 sm:$0xff]   ;;  %v18778_v19 = vld [vmem:[%s22187_s19 + $0x64c] ss:$40 sps:$4 sm:$0xff]  }
  0x8e   : > { %6550 = vmatprep.subr.bf16.mxu1 %v18694_v29  ;;  %v18775_v18 = vld [vmem:[%s22187_s19 + $0x644] ss:$40 sps:$4 sm:$0xff]   ;;  %v18773_v20 = vld [vmem:[%s22187_s19 + $0x640] ss:$40 sps:$4 sm:$0xff]   ;;  %v18781_v22 = vld [vmem:[%s22187_s19 + $0x694] ss:$40 sps:$4 sm:$0xff]  }
  0x8f   : > { %v18776_v21 = vld [vmem:[%s22187_s19 + $0x648] ss:$40 sps:$4 sm:$0xff]   ;;  %v18784_v23 = vld [vmem:[%s22187_s19 + $0x69c] ss:$40 sps:$4 sm:$0xff]   ;;  %v18782_v25 = vld [vmem:[%s22187_s19 + $0x698] ss:$40 sps:$4 sm:$0xff]  }
  0x90   : > { %6293 = vmatpush1.bf16.msra.mxu0 %v18696_v30  ;;  %v18779_v24 = vld [vmem:[%s22187_s19 + $0x690] ss:$40 sps:$4 sm:$0xff]   ;;  %v18787_v26 = vld [vmem:[%s22187_s19 + $0x6e4] ss:$40 sps:$4 sm:$0xff]   ;;  %v18785_v28 = vld [vmem:[%s22187_s19 + $0x6e0] ss:$40 sps:$4 sm:$0xff]  }
  0x91   : > { %6551 = vmatpush1.bf16.msra.mxu1 %v18697_v31  ;;  %6294 = vmatprep.subr.bf16.mxu0 %v18698_v32  ;;  %v18790_v27 = vld [vmem:[%s22187_s19 + $0x6ec] ss:$40 sps:$4 sm:$0xff]   ;;  %v18788_v30 = vld [vmem:[%s22187_s19 + $0x6e8] ss:$40 sps:$4 sm:$0xff]   ;;  %v18796_v32 = vld [vmem:[%s22187_s19 + $0x73c] ss:$40 sps:$4 sm:$0xff]  }
  0x92   : > { %6552 = vmatprep.subr.bf16.mxu1 %v18700_v33  ;;  %v18845_v29 = vld [vmem:[%s24840_s0 + $0xc] ss:$48 sps:$4 sm:$0xff]   ;;  %v18791_v33 = vld [vmem:[%s22187_s19 + $0x730] ss:$40 sps:$4 sm:$0xff]   ;;  %s18597_s18 = smul.u32 3840, %s22183_s30  ;;  %p24864_p2 = scmp.ne.s32.totalorder %s24857_s11, 0 }
  0x93   : > { %v18793_v31 = vld [vmem:[%s22187_s19 + $0x734] ss:$40 sps:$4 sm:$0xff]  }
  0x94   : > { %6295 = vmatpush1.bf16.msra.mxu0 %v18702_v34  ;;  %v18794_v34 = vld [vmem:[%s22187_s19 + $0x738] ss:$40 sps:$4 sm:$0xff]   ;;  %v18817_v47 = vld [vmem:[%s22187_s19 + $0x874] ss:$40 sps:$4 sm:$0xff]   ;;  %s23895_s17 = scalar_lea.vmem [#allocation6], %s18597_s18 }
  0x95   : > { %6553 = vmatpush1.bf16.msra.mxu1 %v18703_v35  ;;  %6296 = vmatprep.subr.bf16.mxu0 %v18704_v36  ;;  %v18799_v35 = vld [vmem:[%s22187_s19 + $0x784] ss:$40 sps:$4 sm:$0xff]  }
  0x96   : > { %6554 = vmatprep.subr.bf16.mxu1 %v18706_v37  ;;  %v18802_v36 = vld [vmem:[%s22187_s19 + $0x78c] ss:$40 sps:$4 sm:$0xff]   ;;  %v18797_v37 = vld [vmem:[%s22187_s19 + $0x780] ss:$40 sps:$4 sm:$0xff]  }
  0x98   : > { %6297 = vmatpush1.bf16.msra.mxu0 %v18708_v38  ;;  %v18800_v38 = vld [vmem:[%s22187_s19 + $0x788] ss:$40 sps:$4 sm:$0xff]  }
  0x99   : > { %6555 = vmatpush1.bf16.msra.mxu1 %v18709_v39  ;;  %6298 = vmatprep.subr.bf16.mxu0 %v18710_v40  ;;  %v18805_v39 = vld [vmem:[%s22187_s19 + $0x7d4] ss:$40 sps:$4 sm:$0xff]  }
  0x9a   : > { %6556 = vmatprep.subr.bf16.mxu1 %v18712_v41  ;;  %v18808_v40 = vld [vmem:[%s22187_s19 + $0x7dc] ss:$40 sps:$4 sm:$0xff]   ;;  %v18803_v41 = vld [vmem:[%s22187_s19 + $0x7d0] ss:$40 sps:$4 sm:$0xff]  }
  0x9c   : > { %6299 = vmatpush1.bf16.msra.mxu0 %v18714_v42  ;;  %v18806_v42 = vld [vmem:[%s22187_s19 + $0x7d8] ss:$40 sps:$4 sm:$0xff]  }
  0x9d   : > { %6557 = vmatpush1.bf16.msra.mxu1 %v18715_v43  ;;  %6300 = vmatprep.subr.bf16.mxu0 %v18716_v44  ;;  %v18811_v43 = vld [vmem:[%s22187_s19 + $0x824] ss:$40 sps:$4 sm:$0xff]  }
  0x9e   : > { %6558 = vmatprep.subr.bf16.mxu1 %v18718_v45  ;;  %v18814_v44 = vld [vmem:[%s22187_s19 + $0x82c] ss:$40 sps:$4 sm:$0xff]   ;;  %v18809_v45 = vld [vmem:[%s22187_s19 + $0x820] ss:$40 sps:$4 sm:$0xff]  }
  0xa0   : > { %6301 = vmatpush1.bf16.msra.mxu0 %v18720_v46  ;;  %v18812_v46 = vld [vmem:[%s22187_s19 + $0x828] ss:$40 sps:$4 sm:$0xff]  }
  0xa1   : > { %6559 = vmatpush1.bf16.msra.mxu1 %v18721_v48  ;;  %6302 = vmatprep.subr.bf16.mxu0 %v18722_v49  ;;  %v18820_v48 = vld [vmem:[%s22187_s19 + $0x87c] ss:$40 sps:$4 sm:$0xff]   ;;  %v18815_v49 = vld [vmem:[%s22187_s19 + $0x870] ss:$40 sps:$4 sm:$0xff]  }
  0xa2   : > { %6560 = vmatprep.subr.bf16.mxu1 %v18724_v50  ;;  %v18818_v50 = vld [vmem:[%s22187_s19 + $0x878] ss:$40 sps:$4 sm:$0xff]  }
  0xa4   : > { %6303 = vmatpush1.bf16.msra.mxu0 %v18726_v51  ;;  %v18823_v51 = vld [vmem:[%s22187_s19 + $0x8c4] ss:$40 sps:$4 sm:$0xff]  }
  0xa5   : > { %6561 = vmatpush1.bf16.msra.mxu1 %v18727_v52  ;;  %6304 = vmatprep.subr.bf16.mxu0 %v18728_v53  ;;  %v18826_v52 = vld [vmem:[%s22187_s19 + $0x8cc] ss:$40 sps:$4 sm:$0xff]   ;;  %v18821_v53 = vld [vmem:[%s22187_s19 + $0x8c0] ss:$40 sps:$4 sm:$0xff]  }
  0xa6   : > { %6562 = vmatprep.subr.bf16.mxu1 %v18730_v54  ;;  %v18824_v54 = vld [vmem:[%s22187_s19 + $0x8c8] ss:$40 sps:$4 sm:$0xff]  }
  0xa8   : > { %6305 = vmatpush1.bf16.msra.mxu0 %v18732_v55  ;;  %v18829_v55 = vld [vmem:[%s22187_s19 + $0x914] ss:$40 sps:$4 sm:$0xff]  }
  0xa9   : > { %6563 = vmatpush1.bf16.msra.mxu1 %v18733_v56  ;;  %6306 = vmatprep.subr.bf16.mxu0 %v18734_v57  ;;  %v18832_v56 = vld [vmem:[%s22187_s19 + $0x91c] ss:$40 sps:$4 sm:$0xff]   ;;  %v18827_v57 = vld [vmem:[%s22187_s19 + $0x910] ss:$40 sps:$4 sm:$0xff]  }
  0xaa   : > { %6564 = vmatprep.subr.bf16.mxu1 %v18736_v58  ;;  %v18830_v58 = vld [vmem:[%s22187_s19 + $0x918] ss:$40 sps:$4 sm:$0xff]  }
  0xac   : > { %6307 = vmatpush1.bf16.msra.mxu0 %v18738_v59  ;;  %v18835_v59 = vld [vmem:[%s22187_s19 + $0x964] ss:$40 sps:$4 sm:$0xff]  }
  0xad   : > { %6565 = vmatpush1.bf16.msra.mxu1 %v18739_v60  ;;  %6308 = vmatprep.subr.bf16.mxu0 %v18740_v61  ;;  %v18838_v60 = vld [vmem:[%s22187_s19 + $0x96c] ss:$40 sps:$4 sm:$0xff]   ;;  %v18833_v61 = vld [vmem:[%s22187_s19 + $0x960] ss:$40 sps:$4 sm:$0xff]  }
  0xae   : > { %6566 = vmatprep.subr.bf16.mxu1 %v18742_v62  ;;  %v18836_v62 = vld [vmem:[%s22187_s19 + $0x968] ss:$40 sps:$4 sm:$0xff]  }
  0xb0   : > { %6309 = vmatpush1.bf16.msra.mxu0 %v18744_v63  ;;  %v18841_v63 = vld [vmem:[%s22187_s19 + $0x9b4] ss:$40 sps:$4 sm:$0xff]  }
  0xb1   : > { %6567 = vmatpush1.bf16.msra.mxu1 %v18745_v0  ;;  %6321 = vmatprep.subr.bf16.mxu0 %v18750_v1  ;;  %v18844_v0 = vld [vmem:[%s22187_s19 + $0x9bc] ss:$40 sps:$4 sm:$0xff]   ;;  %v18839_v1 = vld [vmem:[%s22187_s19 + $0x9b0] ss:$40 sps:$4 sm:$0xff]  }
  0xb2   : > { %6579 = vmatprep.subr.bf16.mxu1 %v18753_v2  ;;  %v18842_v2 = vld [vmem:[%s22187_s19 + $0x9b8] ss:$40 sps:$4 sm:$0xff]  }
  0xb3   : > { %6311 = vmatmul.mubr.bf16.vlgmr.msra.gmra.mrb[0].mxu0 %v18754_v5 }
  0xb4   : > { %6569 = vmatmul.mubr.bf16.vlgmr.msra.gmra.mrb[0].mxu1 %v18754_v5  ;;  %6322 = vmatpush1.bf16.msra.mxu0 %v18748_v3  ;;  %v18849_v3 = vld [vmem:[%s22187_s19 + $0xa04] ss:$40 sps:$4 sm:$0xff]   ;;  %v18847_v5 = vld [vmem:[%s22187_s19 + $0xa00] ss:$40 sps:$4 sm:$0xff]  }
  0xb5   : > { %6580 = vmatpush1.bf16.msra.mxu1 %v18751_v4  ;;  %6323 = vmatprep.subr.bf16.mxu0 %v18757_v6  ;;  %v18852_v4 = vld [vmem:[%s22187_s19 + $0xa0c] ss:$40 sps:$4 sm:$0xff]   ;;  %v18850_v6 = vld [vmem:[%s22187_s19 + $0xa08] ss:$40 sps:$4 sm:$0xff]  }
  0xb6   : > { %6581 = vmatprep.subr.bf16.mxu1 %v18760_v7  ;;  %6353 = vmatprep.mubr.bf16.mxu0 %v18845_v29  ;;  %v18853_v7 = vld [vmem:[%s24840_s0 + $0x8] ss:$48 sps:$4 sm:$0xff]  }
  0xb7   : > { %6611 = vmatprep.mubr.bf16.mxu1 %v18845_v29  ;;  %v18886_v29 = vld [vmem:[%s22187_s19 + $0xbe4] ss:$40 sps:$4 sm:$0xff]  }
  0xb8   : > { %6324 = vmatpush1.bf16.msra.mxu0 %v18755_v8  ;;  %v18856_v8 = vld [vmem:[%s22187_s19 + $0xa54] ss:$40 sps:$4 sm:$0xff]  }
  0xb9   : > { %6582 = vmatpush1.bf16.msra.mxu1 %v18758_v9  ;;  %6325 = vmatprep.subr.bf16.mxu0 %v18763_v10  ;;  %v18859_v9 = vld [vmem:[%s22187_s19 + $0xa5c] ss:$40 sps:$4 sm:$0xff]   ;;  %v18854_v10 = vld [vmem:[%s22187_s19 + $0xa50] ss:$40 sps:$4 sm:$0xff]  }
  0xba   : > { %6583 = vmatprep.subr.bf16.mxu1 %v18766_v11  ;;  %v18944_v11 = vld [vmem:[%s24840_s0 + $0x14] ss:$48 sps:$4 sm:$0xff]  }
  0xbc   : > { %6326 = vmatpush1.bf16.msra.mxu0 %v18761_v12  ;;  %v18857_v12 = vld [vmem:[%s22187_s19 + $0xa58] ss:$40 sps:$4 sm:$0xff]  }
  0xbd   : > { %6584 = vmatpush1.bf16.msra.mxu1 %v18764_v13  ;;  %6327 = vmatprep.subr.bf16.mxu0 %v18769_v14  ;;  %v18862_v13 = vld [vmem:[%s22187_s19 + $0xaa4] ss:$40 sps:$4 sm:$0xff]  }
  0xbe   : > { %6585 = vmatprep.subr.bf16.mxu1 %v18772_v15  ;;  %v18865_v14 = vld [vmem:[%s22187_s19 + $0xaac] ss:$40 sps:$4 sm:$0xff]   ;;  %v18860_v15 = vld [vmem:[%s22187_s19 + $0xaa0] ss:$40 sps:$4 sm:$0xff]  }
  0xc0   : > { %6328 = vmatpush1.bf16.msra.mxu0 %v18767_v16  ;;  %v18863_v16 = vld [vmem:[%s22187_s19 + $0xaa8] ss:$40 sps:$4 sm:$0xff]  }
  0xc1   : > { %6586 = vmatpush1.bf16.msra.mxu1 %v18770_v17  ;;  %6329 = vmatprep.subr.bf16.mxu0 %v18775_v18  ;;  %v18868_v17 = vld [vmem:[%s22187_s19 + $0xaf4] ss:$40 sps:$4 sm:$0xff]  }
  0xc2   : > { %6587 = vmatprep.subr.bf16.mxu1 %v18778_v19  ;;  %v18871_v18 = vld [vmem:[%s22187_s19 + $0xafc] ss:$40 sps:$4 sm:$0xff]   ;;  %v18866_v19 = vld [vmem:[%s22187_s19 + $0xaf0] ss:$40 sps:$4 sm:$0xff]  }
  0xc4   : > { %6330 = vmatpush1.bf16.msra.mxu0 %v18773_v20  ;;  %v18869_v20 = vld [vmem:[%s22187_s19 + $0xaf8] ss:$40 sps:$4 sm:$0xff]  }
  0xc5   : > { %6588 = vmatpush1.bf16.msra.mxu1 %v18776_v21  ;;  %6331 = vmatprep.subr.bf16.mxu0 %v18781_v22  ;;  %v18874_v21 = vld [vmem:[%s22187_s19 + $0xb44] ss:$40 sps:$4 sm:$0xff]  }
  0xc6   : > { %6589 = vmatprep.subr.bf16.mxu1 %v18784_v23  ;;  %v18877_v22 = vld [vmem:[%s22187_s19 + $0xb4c] ss:$40 sps:$4 sm:$0xff]   ;;  %v18872_v23 = vld [vmem:[%s22187_s19 + $0xb40] ss:$40 sps:$4 sm:$0xff]  }
  0xc8   : > { %6332 = vmatpush1.bf16.msra.mxu0 %v18779_v24  ;;  %v18875_v24 = vld [vmem:[%s22187_s19 + $0xb48] ss:$40 sps:$4 sm:$0xff]  }
  0xc9   : > { %6590 = vmatpush1.bf16.msra.mxu1 %v18782_v25  ;;  %6333 = vmatprep.subr.bf16.mxu0 %v18787_v26  ;;  %v18880_v25 = vld [vmem:[%s22187_s19 + $0xb94] ss:$40 sps:$4 sm:$0xff]  }
  0xca   : > { %6591 = vmatprep.subr.bf16.mxu1 %v18790_v27  ;;  %v18883_v26 = vld [vmem:[%s22187_s19 + $0xb9c] ss:$40 sps:$4 sm:$0xff]   ;;  %v18878_v27 = vld [vmem:[%s22187_s19 + $0xb90] ss:$40 sps:$4 sm:$0xff]  }
  0xcc   : > { %6334 = vmatpush1.bf16.msra.mxu0 %v18785_v28  ;;  %v18881_v28 = vld [vmem:[%s22187_s19 + $0xb98] ss:$40 sps:$4 sm:$0xff]  }
  0xcd   : > { %6592 = vmatpush1.bf16.msra.mxu1 %v18788_v30  ;;  %6335 = vmatprep.subr.bf16.mxu0 %v18793_v31  ;;  %v18889_v30 = vld [vmem:[%s22187_s19 + $0xbec] ss:$40 sps:$4 sm:$0xff]   ;;  %v18884_v31 = vld [vmem:[%s22187_s19 + $0xbe0] ss:$40 sps:$4 sm:$0xff]  }
  0xce   : > { %6593 = vmatprep.subr.bf16.mxu1 %v18796_v32  ;;  %v18887_v32 = vld [vmem:[%s22187_s19 + $0xbe8] ss:$40 sps:$4 sm:$0xff]  }
  0xd0   : > { %6336 = vmatpush1.bf16.msra.mxu0 %v18791_v33  ;;  %v18892_v33 = vld [vmem:[%s22187_s19 + $0xc34] ss:$40 sps:$4 sm:$0xff]  }
  0xd1   : > { %6594 = vmatpush1.bf16.msra.mxu1 %v18794_v34  ;;  %6337 = vmatprep.subr.bf16.mxu0 %v18799_v35  ;;  %v18895_v34 = vld [vmem:[%s22187_s19 + $0xc3c] ss:$40 sps:$4 sm:$0xff]   ;;  %v18890_v35 = vld [vmem:[%s22187_s19 + $0xc30] ss:$40 sps:$4 sm:$0xff]  }
  0xd2   : > { %6595 = vmatprep.subr.bf16.mxu1 %v18802_v36  ;;  %v18893_v36 = vld [vmem:[%s22187_s19 + $0xc38] ss:$40 sps:$4 sm:$0xff]  }
  0xd4   : > { %6338 = vmatpush1.bf16.msra.mxu0 %v18797_v37  ;;  %v18898_v37 = vld [vmem:[%s22187_s19 + $0xc84] ss:$40 sps:$4 sm:$0xff]  }
  0xd5   : > { %6596 = vmatpush1.bf16.msra.mxu1 %v18800_v38  ;;  %6339 = vmatprep.subr.bf16.mxu0 %v18805_v39  ;;  %v18901_v38 = vld [vmem:[%s22187_s19 + $0xc8c] ss:$40 sps:$4 sm:$0xff]   ;;  %v18896_v39 = vld [vmem:[%s22187_s19 + $0xc80] ss:$40 sps:$4 sm:$0xff]  }
  0xd6   : > { %6597 = vmatprep.subr.bf16.mxu1 %v18808_v40  ;;  %v18899_v40 = vld [vmem:[%s22187_s19 + $0xc88] ss:$40 sps:$4 sm:$0xff]  }
  0xd8   : > { %6340 = vmatpush1.bf16.msra.mxu0 %v18803_v41  ;;  %v18904_v41 = vld [vmem:[%s22187_s19 + $0xcd4] ss:$40 sps:$4 sm:$0xff]  }
  0xd9   : > { %6598 = vmatpush1.bf16.msra.mxu1 %v18806_v42  ;;  %6341 = vmatprep.subr.bf16.mxu0 %v18811_v43  ;;  %v18907_v42 = vld [vmem:[%s22187_s19 + $0xcdc] ss:$40 sps:$4 sm:$0xff]   ;;  %v18902_v43 = vld [vmem:[%s22187_s19 + $0xcd0] ss:$40 sps:$4 sm:$0xff]  }
  0xda   : > { %6599 = vmatprep.subr.bf16.mxu1 %v18814_v44  ;;  %v18905_v44 = vld [vmem:[%s22187_s19 + $0xcd8] ss:$40 sps:$4 sm:$0xff]  }
  0xdc   : > { %6342 = vmatpush1.bf16.msra.mxu0 %v18809_v45  ;;  %v18910_v45 = vld [vmem:[%s22187_s19 + $0xd24] ss:$40 sps:$4 sm:$0xff]  }
  0xdd   : > { %6600 = vmatpush1.bf16.msra.mxu1 %v18812_v46  ;;  %6343 = vmatprep.subr.bf16.mxu0 %v18817_v47  ;;  %v18913_v46 = vld [vmem:[%s22187_s19 + $0xd2c] ss:$40 sps:$4 sm:$0xff]   ;;  %v18908_v47 = vld [vmem:[%s22187_s19 + $0xd20] ss:$40 sps:$4 sm:$0xff]  }
  0xde   : > { %6601 = vmatprep.subr.bf16.mxu1 %v18820_v48  ;;  %v18911_v48 = vld [vmem:[%s22187_s19 + $0xd28] ss:$40 sps:$4 sm:$0xff]  }
  0xe0   : > { %6344 = vmatpush1.bf16.msra.mxu0 %v18815_v49  ;;  %v18916_v49 = vld [vmem:[%s22187_s19 + $0xd74] ss:$40 sps:$4 sm:$0xff]  }
  0xe1   : > { %6602 = vmatpush1.bf16.msra.mxu1 %v18818_v50  ;;  %6345 = vmatprep.subr.bf16.mxu0 %v18823_v51  ;;  %v18919_v50 = vld [vmem:[%s22187_s19 + $0xd7c] ss:$40 sps:$4 sm:$0xff]   ;;  %v18914_v51 = vld [vmem:[%s22187_s19 + $0xd70] ss:$40 sps:$4 sm:$0xff]  }
  0xe2   : > { %6603 = vmatprep.subr.bf16.mxu1 %v18826_v52  ;;  %v18917_v52 = vld [vmem:[%s22187_s19 + $0xd78] ss:$40 sps:$4 sm:$0xff]  }
  0xe4   : > { %6346 = vmatpush1.bf16.msra.mxu0 %v18821_v53  ;;  %v18922_v53 = vld [vmem:[%s22187_s19 + $0xdc4] ss:$40 sps:$4 sm:$0xff]  }
  0xe5   : > { %6604 = vmatpush1.bf16.msra.mxu1 %v18824_v54  ;;  %6347 = vmatprep.subr.bf16.mxu0 %v18829_v55  ;;  %v18925_v54 = vld [vmem:[%s22187_s19 + $0xdcc] ss:$40 sps:$4 sm:$0xff]   ;;  %v18920_v55 = vld [vmem:[%s22187_s19 + $0xdc0] ss:$40 sps:$4 sm:$0xff]  }
  0xe6   : > { %6605 = vmatprep.subr.bf16.mxu1 %v18832_v56  ;;  %v18923_v56 = vld [vmem:[%s22187_s19 + $0xdc8] ss:$40 sps:$4 sm:$0xff]  }
  0xe8   : > { %6348 = vmatpush1.bf16.msra.mxu0 %v18827_v57  ;;  %v18928_v57 = vld [vmem:[%s22187_s19 + $0xe14] ss:$40 sps:$4 sm:$0xff]  }
  0xe9   : > { %6606 = vmatpush1.bf16.msra.mxu1 %v18830_v58  ;;  %6349 = vmatprep.subr.bf16.mxu0 %v18835_v59  ;;  %v18931_v58 = vld [vmem:[%s22187_s19 + $0xe1c] ss:$40 sps:$4 sm:$0xff]   ;;  %v18926_v59 = vld [vmem:[%s22187_s19 + $0xe10] ss:$40 sps:$4 sm:$0xff]  }
  0xea   : > { %6607 = vmatprep.subr.bf16.mxu1 %v18838_v60  ;;  %v18929_v60 = vld [vmem:[%s22187_s19 + $0xe18] ss:$40 sps:$4 sm:$0xff]  }
  0xec   : > { %6350 = vmatpush1.bf16.msra.mxu0 %v18833_v61  ;;  %v18934_v61 = vld [vmem:[%s22187_s19 + $0xe64] ss:$40 sps:$4 sm:$0xff]  }
  0xed   : > { %6608 = vmatpush1.bf16.msra.mxu1 %v18836_v62  ;;  %6351 = vmatprep.subr.bf16.mxu0 %v18841_v63  ;;  %v18937_v62 = vld [vmem:[%s22187_s19 + $0xe6c] ss:$40 sps:$4 sm:$0xff]   ;;  %v18932_v63 = vld [vmem:[%s22187_s19 + $0xe60] ss:$40 sps:$4 sm:$0xff]  }
  0xee   : > { %6609 = vmatprep.subr.bf16.mxu1 %v18844_v0  ;;  %v18935_v0 = vld [vmem:[%s22187_s19 + $0xe68] ss:$40 sps:$4 sm:$0xff]  }
  0xf0   : > { %6352 = vmatpush1.bf16.msra.mxu0 %v18839_v1  ;;  %v18940_v1 = vld [vmem:[%s22187_s19 + $0xeb4] ss:$40 sps:$4 sm:$0xff]  }
  0xf1   : > { %6610 = vmatpush1.bf16.msra.mxu1 %v18842_v2  ;;  %6364 = vmatprep.subr.bf16.mxu0 %v18849_v3  ;;  %v18943_v2 = vld [vmem:[%s22187_s19 + $0xebc] ss:$40 sps:$4 sm:$0xff]   ;;  %v18938_v3 = vld [vmem:[%s22187_s19 + $0xeb0] ss:$40 sps:$4 sm:$0xff]  }
  0xf2   : > { %6622 = vmatprep.subr.bf16.mxu1 %v18852_v4  ;;  %v18941_v4 = vld [vmem:[%s22187_s19 + $0xeb8] ss:$40 sps:$4 sm:$0xff]  }
  0xf3   : > { %6354 = vmatmul.mubr.bf16.vlgmr.msra.gmra.mrb[0].mxu0 %v18853_v7 }
  0xf4   : > { %6612 = vmatmul.mubr.bf16.vlgmr.msra.gmra.mrb[0].mxu1 %v18853_v7  ;;  %6365 = vmatpush1.bf16.msra.mxu0 %v18847_v5  ;;  %v18948_v5 = vld [vmem:[%s22187_s19 + $0xf04] ss:$40 sps:$4 sm:$0xff]   ;;  %v18946_v7 = vld [vmem:[%s22187_s19 + $0xf00] ss:$40 sps:$4 sm:$0xff]  }
  0xf5   : > { %6623 = vmatpush1.bf16.msra.mxu1 %v18850_v6  ;;  %6366 = vmatprep.subr.bf16.mxu0 %v18856_v8  ;;  %v18951_v6 = vld [vmem:[%s22187_s19 + $0xf0c] ss:$40 sps:$4 sm:$0xff]   ;;  %v18949_v8 = vld [vmem:[%s22187_s19 + $0xf08] ss:$40 sps:$4 sm:$0xff]  }
  0xf6   : > { %6624 = vmatprep.subr.bf16.mxu1 %v18859_v9  ;;  %6396 = vmatprep.mubr.bf16.mxu0 %v18944_v11  ;;  %v18952_v9 = vld [vmem:[%s24840_s0 + $0x10] ss:$48 sps:$4 sm:$0xff]  }
  0xf7   : > { %6654 = vmatprep.mubr.bf16.mxu1 %v18944_v11  ;;  %v18958_v11 = vld [vmem:[%s22187_s19 + $0xf5c] ss:$40 sps:$4 sm:$0xff]  }
  0xf8   : > { %6367 = vmatpush1.bf16.msra.mxu0 %v18854_v10  ;;  %v18955_v10 = vld [vmem:[%s22187_s19 + $0xf54] ss:$40 sps:$4 sm:$0xff]  }
  0xf9   : > { %6625 = vmatpush1.bf16.msra.mxu1 %v18857_v12  ;;  %6368 = vmatprep.subr.bf16.mxu0 %v18862_v13  ;;  %v19043_v12 = vld [vmem:[%s24840_s0 + $0x1c] ss:$48 sps:$4 sm:$0xff]   ;;  %v18953_v13 = vld [vmem:[%s22187_s19 + $0xf50] ss:$40 sps:$4 sm:$0xff]  }
  0xfa   : > { %6626 = vmatprep.subr.bf16.mxu1 %v18865_v14  ;;  %v18956_v14 = vld [vmem:[%s22187_s19 + $0xf58] ss:$40 sps:$4 sm:$0xff]  }
  0xfc   : > { %6369 = vmatpush1.bf16.msra.mxu0 %v18860_v15  ;;  %v18961_v15 = vld [vmem:[%s22187_s19 + $0xfa4] ss:$40 sps:$4 sm:$0xff]  }
  0xfd   : > { %6627 = vmatpush1.bf16.msra.mxu1 %v18863_v16  ;;  %6370 = vmatprep.subr.bf16.mxu0 %v18868_v17  ;;  %v18964_v16 = vld [vmem:[%s22187_s19 + $0xfac] ss:$40 sps:$4 sm:$0xff]   ;;  %v18959_v17 = vld [vmem:[%s22187_s19 + $0xfa0] ss:$40 sps:$4 sm:$0xff]  }
  0xfe   : > { %6628 = vmatprep.subr.bf16.mxu1 %v18871_v18  ;;  %v18962_v18 = vld [vmem:[%s22187_s19 + $0xfa8] ss:$40 sps:$4 sm:$0xff]  }
 0x100   : > { %6371 = vmatpush1.bf16.msra.mxu0 %v18866_v19  ;;  %v18967_v19 = vld [vmem:[%s22187_s19 + $0xff4] ss:$40 sps:$4 sm:$0xff]  }
 0x101   : > { %6629 = vmatpush1.bf16.msra.mxu1 %v18869_v20  ;;  %6372 = vmatprep.subr.bf16.mxu0 %v18874_v21  ;;  %v18970_v20 = vld [vmem:[%s22187_s19 + $0xffc] ss:$40 sps:$4 sm:$0xff]   ;;  %v18965_v21 = vld [vmem:[%s22187_s19 + $0xff0] ss:$40 sps:$4 sm:$0xff]  }
 0x102   : > { %6630 = vmatprep.subr.bf16.mxu1 %v18877_v22  ;;  %v18968_v22 = vld [vmem:[%s22187_s19 + $0xff8] ss:$40 sps:$4 sm:$0xff]  }
 0x104   : > { %6373 = vmatpush1.bf16.msra.mxu0 %v18872_v23  ;;  %v18973_v23 = vld [vmem:[%s22187_s19 + $0x1044] ss:$40 sps:$4 sm:$0xff]  }
 0x105   : > { %6631 = vmatpush1.bf16.msra.mxu1 %v18875_v24  ;;  %6374 = vmatprep.subr.bf16.mxu0 %v18880_v25  ;;  %v18976_v24 = vld [vmem:[%s22187_s19 + $0x104c] ss:$40 sps:$4 sm:$0xff]   ;;  %v18971_v25 = vld [vmem:[%s22187_s19 + $0x1040] ss:$40 sps:$4 sm:$0xff]  }
 0x106   : > { %6632 = vmatprep.subr.bf16.mxu1 %v18883_v26  ;;  %v18974_v26 = vld [vmem:[%s22187_s19 + $0x1048] ss:$40 sps:$4 sm:$0xff]  }
 0x108   : > { %6375 = vmatpush1.bf16.msra.mxu0 %v18878_v27  ;;  %v18979_v27 = vld [vmem:[%s22187_s19 + $0x1094] ss:$40 sps:$4 sm:$0xff]  }
 0x109   : > { %6633 = vmatpush1.bf16.msra.mxu1 %v18881_v28  ;;  %6376 = vmatprep.subr.bf16.mxu0 %v18886_v29  ;;  %v18982_v28 = vld [vmem:[%s22187_s19 + $0x109c] ss:$40 sps:$4 sm:$0xff]   ;;  %v18977_v29 = vld [vmem:[%s22187_s19 + $0x1090] ss:$40 sps:$4 sm:$0xff]  }
 0x10a   : > { %6634 = vmatprep.subr.bf16.mxu1 %v18889_v30  ;;  %v18980_v30 = vld [vmem:[%s22187_s19 + $0x1098] ss:$40 sps:$4 sm:$0xff]  }
 0x10c   : > { %6377 = vmatpush1.bf16.msra.mxu0 %v18884_v31  ;;  %v18985_v31 = vld [vmem:[%s22187_s19 + $0x10e4] ss:$40 sps:$4 sm:$0xff]  }
 0x10d   : > { %6635 = vmatpush1.bf16.msra.mxu1 %v18887_v32  ;;  %6378 = vmatprep.subr.bf16.mxu0 %v18892_v33  ;;  %v18988_v32 = vld [vmem:[%s22187_s19 + $0x10ec] ss:$40 sps:$4 sm:$0xff]   ;;  %v18983_v33 = vld [vmem:[%s22187_s19 + $0x10e0] ss:$40 sps:$4 sm:$0xff]  }
 0x10e   : > { %6636 = vmatprep.subr.bf16.mxu1 %v18895_v34  ;;  %v18986_v34 = vld [vmem:[%s22187_s19 + $0x10e8] ss:$40 sps:$4 sm:$0xff]  }
 0x110   : > { %6379 = vmatpush1.bf16.msra.mxu0 %v18890_v35  ;;  %v18991_v35 = vld [vmem:[%s22187_s19 + $0x1134] ss:$40 sps:$4 sm:$0xff]  }
 0x111   : > { %6637 = vmatpush1.bf16.msra.mxu1 %v18893_v36  ;;  %6380 = vmatprep.subr.bf16.mxu0 %v18898_v37  ;;  %v18994_v36 = vld [vmem:[%s22187_s19 + $0x113c] ss:$40 sps:$4 sm:$0xff]   ;;  %v18989_v37 = vld [vmem:[%s22187_s19 + $0x1130] ss:$40 sps:$4 sm:$0xff]  }
 0x112   : > { %6638 = vmatprep.subr.bf16.mxu1 %v18901_v38  ;;  %v18992_v38 = vld [vmem:[%s22187_s19 + $0x1138] ss:$40 sps:$4 sm:$0xff]  }
 0x114   : > { %6381 = vmatpush1.bf16.msra.mxu0 %v18896_v39  ;;  %v18997_v39 = vld [vmem:[%s22187_s19 + $0x1184] ss:$40 sps:$4 sm:$0xff]  }
 0x115   : > { %6639 = vmatpush1.bf16.msra.mxu1 %v18899_v40  ;;  %6382 = vmatprep.subr.bf16.mxu0 %v18904_v41  ;;  %v19000_v40 = vld [vmem:[%s22187_s19 + $0x118c] ss:$40 sps:$4 sm:$0xff]   ;;  %v18995_v41 = vld [vmem:[%s22187_s19 + $0x1180] ss:$40 sps:$4 sm:$0xff]  }
 0x116   : > { %6640 = vmatprep.subr.bf16.mxu1 %v18907_v42  ;;  %v18998_v42 = vld [vmem:[%s22187_s19 + $0x1188] ss:$40 sps:$4 sm:$0xff]  }
 0x118   : > { %6383 = vmatpush1.bf16.msra.mxu0 %v18902_v43  ;;  %v19003_v43 = vld [vmem:[%s22187_s19 + $0x11d4] ss:$40 sps:$4 sm:$0xff]  }
 0x119   : > { %6641 = vmatpush1.bf16.msra.mxu1 %v18905_v44  ;;  %6384 = vmatprep.subr.bf16.mxu0 %v18910_v45  ;;  %v19006_v44 = vld [vmem:[%s22187_s19 + $0x11dc] ss:$40 sps:$4 sm:$0xff]   ;;  %v19001_v45 = vld [vmem:[%s22187_s19 + $0x11d0] ss:$40 sps:$4 sm:$0xff]  }
 0x11a   : > { %6642 = vmatprep.subr.bf16.mxu1 %v18913_v46  ;;  %v19004_v46 = vld [vmem:[%s22187_s19 + $0x11d8] ss:$40 sps:$4 sm:$0xff]  }
 0x11c   : > { %6385 = vmatpush1.bf16.msra.mxu0 %v18908_v47  ;;  %v19009_v47 = vld [vmem:[%s22187_s19 + $0x1224] ss:$40 sps:$4 sm:$0xff]  }
 0x11d   : > { %6643 = vmatpush1.bf16.msra.mxu1 %v18911_v48  ;;  %6386 = vmatprep.subr.bf16.mxu0 %v18916_v49  ;;  %v19012_v48 = vld [vmem:[%s22187_s19 + $0x122c] ss:$40 sps:$4 sm:$0xff]   ;;  %v19007_v49 = vld [vmem:[%s22187_s19 + $0x1220] ss:$40 sps:$4 sm:$0xff]  }
 0x11e   : > { %6644 = vmatprep.subr.bf16.mxu1 %v18919_v50  ;;  %v19010_v50 = vld [vmem:[%s22187_s19 + $0x1228] ss:$40 sps:$4 sm:$0xff]  }
 0x120   : > { %6387 = vmatpush1.bf16.msra.mxu0 %v18914_v51  ;;  %v19015_v51 = vld [vmem:[%s22187_s19 + $0x1274] ss:$40 sps:$4 sm:$0xff]  }
 0x121   : > { %6645 = vmatpush1.bf16.msra.mxu1 %v18917_v52  ;;  %6388 = vmatprep.subr.bf16.mxu0 %v18922_v53  ;;  %v19018_v52 = vld [vmem:[%s22187_s19 + $0x127c] ss:$40 sps:$4 sm:$0xff]   ;;  %v19013_v53 = vld [vmem:[%s22187_s19 + $0x1270] ss:$40 sps:$4 sm:$0xff]  }
 0x122   : > { %6646 = vmatprep.subr.bf16.mxu1 %v18925_v54  ;;  %v19016_v54 = vld [vmem:[%s22187_s19 + $0x1278] ss:$40 sps:$4 sm:$0xff]  }
 0x124   : > { %6389 = vmatpush1.bf16.msra.mxu0 %v18920_v55  ;;  %v19021_v55 = vld [vmem:[%s22187_s19 + $0x12c4] ss:$40 sps:$4 sm:$0xff]  }
 0x125   : > { %6647 = vmatpush1.bf16.msra.mxu1 %v18923_v56  ;;  %6390 = vmatprep.subr.bf16.mxu0 %v18928_v57  ;;  %v19024_v56 = vld [vmem:[%s22187_s19 + $0x12cc] ss:$40 sps:$4 sm:$0xff]   ;;  %v19019_v57 = vld [vmem:[%s22187_s19 + $0x12c0] ss:$40 sps:$4 sm:$0xff]  }
 0x126   : > { %6648 = vmatprep.subr.bf16.mxu1 %v18931_v58  ;;  %v19022_v58 = vld [vmem:[%s22187_s19 + $0x12c8] ss:$40 sps:$4 sm:$0xff]  }
 0x128   : > { %6391 = vmatpush1.bf16.msra.mxu0 %v18926_v59  ;;  %v19027_v59 = vld [vmem:[%s22187_s19 + $0x1314] ss:$40 sps:$4 sm:$0xff]  }
 0x129   : > { %6649 = vmatpush1.bf16.msra.mxu1 %v18929_v60  ;;  %6392 = vmatprep.subr.bf16.mxu0 %v18934_v61  ;;  %v19030_v60 = vld [vmem:[%s22187_s19 + $0x131c] ss:$40 sps:$4 sm:$0xff]   ;;  %v19025_v61 = vld [vmem:[%s22187_s19 + $0x1310] ss:$40 sps:$4 sm:$0xff]  }
 0x12a   : > { %6650 = vmatprep.subr.bf16.mxu1 %v18937_v62  ;;  %v19028_v62 = vld [vmem:[%s22187_s19 + $0x1318] ss:$40 sps:$4 sm:$0xff]  }
 0x12c   : > { %6393 = vmatpush1.bf16.msra.mxu0 %v18932_v63  ;;  %v19033_v63 = vld [vmem:[%s22187_s19 + $0x1364] ss:$40 sps:$4 sm:$0xff]  }
 0x12d   : > { %6651 = vmatpush1.bf16.msra.mxu1 %v18935_v0  ;;  %6394 = vmatprep.subr.bf16.mxu0 %v18940_v1  ;;  %v19036_v0 = vld [vmem:[%s22187_s19 + $0x136c] ss:$40 sps:$4 sm:$0xff]   ;;  %v19031_v1 = vld [vmem:[%s22187_s19 + $0x1360] ss:$40 sps:$4 sm:$0xff]  }
 0x12e   : > { %6652 = vmatprep.subr.bf16.mxu1 %v18943_v2  ;;  %v19034_v2 = vld [vmem:[%s22187_s19 + $0x1368] ss:$40 sps:$4 sm:$0xff]  }
 0x130   : > { %6395 = vmatpush1.bf16.msra.mxu0 %v18938_v3  ;;  %v19039_v3 = vld [vmem:[%s22187_s19 + $0x13b4] ss:$40 sps:$4 sm:$0xff]  }
 0x131   : > { %6653 = vmatpush1.bf16.msra.mxu1 %v18941_v4  ;;  %6407 = vmatprep.subr.bf16.mxu0 %v18948_v5  ;;  %v19042_v4 = vld [vmem:[%s22187_s19 + $0x13bc] ss:$40 sps:$4 sm:$0xff]   ;;  %v19037_v5 = vld [vmem:[%s22187_s19 + $0x13b0] ss:$40 sps:$4 sm:$0xff]  }
 0x132   : > { %6665 = vmatprep.subr.bf16.mxu1 %v18951_v6  ;;  %v19040_v6 = vld [vmem:[%s22187_s19 + $0x13b8] ss:$40 sps:$4 sm:$0xff]  }
 0x133   : > { %6397 = vmatmul.mubr.bf16.vlgmr.msra.gmra.mrb[0].mxu0 %v18952_v9 }
 0x134   : > { %6655 = vmatmul.mubr.bf16.vlgmr.msra.gmra.mrb[0].mxu1 %v18952_v9  ;;  %6408 = vmatpush1.bf16.msra.mxu0 %v18946_v7  ;;  %v19047_v7 = vld [vmem:[%s22187_s19 + $0x1404] ss:$40 sps:$4 sm:$0xff]   ;;  %v19045_v9 = vld [vmem:[%s22187_s19 + $0x1400] ss:$40 sps:$4 sm:$0xff]  }
 0x135   : > { %6666 = vmatpush1.bf16.msra.mxu1 %v18949_v8  ;;  %6409 = vmatprep.subr.bf16.mxu0 %v18955_v10  ;;  %v19050_v8 = vld [vmem:[%s22187_s19 + $0x140c] ss:$40 sps:$4 sm:$0xff]   ;;  %v19048_v10 = vld [vmem:[%s22187_s19 + $0x1408] ss:$40 sps:$4 sm:$0xff]  }
 0x136   : > { %6667 = vmatprep.subr.bf16.mxu1 %v18958_v11  ;;  %6439 = vmatprep.mubr.bf16.mxu0 %v19043_v12  ;;  %v19051_v11 = vld [vmem:[%s24840_s0 + $0x18] ss:$48 sps:$4 sm:$0xff]  }
 0x137   : > { %6697 = vmatprep.mubr.bf16.mxu1 %v19043_v12  ;;  %v19054_v12 = vld [vmem:[%s22187_s19 + $0x1454] ss:$40 sps:$4 sm:$0xff]  }
 0x138   : > { %6410 = vmatpush1.bf16.msra.mxu0 %v18953_v13  ;;  %v19057_v13 = vld [vmem:[%s22187_s19 + $0x145c] ss:$40 sps:$4 sm:$0xff]  }
 0x139   : > { %6668 = vmatpush1.bf16.msra.mxu1 %v18956_v14  ;;  %6411 = vmatprep.subr.bf16.mxu0 %v18961_v15  ;;  %v19142_v14 = vld [vmem:[%s24840_s0 + $0x24] ss:$48 sps:$4 sm:$0xff]   ;;  %v19052_v15 = vld [vmem:[%s22187_s19 + $0x1450] ss:$40 sps:$4 sm:$0xff]  }
 0x13a   : > { %6669 = vmatprep.subr.bf16.mxu1 %v18964_v16  ;;  %v19055_v16 = vld [vmem:[%s22187_s19 + $0x1458] ss:$40 sps:$4 sm:$0xff]  }
 0x13c   : > { %6412 = vmatpush1.bf16.msra.mxu0 %v18959_v17  ;;  %v19060_v17 = vld [vmem:[%s22187_s19 + $0x14a4] ss:$40 sps:$4 sm:$0xff]  }
 0x13d   : > { %6670 = vmatpush1.bf16.msra.mxu1 %v18962_v18  ;;  %6413 = vmatprep.subr.bf16.mxu0 %v18967_v19  ;;  %v19063_v18 = vld [vmem:[%s22187_s19 + $0x14ac] ss:$40 sps:$4 sm:$0xff]   ;;  %v19058_v19 = vld [vmem:[%s22187_s19 + $0x14a0] ss:$40 sps:$4 sm:$0xff]  }
 0x13e   : > { %6671 = vmatprep.subr.bf16.mxu1 %v18970_v20  ;;  %v19061_v20 = vld [vmem:[%s22187_s19 + $0x14a8] ss:$40 sps:$4 sm:$0xff]  }
 0x140   : > { %6414 = vmatpush1.bf16.msra.mxu0 %v18965_v21  ;;  %v19066_v21 = vld [vmem:[%s22187_s19 + $0x14f4] ss:$40 sps:$4 sm:$0xff]  }
 0x141   : > { %6672 = vmatpush1.bf16.msra.mxu1 %v18968_v22  ;;  %6415 = vmatprep.subr.bf16.mxu0 %v18973_v23  ;;  %v19069_v22 = vld [vmem:[%s22187_s19 + $0x14fc] ss:$40 sps:$4 sm:$0xff]   ;;  %v19064_v23 = vld [vmem:[%s22187_s19 + $0x14f0] ss:$40 sps:$4 sm:$0xff]  }
 0x142   : > { %6673 = vmatprep.subr.bf16.mxu1 %v18976_v24  ;;  %v19067_v24 = vld [vmem:[%s22187_s19 + $0x14f8] ss:$40 sps:$4 sm:$0xff]  }
 0x144   : > { %6416 = vmatpush1.bf16.msra.mxu0 %v18971_v25  ;;  %v19072_v25 = vld [vmem:[%s22187_s19 + $0x1544] ss:$40 sps:$4 sm:$0xff]  }
 0x145   : > { %6674 = vmatpush1.bf16.msra.mxu1 %v18974_v26  ;;  %6417 = vmatprep.subr.bf16.mxu0 %v18979_v27  ;;  %v19075_v26 = vld [vmem:[%s22187_s19 + $0x154c] ss:$40 sps:$4 sm:$0xff]   ;;  %v19070_v27 = vld [vmem:[%s22187_s19 + $0x1540] ss:$40 sps:$4 sm:$0xff]  }
 0x146   : > { %6675 = vmatprep.subr.bf16.mxu1 %v18982_v28  ;;  %v19073_v28 = vld [vmem:[%s22187_s19 + $0x1548] ss:$40 sps:$4 sm:$0xff]  }
 0x148   : > { %6418 = vmatpush1.bf16.msra.mxu0 %v18977_v29  ;;  %v19078_v29 = vld [vmem:[%s22187_s19 + $0x1594] ss:$40 sps:$4 sm:$0xff]  }
 0x149   : > { %6676 = vmatpush1.bf16.msra.mxu1 %v18980_v30  ;;  %6419 = vmatprep.subr.bf16.mxu0 %v18985_v31  ;;  %v19081_v30 = vld [vmem:[%s22187_s19 + $0x159c] ss:$40 sps:$4 sm:$0xff]   ;;  %v19076_v31 = vld [vmem:[%s22187_s19 + $0x1590] ss:$40 sps:$4 sm:$0xff]  }
 0x14a   : > { %6677 = vmatprep.subr.bf16.mxu1 %v18988_v32  ;;  %v19079_v32 = vld [vmem:[%s22187_s19 + $0x1598] ss:$40 sps:$4 sm:$0xff]  }
 0x14c   : > { %6420 = vmatpush1.bf16.msra.mxu0 %v18983_v33  ;;  %v19084_v33 = vld [vmem:[%s22187_s19 + $0x15e4] ss:$40 sps:$4 sm:$0xff]  }
 0x14d   : > { %6678 = vmatpush1.bf16.msra.mxu1 %v18986_v34  ;;  %6421 = vmatprep.subr.bf16.mxu0 %v18991_v35  ;;  %v19087_v34 = vld [vmem:[%s22187_s19 + $0x15ec] ss:$40 sps:$4 sm:$0xff]   ;;  %v19082_v35 = vld [vmem:[%s22187_s19 + $0x15e0] ss:$40 sps:$4 sm:$0xff]  }
 0x14e   : > { %6679 = vmatprep.subr.bf16.mxu1 %v18994_v36  ;;  %v19085_v36 = vld [vmem:[%s22187_s19 + $0x15e8] ss:$40 sps:$4 sm:$0xff]  }
 0x150   : > { %6422 = vmatpush1.bf16.msra.mxu0 %v18989_v37  ;;  %v19090_v37 = vld [vmem:[%s22187_s19 + $0x1634] ss:$40 sps:$4 sm:$0xff]  }
 0x151   : > { %6680 = vmatpush1.bf16.msra.mxu1 %v18992_v38  ;;  %6423 = vmatprep.subr.bf16.mxu0 %v18997_v39  ;;  %v19093_v38 = vld [vmem:[%s22187_s19 + $0x163c] ss:$40 sps:$4 sm:$0xff]   ;;  %v19088_v39 = vld [vmem:[%s22187_s19 + $0x1630] ss:$40 sps:$4 sm:$0xff]  }
 0x152   : > { %6681 = vmatprep.subr.bf16.mxu1 %v19000_v40  ;;  %v19091_v40 = vld [vmem:[%s22187_s19 + $0x1638] ss:$40 sps:$4 sm:$0xff]  }
 0x154   : > { %6424 = vmatpush1.bf16.msra.mxu0 %v18995_v41  ;;  %v19096_v41 = vld [vmem:[%s22187_s19 + $0x1684] ss:$40 sps:$4 sm:$0xff]  }
 0x155   : > { %6682 = vmatpush1.bf16.msra.mxu1 %v18998_v42  ;;  %6425 = vmatprep.subr.bf16.mxu0 %v19003_v43  ;;  %v19099_v42 = vld [vmem:[%s22187_s19 + $0x168c] ss:$40 sps:$4 sm:$0xff]   ;;  %v19094_v43 = vld [vmem:[%s22187_s19 + $0x1680] ss:$40 sps:$4 sm:$0xff]  }
 0x156   : > { %6683 = vmatprep.subr.bf16.mxu1 %v19006_v44  ;;  %v19097_v44 = vld [vmem:[%s22187_s19 + $0x1688] ss:$40 sps:$4 sm:$0xff]  }
 0x158   : > { %6426 = vmatpush1.bf16.msra.mxu0 %v19001_v45  ;;  %v19102_v45 = vld [vmem:[%s22187_s19 + $0x16d4] ss:$40 sps:$4 sm:$0xff]  }
 0x159   : > { %6684 = vmatpush1.bf16.msra.mxu1 %v19004_v46  ;;  %6427 = vmatprep.subr.bf16.mxu0 %v19009_v47  ;;  %v19105_v46 = vld [vmem:[%s22187_s19 + $0x16dc] ss:$40 sps:$4 sm:$0xff]   ;;  %v19100_v47 = vld [vmem:[%s22187_s19 + $0x16d0] ss:$40 sps:$4 sm:$0xff]  }
 0x15a   : > { %6685 = vmatprep.subr.bf16.mxu1 %v19012_v48  ;;  %v19103_v48 = vld [vmem:[%s22187_s19 + $0x16d8] ss:$40 sps:$4 sm:$0xff]  }
 0x15c   : > { %6428 = vmatpush1.bf16.msra.mxu0 %v19007_v49  ;;  %v19108_v49 = vld [vmem:[%s22187_s19 + $0x1724] ss:$40 sps:$4 sm:$0xff]  }
 0x15d   : > { %6686 = vmatpush1.bf16.msra.mxu1 %v19010_v50  ;;  %6429 = vmatprep.subr.bf16.mxu0 %v19015_v51  ;;  %v19111_v50 = vld [vmem:[%s22187_s19 + $0x172c] ss:$40 sps:$4 sm:$0xff]   ;;  %v19106_v51 = vld [vmem:[%s22187_s19 + $0x1720] ss:$40 sps:$4 sm:$0xff]  }
 0x15e   : > { %6687 = vmatprep.subr.bf16.mxu1 %v19018_v52  ;;  %v19109_v52 = vld [vmem:[%s22187_s19 + $0x1728] ss:$40 sps:$4 sm:$0xff]  }
 0x160   : > { %6430 = vmatpush1.bf16.msra.mxu0 %v19013_v53  ;;  %v19114_v53 = vld [vmem:[%s22187_s19 + $0x1774] ss:$40 sps:$4 sm:$0xff]  }
 0x161   : > { %6688 = vmatpush1.bf16.msra.mxu1 %v19016_v54  ;;  %6431 = vmatprep.subr.bf16.mxu0 %v19021_v55  ;;  %v19117_v54 = vld [vmem:[%s22187_s19 + $0x177c] ss:$40 sps:$4 sm:$0xff]   ;;  %v19112_v55 = vld [vmem:[%s22187_s19 + $0x1770] ss:$40 sps:$4 sm:$0xff]  }
 0x162   : > { %6689 = vmatprep.subr.bf16.mxu1 %v19024_v56  ;;  %v19115_v56 = vld [vmem:[%s22187_s19 + $0x1778] ss:$40 sps:$4 sm:$0xff]  }
 0x164   : > { %6432 = vmatpush1.bf16.msra.mxu0 %v19019_v57  ;;  %v19120_v57 = vld [vmem:[%s22187_s19 + $0x17c4] ss:$40 sps:$4 sm:$0xff]  }
 0x165   : > { %6690 = vmatpush1.bf16.msra.mxu1 %v19022_v58  ;;  %6433 = vmatprep.subr.bf16.mxu0 %v19027_v59  ;;  %v19123_v58 = vld [vmem:[%s22187_s19 + $0x17cc] ss:$40 sps:$4 sm:$0xff]   ;;  %v19118_v59 = vld [vmem:[%s22187_s19 + $0x17c0] ss:$40 sps:$4 sm:$0xff]  }
 0x166   : > { %6691 = vmatprep.subr.bf16.mxu1 %v19030_v60  ;;  %v19121_v60 = vld [vmem:[%s22187_s19 + $0x17c8] ss:$40 sps:$4 sm:$0xff]  }
 0x168   : > { %6434 = vmatpush1.bf16.msra.mxu0 %v19025_v61  ;;  %v19126_v61 = vld [vmem:[%s22187_s19 + $0x1814] ss:$40 sps:$4 sm:$0xff]  }
 0x169   : > { %6692 = vmatpush1.bf16.msra.mxu1 %v19028_v62  ;;  %6435 = vmatprep.subr.bf16.mxu0 %v19033_v63  ;;  %v19129_v62 = vld [vmem:[%s22187_s19 + $0x181c] ss:$40 sps:$4 sm:$0xff]   ;;  %v19124_v63 = vld [vmem:[%s22187_s19 + $0x1810] ss:$40 sps:$4 sm:$0xff]  }
 0x16a   : > { %6693 = vmatprep.subr.bf16.mxu1 %v19036_v0  ;;  %v19127_v0 = vld [vmem:[%s22187_s19 + $0x1818] ss:$40 sps:$4 sm:$0xff]  }
 0x16c   : > { %6436 = vmatpush1.bf16.msra.mxu0 %v19031_v1  ;;  %v19132_v1 = vld [vmem:[%s22187_s19 + $0x1864] ss:$40 sps:$4 sm:$0xff]  }
 0x16d   : > { %6694 = vmatpush1.bf16.msra.mxu1 %v19034_v2  ;;  %6437 = vmatprep.subr.bf16.mxu0 %v19039_v3  ;;  %v19135_v2 = vld [vmem:[%s22187_s19 + $0x186c] ss:$40 sps:$4 sm:$0xff]   ;;  %v19130_v3 = vld [vmem:[%s22187_s19 + $0x1860] ss:$40 sps:$4 sm:$0xff]  }
 0x16e   : > { %6695 = vmatprep.subr.bf16.mxu1 %v19042_v4  ;;  %v19133_v4 = vld [vmem:[%s22187_s19 + $0x1868] ss:$40 sps:$4 sm:$0xff]  }
 0x170   : > { %6438 = vmatpush1.bf16.msra.mxu0 %v19037_v5  ;;  %v19138_v5 = vld [vmem:[%s22187_s19 + $0x18b4] ss:$40 sps:$4 sm:$0xff]  }
 0x171   : > { %6696 = vmatpush1.bf16.msra.mxu1 %v19040_v6  ;;  %6450 = vmatprep.subr.bf16.mxu0 %v19047_v7  ;;  %v19141_v6 = vld [vmem:[%s22187_s19 + $0x18bc] ss:$40 sps:$4 sm:$0xff]   ;;  %v19136_v7 = vld [vmem:[%s22187_s19 + $0x18b0] ss:$40 sps:$4 sm:$0xff]  }
 0x172   : > { %6708 = vmatprep.subr.bf16.mxu1 %v19050_v8  ;;  %v19139_v8 = vld [vmem:[%s22187_s19 + $0x18b8] ss:$40 sps:$4 sm:$0xff]  }
 0x173   : > { %6440 = vmatmul.mubr.bf16.vlgmr.msra.gmra.mrb[0].mxu0 %v19051_v11 }
 0x174   : > { %6698 = vmatmul.mubr.bf16.vlgmr.msra.gmra.mrb[0].mxu1 %v19051_v11  ;;  %6451 = vmatpush1.bf16.msra.mxu0 %v19045_v9  ;;  %v19146_v9 = vld [vmem:[%s22187_s19 + $0x1904] ss:$40 sps:$4 sm:$0xff]   ;;  %v19150_v11 = vld [vmem:[%s24840_s0 + $0x20] ss:$48 sps:$4 sm:$0xff]  }
 0x175   : > { %6709 = vmatpush1.bf16.msra.mxu1 %v19048_v10  ;;  %6452 = vmatprep.subr.bf16.mxu0 %v19054_v12  ;;  %v19149_v10 = vld [vmem:[%s22187_s19 + $0x190c] ss:$40 sps:$4 sm:$0xff]   ;;  %v19144_v12 = vld [vmem:[%s22187_s19 + $0x1900] ss:$40 sps:$4 sm:$0xff]  }
 0x176   : > { %6710 = vmatprep.subr.bf16.mxu1 %v19057_v13  ;;  %6482 = vmatprep.mubr.bf16.mxu0 %v19142_v14  ;;  %v19147_v13 = vld [vmem:[%s22187_s19 + $0x1908] ss:$40 sps:$4 sm:$0xff]  }
 0x177   : > { %6740 = vmatprep.mubr.bf16.mxu1 %v19142_v14  ;;  %v19153_v14 = vld [vmem:[%s22187_s19 + $0x1954] ss:$40 sps:$4 sm:$0xff]  }
 0x178   : > { %6453 = vmatpush1.bf16.msra.mxu0 %v19052_v15  ;;  %v19156_v15 = vld [vmem:[%s22187_s19 + $0x195c] ss:$40 sps:$4 sm:$0xff]  }
 0x179   : > { %6711 = vmatpush1.bf16.msra.mxu1 %v19055_v16  ;;  %6454 = vmatprep.subr.bf16.mxu0 %v19060_v17  ;;  %v19241_v16 = vld [vmem:[%s24840_s0 + $0x2c] ss:$48 sps:$4 sm:$0xff]   ;;  %v19151_v17 = vld [vmem:[%s22187_s19 + $0x1950] ss:$40 sps:$4 sm:$0xff]  }
 0x17a   : > { %6712 = vmatprep.subr.bf16.mxu1 %v19063_v18  ;;  %v19154_v18 = vld [vmem:[%s22187_s19 + $0x1958] ss:$40 sps:$4 sm:$0xff]  }
 0x17c   : > { %6455 = vmatpush1.bf16.msra.mxu0 %v19058_v19  ;;  %v19159_v19 = vld [vmem:[%s22187_s19 + $0x19a4] ss:$40 sps:$4 sm:$0xff]  }
 0x17d   : > { %6713 = vmatpush1.bf16.msra.mxu1 %v19061_v20  ;;  %6456 = vmatprep.subr.bf16.mxu0 %v19066_v21  ;;  %v19162_v20 = vld [vmem:[%s22187_s19 + $0x19ac] ss:$40 sps:$4 sm:$0xff]   ;;  %v19157_v21 = vld [vmem:[%s22187_s19 + $0x19a0] ss:$40 sps:$4 sm:$0xff]  }
 0x17e   : > { %6714 = vmatprep.subr.bf16.mxu1 %v19069_v22  ;;  %v19160_v22 = vld [vmem:[%s22187_s19 + $0x19a8] ss:$40 sps:$4 sm:$0xff]  }
 0x180   : > { %6457 = vmatpush1.bf16.msra.mxu0 %v19064_v23  ;;  %v19165_v23 = vld [vmem:[%s22187_s19 + $0x19f4] ss:$40 sps:$4 sm:$0xff]  }
 0x181   : > { %6715 = vmatpush1.bf16.msra.mxu1 %v19067_v24  ;;  %6458 = vmatprep.subr.bf16.mxu0 %v19072_v25  ;;  %v19168_v24 = vld [vmem:[%s22187_s19 + $0x19fc] ss:$40 sps:$4 sm:$0xff]   ;;  %v19163_v25 = vld [vmem:[%s22187_s19 + $0x19f0] ss:$40 sps:$4 sm:$0xff]  }
 0x182   : > { %6716 = vmatprep.subr.bf16.mxu1 %v19075_v26  ;;  %v19166_v26 = vld [vmem:[%s22187_s19 + $0x19f8] ss:$40 sps:$4 sm:$0xff]  }
 0x184   : > { %6459 = vmatpush1.bf16.msra.mxu0 %v19070_v27  ;;  %v19171_v27 = vld [vmem:[%s22187_s19 + $0x1a44] ss:$40 sps:$4 sm:$0xff]  }
 0x185   : > { %6717 = vmatpush1.bf16.msra.mxu1 %v19073_v28  ;;  %6460 = vmatprep.subr.bf16.mxu0 %v19078_v29  ;;  %v19174_v28 = vld [vmem:[%s22187_s19 + $0x1a4c] ss:$40 sps:$4 sm:$0xff]   ;;  %v19169_v29 = vld [vmem:[%s22187_s19 + $0x1a40] ss:$40 sps:$4 sm:$0xff]  }
 0x186   : > { %6718 = vmatprep.subr.bf16.mxu1 %v19081_v30  ;;  %v19172_v30 = vld [vmem:[%s22187_s19 + $0x1a48] ss:$40 sps:$4 sm:$0xff]  }
 0x188   : > { %6461 = vmatpush1.bf16.msra.mxu0 %v19076_v31  ;;  %v19177_v31 = vld [vmem:[%s22187_s19 + $0x1a94] ss:$40 sps:$4 sm:$0xff]  }
 0x189   : > { %6719 = vmatpush1.bf16.msra.mxu1 %v19079_v32  ;;  %6462 = vmatprep.subr.bf16.mxu0 %v19084_v33  ;;  %v19180_v32 = vld [vmem:[%s22187_s19 + $0x1a9c] ss:$40 sps:$4 sm:$0xff]   ;;  %v19175_v33 = vld [vmem:[%s22187_s19 + $0x1a90] ss:$40 sps:$4 sm:$0xff]  }
 0x18a   : > { %6720 = vmatprep.subr.bf16.mxu1 %v19087_v34  ;;  %v19178_v34 = vld [vmem:[%s22187_s19 + $0x1a98] ss:$40 sps:$4 sm:$0xff]  }
 0x18c   : > { %6463 = vmatpush1.bf16.msra.mxu0 %v19082_v35  ;;  %v19183_v35 = vld [vmem:[%s22187_s19 + $0x1ae4] ss:$40 sps:$4 sm:$0xff]  }
 0x18d   : > { %6721 = vmatpush1.bf16.msra.mxu1 %v19085_v36  ;;  %6464 = vmatprep.subr.bf16.mxu0 %v19090_v37  ;;  %v19186_v36 = vld [vmem:[%s22187_s19 + $0x1aec] ss:$40 sps:$4 sm:$0xff]   ;;  %v19181_v37 = vld [vmem:[%s22187_s19 + $0x1ae0] ss:$40 sps:$4 sm:$0xff]  }
 0x18e   : > { %6722 = vmatprep.subr.bf16.mxu1 %v19093_v38  ;;  %v19184_v38 = vld [vmem:[%s22187_s19 + $0x1ae8] ss:$40 sps:$4 sm:$0xff]  }
 0x190   : > { %6465 = vmatpush1.bf16.msra.mxu0 %v19088_v39  ;;  %v19189_v39 = vld [vmem:[%s22187_s19 + $0x1b34] ss:$40 sps:$4 sm:$0xff]  }
 0x191   : > { %6723 = vmatpush1.bf16.msra.mxu1 %v19091_v40  ;;  %6466 = vmatprep.subr.bf16.mxu0 %v19096_v41  ;;  %v19192_v40 = vld [vmem:[%s22187_s19 + $0x1b3c] ss:$40 sps:$4 sm:$0xff]   ;;  %v19187_v41 = vld [vmem:[%s22187_s19 + $0x1b30] ss:$40 sps:$4 sm:$0xff]  }
 0x192   : > { %6724 = vmatprep.subr.bf16.mxu1 %v19099_v42  ;;  %v19190_v42 = vld [vmem:[%s22187_s19 + $0x1b38] ss:$40 sps:$4 sm:$0xff]  }
 0x194   : > { %6467 = vmatpush1.bf16.msra.mxu0 %v19094_v43  ;;  %v19195_v43 = vld [vmem:[%s22187_s19 + $0x1b84] ss:$40 sps:$4 sm:$0xff]  }
 0x195   : > { %6725 = vmatpush1.bf16.msra.mxu1 %v19097_v44  ;;  %6468 = vmatprep.subr.bf16.mxu0 %v19102_v45  ;;  %v19198_v44 = vld [vmem:[%s22187_s19 + $0x1b8c] ss:$40 sps:$4 sm:$0xff]   ;;  %v19193_v45 = vld [vmem:[%s22187_s19 + $0x1b80] ss:$40 sps:$4 sm:$0xff]  }
 0x196   : > { %6726 = vmatprep.subr.bf16.mxu1 %v19105_v46  ;;  %v19196_v46 = vld [vmem:[%s22187_s19 + $0x1b88] ss:$40 sps:$4 sm:$0xff]  }
 0x198   : > { %6469 = vmatpush1.bf16.msra.mxu0 %v19100_v47  ;;  %v19201_v47 = vld [vmem:[%s22187_s19 + $0x1bd4] ss:$40 sps:$4 sm:$0xff]  }
 0x199   : > { %6727 = vmatpush1.bf16.msra.mxu1 %v19103_v48  ;;  %6470 = vmatprep.subr.bf16.mxu0 %v19108_v49  ;;  %v19204_v48 = vld [vmem:[%s22187_s19 + $0x1bdc] ss:$40 sps:$4 sm:$0xff]   ;;  %v19199_v49 = vld [vmem:[%s22187_s19 + $0x1bd0] ss:$40 sps:$4 sm:$0xff]  }
 0x19a   : > { %6728 = vmatprep.subr.bf16.mxu1 %v19111_v50  ;;  %v19202_v50 = vld [vmem:[%s22187_s19 + $0x1bd8] ss:$40 sps:$4 sm:$0xff]  }
 0x19c   : > { %6471 = vmatpush1.bf16.msra.mxu0 %v19106_v51  ;;  %v19207_v51 = vld [vmem:[%s22187_s19 + $0x1c24] ss:$40 sps:$4 sm:$0xff]  }
 0x19d   : > { %6729 = vmatpush1.bf16.msra.mxu1 %v19109_v52  ;;  %6472 = vmatprep.subr.bf16.mxu0 %v19114_v53  ;;  %v19210_v52 = vld [vmem:[%s22187_s19 + $0x1c2c] ss:$40 sps:$4 sm:$0xff]   ;;  %v19205_v53 = vld [vmem:[%s22187_s19 + $0x1c20] ss:$40 sps:$4 sm:$0xff]  }
 0x19e   : > { %6730 = vmatprep.subr.bf16.mxu1 %v19117_v54  ;;  %v19208_v54 = vld [vmem:[%s22187_s19 + $0x1c28] ss:$40 sps:$4 sm:$0xff]  }
 0x1a0   : > { %6473 = vmatpush1.bf16.msra.mxu0 %v19112_v55  ;;  %v19213_v55 = vld [vmem:[%s22187_s19 + $0x1c74] ss:$40 sps:$4 sm:$0xff]  }
 0x1a1   : > { %6731 = vmatpush1.bf16.msra.mxu1 %v19115_v56  ;;  %6474 = vmatprep.subr.bf16.mxu0 %v19120_v57  ;;  %v19216_v56 = vld [vmem:[%s22187_s19 + $0x1c7c] ss:$40 sps:$4 sm:$0xff]   ;;  %v19211_v57 = vld [vmem:[%s22187_s19 + $0x1c70] ss:$40 sps:$4 sm:$0xff]  }
 0x1a2   : > { %6732 = vmatprep.subr.bf16.mxu1 %v19123_v58  ;;  %v19214_v58 = vld [vmem:[%s22187_s19 + $0x1c78] ss:$40 sps:$4 sm:$0xff]  }
 0x1a4   : > { %6475 = vmatpush1.bf16.msra.mxu0 %v19118_v59  ;;  %v19219_v59 = vld [vmem:[%s22187_s19 + $0x1cc4] ss:$40 sps:$4 sm:$0xff]  }
 0x1a5   : > { %6733 = vmatpush1.bf16.msra.mxu1 %v19121_v60  ;;  %6476 = vmatprep.subr.bf16.mxu0 %v19126_v61  ;;  %v19222_v60 = vld [vmem:[%s22187_s19 + $0x1ccc] ss:$40 sps:$4 sm:$0xff]   ;;  %v19217_v61 = vld [vmem:[%s22187_s19 + $0x1cc0] ss:$40 sps:$4 sm:$0xff]  }
 0x1a6   : > { %6734 = vmatprep.subr.bf16.mxu1 %v19129_v62  ;;  %v19220_v62 = vld [vmem:[%s22187_s19 + $0x1cc8] ss:$40 sps:$4 sm:$0xff]  }
 0x1a8   : > { %6477 = vmatpush1.bf16.msra.mxu0 %v19124_v63  ;;  %v19225_v63 = vld [vmem:[%s22187_s19 + $0x1d14] ss:$40 sps:$4 sm:$0xff]  }
 0x1a9   : > { %6735 = vmatpush1.bf16.msra.mxu1 %v19127_v0  ;;  %6478 = vmatprep.subr.bf16.mxu0 %v19132_v1  ;;  %v19228_v0 = vld [vmem:[%s22187_s19 + $0x1d1c] ss:$40 sps:$4 sm:$0xff]   ;;  %v19223_v1 = vld [vmem:[%s22187_s19 + $0x1d10] ss:$40 sps:$4 sm:$0xff]  }
 0x1aa   : > { %6736 = vmatprep.subr.bf16.mxu1 %v19135_v2  ;;  %v19226_v2 = vld [vmem:[%s22187_s19 + $0x1d18] ss:$40 sps:$4 sm:$0xff]  }
 0x1ac   : > { %6479 = vmatpush1.bf16.msra.mxu0 %v19130_v3  ;;  %v19231_v3 = vld [vmem:[%s22187_s19 + $0x1d64] ss:$40 sps:$4 sm:$0xff]  }
 0x1ad   : > { %6737 = vmatpush1.bf16.msra.mxu1 %v19133_v4  ;;  %6480 = vmatprep.subr.bf16.mxu0 %v19138_v5  ;;  %v19234_v4 = vld [vmem:[%s22187_s19 + $0x1d6c] ss:$40 sps:$4 sm:$0xff]   ;;  %v19229_v5 = vld [vmem:[%s22187_s19 + $0x1d60] ss:$40 sps:$4 sm:$0xff]  }
 0x1ae   : > { %6738 = vmatprep.subr.bf16.mxu1 %v19141_v6  ;;  %v19232_v6 = vld [vmem:[%s22187_s19 + $0x1d68] ss:$40 sps:$4 sm:$0xff]  }
 0x1b0   : > { %6481 = vmatpush1.bf16.msra.mxu0 %v19136_v7  ;;  %v19237_v7 = vld [vmem:[%s22187_s19 + $0x1db4] ss:$40 sps:$4 sm:$0xff]  }
 0x1b1   : > { %6739 = vmatpush1.bf16.msra.mxu1 %v19139_v8  ;;  %6493 = vmatprep.subr.bf16.mxu0 %v19146_v9  ;;  %v19240_v8 = vld [vmem:[%s22187_s19 + $0x1dbc] ss:$40 sps:$4 sm:$0xff]   ;;  %v19235_v9 = vld [vmem:[%s22187_s19 + $0x1db0] ss:$40 sps:$4 sm:$0xff]  }
 0x1b2   : > { %6751 = vmatprep.subr.bf16.mxu1 %v19149_v10  ;;  %v19238_v10 = vld [vmem:[%s22187_s19 + $0x1db8] ss:$40 sps:$4 sm:$0xff]  }
 0x1b3   : > { %6483 = vmatmul.mubr.bf16.vlgmr.msra.gmra.mrb[0].mxu0 %v19150_v11 }
 0x1b4   : > { %6741 = vmatmul.mubr.bf16.vlgmr.msra.gmra.mrb[0].mxu1 %v19150_v11  ;;  %6494 = vmatpush1.bf16.msra.mxu0 %v19144_v12  ;;  %v19243_v11 = vld [vmem:[%s24840_s0 + $0x28] ss:$48 sps:$4 sm:$0xff]   ;;  %v19246_v12 = vld [vmem:[%s22187_s19 + $0x14] ss:$40 sps:$4 sm:$0xff]  }
 0x1b5   : > { %6752 = vmatpush1.bf16.msra.mxu1 %v19147_v13  ;;  %6495 = vmatprep.subr.bf16.mxu0 %v19153_v14  ;;  %v19249_v13 = vld [vmem:[%s22187_s19 + $0x1c] ss:$40 sps:$4 sm:$0xff]   ;;  %v19244_v14 = vld [vmem:[%s22187_s19 + $0x10] ss:$40 sps:$4 sm:$0xff]  }
 0x1b6   : > { %6753 = vmatprep.subr.bf16.mxu1 %v19156_v15  ;;  %6525 = vmatprep.mubr.bf16.mxu0 %v19241_v16  ;;  %v19247_v15 = vld [vmem:[%s22187_s19 + $0x18] ss:$40 sps:$4 sm:$0xff]  }
 0x1b7   : > { %6783 = vmatprep.mubr.bf16.mxu1 %v19241_v16  ;;  %v19252_v16 = vld [vmem:[%s22187_s19 + $0x64] ss:$40 sps:$4 sm:$0xff]  }
 0x1b8   : > { %6496 = vmatpush1.bf16.msra.mxu0 %v19151_v17  ;;  %v19255_v17 = vld [vmem:[%s22187_s19 + $0x6c] ss:$40 sps:$4 sm:$0xff]  }
 0x1b9   : > { %6754 = vmatpush1.bf16.msra.mxu1 %v19154_v18  ;;  %6497 = vmatprep.subr.bf16.mxu0 %v19159_v19  ;;  %v19250_v18 = vld [vmem:[%s22187_s19 + $0x60] ss:$40 sps:$4 sm:$0xff]  }
 0x1ba   : > { %6755 = vmatprep.subr.bf16.mxu1 %v19162_v20  ;;  %v19253_v19 = vld [vmem:[%s22187_s19 + $0x68] ss:$40 sps:$4 sm:$0xff]   ;;  %v19258_v20 = vld [vmem:[%s22187_s19 + $0xb4] ss:$40 sps:$4 sm:$0xff]  }
 0x1bc   : > { %6498 = vmatpush1.bf16.msra.mxu0 %v19157_v21  ;;  %v19261_v21 = vld [vmem:[%s22187_s19 + $0xbc] ss:$40 sps:$4 sm:$0xff]  }
 0x1bd   : > { %6756 = vmatpush1.bf16.msra.mxu1 %v19160_v22  ;;  %6499 = vmatprep.subr.bf16.mxu0 %v19165_v23  ;;  %v21797_v22 = vld [vmem:[%s24840_s0 + $0x4] ss:$48 sps:$4 sm:$0xff]   ;;  %v19256_v23 = vld [vmem:[%s22187_s19 + $0xb0] ss:$40 sps:$4 sm:$0xff]  }
 0x1be   : > { %6757 = vmatprep.subr.bf16.mxu1 %v19168_v24  ;;  %v19259_v24 = vld [vmem:[%s22187_s19 + $0xb8] ss:$40 sps:$4 sm:$0xff]  }
 0x1c0   : > { %6500 = vmatpush1.bf16.msra.mxu0 %v19163_v25  ;;  %v19264_v25 = vld [vmem:[%s22187_s19 + $0x104] ss:$40 sps:$4 sm:$0xff]  }
 0x1c1   : > { %6758 = vmatpush1.bf16.msra.mxu1 %v19166_v26  ;;  %6501 = vmatprep.subr.bf16.mxu0 %v19171_v27  ;;  %v19267_v26 = vld [vmem:[%s22187_s19 + $0x10c] ss:$40 sps:$4 sm:$0xff]   ;;  %v19262_v27 = vld [vmem:[%s22187_s19 + $0x100] ss:$40 sps:$4 sm:$0xff]  }
 0x1c2   : > { %6759 = vmatprep.subr.bf16.mxu1 %v19174_v28  ;;  %v19265_v28 = vld [vmem:[%s22187_s19 + $0x108] ss:$40 sps:$4 sm:$0xff]  }
 0x1c4   : > { %6502 = vmatpush1.bf16.msra.mxu0 %v19169_v29  ;;  %v19270_v29 = vld [vmem:[%s22187_s19 + $0x154] ss:$40 sps:$4 sm:$0xff]  }
 0x1c5   : > { %6760 = vmatpush1.bf16.msra.mxu1 %v19172_v30  ;;  %6503 = vmatprep.subr.bf16.mxu0 %v19177_v31  ;;  %v19273_v30 = vld [vmem:[%s22187_s19 + $0x15c] ss:$40 sps:$4 sm:$0xff]   ;;  %v19268_v31 = vld [vmem:[%s22187_s19 + $0x150] ss:$40 sps:$4 sm:$0xff]  }
 0x1c6   : > { %6761 = vmatprep.subr.bf16.mxu1 %v19180_v32  ;;  %v19271_v32 = vld [vmem:[%s22187_s19 + $0x158] ss:$40 sps:$4 sm:$0xff]  }
 0x1c8   : > { %6504 = vmatpush1.bf16.msra.mxu0 %v19175_v33  ;;  %v19276_v33 = vld [vmem:[%s22187_s19 + $0x1a4] ss:$40 sps:$4 sm:$0xff]  }
 0x1c9   : > { %6762 = vmatpush1.bf16.msra.mxu1 %v19178_v34  ;;  %6505 = vmatprep.subr.bf16.mxu0 %v19183_v35  ;;  %v19279_v34 = vld [vmem:[%s22187_s19 + $0x1ac] ss:$40 sps:$4 sm:$0xff]   ;;  %v19274_v35 = vld [vmem:[%s22187_s19 + $0x1a0] ss:$40 sps:$4 sm:$0xff]  }
 0x1ca   : > { %6763 = vmatprep.subr.bf16.mxu1 %v19186_v36  ;;  %v19277_v36 = vld [vmem:[%s22187_s19 + $0x1a8] ss:$40 sps:$4 sm:$0xff]  }
 0x1cc   : > { %6506 = vmatpush1.bf16.msra.mxu0 %v19181_v37  ;;  %v19282_v37 = vld [vmem:[%s22187_s19 + $0x1f4] ss:$40 sps:$4 sm:$0xff]  }
 0x1cd   : > { %6764 = vmatpush1.bf16.msra.mxu1 %v19184_v38  ;;  %6507 = vmatprep.subr.bf16.mxu0 %v19189_v39  ;;  %v19285_v38 = vld [vmem:[%s22187_s19 + $0x1fc] ss:$40 sps:$4 sm:$0xff]   ;;  %v19280_v39 = vld [vmem:[%s22187_s19 + $0x1f0] ss:$40 sps:$4 sm:$0xff]  }
 0x1ce   : > { %6765 = vmatprep.subr.bf16.mxu1 %v19192_v40  ;;  %v19283_v40 = vld [vmem:[%s22187_s19 + $0x1f8] ss:$40 sps:$4 sm:$0xff]  }
 0x1d0   : > { %6508 = vmatpush1.bf16.msra.mxu0 %v19187_v41  ;;  %v19288_v41 = vld [vmem:[%s22187_s19 + $0x244] ss:$40 sps:$4 sm:$0xff]  }
 0x1d1   : > { %6766 = vmatpush1.bf16.msra.mxu1 %v19190_v42  ;;  %6509 = vmatprep.subr.bf16.mxu0 %v19195_v43  ;;  %v19291_v42 = vld [vmem:[%s22187_s19 + $0x24c] ss:$40 sps:$4 sm:$0xff]   ;;  %v19286_v43 = vld [vmem:[%s22187_s19 + $0x240] ss:$40 sps:$4 sm:$0xff]  }
 0x1d2   : > { %6767 = vmatprep.subr.bf16.mxu1 %v19198_v44  ;;  %v19289_v44 = vld [vmem:[%s22187_s19 + $0x248] ss:$40 sps:$4 sm:$0xff]  }
 0x1d4   : > { %6510 = vmatpush1.bf16.msra.mxu0 %v19193_v45  ;;  %v19294_v45 = vld [vmem:[%s22187_s19 + $0x294] ss:$40 sps:$4 sm:$0xff]  }
 0x1d5   : > { %6768 = vmatpush1.bf16.msra.mxu1 %v19196_v46  ;;  %6511 = vmatprep.subr.bf16.mxu0 %v19201_v47  ;;  %v19297_v46 = vld [vmem:[%s22187_s19 + $0x29c] ss:$40 sps:$4 sm:$0xff]   ;;  %v19292_v47 = vld [vmem:[%s22187_s19 + $0x290] ss:$40 sps:$4 sm:$0xff]  }
 0x1d6   : > { %6769 = vmatprep.subr.bf16.mxu1 %v19204_v48  ;;  %v19295_v48 = vld [vmem:[%s22187_s19 + $0x298] ss:$40 sps:$4 sm:$0xff]  }
 0x1d8   : > { %6512 = vmatpush1.bf16.msra.mxu0 %v19199_v49  ;;  %v19300_v49 = vld [vmem:[%s22187_s19 + $0x2e4] ss:$40 sps:$4 sm:$0xff]  }
 0x1d9   : > { %6770 = vmatpush1.bf16.msra.mxu1 %v19202_v50  ;;  %6513 = vmatprep.subr.bf16.mxu0 %v19207_v51  ;;  %v19303_v50 = vld [vmem:[%s22187_s19 + $0x2ec] ss:$40 sps:$4 sm:$0xff]   ;;  %v19298_v51 = vld [vmem:[%s22187_s19 + $0x2e0] ss:$40 sps:$4 sm:$0xff]  }
 0x1da   : > { %6771 = vmatprep.subr.bf16.mxu1 %v19210_v52  ;;  %v19301_v52 = vld [vmem:[%s22187_s19 + $0x2e8] ss:$40 sps:$4 sm:$0xff]  }
 0x1dc   : > { %6514 = vmatpush1.bf16.msra.mxu0 %v19205_v53  ;;  %v19306_v53 = vld [vmem:[%s22187_s19 + $0x334] ss:$40 sps:$4 sm:$0xff]  }
 0x1dd   : > { %6772 = vmatpush1.bf16.msra.mxu1 %v19208_v54  ;;  %6515 = vmatprep.subr.bf16.mxu0 %v19213_v55  ;;  %v19309_v54 = vld [vmem:[%s22187_s19 + $0x33c] ss:$40 sps:$4 sm:$0xff]   ;;  %v19304_v55 = vld [vmem:[%s22187_s19 + $0x330] ss:$40 sps:$4 sm:$0xff]  }
 0x1de   : > { %6773 = vmatprep.subr.bf16.mxu1 %v19216_v56  ;;  %v19307_v56 = vld [vmem:[%s22187_s19 + $0x338] ss:$40 sps:$4 sm:$0xff]  }
 0x1e0   : > { %6516 = vmatpush1.bf16.msra.mxu0 %v19211_v57  ;;  %v19312_v57 = vld [vmem:[%s22187_s19 + $0x384] ss:$40 sps:$4 sm:$0xff]  }
 0x1e1   : > { %6774 = vmatpush1.bf16.msra.mxu1 %v19214_v58  ;;  %6517 = vmatprep.subr.bf16.mxu0 %v19219_v59  ;;  %v19315_v58 = vld [vmem:[%s22187_s19 + $0x38c] ss:$40 sps:$4 sm:$0xff]   ;;  %v19310_v59 = vld [vmem:[%s22187_s19 + $0x380] ss:$40 sps:$4 sm:$0xff]  }
 0x1e2   : > { %6775 = vmatprep.subr.bf16.mxu1 %v19222_v60  ;;  %v19313_v60 = vld [vmem:[%s22187_s19 + $0x388] ss:$40 sps:$4 sm:$0xff]  }
 0x1e4   : > { %6518 = vmatpush1.bf16.msra.mxu0 %v19217_v61  ;;  %v19318_v61 = vld [vmem:[%s22187_s19 + $0x3d4] ss:$40 sps:$4 sm:$0xff]  }
 0x1e5   : > { %6776 = vmatpush1.bf16.msra.mxu1 %v19220_v62  ;;  %6519 = vmatprep.subr.bf16.mxu0 %v19225_v63  ;;  %v19321_v62 = vld [vmem:[%s22187_s19 + $0x3dc] ss:$40 sps:$4 sm:$0xff]   ;;  %v19316_v63 = vld [vmem:[%s22187_s19 + $0x3d0] ss:$40 sps:$4 sm:$0xff]  }
 0x1e6   : > { %6777 = vmatprep.subr.bf16.mxu1 %v19228_v0  ;;  %v19319_v0 = vld [vmem:[%s22187_s19 + $0x3d8] ss:$40 sps:$4 sm:$0xff]  }
 0x1e8   : > { %6520 = vmatpush1.bf16.msra.mxu0 %v19223_v1  ;;  %v19324_v1 = vld [vmem:[%s22187_s19 + $0x424] ss:$40 sps:$4 sm:$0xff]  }
 0x1e9   : > { %6778 = vmatpush1.bf16.msra.mxu1 %v19226_v2  ;;  %6521 = vmatprep.subr.bf16.mxu0 %v19231_v3  ;;  %v19327_v2 = vld [vmem:[%s22187_s19 + $0x42c] ss:$40 sps:$4 sm:$0xff]   ;;  %v19322_v3 = vld [vmem:[%s22187_s19 + $0x420] ss:$40 sps:$4 sm:$0xff]  }
 0x1ea   : > { %6779 = vmatprep.subr.bf16.mxu1 %v19234_v4  ;;  %v19325_v4 = vld [vmem:[%s22187_s19 + $0x428] ss:$40 sps:$4 sm:$0xff]  }
 0x1ec   : > { %6522 = vmatpush1.bf16.msra.mxu0 %v19229_v5  ;;  %v19330_v5 = vld [vmem:[%s22187_s19 + $0x474] ss:$40 sps:$4 sm:$0xff]  }
 0x1ed   : > { %6780 = vmatpush1.bf16.msra.mxu1 %v19232_v6  ;;  %6523 = vmatprep.subr.bf16.mxu0 %v19237_v7  ;;  %v19333_v6 = vld [vmem:[%s22187_s19 + $0x47c] ss:$40 sps:$4 sm:$0xff]   ;;  %v19328_v7 = vld [vmem:[%s22187_s19 + $0x470] ss:$40 sps:$4 sm:$0xff]  }
 0x1ee   : > { %6781 = vmatprep.subr.bf16.mxu1 %v19240_v8  ;;  %v19331_v8 = vld [vmem:[%s22187_s19 + $0x478] ss:$40 sps:$4 sm:$0xff]  }
 0x1f0   : > { %6524 = vmatpush1.bf16.msra.mxu0 %v19235_v9  ;;  %v19336_v9 = vld [vmem:[%s22187_s19 + $0x4c4] ss:$40 sps:$4 sm:$0xff]  }
 0x1f1   : > { %6782 = vmatpush1.bf16.msra.mxu1 %v19238_v10  ;;  %6794 = vmatprep.subr.bf16.mxu0 %v19246_v12  ;;  %v19339_v10 = vld [vmem:[%s22187_s19 + $0x4cc] ss:$40 sps:$4 sm:$0xff]   ;;  %v19337_v12 = vld [vmem:[%s22187_s19 + $0x4c8] ss:$40 sps:$4 sm:$0xff]  }
 0x1f2   : > { %7052 = vmatprep.subr.bf16.mxu1 %v19249_v13  ;;  %v19342_v13 = vld [vmem:[%s22187_s19 + $0x514] ss:$40 sps:$4 sm:$0xff]  }
 0x1f3   : > { %6526 = vmatmul.mubr.bf16.vlgmr.msra.gmra.mrb[0].mxu0 %v19243_v11 }
 0x1f4   : > { %6784 = vmatmul.mubr.bf16.vlgmr.msra.gmra.mrb[0].mxu1 %v19243_v11  ;;  %6795 = vmatpush1.bf16.msra.mxu0 %v19244_v14  ;;  %v19334_v11 = vld [vmem:[%s22187_s19 + $0x4c0] ss:$40 sps:$4 sm:$0xff]   ;;  %v19345_v14 = vld [vmem:[%s22187_s19 + $0x51c] ss:$40 sps:$4 sm:$0xff]  }
 0x1f5   : > { %7053 = vmatpush1.bf16.msra.mxu1 %v19247_v15  ;;  %6796 = vmatprep.subr.bf16.mxu0 %v19252_v16  ;;  %v19340_v15 = vld [vmem:[%s22187_s19 + $0x510] ss:$40 sps:$4 sm:$0xff]  }
 0x1f6   : > { %7054 = vmatprep.subr.bf16.mxu1 %v19255_v17  ;;  %6826 = vmatprep.mubr.bf16.mxu0 %v21797_v22  ;;  %v19343_v16 = vld [vmem:[%s22187_s19 + $0x518] ss:$40 sps:$4 sm:$0xff]   ;;  %v19348_v17 = vld [vmem:[%s22187_s19 + $0x564] ss:$40 sps:$4 sm:$0xff]  }
 0x1f7   : > { %7084 = vmatprep.mubr.bf16.mxu1 %v21797_v22  ;;  %v19354_v22 = vld [vmem:[%s22187_s19 + $0x5b4] ss:$40 sps:$4 sm:$0xff]  }
 0x1f8   : > { %6797 = vmatpush1.bf16.msra.mxu0 %v19250_v18  ;;  %v19351_v18 = vld [vmem:[%s22187_s19 + $0x56c] ss:$40 sps:$4 sm:$0xff]  }
 0x1f9   : > { %7055 = vmatpush1.bf16.msra.mxu1 %v19253_v19  ;;  %6798 = vmatprep.subr.bf16.mxu0 %v19258_v20  ;;  %v21798_v19 = vld [vmem:[%s24840_s0] ss:$48 sps:$4 sm:$0xff]  }
 0x1fa   : > { %7056 = vmatprep.subr.bf16.mxu1 %v19261_v21  ;;  %v19346_v20 = vld [vmem:[%s22187_s19 + $0x560] ss:$40 sps:$4 sm:$0xff]  }
 0x1fb   : > { %v19349_v21 = vld [vmem:[%s22187_s19 + $0x568] ss:$40 sps:$4 sm:$0xff]  }
 0x1fc   : > { %6799 = vmatpush1.bf16.msra.mxu0 %v19256_v23  ;;  %v19357_v23 = vld [vmem:[%s22187_s19 + $0x5bc] ss:$40 sps:$4 sm:$0xff]  }
 0x1fd   : > { %7057 = vmatpush1.bf16.msra.mxu1 %v19259_v24  ;;  %6800 = vmatprep.subr.bf16.mxu0 %v19264_v25  ;;  %v21799_v24 = vld [vmem:[%s24840_s0 + $0xc] ss:$48 sps:$4 sm:$0xff]   ;;  %v19352_v25 = vld [vmem:[%s22187_s19 + $0x5b0] ss:$40 sps:$4 sm:$0xff]  }
 0x1fe   : > { %7058 = vmatprep.subr.bf16.mxu1 %v19267_v26  ;;  %v19355_v26 = vld [vmem:[%s22187_s19 + $0x5b8] ss:$40 sps:$4 sm:$0xff]  }
 0x200   : > { %6801 = vmatpush1.bf16.msra.mxu0 %v19262_v27  ;;  %v19360_v27 = vld [vmem:[%s22187_s19 + $0x604] ss:$40 sps:$4 sm:$0xff]  }
 0x201   : > { %7059 = vmatpush1.bf16.msra.mxu1 %v19265_v28  ;;  %6802 = vmatprep.subr.bf16.mxu0 %v19270_v29  ;;  %v19363_v28 = vld [vmem:[%s22187_s19 + $0x60c] ss:$40 sps:$4 sm:$0xff]   ;;  %v19358_v29 = vld [vmem:[%s22187_s19 + $0x600] ss:$40 sps:$4 sm:$0xff]  }
 0x202   : > { %7060 = vmatprep.subr.bf16.mxu1 %v19273_v30  ;;  %v19361_v30 = vld [vmem:[%s22187_s19 + $0x608] ss:$40 sps:$4 sm:$0xff]  }
 0x204   : > { %6803 = vmatpush1.bf16.msra.mxu0 %v19268_v31  ;;  %v19366_v31 = vld [vmem:[%s22187_s19 + $0x654] ss:$40 sps:$4 sm:$0xff]  }
 0x205   : > { %7061 = vmatpush1.bf16.msra.mxu1 %v19271_v32  ;;  %6804 = vmatprep.subr.bf16.mxu0 %v19276_v33  ;;  %v19369_v32 = vld [vmem:[%s22187_s19 + $0x65c] ss:$40 sps:$4 sm:$0xff]   ;;  %v19364_v33 = vld [vmem:[%s22187_s19 + $0x650] ss:$40 sps:$4 sm:$0xff]  }
 0x206   : > { %7062 = vmatprep.subr.bf16.mxu1 %v19279_v34  ;;  %v19367_v34 = vld [vmem:[%s22187_s19 + $0x658] ss:$40 sps:$4 sm:$0xff]  }
 0x208   : > { %6805 = vmatpush1.bf16.msra.mxu0 %v19274_v35  ;;  %v19372_v35 = vld [vmem:[%s22187_s19 + $0x6a4] ss:$40 sps:$4 sm:$0xff]  }
 0x209   : > { %7063 = vmatpush1.bf16.msra.mxu1 %v19277_v36  ;;  %6806 = vmatprep.subr.bf16.mxu0 %v19282_v37  ;;  %v19375_v36 = vld [vmem:[%s22187_s19 + $0x6ac] ss:$40 sps:$4 sm:$0xff]   ;;  %v19370_v37 = vld [vmem:[%s22187_s19 + $0x6a0] ss:$40 sps:$4 sm:$0xff]  }
 0x20a   : > { %7064 = vmatprep.subr.bf16.mxu1 %v19285_v38  ;;  %v19373_v38 = vld [vmem:[%s22187_s19 + $0x6a8] ss:$40 sps:$4 sm:$0xff]  }
 0x20c   : > { %6807 = vmatpush1.bf16.msra.mxu0 %v19280_v39  ;;  %v19378_v39 = vld [vmem:[%s22187_s19 + $0x6f4] ss:$40 sps:$4 sm:$0xff]  }
 0x20d   : > { %7065 = vmatpush1.bf16.msra.mxu1 %v19283_v40  ;;  %6808 = vmatprep.subr.bf16.mxu0 %v19288_v41  ;;  %v19381_v40 = vld [vmem:[%s22187_s19 + $0x6fc] ss:$40 sps:$4 sm:$0xff]   ;;  %v19376_v41 = vld [vmem:[%s22187_s19 + $0x6f0] ss:$40 sps:$4 sm:$0xff]  }
 0x20e   : > { %7066 = vmatprep.subr.bf16.mxu1 %v19291_v42  ;;  %v19379_v42 = vld [vmem:[%s22187_s19 + $0x6f8] ss:$40 sps:$4 sm:$0xff]  }
 0x210   : > { %6809 = vmatpush1.bf16.msra.mxu0 %v19286_v43  ;;  %v19384_v43 = vld [vmem:[%s22187_s19 + $0x744] ss:$40 sps:$4 sm:$0xff]  }
 0x211   : > { %7067 = vmatpush1.bf16.msra.mxu1 %v19289_v44  ;;  %6810 = vmatprep.subr.bf16.mxu0 %v19294_v45  ;;  %v19387_v44 = vld [vmem:[%s22187_s19 + $0x74c] ss:$40 sps:$4 sm:$0xff]   ;;  %v19382_v45 = vld [vmem:[%s22187_s19 + $0x740] ss:$40 sps:$4 sm:$0xff]  }
 0x212   : > { %7068 = vmatprep.subr.bf16.mxu1 %v19297_v46  ;;  %v19385_v46 = vld [vmem:[%s22187_s19 + $0x748] ss:$40 sps:$4 sm:$0xff]  }
 0x214   : > { %6811 = vmatpush1.bf16.msra.mxu0 %v19292_v47  ;;  %v19390_v47 = vld [vmem:[%s22187_s19 + $0x794] ss:$40 sps:$4 sm:$0xff]  }
 0x215   : > { %7069 = vmatpush1.bf16.msra.mxu1 %v19295_v48  ;;  %6812 = vmatprep.subr.bf16.mxu0 %v19300_v49  ;;  %v19393_v48 = vld [vmem:[%s22187_s19 + $0x79c] ss:$40 sps:$4 sm:$0xff]   ;;  %v19388_v49 = vld [vmem:[%s22187_s19 + $0x790] ss:$40 sps:$4 sm:$0xff]  }
 0x216   : > { %7070 = vmatprep.subr.bf16.mxu1 %v19303_v50  ;;  %v19391_v50 = vld [vmem:[%s22187_s19 + $0x798] ss:$40 sps:$4 sm:$0xff]  }
 0x218   : > { %6813 = vmatpush1.bf16.msra.mxu0 %v19298_v51  ;;  %v19396_v51 = vld [vmem:[%s22187_s19 + $0x7e4] ss:$40 sps:$4 sm:$0xff]  }
 0x219   : > { %7071 = vmatpush1.bf16.msra.mxu1 %v19301_v52  ;;  %6814 = vmatprep.subr.bf16.mxu0 %v19306_v53  ;;  %v19399_v52 = vld [vmem:[%s22187_s19 + $0x7ec] ss:$40 sps:$4 sm:$0xff]   ;;  %v19394_v53 = vld [vmem:[%s22187_s19 + $0x7e0] ss:$40 sps:$4 sm:$0xff]  }
 0x21a   : > { %7072 = vmatprep.subr.bf16.mxu1 %v19309_v54  ;;  %v19397_v54 = vld [vmem:[%s22187_s19 + $0x7e8] ss:$40 sps:$4 sm:$0xff]  }
 0x21c   : > { %6815 = vmatpush1.bf16.msra.mxu0 %v19304_v55  ;;  %v19402_v55 = vld [vmem:[%s22187_s19 + $0x834] ss:$40 sps:$4 sm:$0xff]  }
 0x21d   : > { %7073 = vmatpush1.bf16.msra.mxu1 %v19307_v56  ;;  %6816 = vmatprep.subr.bf16.mxu0 %v19312_v57  ;;  %v19405_v56 = vld [vmem:[%s22187_s19 + $0x83c] ss:$40 sps:$4 sm:$0xff]   ;;  %v19400_v57 = vld [vmem:[%s22187_s19 + $0x830] ss:$40 sps:$4 sm:$0xff]  }
 0x21e   : > { %7074 = vmatprep.subr.bf16.mxu1 %v19315_v58  ;;  %v19403_v58 = vld [vmem:[%s22187_s19 + $0x838] ss:$40 sps:$4 sm:$0xff]  }
 0x220   : > { %6817 = vmatpush1.bf16.msra.mxu0 %v19310_v59  ;;  %v19408_v59 = vld [vmem:[%s22187_s19 + $0x884] ss:$40 sps:$4 sm:$0xff]  }
 0x221   : > { %7075 = vmatpush1.bf16.msra.mxu1 %v19313_v60  ;;  %6818 = vmatprep.subr.bf16.mxu0 %v19318_v61  ;;  %v19411_v60 = vld [vmem:[%s22187_s19 + $0x88c] ss:$40 sps:$4 sm:$0xff]   ;;  %v19406_v61 = vld [vmem:[%s22187_s19 + $0x880] ss:$40 sps:$4 sm:$0xff]  }
 0x222   : > { %7076 = vmatprep.subr.bf16.mxu1 %v19321_v62  ;;  %v19409_v62 = vld [vmem:[%s22187_s19 + $0x888] ss:$40 sps:$4 sm:$0xff]  }
 0x224   : > { %6819 = vmatpush1.bf16.msra.mxu0 %v19316_v63  ;;  %v19414_v63 = vld [vmem:[%s22187_s19 + $0x8d4] ss:$40 sps:$4 sm:$0xff]  }
 0x225   : > { %7077 = vmatpush1.bf16.msra.mxu1 %v19319_v0  ;;  %6820 = vmatprep.subr.bf16.mxu0 %v19324_v1  ;;  %v19417_v0 = vld [vmem:[%s22187_s19 + $0x8dc] ss:$40 sps:$4 sm:$0xff]   ;;  %v19412_v1 = vld [vmem:[%s22187_s19 + $0x8d0] ss:$40 sps:$4 sm:$0xff]  }
 0x226   : > { %7078 = vmatprep.subr.bf16.mxu1 %v19327_v2  ;;  %v19415_v2 = vld [vmem:[%s22187_s19 + $0x8d8] ss:$40 sps:$4 sm:$0xff]  }
 0x228   : > { %6821 = vmatpush1.bf16.msra.mxu0 %v19322_v3  ;;  %v19420_v3 = vld [vmem:[%s22187_s19 + $0x924] ss:$40 sps:$4 sm:$0xff]  }
 0x229   : > { %7079 = vmatpush1.bf16.msra.mxu1 %v19325_v4  ;;  %6822 = vmatprep.subr.bf16.mxu0 %v19330_v5  ;;  %v19423_v4 = vld [vmem:[%s22187_s19 + $0x92c] ss:$40 sps:$4 sm:$0xff]   ;;  %v19418_v5 = vld [vmem:[%s22187_s19 + $0x920] ss:$40 sps:$4 sm:$0xff]  }
 0x22a   : > { %7080 = vmatprep.subr.bf16.mxu1 %v19333_v6  ;;  %v19421_v6 = vld [vmem:[%s22187_s19 + $0x928] ss:$40 sps:$4 sm:$0xff]  }
 0x22c   : > { %6823 = vmatpush1.bf16.msra.mxu0 %v19328_v7  ;;  %v19426_v7 = vld [vmem:[%s22187_s19 + $0x974] ss:$40 sps:$4 sm:$0xff]  }
 0x22d   : > { %7081 = vmatpush1.bf16.msra.mxu1 %v19331_v8  ;;  %6824 = vmatprep.subr.bf16.mxu0 %v19336_v9  ;;  %v19429_v8 = vld [vmem:[%s22187_s19 + $0x97c] ss:$40 sps:$4 sm:$0xff]   ;;  %v19424_v9 = vld [vmem:[%s22187_s19 + $0x970] ss:$40 sps:$4 sm:$0xff]  }
 0x22e   : > { %7082 = vmatprep.subr.bf16.mxu1 %v19339_v10  ;;  %v19427_v10 = vld [vmem:[%s22187_s19 + $0x978] ss:$40 sps:$4 sm:$0xff]  }
 0x230   : > { %6825 = vmatpush1.bf16.msra.mxu0 %v19334_v11  ;;  %v19432_v11 = vld [vmem:[%s22187_s19 + $0x9c4] ss:$40 sps:$4 sm:$0xff]  }
 0x231   : > { %7083 = vmatpush1.bf16.msra.mxu1 %v19337_v12  ;;  %6837 = vmatprep.subr.bf16.mxu0 %v19342_v13  ;;  %v19435_v12 = vld [vmem:[%s22187_s19 + $0x9cc] ss:$40 sps:$4 sm:$0xff]   ;;  %v19430_v13 = vld [vmem:[%s22187_s19 + $0x9c0] ss:$40 sps:$4 sm:$0xff]  }
 0x232   : > { %7095 = vmatprep.subr.bf16.mxu1 %v19345_v14  ;;  %v19433_v14 = vld [vmem:[%s22187_s19 + $0x9c8] ss:$40 sps:$4 sm:$0xff]  }
 0x233   : > { %6827 = vmatmul.mubr.bf16.vlgmr.msra.gmra.mrb[4].mxu0 %v21798_v19 }
 0x234   : > { %7085 = vmatmul.mubr.bf16.vlgmr.msra.gmra.mrb[4].mxu1 %v21798_v19  ;;  %6838 = vmatpush1.bf16.msra.mxu0 %v19340_v15  ;;  %v19438_v15 = vld [vmem:[%s22187_s19 + $0xa14] ss:$40 sps:$4 sm:$0xff]   ;;  %v19444_v19 = vld [vmem:[%s22187_s19 + $0xa64] ss:$40 sps:$4 sm:$0xff]  }
 0x235   : > { %7096 = vmatpush1.bf16.msra.mxu1 %v19343_v16  ;;  %6839 = vmatprep.subr.bf16.mxu0 %v19348_v17  ;;  %v19441_v16 = vld [vmem:[%s22187_s19 + $0xa1c] ss:$40 sps:$4 sm:$0xff]   ;;  %v19436_v17 = vld [vmem:[%s22187_s19 + $0xa10] ss:$40 sps:$4 sm:$0xff]  }
 0x236   : > { %7097 = vmatprep.subr.bf16.mxu1 %v19351_v18  ;;  %6869 = vmatprep.mubr.bf16.mxu0 %v21799_v24  ;;  %v19439_v18 = vld [vmem:[%s22187_s19 + $0xa18] ss:$40 sps:$4 sm:$0xff]  }
 0x237   : > { %7127 = vmatprep.mubr.bf16.mxu1 %v21799_v24  ;;  %v19450_v24 = vld [vmem:[%s22187_s19 + $0xab4] ss:$40 sps:$4 sm:$0xff]  }
 0x238   : > { %6840 = vmatpush1.bf16.msra.mxu0 %v19346_v20  ;;  %v19447_v20 = vld [vmem:[%s22187_s19 + $0xa6c] ss:$40 sps:$4 sm:$0xff]  }
 0x239   : > { %7098 = vmatpush1.bf16.msra.mxu1 %v19349_v21  ;;  %6841 = vmatprep.subr.bf16.mxu0 %v19354_v22  ;;  %v21800_v21 = vld [vmem:[%s24840_s0 + $0x8] ss:$48 sps:$4 sm:$0xff]  }
 0x23a   : > { %7099 = vmatprep.subr.bf16.mxu1 %v19357_v23  ;;  %v19442_v22 = vld [vmem:[%s22187_s19 + $0xa60] ss:$40 sps:$4 sm:$0xff]  }
 0x23b   : > { %v19445_v23 = vld [vmem:[%s22187_s19 + $0xa68] ss:$40 sps:$4 sm:$0xff]  }
 0x23c   : > { %6842 = vmatpush1.bf16.msra.mxu0 %v19352_v25  ;;  %v19453_v25 = vld [vmem:[%s22187_s19 + $0xabc] ss:$40 sps:$4 sm:$0xff]  }
 0x23d   : > { %7100 = vmatpush1.bf16.msra.mxu1 %v19355_v26  ;;  %6843 = vmatprep.subr.bf16.mxu0 %v19360_v27  ;;  %v21801_v26 = vld [vmem:[%s24840_s0 + $0x14] ss:$48 sps:$4 sm:$0xff]   ;;  %v19448_v27 = vld [vmem:[%s22187_s19 + $0xab0] ss:$40 sps:$4 sm:$0xff]  }
 0x23e   : > { %7101 = vmatprep.subr.bf16.mxu1 %v19363_v28  ;;  %v19451_v28 = vld [vmem:[%s22187_s19 + $0xab8] ss:$40 sps:$4 sm:$0xff]  }
 0x240   : > { %6844 = vmatpush1.bf16.msra.mxu0 %v19358_v29  ;;  %v19456_v29 = vld [vmem:[%s22187_s19 + $0xb04] ss:$40 sps:$4 sm:$0xff]  }
 0x241   : > { %7102 = vmatpush1.bf16.msra.mxu1 %v19361_v30  ;;  %6845 = vmatprep.subr.bf16.mxu0 %v19366_v31  ;;  %v19459_v30 = vld [vmem:[%s22187_s19 + $0xb0c] ss:$40 sps:$4 sm:$0xff]   ;;  %v19454_v31 = vld [vmem:[%s22187_s19 + $0xb00] ss:$40 sps:$4 sm:$0xff]  }
 0x242   : > { %7103 = vmatprep.subr.bf16.mxu1 %v19369_v32  ;;  %v19457_v32 = vld [vmem:[%s22187_s19 + $0xb08] ss:$40 sps:$4 sm:$0xff]  }
 0x244   : > { %6846 = vmatpush1.bf16.msra.mxu0 %v19364_v33  ;;  %v19462_v33 = vld [vmem:[%s22187_s19 + $0xb54] ss:$40 sps:$4 sm:$0xff]  }
 0x245   : > { %7104 = vmatpush1.bf16.msra.mxu1 %v19367_v34  ;;  %6847 = vmatprep.subr.bf16.mxu0 %v19372_v35  ;;  %v19465_v34 = vld [vmem:[%s22187_s19 + $0xb5c] ss:$40 sps:$4 sm:$0xff]   ;;  %v19460_v35 = vld [vmem:[%s22187_s19 + $0xb50] ss:$40 sps:$4 sm:$0xff]  }
 0x246   : > { %7105 = vmatprep.subr.bf16.mxu1 %v19375_v36  ;;  %v19463_v36 = vld [vmem:[%s22187_s19 + $0xb58] ss:$40 sps:$4 sm:$0xff]  }
 0x248   : > { %6848 = vmatpush1.bf16.msra.mxu0 %v19370_v37  ;;  %v19468_v37 = vld [vmem:[%s22187_s19 + $0xba4] ss:$40 sps:$4 sm:$0xff]  }
 0x249   : > { %7106 = vmatpush1.bf16.msra.mxu1 %v19373_v38  ;;  %6849 = vmatprep.subr.bf16.mxu0 %v19378_v39  ;;  %v19471_v38 = vld [vmem:[%s22187_s19 + $0xbac] ss:$40 sps:$4 sm:$0xff]   ;;  %v19466_v39 = vld [vmem:[%s22187_s19 + $0xba0] ss:$40 sps:$4 sm:$0xff]  }
 0x24a   : > { %7107 = vmatprep.subr.bf16.mxu1 %v19381_v40  ;;  %v19469_v40 = vld [vmem:[%s22187_s19 + $0xba8] ss:$40 sps:$4 sm:$0xff]  }
 0x24c   : > { %6850 = vmatpush1.bf16.msra.mxu0 %v19376_v41  ;;  %v19474_v41 = vld [vmem:[%s22187_s19 + $0xbf4] ss:$40 sps:$4 sm:$0xff]  }
 0x24d   : > { %7108 = vmatpush1.bf16.msra.mxu1 %v19379_v42  ;;  %6851 = vmatprep.subr.bf16.mxu0 %v19384_v43  ;;  %v19477_v42 = vld [vmem:[%s22187_s19 + $0xbfc] ss:$40 sps:$4 sm:$0xff]   ;;  %v19472_v43 = vld [vmem:[%s22187_s19 + $0xbf0] ss:$40 sps:$4 sm:$0xff]  }
 0x24e   : > { %7109 = vmatprep.subr.bf16.mxu1 %v19387_v44  ;;  %v19475_v44 = vld [vmem:[%s22187_s19 + $0xbf8] ss:$40 sps:$4 sm:$0xff]  }
 0x250   : > { %6852 = vmatpush1.bf16.msra.mxu0 %v19382_v45  ;;  %v19480_v45 = vld [vmem:[%s22187_s19 + $0xc44] ss:$40 sps:$4 sm:$0xff]  }
 0x251   : > { %7110 = vmatpush1.bf16.msra.mxu1 %v19385_v46  ;;  %6853 = vmatprep.subr.bf16.mxu0 %v19390_v47  ;;  %v19483_v46 = vld [vmem:[%s22187_s19 + $0xc4c] ss:$40 sps:$4 sm:$0xff]   ;;  %v19478_v47 = vld [vmem:[%s22187_s19 + $0xc40] ss:$40 sps:$4 sm:$0xff]  }
 0x252   : > { %7111 = vmatprep.subr.bf16.mxu1 %v19393_v48  ;;  %v19481_v48 = vld [vmem:[%s22187_s19 + $0xc48] ss:$40 sps:$4 sm:$0xff]  }
 0x254   : > { %6854 = vmatpush1.bf16.msra.mxu0 %v19388_v49  ;;  %v19486_v49 = vld [vmem:[%s22187_s19 + $0xc94] ss:$40 sps:$4 sm:$0xff]  }
 0x255   : > { %7112 = vmatpush1.bf16.msra.mxu1 %v19391_v50  ;;  %6855 = vmatprep.subr.bf16.mxu0 %v19396_v51  ;;  %v19489_v50 = vld [vmem:[%s22187_s19 + $0xc9c] ss:$40 sps:$4 sm:$0xff]   ;;  %v19484_v51 = vld [vmem:[%s22187_s19 + $0xc90] ss:$40 sps:$4 sm:$0xff]  }
 0x256   : > { %7113 = vmatprep.subr.bf16.mxu1 %v19399_v52  ;;  %v19487_v52 = vld [vmem:[%s22187_s19 + $0xc98] ss:$40 sps:$4 sm:$0xff]  }
 0x258   : > { %6856 = vmatpush1.bf16.msra.mxu0 %v19394_v53  ;;  %v19492_v53 = vld [vmem:[%s22187_s19 + $0xce4] ss:$40 sps:$4 sm:$0xff]  }
 0x259   : > { %7114 = vmatpush1.bf16.msra.mxu1 %v19397_v54  ;;  %6857 = vmatprep.subr.bf16.mxu0 %v19402_v55  ;;  %v19495_v54 = vld [vmem:[%s22187_s19 + $0xcec] ss:$40 sps:$4 sm:$0xff]   ;;  %v19490_v55 = vld [vmem:[%s22187_s19 + $0xce0] ss:$40 sps:$4 sm:$0xff]  }
 0x25a   : > { %7115 = vmatprep.subr.bf16.mxu1 %v19405_v56  ;;  %v19493_v56 = vld [vmem:[%s22187_s19 + $0xce8] ss:$40 sps:$4 sm:$0xff]  }
 0x25c   : > { %6858 = vmatpush1.bf16.msra.mxu0 %v19400_v57  ;;  %v19498_v57 = vld [vmem:[%s22187_s19 + $0xd34] ss:$40 sps:$4 sm:$0xff]  }
 0x25d   : > { %7116 = vmatpush1.bf16.msra.mxu1 %v19403_v58  ;;  %6859 = vmatprep.subr.bf16.mxu0 %v19408_v59  ;;  %v19501_v58 = vld [vmem:[%s22187_s19 + $0xd3c] ss:$40 sps:$4 sm:$0xff]   ;;  %v19496_v59 = vld [vmem:[%s22187_s19 + $0xd30] ss:$40 sps:$4 sm:$0xff]  }
 0x25e   : > { %7117 = vmatprep.subr.bf16.mxu1 %v19411_v60  ;;  %v19499_v60 = vld [vmem:[%s22187_s19 + $0xd38] ss:$40 sps:$4 sm:$0xff]  }
 0x260   : > { %6860 = vmatpush1.bf16.msra.mxu0 %v19406_v61  ;;  %v19504_v61 = vld [vmem:[%s22187_s19 + $0xd84] ss:$40 sps:$4 sm:$0xff]  }
 0x261   : > { %7118 = vmatpush1.bf16.msra.mxu1 %v19409_v62  ;;  %6861 = vmatprep.subr.bf16.mxu0 %v19414_v63  ;;  %v19507_v62 = vld [vmem:[%s22187_s19 + $0xd8c] ss:$40 sps:$4 sm:$0xff]   ;;  %v19502_v63 = vld [vmem:[%s22187_s19 + $0xd80] ss:$40 sps:$4 sm:$0xff]  }
 0x262   : > { %7119 = vmatprep.subr.bf16.mxu1 %v19417_v0  ;;  %v19505_v0 = vld [vmem:[%s22187_s19 + $0xd88] ss:$40 sps:$4 sm:$0xff]  }
 0x264   : > { %6862 = vmatpush1.bf16.msra.mxu0 %v19412_v1  ;;  %v19510_v1 = vld [vmem:[%s22187_s19 + $0xdd4] ss:$40 sps:$4 sm:$0xff]  }
 0x265   : > { %7120 = vmatpush1.bf16.msra.mxu1 %v19415_v2  ;;  %6863 = vmatprep.subr.bf16.mxu0 %v19420_v3  ;;  %v19513_v2 = vld [vmem:[%s22187_s19 + $0xddc] ss:$40 sps:$4 sm:$0xff]   ;;  %v19508_v3 = vld [vmem:[%s22187_s19 + $0xdd0] ss:$40 sps:$4 sm:$0xff]  }
 0x266   : > { %7121 = vmatprep.subr.bf16.mxu1 %v19423_v4  ;;  %v19511_v4 = vld [vmem:[%s22187_s19 + $0xdd8] ss:$40 sps:$4 sm:$0xff]  }
 0x268   : > { %6864 = vmatpush1.bf16.msra.mxu0 %v19418_v5  ;;  %v19516_v5 = vld [vmem:[%s22187_s19 + $0xe24] ss:$40 sps:$4 sm:$0xff]  }
 0x269   : > { %7122 = vmatpush1.bf16.msra.mxu1 %v19421_v6  ;;  %6865 = vmatprep.subr.bf16.mxu0 %v19426_v7  ;;  %v19519_v6 = vld [vmem:[%s22187_s19 + $0xe2c] ss:$40 sps:$4 sm:$0xff]   ;;  %v19514_v7 = vld [vmem:[%s22187_s19 + $0xe20] ss:$40 sps:$4 sm:$0xff]  }
 0x26a   : > { %7123 = vmatprep.subr.bf16.mxu1 %v19429_v8  ;;  %v19517_v8 = vld [vmem:[%s22187_s19 + $0xe28] ss:$40 sps:$4 sm:$0xff]  }
 0x26c   : > { %6866 = vmatpush1.bf16.msra.mxu0 %v19424_v9  ;;  %v19522_v9 = vld [vmem:[%s22187_s19 + $0xe74] ss:$40 sps:$4 sm:$0xff]  }
 0x26d   : > { %7124 = vmatpush1.bf16.msra.mxu1 %v19427_v10  ;;  %6867 = vmatprep.subr.bf16.mxu0 %v19432_v11  ;;  %v19525_v10 = vld [vmem:[%s22187_s19 + $0xe7c] ss:$40 sps:$4 sm:$0xff]   ;;  %v19520_v11 = vld [vmem:[%s22187_s19 + $0xe70] ss:$40 sps:$4 sm:$0xff]  }
 0x26e   : > { %7125 = vmatprep.subr.bf16.mxu1 %v19435_v12  ;;  %v19523_v12 = vld [vmem:[%s22187_s19 + $0xe78] ss:$40 sps:$4 sm:$0xff]  }
 0x270   : > { %6868 = vmatpush1.bf16.msra.mxu0 %v19430_v13  ;;  %v19528_v13 = vld [vmem:[%s22187_s19 + $0xec4] ss:$40 sps:$4 sm:$0xff]  }
 0x271   : > { %7126 = vmatpush1.bf16.msra.mxu1 %v19433_v14  ;;  %6880 = vmatprep.subr.bf16.mxu0 %v19438_v15  ;;  %v19531_v14 = vld [vmem:[%s22187_s19 + $0xecc] ss:$40 sps:$4 sm:$0xff]   ;;  %v19526_v15 = vld [vmem:[%s22187_s19 + $0xec0] ss:$40 sps:$4 sm:$0xff]  }
 0x272   : > { %7138 = vmatprep.subr.bf16.mxu1 %v19441_v16  ;;  %v19529_v16 = vld [vmem:[%s22187_s19 + $0xec8] ss:$40 sps:$4 sm:$0xff]  }
 0x273   : > { %6870 = vmatmul.mubr.bf16.vlgmr.msra.gmra.mrb[4].mxu0 %v21800_v21 }
 0x274   : > { %7128 = vmatmul.mubr.bf16.vlgmr.msra.gmra.mrb[4].mxu1 %v21800_v21  ;;  %6881 = vmatpush1.bf16.msra.mxu0 %v19436_v17  ;;  %v19534_v17 = vld [vmem:[%s22187_s19 + $0xf14] ss:$40 sps:$4 sm:$0xff]   ;;  %v19540_v21 = vld [vmem:[%s22187_s19 + $0xf64] ss:$40 sps:$4 sm:$0xff]  }
 0x275   : > { %7139 = vmatpush1.bf16.msra.mxu1 %v19439_v18  ;;  %6882 = vmatprep.subr.bf16.mxu0 %v19444_v19  ;;  %v19537_v18 = vld [vmem:[%s22187_s19 + $0xf1c] ss:$40 sps:$4 sm:$0xff]   ;;  %v19532_v19 = vld [vmem:[%s22187_s19 + $0xf10] ss:$40 sps:$4 sm:$0xff]  }
 0x276   : > { %7140 = vmatprep.subr.bf16.mxu1 %v19447_v20  ;;  %6912 = vmatprep.mubr.bf16.mxu0 %v21801_v26  ;;  %v19535_v20 = vld [vmem:[%s22187_s19 + $0xf18] ss:$40 sps:$4 sm:$0xff]  }
 0x277   : > { %7170 = vmatprep.mubr.bf16.mxu1 %v21801_v26  ;;  %v19546_v26 = vld [vmem:[%s22187_s19 + $0xfb4] ss:$40 sps:$4 sm:$0xff]  }
 0x278   : > { %6883 = vmatpush1.bf16.msra.mxu0 %v19442_v22  ;;  %v19543_v22 = vld [vmem:[%s22187_s19 + $0xf6c] ss:$40 sps:$4 sm:$0xff]  }
 0x279   : > { %7141 = vmatpush1.bf16.msra.mxu1 %v19445_v23  ;;  %6884 = vmatprep.subr.bf16.mxu0 %v19450_v24  ;;  %v21802_v23 = vld [vmem:[%s24840_s0 + $0x10] ss:$48 sps:$4 sm:$0xff]  }
 0x27a   : > { %7142 = vmatprep.subr.bf16.mxu1 %v19453_v25  ;;  %v19538_v24 = vld [vmem:[%s22187_s19 + $0xf60] ss:$40 sps:$4 sm:$0xff]  }
 0x27b   : > { %v19541_v25 = vld [vmem:[%s22187_s19 + $0xf68] ss:$40 sps:$4 sm:$0xff]  }
 0x27c   : > { %6885 = vmatpush1.bf16.msra.mxu0 %v19448_v27  ;;  %v19549_v27 = vld [vmem:[%s22187_s19 + $0xfbc] ss:$40 sps:$4 sm:$0xff]  }
 0x27d   : > { %7143 = vmatpush1.bf16.msra.mxu1 %v19451_v28  ;;  %6886 = vmatprep.subr.bf16.mxu0 %v19456_v29  ;;  %v21803_v28 = vld [vmem:[%s24840_s0 + $0x1c] ss:$48 sps:$4 sm:$0xff]   ;;  %v19544_v29 = vld [vmem:[%s22187_s19 + $0xfb0] ss:$40 sps:$4 sm:$0xff]  }
 0x27e   : > { %7144 = vmatprep.subr.bf16.mxu1 %v19459_v30  ;;  %v19547_v30 = vld [vmem:[%s22187_s19 + $0xfb8] ss:$40 sps:$4 sm:$0xff]  }
 0x280   : > { %6887 = vmatpush1.bf16.msra.mxu0 %v19454_v31  ;;  %v19552_v31 = vld [vmem:[%s22187_s19 + $0x1004] ss:$40 sps:$4 sm:$0xff]  }
 0x281   : > { %7145 = vmatpush1.bf16.msra.mxu1 %v19457_v32  ;;  %6888 = vmatprep.subr.bf16.mxu0 %v19462_v33  ;;  %v19555_v32 = vld [vmem:[%s22187_s19 + $0x100c] ss:$40 sps:$4 sm:$0xff]   ;;  %v19550_v33 = vld [vmem:[%s22187_s19 + $0x1000] ss:$40 sps:$4 sm:$0xff]  }
 0x282   : > { %7146 = vmatprep.subr.bf16.mxu1 %v19465_v34  ;;  %v19553_v34 = vld [vmem:[%s22187_s19 + $0x1008] ss:$40 sps:$4 sm:$0xff]  }
 0x284   : > { %6889 = vmatpush1.bf16.msra.mxu0 %v19460_v35  ;;  %v19558_v35 = vld [vmem:[%s22187_s19 + $0x1054] ss:$40 sps:$4 sm:$0xff]  }
 0x285   : > { %7147 = vmatpush1.bf16.msra.mxu1 %v19463_v36  ;;  %6890 = vmatprep.subr.bf16.mxu0 %v19468_v37  ;;  %v19561_v36 = vld [vmem:[%s22187_s19 + $0x105c] ss:$40 sps:$4 sm:$0xff]   ;;  %v19556_v37 = vld [vmem:[%s22187_s19 + $0x1050] ss:$40 sps:$4 sm:$0xff]  }
 0x286   : > { %7148 = vmatprep.subr.bf16.mxu1 %v19471_v38  ;;  %v19559_v38 = vld [vmem:[%s22187_s19 + $0x1058] ss:$40 sps:$4 sm:$0xff]  }
 0x288   : > { %6891 = vmatpush1.bf16.msra.mxu0 %v19466_v39  ;;  %v19564_v39 = vld [vmem:[%s22187_s19 + $0x10a4] ss:$40 sps:$4 sm:$0xff]  }
 0x289   : > { %7149 = vmatpush1.bf16.msra.mxu1 %v19469_v40  ;;  %6892 = vmatprep.subr.bf16.mxu0 %v19474_v41  ;;  %v19567_v40 = vld [vmem:[%s22187_s19 + $0x10ac] ss:$40 sps:$4 sm:$0xff]   ;;  %v19562_v41 = vld [vmem:[%s22187_s19 + $0x10a0] ss:$40 sps:$4 sm:$0xff]  }
 0x28a   : > { %7150 = vmatprep.subr.bf16.mxu1 %v19477_v42  ;;  %v19565_v42 = vld [vmem:[%s22187_s19 + $0x10a8] ss:$40 sps:$4 sm:$0xff]  }
 0x28c   : > { %6893 = vmatpush1.bf16.msra.mxu0 %v19472_v43  ;;  %v19570_v43 = vld [vmem:[%s22187_s19 + $0x10f4] ss:$40 sps:$4 sm:$0xff]  }
 0x28d   : > { %7151 = vmatpush1.bf16.msra.mxu1 %v19475_v44  ;;  %6894 = vmatprep.subr.bf16.mxu0 %v19480_v45  ;;  %v19573_v44 = vld [vmem:[%s22187_s19 + $0x10fc] ss:$40 sps:$4 sm:$0xff]  }
 0x28e   : > { %7152 = vmatprep.subr.bf16.mxu1 %v19483_v46 }
 0x290   : > { %6895 = vmatpush1.bf16.msra.mxu0 %v19478_v47 }
 0x291   : > { %7153 = vmatpush1.bf16.msra.mxu1 %v19481_v48  ;;  %6896 = vmatprep.subr.bf16.mxu0 %v19486_v49 }
 0x292   : > { %7154 = vmatprep.subr.bf16.mxu1 %v19489_v50 }
 0x294   : > { %6897 = vmatpush1.bf16.msra.mxu0 %v19484_v51  ;;  %v19568_v51 = vld [vmem:[%s22187_s19 + $0x10f0] ss:$40 sps:$4 sm:$0xff]  }
 0x295   : > { %7155 = vmatpush1.bf16.msra.mxu1 %v19487_v52  ;;  %6898 = vmatprep.subr.bf16.mxu0 %v19492_v53  ;;  %v19571_v52 = vld [vmem:[%s22187_s19 + $0x10f8] ss:$40 sps:$4 sm:$0xff]  }
 0x296   : > { %7156 = vmatprep.subr.bf16.mxu1 %v19495_v54 }
 0x298   : > { %6899 = vmatpush1.bf16.msra.mxu0 %v19490_v55  ;;  %v19576_v55 = vld [vmem:[%s22187_s19 + $0x1144] ss:$40 sps:$4 sm:$0xff]  }
 0x299   : > { %7157 = vmatpush1.bf16.msra.mxu1 %v19493_v56  ;;  %6900 = vmatprep.subr.bf16.mxu0 %v19498_v57  ;;  %v19579_v56 = vld [vmem:[%s22187_s19 + $0x114c] ss:$40 sps:$4 sm:$0xff]   ;;  %v19574_v57 = vld [vmem:[%s22187_s19 + $0x1140] ss:$40 sps:$4 sm:$0xff]  }
 0x29a   : > { %7158 = vmatprep.subr.bf16.mxu1 %v19501_v58  ;;  %v19577_v58 = vld [vmem:[%s22187_s19 + $0x1148] ss:$40 sps:$4 sm:$0xff]  }
 0x29c   : > { %6901 = vmatpush1.bf16.msra.mxu0 %v19496_v59  ;;  %v19582_v59 = vld [vmem:[%s22187_s19 + $0x1194] ss:$40 sps:$4 sm:$0xff]  }
 0x29d   : > { %7159 = vmatpush1.bf16.msra.mxu1 %v19499_v60  ;;  %6902 = vmatprep.subr.bf16.mxu0 %v19504_v61  ;;  %v19585_v60 = vld [vmem:[%s22187_s19 + $0x119c] ss:$40 sps:$4 sm:$0xff]   ;;  %v19580_v61 = vld [vmem:[%s22187_s19 + $0x1190] ss:$40 sps:$4 sm:$0xff]  }
 0x29e   : > { %7160 = vmatprep.subr.bf16.mxu1 %v19507_v62  ;;  %v19583_v62 = vld [vmem:[%s22187_s19 + $0x1198] ss:$40 sps:$4 sm:$0xff]  }
 0x2a0   : > { %6903 = vmatpush1.bf16.msra.mxu0 %v19502_v63  ;;  %v19588_v63 = vld [vmem:[%s22187_s19 + $0x11e4] ss:$40 sps:$4 sm:$0xff]  }
 0x2a1   : > { %7161 = vmatpush1.bf16.msra.mxu1 %v19505_v0  ;;  %6904 = vmatprep.subr.bf16.mxu0 %v19510_v1  ;;  %v19591_v0 = vld [vmem:[%s22187_s19 + $0x11ec] ss:$40 sps:$4 sm:$0xff]   ;;  %v19586_v1 = vld [vmem:[%s22187_s19 + $0x11e0] ss:$40 sps:$4 sm:$0xff]  }
 0x2a2   : > { %7162 = vmatprep.subr.bf16.mxu1 %v19513_v2  ;;  %v19589_v2 = vld [vmem:[%s22187_s19 + $0x11e8] ss:$40 sps:$4 sm:$0xff]  }
 0x2a4   : > { %6905 = vmatpush1.bf16.msra.mxu0 %v19508_v3  ;;  %v19594_v3 = vld [vmem:[%s22187_s19 + $0x1234] ss:$40 sps:$4 sm:$0xff]  }
 0x2a5   : > { %7163 = vmatpush1.bf16.msra.mxu1 %v19511_v4  ;;  %6906 = vmatprep.subr.bf16.mxu0 %v19516_v5  ;;  %v19597_v4 = vld [vmem:[%s22187_s19 + $0x123c] ss:$40 sps:$4 sm:$0xff]   ;;  %v19592_v5 = vld [vmem:[%s22187_s19 + $0x1230] ss:$40 sps:$4 sm:$0xff]  }
 0x2a6   : > { %7164 = vmatprep.subr.bf16.mxu1 %v19519_v6  ;;  %v19595_v6 = vld [vmem:[%s22187_s19 + $0x1238] ss:$40 sps:$4 sm:$0xff]  }
 0x2a8   : > { %6907 = vmatpush1.bf16.msra.mxu0 %v19514_v7  ;;  %v19600_v7 = vld [vmem:[%s22187_s19 + $0x1284] ss:$40 sps:$4 sm:$0xff]  }
 0x2a9   : > { %7165 = vmatpush1.bf16.msra.mxu1 %v19517_v8  ;;  %6908 = vmatprep.subr.bf16.mxu0 %v19522_v9  ;;  %v19603_v8 = vld [vmem:[%s22187_s19 + $0x128c] ss:$40 sps:$4 sm:$0xff]   ;;  %v19598_v9 = vld [vmem:[%s22187_s19 + $0x1280] ss:$40 sps:$4 sm:$0xff]  }
 0x2aa   : > { %7166 = vmatprep.subr.bf16.mxu1 %v19525_v10  ;;  %v19601_v10 = vld [vmem:[%s22187_s19 + $0x1288] ss:$40 sps:$4 sm:$0xff]  }
 0x2ac   : > { %6909 = vmatpush1.bf16.msra.mxu0 %v19520_v11  ;;  %v19606_v11 = vld [vmem:[%s22187_s19 + $0x12d4] ss:$40 sps:$4 sm:$0xff]  }
 0x2ad   : > { %7167 = vmatpush1.bf16.msra.mxu1 %v19523_v12  ;;  %6910 = vmatprep.subr.bf16.mxu0 %v19528_v13  ;;  %v19609_v12 = vld [vmem:[%s22187_s19 + $0x12dc] ss:$40 sps:$4 sm:$0xff]   ;;  %v19604_v13 = vld [vmem:[%s22187_s19 + $0x12d0] ss:$40 sps:$4 sm:$0xff]  }
 0x2ae   : > { %7168 = vmatprep.subr.bf16.mxu1 %v19531_v14  ;;  %v19607_v14 = vld [vmem:[%s22187_s19 + $0x12d8] ss:$40 sps:$4 sm:$0xff]  }
 0x2b0   : > { %6911 = vmatpush1.bf16.msra.mxu0 %v19526_v15  ;;  %v19612_v15 = vld [vmem:[%s22187_s19 + $0x1324] ss:$40 sps:$4 sm:$0xff]  }
 0x2b1   : > { %7169 = vmatpush1.bf16.msra.mxu1 %v19529_v16  ;;  %6923 = vmatprep.subr.bf16.mxu0 %v19534_v17  ;;  %v19615_v16 = vld [vmem:[%s22187_s19 + $0x132c] ss:$40 sps:$4 sm:$0xff]   ;;  %v19610_v17 = vld [vmem:[%s22187_s19 + $0x1320] ss:$40 sps:$4 sm:$0xff]  }
 0x2b2   : > { %7181 = vmatprep.subr.bf16.mxu1 %v19537_v18  ;;  %v19613_v18 = vld [vmem:[%s22187_s19 + $0x1328] ss:$40 sps:$4 sm:$0xff]  }
 0x2b3   : > { %6913 = vmatmul.mubr.bf16.vlgmr.msra.gmra.mrb[4].mxu0 %v21802_v23 }
 0x2b4   : > { %7171 = vmatmul.mubr.bf16.vlgmr.msra.gmra.mrb[4].mxu1 %v21802_v23  ;;  %6924 = vmatpush1.bf16.msra.mxu0 %v19532_v19  ;;  %v19618_v19 = vld [vmem:[%s22187_s19 + $0x1374] ss:$40 sps:$4 sm:$0xff]   ;;  %v19624_v23 = vld [vmem:[%s22187_s19 + $0x13c4] ss:$40 sps:$4 sm:$0xff]  }
 0x2b5   : > { %7182 = vmatpush1.bf16.msra.mxu1 %v19535_v20  ;;  %6925 = vmatprep.subr.bf16.mxu0 %v19540_v21  ;;  %v19621_v20 = vld [vmem:[%s22187_s19 + $0x137c] ss:$40 sps:$4 sm:$0xff]   ;;  %v19616_v21 = vld [vmem:[%s22187_s19 + $0x1370] ss:$40 sps:$4 sm:$0xff]  }
 0x2b6   : > { %7183 = vmatprep.subr.bf16.mxu1 %v19543_v22  ;;  %6955 = vmatprep.mubr.bf16.mxu0 %v21803_v28  ;;  %v19619_v22 = vld [vmem:[%s22187_s19 + $0x1378] ss:$40 sps:$4 sm:$0xff]  }
 0x2b7   : > { %7213 = vmatprep.mubr.bf16.mxu1 %v21803_v28  ;;  %v19633_v28 = vld [vmem:[%s22187_s19 + $0x141c] ss:$40 sps:$4 sm:$0xff]  }
 0x2b8   : > { %6926 = vmatpush1.bf16.msra.mxu0 %v19538_v24  ;;  %v19627_v24 = vld [vmem:[%s22187_s19 + $0x13cc] ss:$40 sps:$4 sm:$0xff]  }
 0x2b9   : > { %7184 = vmatpush1.bf16.msra.mxu1 %v19541_v25  ;;  %6927 = vmatprep.subr.bf16.mxu0 %v19546_v26  ;;  %v19622_v25 = vld [vmem:[%s22187_s19 + $0x13c0] ss:$40 sps:$4 sm:$0xff]  }
 0x2ba   : > { %7185 = vmatprep.subr.bf16.mxu1 %v19549_v27  ;;  %v19625_v26 = vld [vmem:[%s22187_s19 + $0x13c8] ss:$40 sps:$4 sm:$0xff]   ;;  %v19630_v27 = vld [vmem:[%s22187_s19 + $0x1414] ss:$40 sps:$4 sm:$0xff]  }
 0x2bc   : > { %6928 = vmatpush1.bf16.msra.mxu0 %v19544_v29  ;;  %v19628_v29 = vld [vmem:[%s22187_s19 + $0x1410] ss:$40 sps:$4 sm:$0xff]  }
 0x2bd   : > { %7186 = vmatpush1.bf16.msra.mxu1 %v19547_v30  ;;  %6929 = vmatprep.subr.bf16.mxu0 %v19552_v31  ;;  %v19631_v30 = vld [vmem:[%s22187_s19 + $0x1418] ss:$40 sps:$4 sm:$0xff]   ;;  %v19636_v31 = vld [vmem:[%s22187_s19 + $0x1464] ss:$40 sps:$4 sm:$0xff]  }
 0x2be   : > { %7187 = vmatprep.subr.bf16.mxu1 %v19555_v32  ;;  %v19639_v32 = vld [vmem:[%s22187_s19 + $0x146c] ss:$40 sps:$4 sm:$0xff]  }
 0x2c0   : > { %6930 = vmatpush1.bf16.msra.mxu0 %v19550_v33  ;;  %v21804_v33 = vld [vmem:[%s24840_s0 + $0x18] ss:$48 sps:$4 sm:$0xff]  }
 0x2c1   : > { %7188 = vmatpush1.bf16.msra.mxu1 %v19553_v34  ;;  %6931 = vmatprep.subr.bf16.mxu0 %v19558_v35  ;;  %v19634_v34 = vld [vmem:[%s22187_s19 + $0x1460] ss:$40 sps:$4 sm:$0xff]  }
 0x2c2   : > { %7189 = vmatprep.subr.bf16.mxu1 %v19561_v36  ;;  %v19637_v35 = vld [vmem:[%s22187_s19 + $0x1468] ss:$40 sps:$4 sm:$0xff]   ;;  %v19642_v36 = vld [vmem:[%s22187_s19 + $0x14b4] ss:$40 sps:$4 sm:$0xff]  }
 0x2c4   : > { %6932 = vmatpush1.bf16.msra.mxu0 %v19556_v37  ;;  %v19645_v37 = vld [vmem:[%s22187_s19 + $0x14bc] ss:$40 sps:$4 sm:$0xff]  }
 0x2c5   : > { %7190 = vmatpush1.bf16.msra.mxu1 %v19559_v38  ;;  %6933 = vmatprep.subr.bf16.mxu0 %v19564_v39  ;;  %v21805_v38 = vld [vmem:[%s24840_s0 + $0x24] ss:$48 sps:$4 sm:$0xff]   ;;  %v19640_v39 = vld [vmem:[%s22187_s19 + $0x14b0] ss:$40 sps:$4 sm:$0xff]  }
 0x2c6   : > { %7191 = vmatprep.subr.bf16.mxu1 %v19567_v40  ;;  %v22860_v45 = vpop.f32.mrb[0].mxu0  ;;  %v19643_v40 = vld [vmem:[%s22187_s19 + $0x14b8] ss:$40 sps:$4 sm:$0xff]  }
 0x2c7   : > { %v22862_v46 = vpop.f32.mrb[0].mxu1  ;;  %v22864_v47 = vpop.f32.mrb[1].mxu0 }
 0x2c8   : > { %v22866_v48 = vpop.f32.mrb[1].mxu1  ;;  %v22868_v49 = vpop.f32.mrb[2].mxu0  ;;  %6934 = vmatpush1.bf16.msra.mxu0 %v19562_v41  ;;  %v19648_v41 = vld [vmem:[%s22187_s19 + $0x1504] ss:$40 sps:$4 sm:$0xff]  }
 0x2c9   : > { %v22870_v50 = vpop.f32.mrb[2].mxu1  ;;  %7192 = vmatpush1.bf16.msra.mxu1 %v19565_v42  ;;  %v22874_v53 = vpop.f32.mrb[3].mxu0  ;;  %6935 = vmatprep.subr.bf16.mxu0 %v19570_v43  ;;  %v19651_v42 = vld [vmem:[%s22187_s19 + $0x150c] ss:$40 sps:$4 sm:$0xff]   ;;  %v19646_v43 = vld [vmem:[%s22187_s19 + $0x1500] ss:$40 sps:$4 sm:$0xff]  }
 0x2ca   : > { %v22876_v54 = vpop.f32.mrb[3].mxu1  ;;  %7193 = vmatprep.subr.bf16.mxu1 %v19573_v44  ;;  %v19649_v44 = vld [vmem:[%s22187_s19 + $0x1508] ss:$40 sps:$4 sm:$0xff]  }
 0x2cc   : > { %6936 = vmatpush1.bf16.msra.mxu0 %v19568_v51  ;;  %v19654_v51 = vld [vmem:[%s22187_s19 + $0x1554] ss:$40 sps:$4 sm:$0xff]  }
 0x2cd   : > { %7194 = vmatpush1.bf16.msra.mxu1 %v19571_v52  ;;  %6937 = vmatprep.subr.bf16.mxu0 %v19576_v55  ;;  %v19657_v52 = vld [vmem:[%s22187_s19 + $0x155c] ss:$40 sps:$4 sm:$0xff]   ;;  %v19652_v55 = vld [vmem:[%s22187_s19 + $0x1550] ss:$40 sps:$4 sm:$0xff]  }
 0x2ce   : > { %7195 = vmatprep.subr.bf16.mxu1 %v19579_v56  ;;  %v19655_v56 = vld [vmem:[%s22187_s19 + $0x1558] ss:$40 sps:$4 sm:$0xff]  }
 0x2d0   : > { %6938 = vmatpush1.bf16.msra.mxu0 %v19574_v57  ;;  %v19660_v57 = vld [vmem:[%s22187_s19 + $0x15a4] ss:$40 sps:$4 sm:$0xff]  }
 0x2d1   : > { %7196 = vmatpush1.bf16.msra.mxu1 %v19577_v58  ;;  %6939 = vmatprep.subr.bf16.mxu0 %v19582_v59  ;;  %v19663_v58 = vld [vmem:[%s22187_s19 + $0x15ac] ss:$40 sps:$4 sm:$0xff]   ;;  %v19658_v59 = vld [vmem:[%s22187_s19 + $0x15a0] ss:$40 sps:$4 sm:$0xff]  }
 0x2d2   : > { %7197 = vmatprep.subr.bf16.mxu1 %v19585_v60  ;;  %v19661_v60 = vld [vmem:[%s22187_s19 + $0x15a8] ss:$40 sps:$4 sm:$0xff]  }
 0x2d4   : > { %6940 = vmatpush1.bf16.msra.mxu0 %v19580_v61  ;;  %v19666_v61 = vld [vmem:[%s22187_s19 + $0x15f4] ss:$40 sps:$4 sm:$0xff]  }
 0x2d5   : > { %7198 = vmatpush1.bf16.msra.mxu1 %v19583_v62  ;;  %6941 = vmatprep.subr.bf16.mxu0 %v19588_v63  ;;  %v19669_v62 = vld [vmem:[%s22187_s19 + $0x15fc] ss:$40 sps:$4 sm:$0xff]   ;;  %v19664_v63 = vld [vmem:[%s22187_s19 + $0x15f0] ss:$40 sps:$4 sm:$0xff]  }
 0x2d6   : > { %7199 = vmatprep.subr.bf16.mxu1 %v19591_v0  ;;  %v19667_v0 = vld [vmem:[%s22187_s19 + $0x15f8] ss:$40 sps:$4 sm:$0xff]  }
 0x2d8   : > { %6942 = vmatpush1.bf16.msra.mxu0 %v19586_v1  ;;  %v19672_v1 = vld [vmem:[%s22187_s19 + $0x1644] ss:$40 sps:$4 sm:$0xff]  }
 0x2d9   : > { %7200 = vmatpush1.bf16.msra.mxu1 %v19589_v2  ;;  %6943 = vmatprep.subr.bf16.mxu0 %v19594_v3  ;;  %v19675_v2 = vld [vmem:[%s22187_s19 + $0x164c] ss:$40 sps:$4 sm:$0xff]   ;;  %v19670_v3 = vld [vmem:[%s22187_s19 + $0x1640] ss:$40 sps:$4 sm:$0xff]  }
 0x2da   : > { %7201 = vmatprep.subr.bf16.mxu1 %v19597_v4  ;;  %v19673_v4 = vld [vmem:[%s22187_s19 + $0x1648] ss:$40 sps:$4 sm:$0xff]  }
 0x2dc   : > { %6944 = vmatpush1.bf16.msra.mxu0 %v19592_v5  ;;  %v19678_v5 = vld [vmem:[%s22187_s19 + $0x1694] ss:$40 sps:$4 sm:$0xff]  }
 0x2dd   : > { %7202 = vmatpush1.bf16.msra.mxu1 %v19595_v6  ;;  %6945 = vmatprep.subr.bf16.mxu0 %v19600_v7  ;;  %v19681_v6 = vld [vmem:[%s22187_s19 + $0x169c] ss:$40 sps:$4 sm:$0xff]   ;;  %v19676_v7 = vld [vmem:[%s22187_s19 + $0x1690] ss:$40 sps:$4 sm:$0xff]  }
 0x2de   : > { %7203 = vmatprep.subr.bf16.mxu1 %v19603_v8  ;;  %v19679_v8 = vld [vmem:[%s22187_s19 + $0x1698] ss:$40 sps:$4 sm:$0xff]  }
 0x2e0   : > { %6946 = vmatpush1.bf16.msra.mxu0 %v19598_v9  ;;  %v19684_v9 = vld [vmem:[%s22187_s19 + $0x16e4] ss:$40 sps:$4 sm:$0xff]  }
 0x2e1   : > { %7204 = vmatpush1.bf16.msra.mxu1 %v19601_v10  ;;  %6947 = vmatprep.subr.bf16.mxu0 %v19606_v11  ;;  %v19687_v10 = vld [vmem:[%s22187_s19 + $0x16ec] ss:$40 sps:$4 sm:$0xff]   ;;  %v19682_v11 = vld [vmem:[%s22187_s19 + $0x16e0] ss:$40 sps:$4 sm:$0xff]  }
 0x2e2   : > { %7205 = vmatprep.subr.bf16.mxu1 %v19609_v12  ;;  %v19685_v12 = vld [vmem:[%s22187_s19 + $0x16e8] ss:$40 sps:$4 sm:$0xff]  }
 0x2e4   : > { %6948 = vmatpush1.bf16.msra.mxu0 %v19604_v13  ;;  %v19690_v13 = vld [vmem:[%s22187_s19 + $0x1734] ss:$40 sps:$4 sm:$0xff]  }
 0x2e5   : > { %7206 = vmatpush1.bf16.msra.mxu1 %v19607_v14  ;;  %6949 = vmatprep.subr.bf16.mxu0 %v19612_v15  ;;  %v19693_v14 = vld [vmem:[%s22187_s19 + $0x173c] ss:$40 sps:$4 sm:$0xff]   ;;  %v19688_v15 = vld [vmem:[%s22187_s19 + $0x1730] ss:$40 sps:$4 sm:$0xff]  }
 0x2e6   : > { %7207 = vmatprep.subr.bf16.mxu1 %v19615_v16  ;;  %v19691_v16 = vld [vmem:[%s22187_s19 + $0x1738] ss:$40 sps:$4 sm:$0xff]  }
 0x2e8   : > { %6950 = vmatpush1.bf16.msra.mxu0 %v19610_v17  ;;  %v19696_v17 = vld [vmem:[%s22187_s19 + $0x1784] ss:$40 sps:$4 sm:$0xff]  }
 0x2e9   : > { %7208 = vmatpush1.bf16.msra.mxu1 %v19613_v18  ;;  %6951 = vmatprep.subr.bf16.mxu0 %v19618_v19  ;;  %v19699_v18 = vld [vmem:[%s22187_s19 + $0x178c] ss:$40 sps:$4 sm:$0xff]   ;;  %v19694_v19 = vld [vmem:[%s22187_s19 + $0x1780] ss:$40 sps:$4 sm:$0xff]  }
 0x2ea   : > { %7209 = vmatprep.subr.bf16.mxu1 %v19621_v20  ;;  %v19697_v20 = vld [vmem:[%s22187_s19 + $0x1788] ss:$40 sps:$4 sm:$0xff]  }
 0x2ec   : > { %6952 = vmatpush1.bf16.msra.mxu0 %v19616_v21  ;;  %v19702_v21 = vld [vmem:[%s22187_s19 + $0x17d4] ss:$40 sps:$4 sm:$0xff]  }
 0x2ed   : > { %7210 = vmatpush1.bf16.msra.mxu1 %v19619_v22  ;;  %6953 = vmatprep.subr.bf16.mxu0 %v19624_v23  ;;  %v19705_v22 = vld [vmem:[%s22187_s19 + $0x17dc] ss:$40 sps:$4 sm:$0xff]   ;;  %v19700_v23 = vld [vmem:[%s22187_s19 + $0x17d0] ss:$40 sps:$4 sm:$0xff]  }
 0x2ee   : > { %7211 = vmatprep.subr.bf16.mxu1 %v19627_v24  ;;  %v19703_v24 = vld [vmem:[%s22187_s19 + $0x17d8] ss:$40 sps:$4 sm:$0xff]  }
 0x2f0   : > { %6954 = vmatpush1.bf16.msra.mxu0 %v19622_v25  ;;  %v19708_v25 = vld [vmem:[%s22187_s19 + $0x1824] ss:$40 sps:$4 sm:$0xff]  }
 0x2f1   : > { %7212 = vmatpush1.bf16.msra.mxu1 %v19625_v26  ;;  %6966 = vmatprep.subr.bf16.mxu0 %v19630_v27  ;;  %v19711_v26 = vld [vmem:[%s22187_s19 + $0x182c] ss:$40 sps:$4 sm:$0xff]   ;;  %v19706_v27 = vld [vmem:[%s22187_s19 + $0x1820] ss:$40 sps:$4 sm:$0xff]  }
 0x2f2   : > { %7224 = vmatprep.subr.bf16.mxu1 %v19633_v28  ;;  %v19709_v28 = vld [vmem:[%s22187_s19 + $0x1828] ss:$40 sps:$4 sm:$0xff]  }
 0x2f3   : > { %6956 = vmatmul.mubr.bf16.vlgmr.msra.gmra.mrb[4].mxu0 %v21804_v33 }
 0x2f4   : > { %7214 = vmatmul.mubr.bf16.vlgmr.msra.gmra.mrb[4].mxu1 %v21804_v33  ;;  %6967 = vmatpush1.bf16.msra.mxu0 %v19628_v29  ;;  %v19714_v29 = vld [vmem:[%s22187_s19 + $0x1874] ss:$40 sps:$4 sm:$0xff]   ;;  %v19720_v33 = vld [vmem:[%s22187_s19 + $0x18c4] ss:$40 sps:$4 sm:$0xff]  }
 0x2f5   : > { %7225 = vmatpush1.bf16.msra.mxu1 %v19631_v30  ;;  %6968 = vmatprep.subr.bf16.mxu0 %v19636_v31  ;;  %v19717_v30 = vld [vmem:[%s22187_s19 + $0x187c] ss:$40 sps:$4 sm:$0xff]   ;;  %v19712_v31 = vld [vmem:[%s22187_s19 + $0x1870] ss:$40 sps:$4 sm:$0xff]  }
 0x2f6   : > { %7226 = vmatprep.subr.bf16.mxu1 %v19639_v32  ;;  %6998 = vmatprep.mubr.bf16.mxu0 %v21805_v38  ;;  %v19715_v32 = vld [vmem:[%s22187_s19 + $0x1878] ss:$40 sps:$4 sm:$0xff]  }
 0x2f7   : > { %7256 = vmatprep.mubr.bf16.mxu1 %v21805_v38  ;;  %v19729_v38 = vld [vmem:[%s22187_s19 + $0x191c] ss:$40 sps:$4 sm:$0xff]  }
 0x2f8   : > { %6969 = vmatpush1.bf16.msra.mxu0 %v19634_v34  ;;  %v19723_v34 = vld [vmem:[%s22187_s19 + $0x18cc] ss:$40 sps:$4 sm:$0xff]  }
 0x2f9   : > { %7227 = vmatpush1.bf16.msra.mxu1 %v19637_v35  ;;  %6970 = vmatprep.subr.bf16.mxu0 %v19642_v36  ;;  %v19718_v35 = vld [vmem:[%s22187_s19 + $0x18c0] ss:$40 sps:$4 sm:$0xff]  }
 0x2fa   : > { %7228 = vmatprep.subr.bf16.mxu1 %v19645_v37  ;;  %v19721_v36 = vld [vmem:[%s22187_s19 + $0x18c8] ss:$40 sps:$4 sm:$0xff]   ;;  %v19726_v37 = vld [vmem:[%s22187_s19 + $0x1914] ss:$40 sps:$4 sm:$0xff]  }
 0x2fc   : > { %6971 = vmatpush1.bf16.msra.mxu0 %v19640_v39  ;;  %v19724_v39 = vld [vmem:[%s22187_s19 + $0x1910] ss:$40 sps:$4 sm:$0xff]  }
 0x2fd   : > { %7229 = vmatpush1.bf16.msra.mxu1 %v19643_v40  ;;  %6972 = vmatprep.subr.bf16.mxu0 %v19648_v41  ;;  %v19727_v40 = vld [vmem:[%s22187_s19 + $0x1918] ss:$40 sps:$4 sm:$0xff]   ;;  %v19732_v41 = vld [vmem:[%s22187_s19 + $0x1964] ss:$40 sps:$4 sm:$0xff]  }
 0x2fe   : > { %7230 = vmatprep.subr.bf16.mxu1 %v19651_v42  ;;  %v19735_v42 = vld [vmem:[%s22187_s19 + $0x196c] ss:$40 sps:$4 sm:$0xff]  }
 0x300   : > { %6973 = vmatpush1.bf16.msra.mxu0 %v19646_v43  ;;  %v21806_v43 = vld [vmem:[%s24840_s0 + $0x20] ss:$48 sps:$4 sm:$0xff]  }
 0x301   : > { %7231 = vmatpush1.bf16.msra.mxu1 %v19649_v44  ;;  %6974 = vmatprep.subr.bf16.mxu0 %v19654_v51  ;;  %v19730_v44 = vld [vmem:[%s22187_s19 + $0x1960] ss:$40 sps:$4 sm:$0xff]  }
 0x302   : > { %7232 = vmatprep.subr.bf16.mxu1 %v19657_v52  ;;  %v19733_v51 = vld [vmem:[%s22187_s19 + $0x1968] ss:$40 sps:$4 sm:$0xff]   ;;  %v19738_v52 = vld [vmem:[%s22187_s19 + $0x19b4] ss:$40 sps:$4 sm:$0xff]  }
 0x304   : > { %6975 = vmatpush1.bf16.msra.mxu0 %v19652_v55  ;;  %v19741_v55 = vld [vmem:[%s22187_s19 + $0x19bc] ss:$40 sps:$4 sm:$0xff]  }
 0x305   : > { %7233 = vmatpush1.bf16.msra.mxu1 %v19655_v56  ;;  %6976 = vmatprep.subr.bf16.mxu0 %v19660_v57  ;;  %v21807_v56 = vld [vmem:[%s24840_s0 + $0x2c] ss:$48 sps:$4 sm:$0xff]   ;;  %v19736_v57 = vld [vmem:[%s22187_s19 + $0x19b0] ss:$40 sps:$4 sm:$0xff]  }
 0x306   : > { %7234 = vmatprep.subr.bf16.mxu1 %v19663_v58  ;;  %v19739_v58 = vld [vmem:[%s22187_s19 + $0x19b8] ss:$40 sps:$4 sm:$0xff]  }
 0x308   : > { %6977 = vmatpush1.bf16.msra.mxu0 %v19658_v59  ;;  %v19744_v59 = vld [vmem:[%s22187_s19 + $0x1a04] ss:$40 sps:$4 sm:$0xff]  }
 0x309   : > { %7235 = vmatpush1.bf16.msra.mxu1 %v19661_v60  ;;  %6978 = vmatprep.subr.bf16.mxu0 %v19666_v61  ;;  %v19747_v60 = vld [vmem:[%s22187_s19 + $0x1a0c] ss:$40 sps:$4 sm:$0xff]   ;;  %v19742_v61 = vld [vmem:[%s22187_s19 + $0x1a00] ss:$40 sps:$4 sm:$0xff]  }
 0x30a   : > { %7236 = vmatprep.subr.bf16.mxu1 %v19669_v62  ;;  %v19745_v62 = vld [vmem:[%s22187_s19 + $0x1a08] ss:$40 sps:$4 sm:$0xff]  }
 0x30c   : > { %6979 = vmatpush1.bf16.msra.mxu0 %v19664_v63  ;;  %v19750_v63 = vld [vmem:[%s22187_s19 + $0x1a54] ss:$40 sps:$4 sm:$0xff]  }
 0x30d   : > { %7237 = vmatpush1.bf16.msra.mxu1 %v19667_v0  ;;  %6980 = vmatprep.subr.bf16.mxu0 %v19672_v1  ;;  %v19753_v0 = vld [vmem:[%s22187_s19 + $0x1a5c] ss:$40 sps:$4 sm:$0xff]   ;;  %v19748_v1 = vld [vmem:[%s22187_s19 + $0x1a50] ss:$40 sps:$4 sm:$0xff]  }
 0x30e   : > { %7238 = vmatprep.subr.bf16.mxu1 %v19675_v2  ;;  %v19751_v2 = vld [vmem:[%s22187_s19 + $0x1a58] ss:$40 sps:$4 sm:$0xff]  }
 0x310   : > { %6981 = vmatpush1.bf16.msra.mxu0 %v19670_v3  ;;  %v19756_v3 = vld [vmem:[%s22187_s19 + $0x1aa4] ss:$40 sps:$4 sm:$0xff]  }
 0x311   : > { %7239 = vmatpush1.bf16.msra.mxu1 %v19673_v4  ;;  %6982 = vmatprep.subr.bf16.mxu0 %v19678_v5  ;;  %v19759_v4 = vld [vmem:[%s22187_s19 + $0x1aac] ss:$40 sps:$4 sm:$0xff]   ;;  %v19754_v5 = vld [vmem:[%s22187_s19 + $0x1aa0] ss:$40 sps:$4 sm:$0xff]  }
 0x312   : > { %7240 = vmatprep.subr.bf16.mxu1 %v19681_v6  ;;  %v19757_v6 = vld [vmem:[%s22187_s19 + $0x1aa8] ss:$40 sps:$4 sm:$0xff]  }
 0x314   : > { %6983 = vmatpush1.bf16.msra.mxu0 %v19676_v7  ;;  %v19762_v7 = vld [vmem:[%s22187_s19 + $0x1af4] ss:$40 sps:$4 sm:$0xff]  }
 0x315   : > { %7241 = vmatpush1.bf16.msra.mxu1 %v19679_v8  ;;  %6984 = vmatprep.subr.bf16.mxu0 %v19684_v9  ;;  %v19765_v8 = vld [vmem:[%s22187_s19 + $0x1afc] ss:$40 sps:$4 sm:$0xff]   ;;  %v19760_v9 = vld [vmem:[%s22187_s19 + $0x1af0] ss:$40 sps:$4 sm:$0xff]  }
 0x316   : > { %7242 = vmatprep.subr.bf16.mxu1 %v19687_v10  ;;  %v19763_v10 = vld [vmem:[%s22187_s19 + $0x1af8] ss:$40 sps:$4 sm:$0xff]  }
 0x318   : > { %6985 = vmatpush1.bf16.msra.mxu0 %v19682_v11  ;;  %v19768_v11 = vld [vmem:[%s22187_s19 + $0x1b44] ss:$40 sps:$4 sm:$0xff]  }
 0x319   : > { %7243 = vmatpush1.bf16.msra.mxu1 %v19685_v12  ;;  %6986 = vmatprep.subr.bf16.mxu0 %v19690_v13  ;;  %v19771_v12 = vld [vmem:[%s22187_s19 + $0x1b4c] ss:$40 sps:$4 sm:$0xff]   ;;  %v19766_v13 = vld [vmem:[%s22187_s19 + $0x1b40] ss:$40 sps:$4 sm:$0xff]  }
 0x31a   : > { %7244 = vmatprep.subr.bf16.mxu1 %v19693_v14  ;;  %v19769_v14 = vld [vmem:[%s22187_s19 + $0x1b48] ss:$40 sps:$4 sm:$0xff]  }
 0x31c   : > { %6987 = vmatpush1.bf16.msra.mxu0 %v19688_v15  ;;  %v19774_v15 = vld [vmem:[%s22187_s19 + $0x1b94] ss:$40 sps:$4 sm:$0xff]  }
 0x31d   : > { %7245 = vmatpush1.bf16.msra.mxu1 %v19691_v16  ;;  %6988 = vmatprep.subr.bf16.mxu0 %v19696_v17  ;;  %v19777_v16 = vld [vmem:[%s22187_s19 + $0x1b9c] ss:$40 sps:$4 sm:$0xff]   ;;  %v19772_v17 = vld [vmem:[%s22187_s19 + $0x1b90] ss:$40 sps:$4 sm:$0xff]  }
 0x31e   : > { %7246 = vmatprep.subr.bf16.mxu1 %v19699_v18  ;;  %v19775_v18 = vld [vmem:[%s22187_s19 + $0x1b98] ss:$40 sps:$4 sm:$0xff]  }
 0x320   : > { %6989 = vmatpush1.bf16.msra.mxu0 %v19694_v19  ;;  %v19780_v19 = vld [vmem:[%s22187_s19 + $0x1be4] ss:$40 sps:$4 sm:$0xff]  }
 0x321   : > { %7247 = vmatpush1.bf16.msra.mxu1 %v19697_v20  ;;  %6990 = vmatprep.subr.bf16.mxu0 %v19702_v21  ;;  %v19783_v20 = vld [vmem:[%s22187_s19 + $0x1bec] ss:$40 sps:$4 sm:$0xff]   ;;  %v19778_v21 = vld [vmem:[%s22187_s19 + $0x1be0] ss:$40 sps:$4 sm:$0xff]  }
 0x322   : > { %7248 = vmatprep.subr.bf16.mxu1 %v19705_v22  ;;  %v19781_v22 = vld [vmem:[%s22187_s19 + $0x1be8] ss:$40 sps:$4 sm:$0xff]  }
 0x324   : > { %6991 = vmatpush1.bf16.msra.mxu0 %v19700_v23  ;;  %v19786_v23 = vld [vmem:[%s22187_s19 + $0x1c34] ss:$40 sps:$4 sm:$0xff]  }
 0x325   : > { %7249 = vmatpush1.bf16.msra.mxu1 %v19703_v24  ;;  %6992 = vmatprep.subr.bf16.mxu0 %v19708_v25  ;;  %v19789_v24 = vld [vmem:[%s22187_s19 + $0x1c3c] ss:$40 sps:$4 sm:$0xff]   ;;  %v19784_v25 = vld [vmem:[%s22187_s19 + $0x1c30] ss:$40 sps:$4 sm:$0xff]  }
 0x326   : > { %7250 = vmatprep.subr.bf16.mxu1 %v19711_v26  ;;  %v19787_v26 = vld [vmem:[%s22187_s19 + $0x1c38] ss:$40 sps:$4 sm:$0xff]  }
 0x328   : > { %6993 = vmatpush1.bf16.msra.mxu0 %v19706_v27  ;;  %v19792_v27 = vld [vmem:[%s22187_s19 + $0x1c84] ss:$40 sps:$4 sm:$0xff]  }
 0x329   : > { %7251 = vmatpush1.bf16.msra.mxu1 %v19709_v28  ;;  %6994 = vmatprep.subr.bf16.mxu0 %v19714_v29  ;;  %v19795_v28 = vld [vmem:[%s22187_s19 + $0x1c8c] ss:$40 sps:$4 sm:$0xff]   ;;  %v19790_v29 = vld [vmem:[%s22187_s19 + $0x1c80] ss:$40 sps:$4 sm:$0xff]  }
 0x32a   : > { %7252 = vmatprep.subr.bf16.mxu1 %v19717_v30  ;;  %v19793_v30 = vld [vmem:[%s22187_s19 + $0x1c88] ss:$40 sps:$4 sm:$0xff]  }
 0x32c   : > { %6995 = vmatpush1.bf16.msra.mxu0 %v19712_v31  ;;  %v19798_v31 = vld [vmem:[%s22187_s19 + $0x1cd4] ss:$40 sps:$4 sm:$0xff]  }
 0x32d   : > { %7253 = vmatpush1.bf16.msra.mxu1 %v19715_v32  ;;  %6996 = vmatprep.subr.bf16.mxu0 %v19720_v33  ;;  %v19801_v32 = vld [vmem:[%s22187_s19 + $0x1cdc] ss:$40 sps:$4 sm:$0xff]   ;;  %v19796_v33 = vld [vmem:[%s22187_s19 + $0x1cd0] ss:$40 sps:$4 sm:$0xff]  }
 0x32e   : > { %7254 = vmatprep.subr.bf16.mxu1 %v19723_v34  ;;  %v19799_v34 = vld [vmem:[%s22187_s19 + $0x1cd8] ss:$40 sps:$4 sm:$0xff]  }
 0x330   : > { %6997 = vmatpush1.bf16.msra.mxu0 %v19718_v35  ;;  %v19804_v35 = vld [vmem:[%s22187_s19 + $0x1d24] ss:$40 sps:$4 sm:$0xff]  }
 0x331   : > { %7255 = vmatpush1.bf16.msra.mxu1 %v19721_v36  ;;  %7009 = vmatprep.subr.bf16.mxu0 %v19726_v37  ;;  %v19807_v36 = vld [vmem:[%s22187_s19 + $0x1d2c] ss:$40 sps:$4 sm:$0xff]   ;;  %v19802_v37 = vld [vmem:[%s22187_s19 + $0x1d20] ss:$40 sps:$4 sm:$0xff]  }
 0x332   : > { %7267 = vmatprep.subr.bf16.mxu1 %v19729_v38  ;;  %v19805_v38 = vld [vmem:[%s22187_s19 + $0x1d28] ss:$40 sps:$4 sm:$0xff]  }
 0x333   : > { %6999 = vmatmul.mubr.bf16.vlgmr.msra.gmra.mrb[4].mxu0 %v21806_v43 }
 0x334   : > { %7257 = vmatmul.mubr.bf16.vlgmr.msra.gmra.mrb[4].mxu1 %v21806_v43  ;;  %7010 = vmatpush1.bf16.msra.mxu0 %v19724_v39  ;;  %v19810_v39 = vld [vmem:[%s22187_s19 + $0x1d74] ss:$40 sps:$4 sm:$0xff]   ;;  %v19816_v43 = vld [vmem:[%s22187_s19 + $0x1dc4] ss:$40 sps:$4 sm:$0xff]  }
 0x335   : > { %7268 = vmatpush1.bf16.msra.mxu1 %v19727_v40  ;;  %7011 = vmatprep.subr.bf16.mxu0 %v19732_v41  ;;  %v19813_v40 = vld [vmem:[%s22187_s19 + $0x1d7c] ss:$40 sps:$4 sm:$0xff]   ;;  %v19808_v41 = vld [vmem:[%s22187_s19 + $0x1d70] ss:$40 sps:$4 sm:$0xff]  }
 0x336   : > { %7269 = vmatprep.subr.bf16.mxu1 %v19735_v42  ;;  %7041 = vmatprep.mubr.bf16.mxu0 %v21807_v56  ;;  %v19811_v42 = vld [vmem:[%s22187_s19 + $0x1d78] ss:$40 sps:$4 sm:$0xff]  }
 0x337   : > { %7299 = vmatprep.mubr.bf16.mxu1 %v21807_v56  ;;  %v19825_v56 = vld [vmem:[%s22195_s24 + $0x4] ss:$40 sps:$4 sm:$0xff]  }
 0x338   : > { %7012 = vmatpush1.bf16.msra.mxu0 %v19730_v44  ;;  %v19819_v44 = vld [vmem:[%s22187_s19 + $0x1dcc] ss:$40 sps:$4 sm:$0xff]  }
 0x339   : > { %7270 = vmatpush1.bf16.msra.mxu1 %v19733_v51  ;;  %7013 = vmatprep.subr.bf16.mxu0 %v19738_v52  ;;  %v19814_v51 = vld [vmem:[%s22187_s19 + $0x1dc0] ss:$40 sps:$4 sm:$0xff]  }
 0x33a   : > { %7271 = vmatprep.subr.bf16.mxu1 %v19741_v55  ;;  %v19817_v52 = vld [vmem:[%s22187_s19 + $0x1dc8] ss:$40 sps:$4 sm:$0xff]   ;;  %v19822_v55 = vld [vmem:[%s22187_s19 + $0x24] ss:$40 sps:$4 sm:$0xff]  }
 0x33c   : > { %7014 = vmatpush1.bf16.msra.mxu0 %v19736_v57  ;;  %v23059_v57 = vld [vmem:[%s24841_s1] sm:$0xff] }
 0x33d   : > { %7272 = vmatpush1.bf16.msra.mxu1 %v19739_v58  ;;  %7015 = vmatprep.subr.bf16.mxu0 %v19744_v59  ;;  %v23064_v58 = vld [vmem:[%s24841_s1 + $0x20] sm:$0xff] }
 0x33e   : > { %7273 = vmatprep.subr.bf16.mxu1 %v19747_v60  ;;  %v19820_v59 = vld [vmem:[%s22187_s19 + $0x20] ss:$40 sps:$4 sm:$0xff]  }
 0x33f   : > { %v19823_v60 = vld [vmem:[%s22195_s24] ss:$40 sps:$4 sm:$0xff]  }
 0x340   : > { %7016 = vmatpush1.bf16.msra.mxu0 %v19742_v61  ;;  %v19828_v61 = vld [vmem:[%s22187_s19 + $0x74] ss:$40 sps:$4 sm:$0xff]  }
 0x341   : > { %7274 = vmatpush1.bf16.msra.mxu1 %v19745_v62  ;;  %7017 = vmatprep.subr.bf16.mxu0 %v19750_v63  ;;  %v19831_v62 = vld [vmem:[%s22195_s24 + $0x54] ss:$40 sps:$4 sm:$0xff]   ;;  %v23072_v63 = vcombine.high %v23059_v57, %v23064_v58 }
 0x342   : > { %7275 = vmatprep.subr.bf16.mxu1 %v19753_v0  ;;  %v21808_v0 = vld [vmem:[%s24840_s0 + $0x28] ss:$48 sps:$4 sm:$0xff]  }
 0x344   : > { %7018 = vmatpush1.bf16.msra.mxu0 %v19748_v1  ;;  %v19826_v1 = vld [vmem:[%s22187_s19 + $0x70] ss:$40 sps:$4 sm:$0xff]  }
 0x345   : > { %7276 = vmatpush1.bf16.msra.mxu1 %v19751_v2  ;;  %7019 = vmatprep.subr.bf16.mxu0 %v19756_v3  ;;  %v19829_v2 = vld [vmem:[%s22195_s24 + $0x50] ss:$40 sps:$4 sm:$0xff]   ;;  %v19834_v3 = vld [vmem:[%s22187_s19 + $0xc4] ss:$40 sps:$4 sm:$0xff]  }
 0x346   : > { %7277 = vmatprep.subr.bf16.mxu1 %v19759_v4  ;;  %v19837_v4 = vld [vmem:[%s22195_s24 + $0xa4] ss:$40 sps:$4 sm:$0xff]  }
 0x348   : > { %7020 = vmatpush1.bf16.msra.mxu0 %v19754_v5  ;;  %v21809_v5 = vld [vmem:[%s24840_s0 + $0x4] ss:$48 sps:$4 sm:$0xff]  }
 0x349   : > { %7278 = vmatpush1.bf16.msra.mxu1 %v19757_v6  ;;  %7021 = vmatprep.subr.bf16.mxu0 %v19762_v7  ;;  %v19832_v6 = vld [vmem:[%s22187_s19 + $0xc0] ss:$40 sps:$4 sm:$0xff]  }
 0x34a   : > { %7279 = vmatprep.subr.bf16.mxu1 %v19765_v8  ;;  %v19835_v7 = vld [vmem:[%s22195_s24 + $0xa0] ss:$40 sps:$4 sm:$0xff]   ;;  %v19840_v8 = vld [vmem:[%s22187_s19 + $0x114] ss:$40 sps:$4 sm:$0xff]  }
 0x34c   : > { %7022 = vmatpush1.bf16.msra.mxu0 %v19760_v9  ;;  %v19843_v9 = vld [vmem:[%s22195_s24 + $0xf4] ss:$40 sps:$4 sm:$0xff]  }
 0x34d   : > { %7280 = vmatpush1.bf16.msra.mxu1 %v19763_v10  ;;  %7023 = vmatprep.subr.bf16.mxu0 %v19768_v11  ;;  %v19838_v10 = vld [vmem:[%s22187_s19 + $0x110] ss:$40 sps:$4 sm:$0xff]  }
 0x34e   : > { %7281 = vmatprep.subr.bf16.mxu1 %v19771_v12  ;;  %v19841_v11 = vld [vmem:[%s22195_s24 + $0xf0] ss:$40 sps:$4 sm:$0xff]   ;;  %v19846_v12 = vld [vmem:[%s22187_s19 + $0x164] ss:$40 sps:$4 sm:$0xff]  }
 0x350   : > { %7024 = vmatpush1.bf16.msra.mxu0 %v19766_v13  ;;  %v19849_v13 = vld [vmem:[%s22195_s24 + $0x144] ss:$40 sps:$4 sm:$0xff]  }
 0x351   : > { %7282 = vmatpush1.bf16.msra.mxu1 %v19769_v14  ;;  %7025 = vmatprep.subr.bf16.mxu0 %v19774_v15  ;;  %v19844_v14 = vld [vmem:[%s22187_s19 + $0x160] ss:$40 sps:$4 sm:$0xff]  }
 0x352   : > { %7283 = vmatprep.subr.bf16.mxu1 %v19777_v16  ;;  %v19847_v15 = vld [vmem:[%s22195_s24 + $0x140] ss:$40 sps:$4 sm:$0xff]   ;;  %v19852_v16 = vld [vmem:[%s22187_s19 + $0x1b4] ss:$40 sps:$4 sm:$0xff]  }
 0x354   : > { %7026 = vmatpush1.bf16.msra.mxu0 %v19772_v17  ;;  %v19855_v17 = vld [vmem:[%s22195_s24 + $0x194] ss:$40 sps:$4 sm:$0xff]  }
 0x355   : > { %7284 = vmatpush1.bf16.msra.mxu1 %v19775_v18  ;;  %7027 = vmatprep.subr.bf16.mxu0 %v19780_v19  ;;  %v19850_v18 = vld [vmem:[%s22187_s19 + $0x1b0] ss:$40 sps:$4 sm:$0xff]  }
 0x356   : > { %7285 = vmatprep.subr.bf16.mxu1 %v19783_v20  ;;  %v19853_v19 = vld [vmem:[%s22195_s24 + $0x190] ss:$40 sps:$4 sm:$0xff]   ;;  %v19858_v20 = vld [vmem:[%s22187_s19 + $0x204] ss:$40 sps:$4 sm:$0xff]  }
 0x358   : > { %7028 = vmatpush1.bf16.msra.mxu0 %v19778_v21  ;;  %v19861_v21 = vld [vmem:[%s22195_s24 + $0x1e4] ss:$40 sps:$4 sm:$0xff]  }
 0x359   : > { %7286 = vmatpush1.bf16.msra.mxu1 %v19781_v22  ;;  %7029 = vmatprep.subr.bf16.mxu0 %v19786_v23  ;;  %v19856_v22 = vld [vmem:[%s22187_s19 + $0x200] ss:$40 sps:$4 sm:$0xff]  }
 0x35a   : > { %7287 = vmatprep.subr.bf16.mxu1 %v19789_v24  ;;  %v19859_v23 = vld [vmem:[%s22195_s24 + $0x1e0] ss:$40 sps:$4 sm:$0xff]   ;;  %v19864_v24 = vld [vmem:[%s22187_s19 + $0x254] ss:$40 sps:$4 sm:$0xff]  }
 0x35c   : > { %7030 = vmatpush1.bf16.msra.mxu0 %v19784_v25  ;;  %v19867_v25 = vld [vmem:[%s22195_s24 + $0x234] ss:$40 sps:$4 sm:$0xff]  }
 0x35d   : > { %7288 = vmatpush1.bf16.msra.mxu1 %v19787_v26  ;;  %7031 = vmatprep.subr.bf16.mxu0 %v19792_v27  ;;  %v19862_v26 = vld [vmem:[%s22187_s19 + $0x250] ss:$40 sps:$4 sm:$0xff]  }
 0x35e   : > { %7289 = vmatprep.subr.bf16.mxu1 %v19795_v28  ;;  %v19865_v27 = vld [vmem:[%s22195_s24 + $0x230] ss:$40 sps:$4 sm:$0xff]   ;;  %v19870_v28 = vld [vmem:[%s22187_s19 + $0x2a4] ss:$40 sps:$4 sm:$0xff]  }
 0x360   : > { %7032 = vmatpush1.bf16.msra.mxu0 %v19790_v29  ;;  %v19873_v29 = vld [vmem:[%s22195_s24 + $0x284] ss:$40 sps:$4 sm:$0xff]  }
 0x361   : > { %7290 = vmatpush1.bf16.msra.mxu1 %v19793_v30  ;;  %7033 = vmatprep.subr.bf16.mxu0 %v19798_v31  ;;  %v19868_v30 = vld [vmem:[%s22187_s19 + $0x2a0] ss:$40 sps:$4 sm:$0xff]  }
 0x362   : > { %7291 = vmatprep.subr.bf16.mxu1 %v19801_v32  ;;  %v19871_v31 = vld [vmem:[%s22195_s24 + $0x280] ss:$40 sps:$4 sm:$0xff]   ;;  %v19876_v32 = vld [vmem:[%s22187_s19 + $0x2f4] ss:$40 sps:$4 sm:$0xff]  }
 0x364   : > { %7034 = vmatpush1.bf16.msra.mxu0 %v19796_v33  ;;  %v19879_v33 = vld [vmem:[%s22195_s24 + $0x2d4] ss:$40 sps:$4 sm:$0xff]  }
 0x365   : > { %7292 = vmatpush1.bf16.msra.mxu1 %v19799_v34  ;;  %7035 = vmatprep.subr.bf16.mxu0 %v19804_v35  ;;  %v19874_v34 = vld [vmem:[%s22187_s19 + $0x2f0] ss:$40 sps:$4 sm:$0xff]  }
 0x366   : > { %7293 = vmatprep.subr.bf16.mxu1 %v19807_v36  ;;  %v19877_v35 = vld [vmem:[%s22195_s24 + $0x2d0] ss:$40 sps:$4 sm:$0xff]   ;;  %v19882_v36 = vld [vmem:[%s22187_s19 + $0x344] ss:$40 sps:$4 sm:$0xff]  }
 0x368   : > { %7036 = vmatpush1.bf16.msra.mxu0 %v19802_v37  ;;  %v19885_v37 = vld [vmem:[%s22195_s24 + $0x324] ss:$40 sps:$4 sm:$0xff]  }
 0x369   : > { %7294 = vmatpush1.bf16.msra.mxu1 %v19805_v38  ;;  %7037 = vmatprep.subr.bf16.mxu0 %v19810_v39  ;;  %v19880_v38 = vld [vmem:[%s22187_s19 + $0x340] ss:$40 sps:$4 sm:$0xff]  }
 0x36a   : > { %7295 = vmatprep.subr.bf16.mxu1 %v19813_v40  ;;  %v19883_v39 = vld [vmem:[%s22195_s24 + $0x320] ss:$40 sps:$4 sm:$0xff]   ;;  %v19888_v40 = vld [vmem:[%s22187_s19 + $0x394] ss:$40 sps:$4 sm:$0xff]  }
 0x36c   : > { %7038 = vmatpush1.bf16.msra.mxu0 %v19808_v41  ;;  %v19891_v41 = vld [vmem:[%s22195_s24 + $0x374] ss:$40 sps:$4 sm:$0xff]  }
 0x36d   : > { %7296 = vmatpush1.bf16.msra.mxu1 %v19811_v42  ;;  %7039 = vmatprep.subr.bf16.mxu0 %v19816_v43  ;;  %v19886_v42 = vld [vmem:[%s22187_s19 + $0x390] ss:$40 sps:$4 sm:$0xff]  }
 0x36e   : > { %7297 = vmatprep.subr.bf16.mxu1 %v19819_v44  ;;  %v19889_v43 = vld [vmem:[%s22195_s24 + $0x370] ss:$40 sps:$4 sm:$0xff]   ;;  %v19894_v44 = vld [vmem:[%s22187_s19 + $0x3e4] ss:$40 sps:$4 sm:$0xff]  }
 0x370   : > { %7040 = vmatpush1.bf16.msra.mxu0 %v19814_v51  ;;  %v19897_v51 = vld [vmem:[%s22195_s24 + $0x3c4] ss:$40 sps:$4 sm:$0xff]  }
 0x371   : > { %7298 = vmatpush1.bf16.msra.mxu1 %v19817_v52  ;;  %7310 = vmatprep.subr.bf16.mxu0 %v19822_v55  ;;  %v19892_v52 = vld [vmem:[%s22187_s19 + $0x3e0] ss:$40 sps:$4 sm:$0xff]  }
 0x372   : > { %11512 = vmatprep.subr.bf16.mxu1 %v19825_v56  ;;  %v19895_v55 = vld [vmem:[%s22195_s24 + $0x3c0] ss:$40 sps:$4 sm:$0xff]   ;;  %v19900_v56 = vld [vmem:[%s22187_s19 + $0x434] ss:$40 sps:$4 sm:$0xff]  }
 0x373   : > { %7042 = vmatmul.mubr.bf16.vlgmr.msra.gmra.mrb[4].mxu0 %v21808_v0 }
 0x374   : > { %7300 = vmatmul.mubr.bf16.vlgmr.msra.gmra.mrb[4].mxu1 %v21808_v0  ;;  %7311 = vmatpush1.bf16.msra.mxu0 %v19820_v59  ;;  %v19903_v59 = vld [vmem:[%s22195_s24 + $0x414] ss:$40 sps:$4 sm:$0xff]   ;;  %v19909_v0 = vld [vmem:[%s22195_s24 + $0x464] ss:$40 sps:$4 sm:$0xff]  }
 0x375   : > { %11513 = vmatpush1.bf16.msra.mxu1 %v19823_v60  ;;  %7312 = vmatprep.subr.bf16.mxu0 %v19828_v61  ;;  %v19898_v60 = vld [vmem:[%s22187_s19 + $0x430] ss:$40 sps:$4 sm:$0xff]  }
 0x376   : > { %11514 = vmatprep.subr.bf16.mxu1 %v19831_v62  ;;  %7342 = vmatprep.mubr.bf16.mxu0 %v21809_v5  ;;  %v19901_v61 = vld [vmem:[%s22195_s24 + $0x410] ss:$40 sps:$4 sm:$0xff]   ;;  %v19906_v62 = vld [vmem:[%s22187_s19 + $0x484] ss:$40 sps:$4 sm:$0xff]  }
 0x377   : > { %11544 = vmatprep.mubr.bf16.mxu1 %v23072_v63  ;;  %v19910_v5 = vld [vmem:[%s22187_s19 + $0x4d0] ss:$40 sps:$4 sm:$0xff]  }
 0x378   : > { %7313 = vmatpush1.bf16.msra.mxu0 %v19826_v1  ;;  %v19904_v1 = vld [vmem:[%s22187_s19 + $0x480] ss:$40 sps:$4 sm:$0xff]  }
 0x379   : > { %11515 = vmatpush1.bf16.msra.mxu1 %v19829_v2  ;;  %7314 = vmatprep.subr.bf16.mxu0 %v19834_v3  ;;  %v19907_v2 = vld [vmem:[%s22195_s24 + $0x460] ss:$40 sps:$4 sm:$0xff]   ;;  %v19912_v3 = vld [vmem:[%s22187_s19 + $0x4d4] ss:$40 sps:$4 sm:$0xff]  }
 0x37a   : > { %11516 = vmatprep.subr.bf16.mxu1 %v19837_v4  ;;  %v19915_v4 = vld [vmem:[%s22195_s24 + $0x4b4] ss:$40 sps:$4 sm:$0xff]  }
 0x37c   : > { %7315 = vmatpush1.bf16.msra.mxu0 %v19832_v6  ;;  %v19913_v6 = vld [vmem:[%s22195_s24 + $0x4b0] ss:$40 sps:$4 sm:$0xff]  }
 0x37d   : > { %11517 = vmatpush1.bf16.msra.mxu1 %v19835_v7  ;;  %7316 = vmatprep.subr.bf16.mxu0 %v19840_v8  ;;  %v19918_v7 = vld [vmem:[%s22187_s19 + $0x524] ss:$40 sps:$4 sm:$0xff]  }
 0x37e   : > { %11518 = vmatprep.subr.bf16.mxu1 %v19843_v9  ;;  %v19921_v8 = vld [vmem:[%s22195_s24 + $0x504] ss:$40 sps:$4 sm:$0xff]  }
 0x37f   : > { %v23144_v9 = vld [vmem:[%s24841_s1 + $0x8] sm:$0xff] }
 0x380   : > { %7317 = vmatpush1.bf16.msra.mxu0 %v19838_v10  ;;  %v23149_v10 = vld [vmem:[%s24841_s1 + $0x28] sm:$0xff] }
 0x381   : > { %11519 = vmatpush1.bf16.msra.mxu1 %v19841_v11  ;;  %7318 = vmatprep.subr.bf16.mxu0 %v19846_v12  ;;  %v23153_v11 = vcombine.low %v23059_v57, %v23064_v58  ;;  %v19916_v12 = vld [vmem:[%s22187_s19 + $0x520] ss:$40 sps:$4 sm:$0xff]   ;;  %v19922_v58 = vld [vmem:[%s22187_s19 + $0x570] ss:$40 sps:$4 sm:$0xff]  }
 0x382   : > { %11520 = vmatprep.subr.bf16.mxu1 %v19849_v13  ;;  %v19919_v13 = vld [vmem:[%s22195_s24 + $0x500] ss:$40 sps:$4 sm:$0xff]  }
 0x383   : > { %v21810_v57 = vld [vmem:[%s24840_s0] ss:$48 sps:$4 sm:$0xff]  }
 0x384   : > { %7319 = vmatpush1.bf16.msra.mxu0 %v19844_v14  ;;  %v19924_v14 = vld [vmem:[%s22187_s19 + $0x574] ss:$40 sps:$4 sm:$0xff]  }
 0x385   : > { %11521 = vmatpush1.bf16.msra.mxu1 %v19847_v15  ;;  %7320 = vmatprep.subr.bf16.mxu0 %v19852_v16  ;;  %v19927_v15 = vld [vmem:[%s22195_s24 + $0x554] ss:$40 sps:$4 sm:$0xff]   ;;  %v23161_v16 = vcombine.high %v23144_v9, %v23149_v10 }
 0x386   : > { %11522 = vmatprep.subr.bf16.mxu1 %v19855_v17  ;;  %v19925_v17 = vld [vmem:[%s22195_s24 + $0x550] ss:$40 sps:$4 sm:$0xff]  }
 0x388   : > { %7321 = vmatpush1.bf16.msra.mxu0 %v19850_v18  ;;  %v19930_v18 = vld [vmem:[%s22187_s19 + $0x5c4] ss:$40 sps:$4 sm:$0xff]  }
 0x389   : > { %11523 = vmatpush1.bf16.msra.mxu1 %v19853_v19  ;;  %7322 = vmatprep.subr.bf16.mxu0 %v19858_v20  ;;  %v19933_v19 = vld [vmem:[%s22195_s24 + $0x5a4] ss:$40 sps:$4 sm:$0xff]  }
 0x38a   : > { %11524 = vmatprep.subr.bf16.mxu1 %v19861_v21  ;;  %v21811_v20 = vld [vmem:[%s24840_s0 + $0xc] ss:$48 sps:$4 sm:$0xff]   ;;  %v19928_v21 = vld [vmem:[%s22187_s19 + $0x5c0] ss:$40 sps:$4 sm:$0xff]  }
 0x38c   : > { %7323 = vmatpush1.bf16.msra.mxu0 %v19856_v22  ;;  %v19931_v22 = vld [vmem:[%s22195_s24 + $0x5a0] ss:$40 sps:$4 sm:$0xff]  }
 0x38d   : > { %11525 = vmatpush1.bf16.msra.mxu1 %v19859_v23  ;;  %7324 = vmatprep.subr.bf16.mxu0 %v19864_v24  ;;  %v19936_v23 = vld [vmem:[%s22187_s19 + $0x614] ss:$40 sps:$4 sm:$0xff]  }
 0x38e   : > { %11526 = vmatprep.subr.bf16.mxu1 %v19867_v25  ;;  %v19939_v24 = vld [vmem:[%s22195_s24 + $0x5f4] ss:$40 sps:$4 sm:$0xff]   ;;  %v19934_v25 = vld [vmem:[%s22187_s19 + $0x610] ss:$40 sps:$4 sm:$0xff]  }
 0x390   : > { %7325 = vmatpush1.bf16.msra.mxu0 %v19862_v26  ;;  %v19937_v26 = vld [vmem:[%s22195_s24 + $0x5f0] ss:$40 sps:$4 sm:$0xff]  }
 0x391   : > { %11527 = vmatpush1.bf16.msra.mxu1 %v19865_v27  ;;  %7326 = vmatprep.subr.bf16.mxu0 %v19870_v28  ;;  %v19942_v27 = vld [vmem:[%s22187_s19 + $0x664] ss:$40 sps:$4 sm:$0xff]  }
 0x392   : > { %11528 = vmatprep.subr.bf16.mxu1 %v19873_v29  ;;  %v19945_v28 = vld [vmem:[%s22195_s24 + $0x644] ss:$40 sps:$4 sm:$0xff]   ;;  %v19940_v29 = vld [vmem:[%s22187_s19 + $0x660] ss:$40 sps:$4 sm:$0xff]  }
 0x394   : > { %7327 = vmatpush1.bf16.msra.mxu0 %v19868_v30  ;;  %v19943_v30 = vld [vmem:[%s22195_s24 + $0x640] ss:$40 sps:$4 sm:$0xff]  }
 0x395   : > { %11529 = vmatpush1.bf16.msra.mxu1 %v19871_v31  ;;  %7328 = vmatprep.subr.bf16.mxu0 %v19876_v32  ;;  %v19948_v31 = vld [vmem:[%s22187_s19 + $0x6b4] ss:$40 sps:$4 sm:$0xff]  }
 0x396   : > { %11530 = vmatprep.subr.bf16.mxu1 %v19879_v33  ;;  %v19951_v32 = vld [vmem:[%s22195_s24 + $0x694] ss:$40 sps:$4 sm:$0xff]   ;;  %v19946_v33 = vld [vmem:[%s22187_s19 + $0x6b0] ss:$40 sps:$4 sm:$0xff]  }
 0x398   : > { %7329 = vmatpush1.bf16.msra.mxu0 %v19874_v34  ;;  %v19949_v34 = vld [vmem:[%s22195_s24 + $0x690] ss:$40 sps:$4 sm:$0xff]  }
 0x399   : > { %11531 = vmatpush1.bf16.msra.mxu1 %v19877_v35  ;;  %7330 = vmatprep.subr.bf16.mxu0 %v19882_v36  ;;  %v19954_v35 = vld [vmem:[%s22187_s19 + $0x704] ss:$40 sps:$4 sm:$0xff]  }
 0x39a   : > { %11532 = vmatprep.subr.bf16.mxu1 %v19885_v37  ;;  %v19957_v36 = vld [vmem:[%s22195_s24 + $0x6e4] ss:$40 sps:$4 sm:$0xff]   ;;  %v19952_v37 = vld [vmem:[%s22187_s19 + $0x700] ss:$40 sps:$4 sm:$0xff]  }
 0x39c   : > { %7331 = vmatpush1.bf16.msra.mxu0 %v19880_v38  ;;  %v19955_v38 = vld [vmem:[%s22195_s24 + $0x6e0] ss:$40 sps:$4 sm:$0xff]  }
 0x39d   : > { %11533 = vmatpush1.bf16.msra.mxu1 %v19883_v39  ;;  %7332 = vmatprep.subr.bf16.mxu0 %v19888_v40  ;;  %v19960_v39 = vld [vmem:[%s22187_s19 + $0x754] ss:$40 sps:$4 sm:$0xff]  }
 0x39e   : > { %11534 = vmatprep.subr.bf16.mxu1 %v19891_v41  ;;  %v19963_v40 = vld [vmem:[%s22195_s24 + $0x734] ss:$40 sps:$4 sm:$0xff]   ;;  %v19958_v41 = vld [vmem:[%s22187_s19 + $0x750] ss:$40 sps:$4 sm:$0xff]  }
 0x3a0   : > { %7333 = vmatpush1.bf16.msra.mxu0 %v19886_v42  ;;  %v19961_v42 = vld [vmem:[%s22195_s24 + $0x730] ss:$40 sps:$4 sm:$0xff]  }
 0x3a1   : > { %11535 = vmatpush1.bf16.msra.mxu1 %v19889_v43  ;;  %7334 = vmatprep.subr.bf16.mxu0 %v19894_v44  ;;  %v19966_v43 = vld [vmem:[%s22187_s19 + $0x7a4] ss:$40 sps:$4 sm:$0xff]  }
 0x3a2   : > { %11536 = vmatprep.subr.bf16.mxu1 %v19897_v51  ;;  %v19969_v44 = vld [vmem:[%s22195_s24 + $0x784] ss:$40 sps:$4 sm:$0xff]   ;;  %v19964_v51 = vld [vmem:[%s22187_s19 + $0x7a0] ss:$40 sps:$4 sm:$0xff]  }
 0x3a4   : > { %7335 = vmatpush1.bf16.msra.mxu0 %v19892_v52  ;;  %v19967_v52 = vld [vmem:[%s22195_s24 + $0x780] ss:$40 sps:$4 sm:$0xff]  }
 0x3a5   : > { %11537 = vmatpush1.bf16.msra.mxu1 %v19895_v55  ;;  %7336 = vmatprep.subr.bf16.mxu0 %v19900_v56  ;;  %v19972_v55 = vld [vmem:[%s22187_s19 + $0x7f4] ss:$40 sps:$4 sm:$0xff]  }
 0x3a6   : > { %11538 = vmatprep.subr.bf16.mxu1 %v19903_v59  ;;  %v19975_v56 = vld [vmem:[%s22195_s24 + $0x7d4] ss:$40 sps:$4 sm:$0xff]   ;;  %v19970_v59 = vld [vmem:[%s22187_s19 + $0x7f0] ss:$40 sps:$4 sm:$0xff]  }
 0x3a8   : > { %7337 = vmatpush1.bf16.msra.mxu0 %v19898_v60  ;;  %v19973_v60 = vld [vmem:[%s22195_s24 + $0x7d0] ss:$40 sps:$4 sm:$0xff]  }
 0x3a9   : > { %11539 = vmatpush1.bf16.msra.mxu1 %v19901_v61  ;;  %7338 = vmatprep.subr.bf16.mxu0 %v19906_v62  ;;  %v19978_v61 = vld [vmem:[%s22187_s19 + $0x844] ss:$40 sps:$4 sm:$0xff]  }
 0x3aa   : > { %11540 = vmatprep.subr.bf16.mxu1 %v19909_v0  ;;  %v19981_v62 = vld [vmem:[%s22195_s24 + $0x824] ss:$40 sps:$4 sm:$0xff]   ;;  %v19976_v0 = vld [vmem:[%s22187_s19 + $0x840] ss:$40 sps:$4 sm:$0xff]  }
 0x3ac   : > { %7339 = vmatpush1.bf16.msra.mxu0 %v19904_v1  ;;  %v19979_v1 = vld [vmem:[%s22195_s24 + $0x820] ss:$40 sps:$4 sm:$0xff]  }
 0x3ad   : > { %11541 = vmatpush1.bf16.msra.mxu1 %v19907_v2  ;;  %7340 = vmatprep.subr.bf16.mxu0 %v19912_v3  ;;  %v19984_v2 = vld [vmem:[%s22187_s19 + $0x894] ss:$40 sps:$4 sm:$0xff]  }
 0x3ae   : > { %11542 = vmatprep.subr.bf16.mxu1 %v19915_v4  ;;  %v19987_v3 = vld [vmem:[%s22195_s24 + $0x874] ss:$40 sps:$4 sm:$0xff]   ;;  %v19982_v4 = vld [vmem:[%s22187_s19 + $0x890] ss:$40 sps:$4 sm:$0xff]  }
 0x3b0   : > { %7341 = vmatpush1.bf16.msra.mxu0 %v19910_v5  ;;  %v19985_v5 = vld [vmem:[%s22195_s24 + $0x870] ss:$40 sps:$4 sm:$0xff]  }
 0x3b1   : > { %11543 = vmatpush1.bf16.msra.mxu1 %v19913_v6  ;;  %7353 = vmatprep.subr.bf16.mxu0 %v19918_v7  ;;  %v19990_v6 = vld [vmem:[%s22187_s19 + $0x8e4] ss:$40 sps:$4 sm:$0xff]  }
 0x3b2   : > { %11555 = vmatprep.subr.bf16.mxu1 %v19921_v8  ;;  %v19993_v7 = vld [vmem:[%s22195_s24 + $0x8c4] ss:$40 sps:$4 sm:$0xff]   ;;  %v19988_v8 = vld [vmem:[%s22187_s19 + $0x8e0] ss:$40 sps:$4 sm:$0xff]  }
 0x3b3   : > { %7343 = vmatmul.mubr.bf16.vlgmr.msra.gmra.mrb[8].mxu0 %v21810_v57  ;;  %v19997_v57 = vld [vmem:[%s22195_s24 + $0x910] ss:$40 sps:$4 sm:$0xff]  }
 0x3b4   : > { %11545 = vmatmul.mubr.bf16.vlgmr.msra.gmra.mrb[8].mxu1 %v23153_v11  ;;  %7354 = vmatpush1.bf16.msra.mxu0 %v19916_v12  ;;  %v19991_v12 = vld [vmem:[%s22195_s24 + $0x8c0] ss:$40 sps:$4 sm:$0xff]  }
 0x3b5   : > { %11556 = vmatpush1.bf16.msra.mxu1 %v19919_v13  ;;  %7355 = vmatprep.subr.bf16.mxu0 %v19924_v14  ;;  %v19996_v13 = vld [vmem:[%s22187_s19 + $0x934] ss:$40 sps:$4 sm:$0xff]  }
 0x3b6   : > { %11557 = vmatprep.subr.bf16.mxu1 %v19927_v15  ;;  %7385 = vmatprep.mubr.bf16.mxu0 %v21811_v20  ;;  %v19999_v14 = vld [vmem:[%s22195_s24 + $0x914] ss:$40 sps:$4 sm:$0xff]   ;;  %v19994_v15 = vld [vmem:[%s22187_s19 + $0x930] ss:$40 sps:$4 sm:$0xff]  }
 0x3b7   : > { %11587 = vmatprep.mubr.bf16.mxu1 %v23161_v16  ;;  %v20008_v20 = vld [vmem:[%s22187_s19 + $0x9d4] ss:$40 sps:$4 sm:$0xff]  }
 0x3b8   : > { %7356 = vmatpush1.bf16.msra.mxu0 %v19922_v58  ;;  %v20002_v58 = vld [vmem:[%s22187_s19 + $0x984] ss:$40 sps:$4 sm:$0xff]  }
 0x3b9   : > { %11558 = vmatpush1.bf16.msra.mxu1 %v19925_v17  ;;  %7357 = vmatprep.subr.bf16.mxu0 %v19930_v18  ;;  %v20005_v17 = vld [vmem:[%s22195_s24 + $0x964] ss:$40 sps:$4 sm:$0xff]   ;;  %v20000_v18 = vld [vmem:[%s22187_s19 + $0x980] ss:$40 sps:$4 sm:$0xff]  }
 0x3ba   : > { %11559 = vmatprep.subr.bf16.mxu1 %v19933_v19  ;;  %v20003_v19 = vld [vmem:[%s22195_s24 + $0x960] ss:$40 sps:$4 sm:$0xff]  }
 0x3bc   : > { %7358 = vmatpush1.bf16.msra.mxu0 %v19928_v21  ;;  %v20011_v21 = vld [vmem:[%s22195_s24 + $0x9b4] ss:$40 sps:$4 sm:$0xff]  }
 0x3bd   : > { %11560 = vmatpush1.bf16.msra.mxu1 %v19931_v22  ;;  %7359 = vmatprep.subr.bf16.mxu0 %v19936_v23  ;;  %v20006_v22 = vld [vmem:[%s22187_s19 + $0x9d0] ss:$40 sps:$4 sm:$0xff]  }
 0x3be   : > { %11561 = vmatprep.subr.bf16.mxu1 %v19939_v24  ;;  %v20009_v23 = vld [vmem:[%s22195_s24 + $0x9b0] ss:$40 sps:$4 sm:$0xff]   ;;  %v20014_v24 = vld [vmem:[%s22187_s19 + $0xa24] ss:$40 sps:$4 sm:$0xff]  }
 0x3c0   : > { %7360 = vmatpush1.bf16.msra.mxu0 %v19934_v25  ;;  %v20017_v25 = vld [vmem:[%s22195_s24 + $0xa04] ss:$40 sps:$4 sm:$0xff]  }
 0x3c1   : > { %11562 = vmatpush1.bf16.msra.mxu1 %v19937_v26  ;;  %7361 = vmatprep.subr.bf16.mxu0 %v19942_v27  ;;  %v23233_v26 = vcombine.low %v23144_v9, %v23149_v10  ;;  %v23238_v27 = vld [vmem:[%s24841_s1 + $0x10] sm:$0xff] }
 0x3c2   : > { %11563 = vmatprep.subr.bf16.mxu1 %v19945_v28  ;;  %v23243_v28 = vld [vmem:[%s24841_s1 + $0x30] sm:$0xff] }
 0x3c3   : > { %v20020_v9 = vld [vmem:[%s22187_s19 + $0xa74] ss:$40 sps:$4 sm:$0xff]  }
 0x3c4   : > { %7362 = vmatpush1.bf16.msra.mxu0 %v19940_v29  ;;  %v20012_v29 = vld [vmem:[%s22187_s19 + $0xa20] ss:$40 sps:$4 sm:$0xff]   ;;  %v20023_v10 = vld [vmem:[%s22195_s24 + $0xa54] ss:$40 sps:$4 sm:$0xff]  }
 0x3c5   : > { %11564 = vmatpush1.bf16.msra.mxu1 %v19943_v30  ;;  %7363 = vmatprep.subr.bf16.mxu0 %v19948_v31  ;;  %v20015_v30 = vld [vmem:[%s22195_s24 + $0xa00] ss:$40 sps:$4 sm:$0xff]   ;;  %v23251_v31 = vcombine.high %v23238_v27, %v23243_v28 }
 0x3c6   : > { %11565 = vmatprep.subr.bf16.mxu1 %v19951_v32  ;;  %v21812_v32 = vld [vmem:[%s24840_s0 + $0x8] ss:$48 sps:$4 sm:$0xff]  }
 0x3c8   : > { %7364 = vmatpush1.bf16.msra.mxu0 %v19946_v33  ;;  %v20018_v33 = vld [vmem:[%s22187_s19 + $0xa70] ss:$40 sps:$4 sm:$0xff]  }
 0x3c9   : > { %11566 = vmatpush1.bf16.msra.mxu1 %v19949_v34  ;;  %7365 = vmatprep.subr.bf16.mxu0 %v19954_v35  ;;  %v20021_v34 = vld [vmem:[%s22195_s24 + $0xa50] ss:$40 sps:$4 sm:$0xff]   ;;  %v20026_v35 = vld [vmem:[%s22187_s19 + $0xac4] ss:$40 sps:$4 sm:$0xff]  }
 0x3ca   : > { %11567 = vmatprep.subr.bf16.mxu1 %v19957_v36  ;;  %v20029_v36 = vld [vmem:[%s22195_s24 + $0xaa4] ss:$40 sps:$4 sm:$0xff]  }
 0x3cc   : > { %7366 = vmatpush1.bf16.msra.mxu0 %v19952_v37  ;;  %v21813_v37 = vld [vmem:[%s24840_s0 + $0x14] ss:$48 sps:$4 sm:$0xff]  }
 0x3cd   : > { %11568 = vmatpush1.bf16.msra.mxu1 %v19955_v38  ;;  %7367 = vmatprep.subr.bf16.mxu0 %v19960_v39  ;;  %v20024_v38 = vld [vmem:[%s22187_s19 + $0xac0] ss:$40 sps:$4 sm:$0xff]  }
 0x3ce   : > { %11569 = vmatprep.subr.bf16.mxu1 %v19963_v40  ;;  %v20027_v39 = vld [vmem:[%s22195_s24 + $0xaa0] ss:$40 sps:$4 sm:$0xff]   ;;  %v20032_v40 = vld [vmem:[%s22187_s19 + $0xb14] ss:$40 sps:$4 sm:$0xff]  }
 0x3d0   : > { %7368 = vmatpush1.bf16.msra.mxu0 %v19958_v41  ;;  %v20035_v41 = vld [vmem:[%s22195_s24 + $0xaf4] ss:$40 sps:$4 sm:$0xff]  }
 0x3d1   : > { %11570 = vmatpush1.bf16.msra.mxu1 %v19961_v42  ;;  %7369 = vmatprep.subr.bf16.mxu0 %v19966_v43  ;;  %v20030_v42 = vld [vmem:[%s22187_s19 + $0xb10] ss:$40 sps:$4 sm:$0xff]  }
 0x3d2   : > { %11571 = vmatprep.subr.bf16.mxu1 %v19969_v44  ;;  %v20033_v43 = vld [vmem:[%s22195_s24 + $0xaf0] ss:$40 sps:$4 sm:$0xff]   ;;  %v20038_v44 = vld [vmem:[%s22187_s19 + $0xb64] ss:$40 sps:$4 sm:$0xff]  }
 0x3d4   : > { %7370 = vmatpush1.bf16.msra.mxu0 %v19964_v51  ;;  %v20041_v51 = vld [vmem:[%s22195_s24 + $0xb44] ss:$40 sps:$4 sm:$0xff]  }
 0x3d5   : > { %11572 = vmatpush1.bf16.msra.mxu1 %v19967_v52  ;;  %7371 = vmatprep.subr.bf16.mxu0 %v19972_v55  ;;  %v20036_v52 = vld [vmem:[%s22187_s19 + $0xb60] ss:$40 sps:$4 sm:$0xff]  }
 0x3d6   : > { %11573 = vmatprep.subr.bf16.mxu1 %v19975_v56  ;;  %v20039_v55 = vld [vmem:[%s22195_s24 + $0xb40] ss:$40 sps:$4 sm:$0xff]   ;;  %v20044_v56 = vld [vmem:[%s22187_s19 + $0xbb4] ss:$40 sps:$4 sm:$0xff]  }
 0x3d8   : > { %7372 = vmatpush1.bf16.msra.mxu0 %v19970_v59  ;;  %v20047_v59 = vld [vmem:[%s22195_s24 + $0xb94] ss:$40 sps:$4 sm:$0xff]  }
 0x3d9   : > { %11574 = vmatpush1.bf16.msra.mxu1 %v19973_v60  ;;  %7373 = vmatprep.subr.bf16.mxu0 %v19978_v61  ;;  %v20042_v60 = vld [vmem:[%s22187_s19 + $0xbb0] ss:$40 sps:$4 sm:$0xff]  }
 0x3da   : > { %11575 = vmatprep.subr.bf16.mxu1 %v19981_v62  ;;  %v20045_v61 = vld [vmem:[%s22195_s24 + $0xb90] ss:$40 sps:$4 sm:$0xff]   ;;  %v20050_v62 = vld [vmem:[%s22187_s19 + $0xc04] ss:$40 sps:$4 sm:$0xff]  }
 0x3dc   : > { %7374 = vmatpush1.bf16.msra.mxu0 %v19976_v0  ;;  %v20053_v0 = vld [vmem:[%s22195_s24 + $0xbe4] ss:$40 sps:$4 sm:$0xff]  }
 0x3dd   : > { %11576 = vmatpush1.bf16.msra.mxu1 %v19979_v1  ;;  %7375 = vmatprep.subr.bf16.mxu0 %v19984_v2  ;;  %v20048_v1 = vld [vmem:[%s22187_s19 + $0xc00] ss:$40 sps:$4 sm:$0xff]  }
 0x3de   : > { %11577 = vmatprep.subr.bf16.mxu1 %v19987_v3  ;;  %v20051_v2 = vld [vmem:[%s22195_s24 + $0xbe0] ss:$40 sps:$4 sm:$0xff]   ;;  %v20056_v3 = vld [vmem:[%s22187_s19 + $0xc54] ss:$40 sps:$4 sm:$0xff]  }
 0x3e0   : > { %7376 = vmatpush1.bf16.msra.mxu0 %v19982_v4  ;;  %v20059_v4 = vld [vmem:[%s22195_s24 + $0xc34] ss:$40 sps:$4 sm:$0xff]  }
 0x3e1   : > { %11578 = vmatpush1.bf16.msra.mxu1 %v19985_v5  ;;  %7377 = vmatprep.subr.bf16.mxu0 %v19990_v6  ;;  %v20054_v5 = vld [vmem:[%s22187_s19 + $0xc50] ss:$40 sps:$4 sm:$0xff]  }
 0x3e2   : > { %11579 = vmatprep.subr.bf16.mxu1 %v19993_v7  ;;  %v20057_v6 = vld [vmem:[%s22195_s24 + $0xc30] ss:$40 sps:$4 sm:$0xff]   ;;  %v20062_v7 = vld [vmem:[%s22187_s19 + $0xca4] ss:$40 sps:$4 sm:$0xff]  }
 0x3e4   : > { %7378 = vmatpush1.bf16.msra.mxu0 %v19988_v8  ;;  %v20065_v8 = vld [vmem:[%s22195_s24 + $0xc84] ss:$40 sps:$4 sm:$0xff]  }
 0x3e5   : > { %11580 = vmatpush1.bf16.msra.mxu1 %v19991_v12  ;;  %7379 = vmatprep.subr.bf16.mxu0 %v19996_v13  ;;  %v20060_v12 = vld [vmem:[%s22187_s19 + $0xca0] ss:$40 sps:$4 sm:$0xff]  }
 0x3e6   : > { %11581 = vmatprep.subr.bf16.mxu1 %v19999_v14  ;;  %v20063_v13 = vld [vmem:[%s22195_s24 + $0xc80] ss:$40 sps:$4 sm:$0xff]   ;;  %v20068_v14 = vld [vmem:[%s22187_s19 + $0xcf4] ss:$40 sps:$4 sm:$0xff]  }
 0x3e8   : > { %7380 = vmatpush1.bf16.msra.mxu0 %v19994_v15  ;;  %v20071_v15 = vld [vmem:[%s22195_s24 + $0xcd4] ss:$40 sps:$4 sm:$0xff]  }
 0x3e9   : > { %11582 = vmatpush1.bf16.msra.mxu1 %v19997_v57  ;;  %7381 = vmatprep.subr.bf16.mxu0 %v20002_v58  ;;  %v20066_v57 = vld [vmem:[%s22187_s19 + $0xcf0] ss:$40 sps:$4 sm:$0xff]  }
 0x3ea   : > { %11583 = vmatprep.subr.bf16.mxu1 %v20005_v17  ;;  %v20069_v58 = vld [vmem:[%s22195_s24 + $0xcd0] ss:$40 sps:$4 sm:$0xff]   ;;  %v20074_v17 = vld [vmem:[%s22187_s19 + $0xd44] ss:$40 sps:$4 sm:$0xff]  }
 0x3ec   : > { %7382 = vmatpush1.bf16.msra.mxu0 %v20000_v18  ;;  %v20077_v18 = vld [vmem:[%s22195_s24 + $0xd24] ss:$40 sps:$4 sm:$0xff]  }
 0x3ed   : > { %11584 = vmatpush1.bf16.msra.mxu1 %v20003_v19  ;;  %7383 = vmatprep.subr.bf16.mxu0 %v20008_v20  ;;  %v20072_v19 = vld [vmem:[%s22187_s19 + $0xd40] ss:$40 sps:$4 sm:$0xff]  }
 0x3ee   : > { %11585 = vmatprep.subr.bf16.mxu1 %v20011_v21  ;;  %v20075_v20 = vld [vmem:[%s22195_s24 + $0xd20] ss:$40 sps:$4 sm:$0xff]   ;;  %v20080_v21 = vld [vmem:[%s22187_s19 + $0xd94] ss:$40 sps:$4 sm:$0xff]  }
 0x3f0   : > { %7384 = vmatpush1.bf16.msra.mxu0 %v20006_v22  ;;  %v20083_v22 = vld [vmem:[%s22195_s24 + $0xd74] ss:$40 sps:$4 sm:$0xff]  }
 0x3f1   : > { %11586 = vmatpush1.bf16.msra.mxu1 %v20009_v23  ;;  %7396 = vmatprep.subr.bf16.mxu0 %v20014_v24  ;;  %v20078_v23 = vld [vmem:[%s22187_s19 + $0xd90] ss:$40 sps:$4 sm:$0xff]  }
 0x3f2   : > { %11598 = vmatprep.subr.bf16.mxu1 %v20017_v25  ;;  %v20081_v24 = vld [vmem:[%s22195_s24 + $0xd70] ss:$40 sps:$4 sm:$0xff]   ;;  %v20086_v25 = vld [vmem:[%s22187_s19 + $0xde4] ss:$40 sps:$4 sm:$0xff]  }
 0x3f3   : > { %7386 = vmatmul.mubr.bf16.vlgmr.msra.gmra.mrb[8].mxu0 %v21812_v32  ;;  %v20095_v32 = vld [vmem:[%s22195_s24 + $0xe14] ss:$40 sps:$4 sm:$0xff]  }
 0x3f4   : > { %11588 = vmatmul.mubr.bf16.vlgmr.msra.gmra.mrb[8].mxu1 %v23233_v26  ;;  %7397 = vmatpush1.bf16.msra.mxu0 %v20012_v29  ;;  %v20089_v29 = vld [vmem:[%s22195_s24 + $0xdc4] ss:$40 sps:$4 sm:$0xff]  }
 0x3f5   : > { %11599 = vmatpush1.bf16.msra.mxu1 %v20015_v30  ;;  %7398 = vmatprep.subr.bf16.mxu0 %v20020_v9  ;;  %v20084_v30 = vld [vmem:[%s22187_s19 + $0xde0] ss:$40 sps:$4 sm:$0xff]  }
 0x3f6   : > { %11600 = vmatprep.subr.bf16.mxu1 %v20023_v10  ;;  %7428 = vmatprep.mubr.bf16.mxu0 %v21813_v37  ;;  %v20087_v9 = vld [vmem:[%s22195_s24 + $0xdc0] ss:$40 sps:$4 sm:$0xff]   ;;  %v20092_v10 = vld [vmem:[%s22187_s19 + $0xe34] ss:$40 sps:$4 sm:$0xff]  }
 0x3f7   : > { %11630 = vmatprep.mubr.bf16.mxu1 %v23251_v31  ;;  %v20096_v37 = vld [vmem:[%s22187_s19 + $0xe80] ss:$40 sps:$4 sm:$0xff]  }
 0x3f8   : > { %7399 = vmatpush1.bf16.msra.mxu0 %v20018_v33  ;;  %v20090_v33 = vld [vmem:[%s22187_s19 + $0xe30] ss:$40 sps:$4 sm:$0xff]  }
 0x3f9   : > { %11601 = vmatpush1.bf16.msra.mxu1 %v20021_v34  ;;  %7400 = vmatprep.subr.bf16.mxu0 %v20026_v35  ;;  %v20093_v34 = vld [vmem:[%s22195_s24 + $0xe10] ss:$40 sps:$4 sm:$0xff]   ;;  %v20098_v35 = vld [vmem:[%s22187_s19 + $0xe84] ss:$40 sps:$4 sm:$0xff]  }
 0x3fa   : > { %11602 = vmatprep.subr.bf16.mxu1 %v20029_v36  ;;  %v20101_v36 = vld [vmem:[%s22195_s24 + $0xe64] ss:$40 sps:$4 sm:$0xff]  }
 0x3fc   : > { %7401 = vmatpush1.bf16.msra.mxu0 %v20024_v38  ;;  %v20099_v38 = vld [vmem:[%s22195_s24 + $0xe60] ss:$40 sps:$4 sm:$0xff]  }
 0x3fd   : > { %11603 = vmatpush1.bf16.msra.mxu1 %v20027_v39  ;;  %7402 = vmatprep.subr.bf16.mxu0 %v20032_v40  ;;  %v20104_v39 = vld [vmem:[%s22187_s19 + $0xed4] ss:$40 sps:$4 sm:$0xff]  }
 0x3fe   : > { %11604 = vmatprep.subr.bf16.mxu1 %v20035_v41  ;;  %v20107_v40 = vld [vmem:[%s22195_s24 + $0xeb4] ss:$40 sps:$4 sm:$0xff]   ;;  %v20102_v41 = vld [vmem:[%s22187_s19 + $0xed0] ss:$40 sps:$4 sm:$0xff]  }
 0x400   : > { %7403 = vmatpush1.bf16.msra.mxu0 %v20030_v42  ;;  %v20105_v42 = vld [vmem:[%s22195_s24 + $0xeb0] ss:$40 sps:$4 sm:$0xff]  }
 0x401   : > { %11605 = vmatpush1.bf16.msra.mxu1 %v20033_v43  ;;  %7404 = vmatprep.subr.bf16.mxu0 %v20038_v44  ;;  %v20110_v43 = vld [vmem:[%s22187_s19 + $0xf24] ss:$40 sps:$4 sm:$0xff]  }
 0x402   : > { %11606 = vmatprep.subr.bf16.mxu1 %v20041_v51  ;;  %v20113_v44 = vld [vmem:[%s22195_s24 + $0xf04] ss:$40 sps:$4 sm:$0xff]   ;;  %v23323_v51 = vcombine.low %v23238_v27, %v23243_v28  ;;  %v20116_v27 = vld [vmem:[%s22187_s19 + $0xf74] ss:$40 sps:$4 sm:$0xff]  }
 0x403   : > { %v20119_v28 = vld [vmem:[%s22195_s24 + $0xf54] ss:$40 sps:$4 sm:$0xff]  }
 0x404   : > { %7405 = vmatpush1.bf16.msra.mxu0 %v20036_v52  ;;  %v23328_v52 = vld [vmem:[%s24841_s1 + $0x18] sm:$0xff] }
 0x405   : > { %11607 = vmatpush1.bf16.msra.mxu1 %v20039_v55  ;;  %7406 = vmatprep.subr.bf16.mxu0 %v20044_v56  ;;  %v23333_v55 = vld [vmem:[%s24841_s1 + $0x38] sm:$0xff]  ;;  %v20108_v56 = vld [vmem:[%s22187_s19 + $0xf20] ss:$40 sps:$4 sm:$0xff]  }
 0x406   : > { %11608 = vmatprep.subr.bf16.mxu1 %v20047_v59  ;;  %v20111_v59 = vld [vmem:[%s22195_s24 + $0xf00] ss:$40 sps:$4 sm:$0xff]  }
 0x408   : > { %7407 = vmatpush1.bf16.msra.mxu0 %v20042_v60  ;;  %v23341_v60 = vcombine.high %v23328_v52, %v23333_v55 }
 0x409   : > { %11609 = vmatpush1.bf16.msra.mxu1 %v20045_v61  ;;  %7408 = vmatprep.subr.bf16.mxu0 %v20050_v62  ;;  %v21814_v61 = vld [vmem:[%s24840_s0 + $0x10] ss:$48 sps:$4 sm:$0xff]  }
 0x40a   : > { %11610 = vmatprep.subr.bf16.mxu1 %v20053_v0  ;;  %v20114_v62 = vld [vmem:[%s22187_s19 + $0xf70] ss:$40 sps:$4 sm:$0xff]  }
 0x40b   : > { %v20117_v0 = vld [vmem:[%s22195_s24 + $0xf50] ss:$40 sps:$4 sm:$0xff]  }
 0x40c   : > { %7409 = vmatpush1.bf16.msra.mxu0 %v20048_v1  ;;  %v20122_v1 = vld [vmem:[%s22187_s19 + $0xfc4] ss:$40 sps:$4 sm:$0xff]  }
 0x40d   : > { %11611 = vmatpush1.bf16.msra.mxu1 %v20051_v2  ;;  %7410 = vmatprep.subr.bf16.mxu0 %v20056_v3  ;;  %v20125_v2 = vld [vmem:[%s22195_s24 + $0xfa4] ss:$40 sps:$4 sm:$0xff]  }
 0x40e   : > { %11612 = vmatprep.subr.bf16.mxu1 %v20059_v4  ;;  %v21815_v3 = vld [vmem:[%s24840_s0 + $0x1c] ss:$48 sps:$4 sm:$0xff]   ;;  %v20120_v4 = vld [vmem:[%s22187_s19 + $0xfc0] ss:$40 sps:$4 sm:$0xff]  }
 0x410   : > { %7411 = vmatpush1.bf16.msra.mxu0 %v20054_v5  ;;  %v20123_v5 = vld [vmem:[%s22195_s24 + $0xfa0] ss:$40 sps:$4 sm:$0xff]  }
 0x411   : > { %11613 = vmatpush1.bf16.msra.mxu1 %v20057_v6  ;;  %7412 = vmatprep.subr.bf16.mxu0 %v20062_v7  ;;  %v20128_v6 = vld [vmem:[%s22187_s19 + $0x1014] ss:$40 sps:$4 sm:$0xff]  }
 0x412   : > { %11614 = vmatprep.subr.bf16.mxu1 %v20065_v8  ;;  %v20131_v7 = vld [vmem:[%s22195_s24 + $0xff4] ss:$40 sps:$4 sm:$0xff]   ;;  %v20126_v8 = vld [vmem:[%s22187_s19 + $0x1010] ss:$40 sps:$4 sm:$0xff]  }
 0x414   : > { %7413 = vmatpush1.bf16.msra.mxu0 %v20060_v12  ;;  %v20129_v12 = vld [vmem:[%s22195_s24 + $0xff0] ss:$40 sps:$4 sm:$0xff]  }
 0x415   : > { %11615 = vmatpush1.bf16.msra.mxu1 %v20063_v13  ;;  %7414 = vmatprep.subr.bf16.mxu0 %v20068_v14  ;;  %v20134_v13 = vld [vmem:[%s22187_s19 + $0x1064] ss:$40 sps:$4 sm:$0xff]  }
 0x416   : > { %11616 = vmatprep.subr.bf16.mxu1 %v20071_v15  ;;  %v20137_v14 = vld [vmem:[%s22195_s24 + $0x1044] ss:$40 sps:$4 sm:$0xff]   ;;  %v20132_v15 = vld [vmem:[%s22187_s19 + $0x1060] ss:$40 sps:$4 sm:$0xff]  }
 0x418   : > { %7415 = vmatpush1.bf16.msra.mxu0 %v20066_v57  ;;  %v20135_v57 = vld [vmem:[%s22195_s24 + $0x1040] ss:$40 sps:$4 sm:$0xff]  }
 0x419   : > { %11617 = vmatpush1.bf16.msra.mxu1 %v20069_v58  ;;  %7416 = vmatprep.subr.bf16.mxu0 %v20074_v17  ;;  %v20140_v58 = vld [vmem:[%s22187_s19 + $0x10b4] ss:$40 sps:$4 sm:$0xff]  }
 0x41a   : > { %11618 = vmatprep.subr.bf16.mxu1 %v20077_v18  ;;  %v20143_v17 = vld [vmem:[%s22195_s24 + $0x1094] ss:$40 sps:$4 sm:$0xff]   ;;  %v20138_v18 = vld [vmem:[%s22187_s19 + $0x10b0] ss:$40 sps:$4 sm:$0xff]  }
 0x41c   : > { %7417 = vmatpush1.bf16.msra.mxu0 %v20072_v19  ;;  %v20141_v19 = vld [vmem:[%s22195_s24 + $0x1090] ss:$40 sps:$4 sm:$0xff]  }
 0x41d   : > { %11619 = vmatpush1.bf16.msra.mxu1 %v20075_v20  ;;  %7418 = vmatprep.subr.bf16.mxu0 %v20080_v21  ;;  %v20146_v20 = vld [vmem:[%s22187_s19 + $0x1104] ss:$40 sps:$4 sm:$0xff]  }
 0x41e   : > { %11620 = vmatprep.subr.bf16.mxu1 %v20083_v22  ;;  %v20149_v21 = vld [vmem:[%s22195_s24 + $0x10e4] ss:$40 sps:$4 sm:$0xff]  }
 0x420   : > { %7419 = vmatpush1.bf16.msra.mxu0 %v20078_v23 }
 0x421   : > { %11621 = vmatpush1.bf16.msra.mxu1 %v20081_v24  ;;  %7420 = vmatprep.subr.bf16.mxu0 %v20086_v25 }
 0x422   : > { %11622 = vmatprep.subr.bf16.mxu1 %v20089_v29 }
 0x424   : > { %7421 = vmatpush1.bf16.msra.mxu0 %v20084_v30 }
 0x425   : > { %11623 = vmatpush1.bf16.msra.mxu1 %v20087_v9  ;;  %7422 = vmatprep.subr.bf16.mxu0 %v20092_v10  ;;  %v20144_v9 = vld [vmem:[%s22187_s19 + $0x1100] ss:$40 sps:$4 sm:$0xff]  }
 0x426   : > { %11624 = vmatprep.subr.bf16.mxu1 %v20095_v32  ;;  %v20147_v10 = vld [vmem:[%s22195_s24 + $0x10e0] ss:$40 sps:$4 sm:$0xff]  }
 0x428   : > { %7423 = vmatpush1.bf16.msra.mxu0 %v20090_v33 }
 0x429   : > { %11625 = vmatpush1.bf16.msra.mxu1 %v20093_v34  ;;  %7424 = vmatprep.subr.bf16.mxu0 %v20098_v35  ;;  %v20152_v34 = vld [vmem:[%s22187_s19 + $0x1154] ss:$40 sps:$4 sm:$0xff]  }
 0x42a   : > { %11626 = vmatprep.subr.bf16.mxu1 %v20101_v36  ;;  %v20155_v35 = vld [vmem:[%s22195_s24 + $0x1134] ss:$40 sps:$4 sm:$0xff]   ;;  %v20150_v36 = vld [vmem:[%s22187_s19 + $0x1150] ss:$40 sps:$4 sm:$0xff]  }
 0x42c   : > { %7425 = vmatpush1.bf16.msra.mxu0 %v20096_v37  ;;  %v20153_v37 = vld [vmem:[%s22195_s24 + $0x1130] ss:$40 sps:$4 sm:$0xff]  }
 0x42d   : > { %11627 = vmatpush1.bf16.msra.mxu1 %v20099_v38  ;;  %7426 = vmatprep.subr.bf16.mxu0 %v20104_v39  ;;  %v20158_v38 = vld [vmem:[%s22187_s19 + $0x11a4] ss:$40 sps:$4 sm:$0xff]  }
 0x42e   : > { %11628 = vmatprep.subr.bf16.mxu1 %v20107_v40  ;;  %v20161_v39 = vld [vmem:[%s22195_s24 + $0x1184] ss:$40 sps:$4 sm:$0xff]   ;;  %v20156_v40 = vld [vmem:[%s22187_s19 + $0x11a0] ss:$40 sps:$4 sm:$0xff]  }
 0x430   : > { %7427 = vmatpush1.bf16.msra.mxu0 %v20102_v41  ;;  %v20159_v41 = vld [vmem:[%s22195_s24 + $0x1180] ss:$40 sps:$4 sm:$0xff]  }
 0x431   : > { %11629 = vmatpush1.bf16.msra.mxu1 %v20105_v42  ;;  %7439 = vmatprep.subr.bf16.mxu0 %v20110_v43  ;;  %v20164_v42 = vld [vmem:[%s22187_s19 + $0x11f4] ss:$40 sps:$4 sm:$0xff]  }
 0x432   : > { %11641 = vmatprep.subr.bf16.mxu1 %v20113_v44  ;;  %v20167_v43 = vld [vmem:[%s22195_s24 + $0x11d4] ss:$40 sps:$4 sm:$0xff]   ;;  %v20162_v44 = vld [vmem:[%s22187_s19 + $0x11f0] ss:$40 sps:$4 sm:$0xff]  }
 0x433   : > { %7429 = vmatmul.mubr.bf16.vlgmr.msra.gmra.mrb[8].mxu0 %v21814_v61  ;;  %v20171_v61 = vld [vmem:[%s22195_s24 + $0x1220] ss:$40 sps:$4 sm:$0xff]  }
 0x434   : > { %11631 = vmatmul.mubr.bf16.vlgmr.msra.gmra.mrb[8].mxu1 %v23323_v51  ;;  %7440 = vmatpush1.bf16.msra.mxu0 %v20108_v56  ;;  %v20165_v56 = vld [vmem:[%s22195_s24 + $0x11d0] ss:$40 sps:$4 sm:$0xff]  }
 0x435   : > { %11642 = vmatpush1.bf16.msra.mxu1 %v20111_v59  ;;  %7441 = vmatprep.subr.bf16.mxu0 %v20116_v27  ;;  %v20170_v59 = vld [vmem:[%s22187_s19 + $0x1244] ss:$40 sps:$4 sm:$0xff]  }
 0x436   : > { %11643 = vmatprep.subr.bf16.mxu1 %v20119_v28  ;;  %11673 = vmatprep.mubr.bf16.mxu1 %v23341_v60  ;;  %v20173_v27 = vld [vmem:[%s22195_s24 + $0x1224] ss:$40 sps:$4 sm:$0xff]   ;;  %v20168_v28 = vld [vmem:[%s22187_s19 + $0x1240] ss:$40 sps:$4 sm:$0xff]  }
 0x437   : > { %7471 = vmatprep.mubr.bf16.mxu0 %v21815_v3  ;;  %v20182_v3 = vld [vmem:[%s22187_s19 + $0x12e4] ss:$40 sps:$4 sm:$0xff]  }
 0x438   : > { %7442 = vmatpush1.bf16.msra.mxu0 %v20114_v62  ;;  %v20176_v62 = vld [vmem:[%s22187_s19 + $0x1294] ss:$40 sps:$4 sm:$0xff]  }
 0x439   : > { %11644 = vmatpush1.bf16.msra.mxu1 %v20117_v0  ;;  %7443 = vmatprep.subr.bf16.mxu0 %v20122_v1  ;;  %v20179_v0 = vld [vmem:[%s22195_s24 + $0x1274] ss:$40 sps:$4 sm:$0xff]   ;;  %v20174_v1 = vld [vmem:[%s22187_s19 + $0x1290] ss:$40 sps:$4 sm:$0xff]  }
 0x43a   : > { %11645 = vmatprep.subr.bf16.mxu1 %v20125_v2  ;;  %v20177_v2 = vld [vmem:[%s22195_s24 + $0x1270] ss:$40 sps:$4 sm:$0xff]  }
 0x43c   : > { %7444 = vmatpush1.bf16.msra.mxu0 %v20120_v4  ;;  %v20185_v4 = vld [vmem:[%s22195_s24 + $0x12c4] ss:$40 sps:$4 sm:$0xff]  }
 0x43d   : > { %11646 = vmatpush1.bf16.msra.mxu1 %v20123_v5  ;;  %7445 = vmatprep.subr.bf16.mxu0 %v20128_v6  ;;  %v20180_v5 = vld [vmem:[%s22187_s19 + $0x12e0] ss:$40 sps:$4 sm:$0xff]  }
 0x43e   : > { %11647 = vmatprep.subr.bf16.mxu1 %v20131_v7  ;;  %v20183_v6 = vld [vmem:[%s22195_s24 + $0x12c0] ss:$40 sps:$4 sm:$0xff]   ;;  %v20188_v7 = vld [vmem:[%s22187_s19 + $0x1334] ss:$40 sps:$4 sm:$0xff]  }
 0x440   : > { %7446 = vmatpush1.bf16.msra.mxu0 %v20126_v8  ;;  %v20191_v8 = vld [vmem:[%s22195_s24 + $0x1314] ss:$40 sps:$4 sm:$0xff]  }
 0x441   : > { %11648 = vmatpush1.bf16.msra.mxu1 %v20129_v12  ;;  %7447 = vmatprep.subr.bf16.mxu0 %v20134_v13  ;;  %v20186_v12 = vld [vmem:[%s22187_s19 + $0x1330] ss:$40 sps:$4 sm:$0xff]  }
 0x442   : > { %11649 = vmatprep.subr.bf16.mxu1 %v20137_v14  ;;  %v20189_v13 = vld [vmem:[%s22195_s24 + $0x1310] ss:$40 sps:$4 sm:$0xff]   ;;  %v20194_v14 = vld [vmem:[%s22187_s19 + $0x1384] ss:$40 sps:$4 sm:$0xff]  }
 0x444   : > { %7448 = vmatpush1.bf16.msra.mxu0 %v20132_v15  ;;  %v20197_v15 = vld [vmem:[%s22195_s24 + $0x1364] ss:$40 sps:$4 sm:$0xff]  }
 0x445   : > { %11650 = vmatpush1.bf16.msra.mxu1 %v20135_v57  ;;  %7449 = vmatprep.subr.bf16.mxu0 %v20140_v58  ;;  %v20192_v57 = vld [vmem:[%s22187_s19 + $0x1380] ss:$40 sps:$4 sm:$0xff]  }
 0x446   : > { %11651 = vmatprep.subr.bf16.mxu1 %v20143_v17  ;;  %v23371_v22 = vpop.f32.mrb[4].mxu0  ;;  %v20195_v58 = vld [vmem:[%s22195_s24 + $0x1360] ss:$40 sps:$4 sm:$0xff]   ;;  %v20200_v17 = vld [vmem:[%s22187_s19 + $0x13d4] ss:$40 sps:$4 sm:$0xff]  }
 0x447   : > { %v23373_v23 = vpop.f32.mrb[4].mxu1  ;;  %v23375_v24 = vpop.f32.mrb[5].mxu0 }
 0x448   : > { %v23377_v25 = vpop.f32.mrb[5].mxu1  ;;  %v23379_v29 = vpop.f32.mrb[6].mxu0  ;;  %7450 = vmatpush1.bf16.msra.mxu0 %v20138_v18  ;;  %v20203_v18 = vld [vmem:[%s22195_s24 + $0x13b4] ss:$40 sps:$4 sm:$0xff]  }
 0x449   : > { %v23381_v30 = vpop.f32.mrb[6].mxu1  ;;  %11652 = vmatpush1.bf16.msra.mxu1 %v20141_v19  ;;  %v23385_v32 = vpop.f32.mrb[7].mxu0  ;;  %7451 = vmatprep.subr.bf16.mxu0 %v20146_v20  ;;  %v20198_v19 = vld [vmem:[%s22187_s19 + $0x13d0] ss:$40 sps:$4 sm:$0xff]  }
 0x44a   : > { %v23387_v33 = vpop.f32.mrb[7].mxu1  ;;  %11653 = vmatprep.subr.bf16.mxu1 %v20149_v21  ;;  %v20201_v20 = vld [vmem:[%s22195_s24 + $0x13b0] ss:$40 sps:$4 sm:$0xff]   ;;  %v20206_v21 = vld [vmem:[%s22187_s19 + $0x1424] ss:$40 sps:$4 sm:$0xff]  }
 0x44c   : > { %7452 = vmatpush1.bf16.msra.mxu0 %v20144_v9  ;;  %v20209_v9 = vld [vmem:[%s22195_s24 + $0xc] ss:$40 sps:$4 sm:$0xff]  }
 0x44d   : > { %11654 = vmatpush1.bf16.msra.mxu1 %v20147_v10  ;;  %7453 = vmatprep.subr.bf16.mxu0 %v20152_v34  ;;  %v23429_v10 = vcombine.low %v23328_v52, %v23333_v55  ;;  %v20204_v34 = vld [vmem:[%s22187_s19 + $0x1420] ss:$40 sps:$4 sm:$0xff]   ;;  %v20210_v52 = vld [vmem:[%s22187_s19 + $0x1470] ss:$40 sps:$4 sm:$0xff]  }
 0x44e   : > { %11655 = vmatprep.subr.bf16.mxu1 %v20155_v35  ;;  %v20207_v35 = vld [vmem:[%s22195_s24 + $0x8] ss:$40 sps:$4 sm:$0xff]   ;;  %v20213_v55 = vld [vmem:[%s22195_s24 + $0x58] ss:$40 sps:$4 sm:$0xff]  }
 0x450   : > { %7454 = vmatpush1.bf16.msra.mxu0 %v20150_v36  ;;  %v20212_v36 = vld [vmem:[%s22187_s19 + $0x1474] ss:$40 sps:$4 sm:$0xff]  }
 0x451   : > { %11656 = vmatpush1.bf16.msra.mxu1 %v20153_v37  ;;  %7455 = vmatprep.subr.bf16.mxu0 %v20158_v38  ;;  %v20215_v37 = vld [vmem:[%s22195_s24 + $0x5c] ss:$40 sps:$4 sm:$0xff]   ;;  %v21816_v38 = vld [vmem:[%s24840_s0 + $0x18] ss:$48 sps:$4 sm:$0xff]  }
 0x452   : > { %11657 = vmatprep.subr.bf16.mxu1 %v20161_v39  ;;  %v20218_v39 = vld [vmem:[%s22187_s19 + $0x14c4] ss:$40 sps:$4 sm:$0xff]  }
 0x454   : > { %7456 = vmatpush1.bf16.msra.mxu0 %v20156_v40  ;;  %v20221_v40 = vld [vmem:[%s22195_s24 + $0xac] ss:$40 sps:$4 sm:$0xff]  }
 0x455   : > { %11658 = vmatpush1.bf16.msra.mxu1 %v20159_v41  ;;  %7457 = vmatprep.subr.bf16.mxu0 %v20164_v42  ;;  %v21817_v41 = vld [vmem:[%s24840_s0 + $0x24] ss:$48 sps:$4 sm:$0xff]   ;;  %v20216_v42 = vld [vmem:[%s22187_s19 + $0x14c0] ss:$40 sps:$4 sm:$0xff]  }
 0x456   : > { %11659 = vmatprep.subr.bf16.mxu1 %v20167_v43  ;;  %v20219_v43 = vld [vmem:[%s22195_s24 + $0xa8] ss:$40 sps:$4 sm:$0xff]  }
 0x458   : > { %7458 = vmatpush1.bf16.msra.mxu0 %v20162_v44  ;;  %v20224_v44 = vld [vmem:[%s22187_s19 + $0x1514] ss:$40 sps:$4 sm:$0xff]  }
 0x459   : > { %11660 = vmatpush1.bf16.msra.mxu1 %v20165_v56  ;;  %7459 = vmatprep.subr.bf16.mxu0 %v20170_v59  ;;  %v20227_v56 = vld [vmem:[%s22195_s24 + $0xfc] ss:$40 sps:$4 sm:$0xff]   ;;  %v20222_v59 = vld [vmem:[%s22187_s19 + $0x1510] ss:$40 sps:$4 sm:$0xff]  }
 0x45a   : > { %11661 = vmatprep.subr.bf16.mxu1 %v20173_v27  ;;  %v20225_v27 = vld [vmem:[%s22195_s24 + $0xf8] ss:$40 sps:$4 sm:$0xff]  }
 0x45c   : > { %7460 = vmatpush1.bf16.msra.mxu0 %v20168_v28  ;;  %v20230_v28 = vld [vmem:[%s22187_s19 + $0x1564] ss:$40 sps:$4 sm:$0xff]  }
 0x45d   : > { %11662 = vmatpush1.bf16.msra.mxu1 %v20171_v61  ;;  %7461 = vmatprep.subr.bf16.mxu0 %v20176_v62  ;;  %v20233_v61 = vld [vmem:[%s22195_s24 + $0x14c] ss:$40 sps:$4 sm:$0xff]   ;;  %v20228_v62 = vld [vmem:[%s22187_s19 + $0x1560] ss:$40 sps:$4 sm:$0xff]  }
 0x45e   : > { %11663 = vmatprep.subr.bf16.mxu1 %v20179_v0  ;;  %v20231_v0 = vld [vmem:[%s22195_s24 + $0x148] ss:$40 sps:$4 sm:$0xff]  }
 0x460   : > { %7462 = vmatpush1.bf16.msra.mxu0 %v20174_v1  ;;  %v20236_v1 = vld [vmem:[%s22187_s19 + $0x15b4] ss:$40 sps:$4 sm:$0xff]  }
 0x461   : > { %11664 = vmatpush1.bf16.msra.mxu1 %v20177_v2  ;;  %7463 = vmatprep.subr.bf16.mxu0 %v20182_v3  ;;  %v20239_v2 = vld [vmem:[%s22195_s24 + $0x19c] ss:$40 sps:$4 sm:$0xff]   ;;  %v20234_v3 = vld [vmem:[%s22187_s19 + $0x15b0] ss:$40 sps:$4 sm:$0xff]  }
 0x462   : > { %11665 = vmatprep.subr.bf16.mxu1 %v20185_v4  ;;  %v20237_v4 = vld [vmem:[%s22195_s24 + $0x198] ss:$40 sps:$4 sm:$0xff]  }
 0x464   : > { %7464 = vmatpush1.bf16.msra.mxu0 %v20180_v5  ;;  %v20242_v5 = vld [vmem:[%s22187_s19 + $0x1604] ss:$40 sps:$4 sm:$0xff]  }
 0x465   : > { %11666 = vmatpush1.bf16.msra.mxu1 %v20183_v6  ;;  %7465 = vmatprep.subr.bf16.mxu0 %v20188_v7  ;;  %v20245_v6 = vld [vmem:[%s22195_s24 + $0x1ec] ss:$40 sps:$4 sm:$0xff]   ;;  %v20240_v7 = vld [vmem:[%s22187_s19 + $0x1600] ss:$40 sps:$4 sm:$0xff]  }
 0x466   : > { %11667 = vmatprep.subr.bf16.mxu1 %v20191_v8  ;;  %v20243_v8 = vld [vmem:[%s22195_s24 + $0x1e8] ss:$40 sps:$4 sm:$0xff]  }
 0x468   : > { %7466 = vmatpush1.bf16.msra.mxu0 %v20186_v12  ;;  %v20248_v12 = vld [vmem:[%s22187_s19 + $0x1654] ss:$40 sps:$4 sm:$0xff]  }
 0x469   : > { %11668 = vmatpush1.bf16.msra.mxu1 %v20189_v13  ;;  %7467 = vmatprep.subr.bf16.mxu0 %v20194_v14  ;;  %v20251_v13 = vld [vmem:[%s22195_s24 + $0x23c] ss:$40 sps:$4 sm:$0xff]   ;;  %v20246_v14 = vld [vmem:[%s22187_s19 + $0x1650] ss:$40 sps:$4 sm:$0xff]  }
 0x46a   : > { %11669 = vmatprep.subr.bf16.mxu1 %v20197_v15  ;;  %v20249_v15 = vld [vmem:[%s22195_s24 + $0x238] ss:$40 sps:$4 sm:$0xff]  }
 0x46c   : > { %7468 = vmatpush1.bf16.msra.mxu0 %v20192_v57  ;;  %v20254_v57 = vld [vmem:[%s22187_s19 + $0x16a4] ss:$40 sps:$4 sm:$0xff]  }
 0x46d   : > { %11670 = vmatpush1.bf16.msra.mxu1 %v20195_v58  ;;  %7469 = vmatprep.subr.bf16.mxu0 %v20200_v17  ;;  %v20257_v58 = vld [vmem:[%s22195_s24 + $0x28c] ss:$40 sps:$4 sm:$0xff]   ;;  %v20252_v17 = vld [vmem:[%s22187_s19 + $0x16a0] ss:$40 sps:$4 sm:$0xff]  }
 0x46e   : > { %11671 = vmatprep.subr.bf16.mxu1 %v20203_v18  ;;  %v20255_v18 = vld [vmem:[%s22195_s24 + $0x288] ss:$40 sps:$4 sm:$0xff]  }
 0x470   : > { %7470 = vmatpush1.bf16.msra.mxu0 %v20198_v19  ;;  %v20260_v19 = vld [vmem:[%s22187_s19 + $0x16f4] ss:$40 sps:$4 sm:$0xff]  }
 0x471   : > { %11672 = vmatpush1.bf16.msra.mxu1 %v20201_v20  ;;  %7482 = vmatprep.subr.bf16.mxu0 %v20206_v21  ;;  %v20263_v20 = vld [vmem:[%s22195_s24 + $0x2dc] ss:$40 sps:$4 sm:$0xff]   ;;  %v20258_v21 = vld [vmem:[%s22187_s19 + $0x16f0] ss:$40 sps:$4 sm:$0xff]  }
 0x472   : > { %11684 = vmatprep.subr.bf16.mxu1 %v20209_v9  ;;  %v20261_v9 = vld [vmem:[%s22195_s24 + $0x2d8] ss:$40 sps:$4 sm:$0xff]  }
 0x473   : > { %7472 = vmatmul.mubr.bf16.vlgmr.msra.gmra.mrb[8].mxu0 %v21816_v38  ;;  %v20272_v38 = vld [vmem:[%s22187_s19 + $0x1794] ss:$40 sps:$4 sm:$0xff]  }
 0x474   : > { %11674 = vmatmul.mubr.bf16.vlgmr.msra.gmra.mrb[8].mxu1 %v23429_v10  ;;  %7483 = vmatpush1.bf16.msra.mxu0 %v20204_v34  ;;  %v20266_v34 = vld [vmem:[%s22187_s19 + $0x1744] ss:$40 sps:$4 sm:$0xff]  }
 0x475   : > { %11685 = vmatpush1.bf16.msra.mxu1 %v20207_v35  ;;  %7484 = vmatprep.subr.bf16.mxu0 %v20212_v36  ;;  %v20269_v35 = vld [vmem:[%s22195_s24 + $0x32c] ss:$40 sps:$4 sm:$0xff]   ;;  %v20264_v36 = vld [vmem:[%s22187_s19 + $0x1740] ss:$40 sps:$4 sm:$0xff]  }
 0x476   : > { %11686 = vmatprep.subr.bf16.mxu1 %v20215_v37  ;;  %7514 = vmatprep.mubr.bf16.mxu0 %v21817_v41  ;;  %v20267_v37 = vld [vmem:[%s22195_s24 + $0x328] ss:$40 sps:$4 sm:$0xff]   ;;  %v20281_v41 = vld [vmem:[%s22195_s24 + $0x3cc] ss:$40 sps:$4 sm:$0xff]  }
 0x477   : > { %11716 = vmatprep.mubr.bf16.mxu1 %v23072_v63 }
 0x478   : > { %7485 = vmatpush1.bf16.msra.mxu0 %v20210_v52  ;;  %v20275_v52 = vld [vmem:[%s22195_s24 + $0x37c] ss:$40 sps:$4 sm:$0xff]  }
 0x479   : > { %11687 = vmatpush1.bf16.msra.mxu1 %v20213_v55  ;;  %7486 = vmatprep.subr.bf16.mxu0 %v20218_v39  ;;  %v20270_v55 = vld [vmem:[%s22187_s19 + $0x1790] ss:$40 sps:$4 sm:$0xff]  }
 0x47a   : > { %11688 = vmatprep.subr.bf16.mxu1 %v20221_v40  ;;  %v20273_v39 = vld [vmem:[%s22195_s24 + $0x378] ss:$40 sps:$4 sm:$0xff]   ;;  %v20278_v40 = vld [vmem:[%s22187_s19 + $0x17e4] ss:$40 sps:$4 sm:$0xff]  }
 0x47c   : > { %7487 = vmatpush1.bf16.msra.mxu0 %v20216_v42  ;;  %v20276_v42 = vld [vmem:[%s22187_s19 + $0x17e0] ss:$40 sps:$4 sm:$0xff]  }
 0x47d   : > { %11689 = vmatpush1.bf16.msra.mxu1 %v20219_v43  ;;  %7488 = vmatprep.subr.bf16.mxu0 %v20224_v44  ;;  %v20279_v43 = vld [vmem:[%s22195_s24 + $0x3c8] ss:$40 sps:$4 sm:$0xff]   ;;  %v20284_v44 = vld [vmem:[%s22187_s19 + $0x1834] ss:$40 sps:$4 sm:$0xff]  }
 0x47e   : > { %11690 = vmatprep.subr.bf16.mxu1 %v20227_v56  ;;  %v20287_v56 = vld [vmem:[%s22195_s24 + $0x41c] ss:$40 sps:$4 sm:$0xff]  }
 0x480   : > { %7489 = vmatpush1.bf16.msra.mxu0 %v20222_v59  ;;  %v20282_v59 = vld [vmem:[%s22187_s19 + $0x1830] ss:$40 sps:$4 sm:$0xff]  }
 0x481   : > { %11691 = vmatpush1.bf16.msra.mxu1 %v20225_v27  ;;  %7490 = vmatprep.subr.bf16.mxu0 %v20230_v28  ;;  %v20285_v27 = vld [vmem:[%s22195_s24 + $0x418] ss:$40 sps:$4 sm:$0xff]   ;;  %v20290_v28 = vld [vmem:[%s22187_s19 + $0x1884] ss:$40 sps:$4 sm:$0xff]  }
 0x482   : > { %11692 = vmatprep.subr.bf16.mxu1 %v20233_v61  ;;  %v20293_v61 = vld [vmem:[%s22195_s24 + $0x46c] ss:$40 sps:$4 sm:$0xff]  }
 0x484   : > { %7491 = vmatpush1.bf16.msra.mxu0 %v20228_v62  ;;  %v20288_v62 = vld [vmem:[%s22187_s19 + $0x1880] ss:$40 sps:$4 sm:$0xff]  }
 0x485   : > { %11693 = vmatpush1.bf16.msra.mxu1 %v20231_v0  ;;  %7492 = vmatprep.subr.bf16.mxu0 %v20236_v1  ;;  %v20291_v0 = vld [vmem:[%s22195_s24 + $0x468] ss:$40 sps:$4 sm:$0xff]   ;;  %v20296_v1 = vld [vmem:[%s22187_s19 + $0x18d4] ss:$40 sps:$4 sm:$0xff]  }
 0x486   : > { %11694 = vmatprep.subr.bf16.mxu1 %v20239_v2  ;;  %v20299_v2 = vld [vmem:[%s22195_s24 + $0x4bc] ss:$40 sps:$4 sm:$0xff]  }
 0x488   : > { %7493 = vmatpush1.bf16.msra.mxu0 %v20234_v3  ;;  %v20294_v3 = vld [vmem:[%s22187_s19 + $0x18d0] ss:$40 sps:$4 sm:$0xff]  }
 0x489   : > { %11695 = vmatpush1.bf16.msra.mxu1 %v20237_v4  ;;  %7494 = vmatprep.subr.bf16.mxu0 %v20242_v5  ;;  %v20297_v4 = vld [vmem:[%s22195_s24 + $0x4b8] ss:$40 sps:$4 sm:$0xff]   ;;  %v20302_v5 = vld [vmem:[%s22187_s19 + $0x1924] ss:$40 sps:$4 sm:$0xff]  }
 0x48a   : > { %11696 = vmatprep.subr.bf16.mxu1 %v20245_v6  ;;  %v20305_v6 = vld [vmem:[%s22195_s24 + $0x50c] ss:$40 sps:$4 sm:$0xff]  }
 0x48c   : > { %7495 = vmatpush1.bf16.msra.mxu0 %v20240_v7  ;;  %v20300_v7 = vld [vmem:[%s22187_s19 + $0x1920] ss:$40 sps:$4 sm:$0xff]  }
 0x48d   : > { %11697 = vmatpush1.bf16.msra.mxu1 %v20243_v8  ;;  %7496 = vmatprep.subr.bf16.mxu0 %v20248_v12  ;;  %v20303_v8 = vld [vmem:[%s22195_s24 + $0x508] ss:$40 sps:$4 sm:$0xff]   ;;  %v20308_v12 = vld [vmem:[%s22187_s19 + $0x1974] ss:$40 sps:$4 sm:$0xff]  }
 0x48e   : > { %11698 = vmatprep.subr.bf16.mxu1 %v20251_v13  ;;  %v20311_v13 = vld [vmem:[%s22195_s24 + $0x55c] ss:$40 sps:$4 sm:$0xff]  }
 0x490   : > { %7497 = vmatpush1.bf16.msra.mxu0 %v20246_v14  ;;  %v21818_v14 = vld [vmem:[%s24840_s0 + $0x20] ss:$48 sps:$4 sm:$0xff]  }
 0x491   : > { %11699 = vmatpush1.bf16.msra.mxu1 %v20249_v15  ;;  %7498 = vmatprep.subr.bf16.mxu0 %v20254_v57  ;;  %v20306_v15 = vld [vmem:[%s22187_s19 + $0x1970] ss:$40 sps:$4 sm:$0xff]  }
 0x492   : > { %11700 = vmatprep.subr.bf16.mxu1 %v20257_v58  ;;  %v20309_v57 = vld [vmem:[%s22195_s24 + $0x558] ss:$40 sps:$4 sm:$0xff]   ;;  %v20314_v58 = vld [vmem:[%s22187_s19 + $0x19c4] ss:$40 sps:$4 sm:$0xff]  }
 0x494   : > { %7499 = vmatpush1.bf16.msra.mxu0 %v20252_v17  ;;  %v20317_v17 = vld [vmem:[%s22195_s24 + $0x5ac] ss:$40 sps:$4 sm:$0xff]  }
 0x495   : > { %11701 = vmatpush1.bf16.msra.mxu1 %v20255_v18  ;;  %7500 = vmatprep.subr.bf16.mxu0 %v20260_v19  ;;  %v21819_v18 = vld [vmem:[%s24840_s0 + $0x2c] ss:$48 sps:$4 sm:$0xff]   ;;  %v20312_v19 = vld [vmem:[%s22187_s19 + $0x19c0] ss:$40 sps:$4 sm:$0xff]  }
 0x496   : > { %11702 = vmatprep.subr.bf16.mxu1 %v20263_v20  ;;  %v20315_v20 = vld [vmem:[%s22195_s24 + $0x5a8] ss:$40 sps:$4 sm:$0xff]  }
 0x498   : > { %7501 = vmatpush1.bf16.msra.mxu0 %v20258_v21  ;;  %v20320_v21 = vld [vmem:[%s22187_s19 + $0x1a14] ss:$40 sps:$4 sm:$0xff]  }
 0x499   : > { %11703 = vmatpush1.bf16.msra.mxu1 %v20261_v9  ;;  %7502 = vmatprep.subr.bf16.mxu0 %v20266_v34  ;;  %v20323_v9 = vld [vmem:[%s22195_s24 + $0x5fc] ss:$40 sps:$4 sm:$0xff]   ;;  %v20318_v34 = vld [vmem:[%s22187_s19 + $0x1a10] ss:$40 sps:$4 sm:$0xff]  }
 0x49a   : > { %11704 = vmatprep.subr.bf16.mxu1 %v20269_v35  ;;  %v20321_v35 = vld [vmem:[%s22195_s24 + $0x5f8] ss:$40 sps:$4 sm:$0xff]  }
 0x49c   : > { %7503 = vmatpush1.bf16.msra.mxu0 %v20264_v36  ;;  %v20326_v36 = vld [vmem:[%s22187_s19 + $0x1a64] ss:$40 sps:$4 sm:$0xff]  }
 0x49d   : > { %11705 = vmatpush1.bf16.msra.mxu1 %v20267_v37  ;;  %7504 = vmatprep.subr.bf16.mxu0 %v20272_v38  ;;  %v20329_v37 = vld [vmem:[%s22195_s24 + $0x64c] ss:$40 sps:$4 sm:$0xff]   ;;  %v20324_v38 = vld [vmem:[%s22187_s19 + $0x1a60] ss:$40 sps:$4 sm:$0xff]  }
 0x49e   : > { %11706 = vmatprep.subr.bf16.mxu1 %v20275_v52  ;;  %v20327_v52 = vld [vmem:[%s22195_s24 + $0x648] ss:$40 sps:$4 sm:$0xff]  }
 0x4a0   : > { %7505 = vmatpush1.bf16.msra.mxu0 %v20270_v55  ;;  %v20332_v55 = vld [vmem:[%s22187_s19 + $0x1ab4] ss:$40 sps:$4 sm:$0xff]  }
 0x4a1   : > { %11707 = vmatpush1.bf16.msra.mxu1 %v20273_v39  ;;  %7506 = vmatprep.subr.bf16.mxu0 %v20278_v40  ;;  %v20335_v39 = vld [vmem:[%s22195_s24 + $0x69c] ss:$40 sps:$4 sm:$0xff]   ;;  %v20330_v40 = vld [vmem:[%s22187_s19 + $0x1ab0] ss:$40 sps:$4 sm:$0xff]  }
 0x4a2   : > { %11708 = vmatprep.subr.bf16.mxu1 %v20281_v41  ;;  %v20333_v41 = vld [vmem:[%s22195_s24 + $0x698] ss:$40 sps:$4 sm:$0xff]  }
 0x4a4   : > { %7507 = vmatpush1.bf16.msra.mxu0 %v20276_v42  ;;  %v20338_v42 = vld [vmem:[%s22187_s19 + $0x1b04] ss:$40 sps:$4 sm:$0xff]  }
 0x4a5   : > { %11709 = vmatpush1.bf16.msra.mxu1 %v20279_v43  ;;  %7508 = vmatprep.subr.bf16.mxu0 %v20284_v44  ;;  %v20341_v43 = vld [vmem:[%s22195_s24 + $0x6ec] ss:$40 sps:$4 sm:$0xff]   ;;  %v20336_v44 = vld [vmem:[%s22187_s19 + $0x1b00] ss:$40 sps:$4 sm:$0xff]  }
 0x4a6   : > { %11710 = vmatprep.subr.bf16.mxu1 %v20287_v56  ;;  %v20339_v56 = vld [vmem:[%s22195_s24 + $0x6e8] ss:$40 sps:$4 sm:$0xff]  }
 0x4a8   : > { %7509 = vmatpush1.bf16.msra.mxu0 %v20282_v59  ;;  %v20344_v59 = vld [vmem:[%s22187_s19 + $0x1b54] ss:$40 sps:$4 sm:$0xff]  }
 0x4a9   : > { %11711 = vmatpush1.bf16.msra.mxu1 %v20285_v27  ;;  %7510 = vmatprep.subr.bf16.mxu0 %v20290_v28  ;;  %v20347_v27 = vld [vmem:[%s22195_s24 + $0x73c] ss:$40 sps:$4 sm:$0xff]   ;;  %v20342_v28 = vld [vmem:[%s22187_s19 + $0x1b50] ss:$40 sps:$4 sm:$0xff]  }
 0x4aa   : > { %11712 = vmatprep.subr.bf16.mxu1 %v20293_v61  ;;  %v20345_v61 = vld [vmem:[%s22195_s24 + $0x738] ss:$40 sps:$4 sm:$0xff]  }
 0x4ac   : > { %7511 = vmatpush1.bf16.msra.mxu0 %v20288_v62  ;;  %v20350_v62 = vld [vmem:[%s22187_s19 + $0x1ba4] ss:$40 sps:$4 sm:$0xff]  }
 0x4ad   : > { %11713 = vmatpush1.bf16.msra.mxu1 %v20291_v0  ;;  %7512 = vmatprep.subr.bf16.mxu0 %v20296_v1  ;;  %v20353_v0 = vld [vmem:[%s22195_s24 + $0x78c] ss:$40 sps:$4 sm:$0xff]   ;;  %v20348_v1 = vld [vmem:[%s22187_s19 + $0x1ba0] ss:$40 sps:$4 sm:$0xff]  }
 0x4ae   : > { %11714 = vmatprep.subr.bf16.mxu1 %v20299_v2  ;;  %v20351_v2 = vld [vmem:[%s22195_s24 + $0x788] ss:$40 sps:$4 sm:$0xff]  }
 0x4b0   : > { %7513 = vmatpush1.bf16.msra.mxu0 %v20294_v3  ;;  %v20356_v3 = vld [vmem:[%s22187_s19 + $0x1bf4] ss:$40 sps:$4 sm:$0xff]  }
 0x4b1   : > { %11715 = vmatpush1.bf16.msra.mxu1 %v20297_v4  ;;  %7525 = vmatprep.subr.bf16.mxu0 %v20302_v5  ;;  %v20359_v4 = vld [vmem:[%s22195_s24 + $0x7dc] ss:$40 sps:$4 sm:$0xff]   ;;  %v20354_v5 = vld [vmem:[%s22187_s19 + $0x1bf0] ss:$40 sps:$4 sm:$0xff]  }
 0x4b2   : > { %11727 = vmatprep.subr.bf16.mxu1 %v20305_v6  ;;  %v20357_v6 = vld [vmem:[%s22195_s24 + $0x7d8] ss:$40 sps:$4 sm:$0xff]  }
 0x4b3   : > { %7515 = vmatmul.mubr.bf16.vlgmr.msra.gmra.mrb[8].mxu0 %v21818_v14  ;;  %v20368_v14 = vld [vmem:[%s22187_s19 + $0x1c94] ss:$40 sps:$4 sm:$0xff]  }
 0x4b4   : > { %11717 = vmatmul.mubr.bf16.vlgmr.msra.gmra.mrb[12].mxu1 %v23153_v11  ;;  %7526 = vmatpush1.bf16.msra.mxu0 %v20300_v7  ;;  %v20362_v7 = vld [vmem:[%s22187_s19 + $0x1c44] ss:$40 sps:$4 sm:$0xff]  }
 0x4b5   : > { %11728 = vmatpush1.bf16.msra.mxu1 %v20303_v8  ;;  %7527 = vmatprep.subr.bf16.mxu0 %v20308_v12  ;;  %v20365_v8 = vld [vmem:[%s22195_s24 + $0x82c] ss:$40 sps:$4 sm:$0xff]   ;;  %v20360_v12 = vld [vmem:[%s22187_s19 + $0x1c40] ss:$40 sps:$4 sm:$0xff]  }
 0x4b6   : > { %11729 = vmatprep.subr.bf16.mxu1 %v20311_v13  ;;  %7557 = vmatprep.mubr.bf16.mxu0 %v21819_v18  ;;  %v20363_v13 = vld [vmem:[%s22195_s24 + $0x828] ss:$40 sps:$4 sm:$0xff]   ;;  %v20377_v18 = vld [vmem:[%s22195_s24 + $0x8cc] ss:$40 sps:$4 sm:$0xff]  }
 0x4b7   : > { %11759 = vmatprep.mubr.bf16.mxu1 %v23161_v16 }
 0x4b8   : > { %7528 = vmatpush1.bf16.msra.mxu0 %v20306_v15  ;;  %v20371_v15 = vld [vmem:[%s22195_s24 + $0x87c] ss:$40 sps:$4 sm:$0xff]  }
 0x4b9   : > { %11730 = vmatpush1.bf16.msra.mxu1 %v20309_v57  ;;  %7529 = vmatprep.subr.bf16.mxu0 %v20314_v58  ;;  %v20366_v57 = vld [vmem:[%s22187_s19 + $0x1c90] ss:$40 sps:$4 sm:$0xff]  }
 0x4ba   : > { %11731 = vmatprep.subr.bf16.mxu1 %v20317_v17  ;;  %v20369_v58 = vld [vmem:[%s22195_s24 + $0x878] ss:$40 sps:$4 sm:$0xff]   ;;  %v20374_v17 = vld [vmem:[%s22187_s19 + $0x1ce4] ss:$40 sps:$4 sm:$0xff]  }
 0x4bc   : > { %7530 = vmatpush1.bf16.msra.mxu0 %v20312_v19  ;;  %v20372_v19 = vld [vmem:[%s22187_s19 + $0x1ce0] ss:$40 sps:$4 sm:$0xff]  }
 0x4bd   : > { %11732 = vmatpush1.bf16.msra.mxu1 %v20315_v20  ;;  %7531 = vmatprep.subr.bf16.mxu0 %v20320_v21  ;;  %v20375_v20 = vld [vmem:[%s22195_s24 + $0x8c8] ss:$40 sps:$4 sm:$0xff]   ;;  %v20380_v21 = vld [vmem:[%s22187_s19 + $0x1d34] ss:$40 sps:$4 sm:$0xff]  }
 0x4be   : > { %11733 = vmatprep.subr.bf16.mxu1 %v20323_v9  ;;  %v20383_v9 = vld [vmem:[%s22195_s24 + $0x91c] ss:$40 sps:$4 sm:$0xff]  }
 0x4c0   : > { %7532 = vmatpush1.bf16.msra.mxu0 %v20318_v34  ;;  %v20378_v34 = vld [vmem:[%s22187_s19 + $0x1d30] ss:$40 sps:$4 sm:$0xff]  }
 0x4c1   : > { %11734 = vmatpush1.bf16.msra.mxu1 %v20321_v35  ;;  %7533 = vmatprep.subr.bf16.mxu0 %v20326_v36  ;;  %v20381_v35 = vld [vmem:[%s22195_s24 + $0x918] ss:$40 sps:$4 sm:$0xff]   ;;  %v20386_v36 = vld [vmem:[%s22187_s19 + $0x1d84] ss:$40 sps:$4 sm:$0xff]  }
 0x4c2   : > { %11735 = vmatprep.subr.bf16.mxu1 %v20329_v37  ;;  %v20389_v37 = vld [vmem:[%s22195_s24 + $0x96c] ss:$40 sps:$4 sm:$0xff]  }
 0x4c4   : > { %7534 = vmatpush1.bf16.msra.mxu0 %v20324_v38  ;;  %v20384_v38 = vld [vmem:[%s22187_s19 + $0x1d80] ss:$40 sps:$4 sm:$0xff]  }
 0x4c5   : > { %11736 = vmatpush1.bf16.msra.mxu1 %v20327_v52  ;;  %7535 = vmatprep.subr.bf16.mxu0 %v20332_v55  ;;  %v20387_v52 = vld [vmem:[%s22195_s24 + $0x968] ss:$40 sps:$4 sm:$0xff]   ;;  %v20392_v55 = vld [vmem:[%s22187_s19 + $0x1dd4] ss:$40 sps:$4 sm:$0xff]  }
 0x4c6   : > { %11737 = vmatprep.subr.bf16.mxu1 %v20335_v39  ;;  %v20395_v39 = vld [vmem:[%s22195_s24 + $0x9bc] ss:$40 sps:$4 sm:$0xff]  }
 0x4c8   : > { %7536 = vmatpush1.bf16.msra.mxu0 %v20330_v40  ;;  %v20390_v40 = vld [vmem:[%s22187_s19 + $0x1dd0] ss:$40 sps:$4 sm:$0xff]   ;;  %s386_s19 = scalar_select %p385_p10, %s22026_s28, 3 }
 0x4c9   : > { %11738 = vmatpush1.bf16.msra.mxu1 %v20333_v41  ;;  %7537 = vmatprep.subr.bf16.mxu0 %v20338_v42  ;;  %v20393_v41 = vld [vmem:[%s22195_s24 + $0x9b8] ss:$40 sps:$4 sm:$0xff]   ;;  %v20398_v42 = vld [vmem:[%s22195_s24 + $0xa0c] ss:$40 sps:$4 sm:$0xff]  }
 0x4ca   : > { %11739 = vmatprep.subr.bf16.mxu1 %v20341_v43  ;;  %v20401_v43 = vld [vmem:[%s22195_s24 + $0x14] ss:$40 sps:$4 sm:$0xff]   ;;  %s18598_s22 = smul.u32 40, %s386_s19 }
 0x4cc   : > { %7538 = vmatpush1.bf16.msra.mxu0 %v20336_v44  ;;  %v20396_v44 = vld [vmem:[%s22195_s24 + $0xa08] ss:$40 sps:$4 sm:$0xff]   ;;  %s23668_s16 = scalar_lea.vmem %s24846_s6, %s18598_s22 }
 0x4cd   : > { %11740 = vmatpush1.bf16.msra.mxu1 %v20339_v56  ;;  %7539 = vmatprep.subr.bf16.mxu0 %v20344_v59  ;;  %v20399_v56 = vld [vmem:[%s22195_s24 + $0x10] ss:$40 sps:$4 sm:$0xff]   ;;  %v20404_v59 = vld [vmem:[%s22195_s24 + $0xa5c] ss:$40 sps:$4 sm:$0xff]  }
 0x4ce   : > { %11741 = vmatprep.subr.bf16.mxu1 %v20347_v27  ;;  %v20407_v27 = vld [vmem:[%s22195_s24 + $0x64] ss:$40 sps:$4 sm:$0xff]  }
 0x4d0   : > { %7540 = vmatpush1.bf16.msra.mxu0 %v20342_v28  ;;  %v21820_v28 = vld [vmem:[%s24840_s0 + $0x28] ss:$48 sps:$4 sm:$0xff]  }
 0x4d1   : > { %11742 = vmatpush1.bf16.msra.mxu1 %v20345_v61  ;;  %7541 = vmatprep.subr.bf16.mxu0 %v20350_v62  ;;  %v20402_v61 = vld [vmem:[%s22195_s24 + $0xa58] ss:$40 sps:$4 sm:$0xff]  }
 0x4d2   : > { %11743 = vmatprep.subr.bf16.mxu1 %v20353_v0  ;;  %v20405_v62 = vld [vmem:[%s22195_s24 + $0x60] ss:$40 sps:$4 sm:$0xff]   ;;  %v20410_v0 = vld [vmem:[%s22195_s24 + $0xaac] ss:$40 sps:$4 sm:$0xff]  }
 0x4d4   : > { %7542 = vmatpush1.bf16.msra.mxu0 %v20348_v1  ;;  %v20413_v1 = vld [vmem:[%s22195_s24 + $0xb4] ss:$40 sps:$4 sm:$0xff]  }
 0x4d5   : > { %11744 = vmatpush1.bf16.msra.mxu1 %v20351_v2  ;;  %7543 = vmatprep.subr.bf16.mxu0 %v20356_v3  ;;  %v20408_v2 = vld [vmem:[%s22195_s24 + $0xaa8] ss:$40 sps:$4 sm:$0xff]  }
 0x4d6   : > { %11745 = vmatprep.subr.bf16.mxu1 %v20359_v4  ;;  %v20411_v3 = vld [vmem:[%s22195_s24 + $0xb0] ss:$40 sps:$4 sm:$0xff]   ;;  %v20416_v4 = vld [vmem:[%s22195_s24 + $0xafc] ss:$40 sps:$4 sm:$0xff]  }
 0x4d8   : > { %7544 = vmatpush1.bf16.msra.mxu0 %v20354_v5  ;;  %v20419_v5 = vld [vmem:[%s22195_s24 + $0x104] ss:$40 sps:$4 sm:$0xff]  }
 0x4d9   : > { %11746 = vmatpush1.bf16.msra.mxu1 %v20357_v6  ;;  %7545 = vmatprep.subr.bf16.mxu0 %v20362_v7  ;;  %v20414_v6 = vld [vmem:[%s22195_s24 + $0xaf8] ss:$40 sps:$4 sm:$0xff]  }
 0x4da   : > { %11747 = vmatprep.subr.bf16.mxu1 %v20365_v8  ;;  %v20417_v7 = vld [vmem:[%s22195_s24 + $0x100] ss:$40 sps:$4 sm:$0xff]   ;;  %v20422_v8 = vld [vmem:[%s22195_s24 + $0xb4c] ss:$40 sps:$4 sm:$0xff]  }
 0x4dc   : > { %7546 = vmatpush1.bf16.msra.mxu0 %v20360_v12  ;;  %v20425_v12 = vld [vmem:[%s22195_s24 + $0x154] ss:$40 sps:$4 sm:$0xff]  }
 0x4dd   : > { %11748 = vmatpush1.bf16.msra.mxu1 %v20363_v13  ;;  %7547 = vmatprep.subr.bf16.mxu0 %v20368_v14  ;;  %v20420_v13 = vld [vmem:[%s22195_s24 + $0xb48] ss:$40 sps:$4 sm:$0xff]  }
 0x4de   : > { %11749 = vmatprep.subr.bf16.mxu1 %v20371_v15  ;;  %v20423_v14 = vld [vmem:[%s22195_s24 + $0x150] ss:$40 sps:$4 sm:$0xff]   ;;  %v20428_v15 = vld [vmem:[%s22195_s24 + $0xb9c] ss:$40 sps:$4 sm:$0xff]  }
 0x4e0   : > { %7548 = vmatpush1.bf16.msra.mxu0 %v20366_v57  ;;  %v20431_v57 = vld [vmem:[%s22195_s24 + $0x1a4] ss:$40 sps:$4 sm:$0xff]  }
 0x4e1   : > { %11750 = vmatpush1.bf16.msra.mxu1 %v20369_v58  ;;  %7549 = vmatprep.subr.bf16.mxu0 %v20374_v17  ;;  %v20426_v58 = vld [vmem:[%s22195_s24 + $0xb98] ss:$40 sps:$4 sm:$0xff]  }
 0x4e2   : > { %11751 = vmatprep.subr.bf16.mxu1 %v20377_v18  ;;  %v20429_v17 = vld [vmem:[%s22195_s24 + $0x1a0] ss:$40 sps:$4 sm:$0xff]   ;;  %v20434_v18 = vld [vmem:[%s22195_s24 + $0xbec] ss:$40 sps:$4 sm:$0xff]  }
 0x4e4   : > { %7550 = vmatpush1.bf16.msra.mxu0 %v20372_v19  ;;  %v20437_v19 = vld [vmem:[%s22195_s24 + $0x1f4] ss:$40 sps:$4 sm:$0xff]  }
 0x4e5   : > { %11752 = vmatpush1.bf16.msra.mxu1 %v20375_v20  ;;  %7551 = vmatprep.subr.bf16.mxu0 %v20380_v21  ;;  %v20432_v20 = vld [vmem:[%s22195_s24 + $0xbe8] ss:$40 sps:$4 sm:$0xff]  }
 0x4e6   : > { %11753 = vmatprep.subr.bf16.mxu1 %v20383_v9  ;;  %v20435_v21 = vld [vmem:[%s22195_s24 + $0x1f0] ss:$40 sps:$4 sm:$0xff]   ;;  %v20440_v9 = vld [vmem:[%s22195_s24 + $0xc3c] ss:$40 sps:$4 sm:$0xff]  }
 0x4e8   : > { %7552 = vmatpush1.bf16.msra.mxu0 %v20378_v34  ;;  %v20443_v34 = vld [vmem:[%s22195_s24 + $0x244] ss:$40 sps:$4 sm:$0xff]  }
 0x4e9   : > { %11754 = vmatpush1.bf16.msra.mxu1 %v20381_v35  ;;  %7553 = vmatprep.subr.bf16.mxu0 %v20386_v36  ;;  %v20438_v35 = vld [vmem:[%s22195_s24 + $0xc38] ss:$40 sps:$4 sm:$0xff]  }
 0x4ea   : > { %11755 = vmatprep.subr.bf16.mxu1 %v20389_v37  ;;  %v20441_v36 = vld [vmem:[%s22195_s24 + $0x240] ss:$40 sps:$4 sm:$0xff]   ;;  %v20446_v37 = vld [vmem:[%s22195_s24 + $0xc8c] ss:$40 sps:$4 sm:$0xff]  }
 0x4ec   : > { %7554 = vmatpush1.bf16.msra.mxu0 %v20384_v38  ;;  %v20449_v38 = vld [vmem:[%s22195_s24 + $0x294] ss:$40 sps:$4 sm:$0xff]  }
 0x4ed   : > { %11756 = vmatpush1.bf16.msra.mxu1 %v20387_v52  ;;  %7555 = vmatprep.subr.bf16.mxu0 %v20392_v55  ;;  %v20444_v52 = vld [vmem:[%s22195_s24 + $0xc88] ss:$40 sps:$4 sm:$0xff]  }
 0x4ee   : > { %11757 = vmatprep.subr.bf16.mxu1 %v20395_v39  ;;  %v20447_v55 = vld [vmem:[%s22195_s24 + $0x290] ss:$40 sps:$4 sm:$0xff]   ;;  %v20452_v39 = vld [vmem:[%s22195_s24 + $0xcdc] ss:$40 sps:$4 sm:$0xff]  }
 0x4f0   : > { %7556 = vmatpush1.bf16.msra.mxu0 %v20390_v40  ;;  %v20455_v40 = vld [vmem:[%s22195_s24 + $0x2e4] ss:$40 sps:$4 sm:$0xff]  }
 0x4f1   : > { %11758 = vmatpush1.bf16.msra.mxu1 %v20393_v41  ;;  %11856 = vmatprep.subr.bf16.mxu0 %v20401_v43  ;;  %v20450_v41 = vld [vmem:[%s22195_s24 + $0xcd8] ss:$40 sps:$4 sm:$0xff]   ;;  %v20458_v43 = vld [vmem:[%s22195_s24 + $0xd2c] ss:$40 sps:$4 sm:$0xff]  }
 0x4f2   : > { %11770 = vmatprep.subr.bf16.mxu1 %v20398_v42  ;;  %v20453_v42 = vld [vmem:[%s22195_s24 + $0x2e0] ss:$40 sps:$4 sm:$0xff]  }
 0x4f3   : > { %7558 = vmatmul.mubr.bf16.vlgmr.msra.gmra.mrb[8].mxu0 %v21820_v28  ;;  %v20467_v28 = vld [vmem:[%s22195_s24 + $0x384] ss:$40 sps:$4 sm:$0xff]  }
 0x4f4   : > { %11760 = vmatmul.mubr.bf16.vlgmr.msra.gmra.mrb[12].mxu1 %v23233_v26  ;;  %11857 = vmatpush1.bf16.msra.mxu0 %v20399_v56  ;;  %v20456_v56 = vld [vmem:[%s22195_s24 + $0xd28] ss:$40 sps:$4 sm:$0xff]  }
 0x4f5   : > { %11771 = vmatpush1.bf16.msra.mxu1 %v20396_v44  ;;  %11858 = vmatprep.subr.bf16.mxu0 %v20407_v27  ;;  %v20461_v44 = vld [vmem:[%s22195_s24 + $0x334] ss:$40 sps:$4 sm:$0xff]  }
 0x4f6   : > { %11772 = vmatprep.subr.bf16.mxu1 %v20404_v59  ;;  %11802 = vmatprep.mubr.bf16.mxu1 %v23251_v31  ;;  %v20459_v59 = vld [vmem:[%s22195_s24 + $0x330] ss:$40 sps:$4 sm:$0xff]   ;;  %v20464_v27 = vld [vmem:[%s22195_s24 + $0xd7c] ss:$40 sps:$4 sm:$0xff]  }
 0x4f7   : > { %11888 = vmatprep.mubr.bf16.mxu0 %v23072_v63 }
 0x4f8   : > { %11859 = vmatpush1.bf16.msra.mxu0 %v20405_v62  ;;  %v20465_v62 = vld [vmem:[%s22195_s24 + $0x380] ss:$40 sps:$4 sm:$0xff]  }
 0x4f9   : > { %11773 = vmatpush1.bf16.msra.mxu1 %v20402_v61  ;;  %11860 = vmatprep.subr.bf16.mxu0 %v20413_v1  ;;  %v20462_v61 = vld [vmem:[%s22195_s24 + $0xd78] ss:$40 sps:$4 sm:$0xff]   ;;  %v20473_v1 = vld [vmem:[%s22195_s24 + $0x3d4] ss:$40 sps:$4 sm:$0xff]  }
 0x4fa   : > { %11774 = vmatprep.subr.bf16.mxu1 %v20410_v0  ;;  %v20470_v0 = vld [vmem:[%s22195_s24 + $0xdcc] ss:$40 sps:$4 sm:$0xff]  }
 0x4fc   : > { %11861 = vmatpush1.bf16.msra.mxu0 %v20411_v3  ;;  %v20471_v3 = vld [vmem:[%s22195_s24 + $0x3d0] ss:$40 sps:$4 sm:$0xff]  }
 0x4fd   : > { %11775 = vmatpush1.bf16.msra.mxu1 %v20408_v2  ;;  %11862 = vmatprep.subr.bf16.mxu0 %v20419_v5  ;;  %v20468_v2 = vld [vmem:[%s22195_s24 + $0xdc8] ss:$40 sps:$4 sm:$0xff]   ;;  %v20479_v5 = vld [vmem:[%s22195_s24 + $0x424] ss:$40 sps:$4 sm:$0xff]  }
 0x4fe   : > { %11776 = vmatprep.subr.bf16.mxu1 %v20416_v4  ;;  %v20476_v4 = vld [vmem:[%s22195_s24 + $0xe1c] ss:$40 sps:$4 sm:$0xff]  }
 0x500   : > { %11863 = vmatpush1.bf16.msra.mxu0 %v20417_v7  ;;  %v20477_v7 = vld [vmem:[%s22195_s24 + $0x420] ss:$40 sps:$4 sm:$0xff]  }
 0x501   : > { %11777 = vmatpush1.bf16.msra.mxu1 %v20414_v6  ;;  %11864 = vmatprep.subr.bf16.mxu0 %v20425_v12  ;;  %v20474_v6 = vld [vmem:[%s22195_s24 + $0xe18] ss:$40 sps:$4 sm:$0xff]   ;;  %v20485_v12 = vld [vmem:[%s22195_s24 + $0x474] ss:$40 sps:$4 sm:$0xff]  }
 0x502   : > { %11778 = vmatprep.subr.bf16.mxu1 %v20422_v8  ;;  %v20482_v8 = vld [vmem:[%s22195_s24 + $0xe6c] ss:$40 sps:$4 sm:$0xff]  }
 0x504   : > { %11865 = vmatpush1.bf16.msra.mxu0 %v20423_v14  ;;  %v20483_v14 = vld [vmem:[%s22195_s24 + $0x470] ss:$40 sps:$4 sm:$0xff]  }
 0x505   : > { %11779 = vmatpush1.bf16.msra.mxu1 %v20420_v13  ;;  %11866 = vmatprep.subr.bf16.mxu0 %v20431_v57  ;;  %v20480_v13 = vld [vmem:[%s22195_s24 + $0xe68] ss:$40 sps:$4 sm:$0xff]   ;;  %v20491_v57 = vld [vmem:[%s22195_s24 + $0x4c4] ss:$40 sps:$4 sm:$0xff]  }
 0x506   : > { %11780 = vmatprep.subr.bf16.mxu1 %v20428_v15  ;;  %v20488_v15 = vld [vmem:[%s22195_s24 + $0xebc] ss:$40 sps:$4 sm:$0xff]  }
 0x508   : > { %11867 = vmatpush1.bf16.msra.mxu0 %v20429_v17  ;;  %v20489_v17 = vld [vmem:[%s22195_s24 + $0x4c0] ss:$40 sps:$4 sm:$0xff]  }
 0x509   : > { %11781 = vmatpush1.bf16.msra.mxu1 %v20426_v58  ;;  %11868 = vmatprep.subr.bf16.mxu0 %v20437_v19  ;;  %v20486_v58 = vld [vmem:[%s22195_s24 + $0xeb8] ss:$40 sps:$4 sm:$0xff]   ;;  %v20497_v19 = vld [vmem:[%s22195_s24 + $0x514] ss:$40 sps:$4 sm:$0xff]  }
 0x50a   : > { %11782 = vmatprep.subr.bf16.mxu1 %v20434_v18  ;;  %v20494_v18 = vld [vmem:[%s22195_s24 + $0xf0c] ss:$40 sps:$4 sm:$0xff]  }
 0x50c   : > { %11869 = vmatpush1.bf16.msra.mxu0 %v20435_v21  ;;  %v20495_v21 = vld [vmem:[%s22195_s24 + $0x510] ss:$40 sps:$4 sm:$0xff]  }
 0x50d   : > { %11783 = vmatpush1.bf16.msra.mxu1 %v20432_v20  ;;  %11870 = vmatprep.subr.bf16.mxu0 %v20443_v34  ;;  %v20492_v20 = vld [vmem:[%s22195_s24 + $0xf08] ss:$40 sps:$4 sm:$0xff]   ;;  %v20503_v34 = vld [vmem:[%s22195_s24 + $0x564] ss:$40 sps:$4 sm:$0xff]  }
 0x50e   : > { %11784 = vmatprep.subr.bf16.mxu1 %v20440_v9  ;;  %v20500_v9 = vld [vmem:[%s22195_s24 + $0xf5c] ss:$40 sps:$4 sm:$0xff]  }
 0x510   : > { %11871 = vmatpush1.bf16.msra.mxu0 %v20441_v36  ;;  %v20501_v36 = vld [vmem:[%s22195_s24 + $0x560] ss:$40 sps:$4 sm:$0xff]  }
 0x511   : > { %11785 = vmatpush1.bf16.msra.mxu1 %v20438_v35  ;;  %11872 = vmatprep.subr.bf16.mxu0 %v20449_v38  ;;  %v20498_v35 = vld [vmem:[%s22195_s24 + $0xf58] ss:$40 sps:$4 sm:$0xff]   ;;  %v20509_v38 = vld [vmem:[%s22195_s24 + $0x5b4] ss:$40 sps:$4 sm:$0xff]  }
 0x512   : > { %11786 = vmatprep.subr.bf16.mxu1 %v20446_v37  ;;  %v20506_v37 = vld [vmem:[%s22195_s24 + $0xfac] ss:$40 sps:$4 sm:$0xff]  }
 0x514   : > { %11873 = vmatpush1.bf16.msra.mxu0 %v20447_v55  ;;  %v20504_v55 = vld [vmem:[%s22195_s24 + $0xfa8] ss:$40 sps:$4 sm:$0xff]  }
 0x515   : > { %11787 = vmatpush1.bf16.msra.mxu1 %v20444_v52  ;;  %11874 = vmatprep.subr.bf16.mxu0 %v20455_v40  ;;  %v1368_v52 = vlaneseq  ;;  %v20512_v40 = vld [vmem:[%s22195_s24 + $0xffc] ss:$40 sps:$4 sm:$0xff]  }
 0x516   : > { %11788 = vmatprep.subr.bf16.mxu1 %v20452_v39  ;;  %v20507_v39 = vld [vmem:[%s22195_s24 + $0x5b0] ss:$40 sps:$4 sm:$0xff]  }
 0x518   : > { %11875 = vmatpush1.bf16.msra.mxu0 %v20453_v42  ;;  %v23663_v42 = vshrl.u32 %v1368_v52, 7 }
 0x519   : > { %11789 = vmatpush1.bf16.msra.mxu1 %v20450_v41  ;;  %11876 = vmatprep.subr.bf16.mxu0 %v20461_v44  ;;  %v20515_v41 = vld [vmem:[%s22195_s24 + $0x604] ss:$40 sps:$4 sm:$0xff]   ;;  %v20513_v44 = vld [vmem:[%s22195_s24 + $0x600] ss:$40 sps:$4 sm:$0xff]  }
 0x51a   : > { %11790 = vmatprep.subr.bf16.mxu1 %v20458_v43  ;;  %v20510_v43 = vld [vmem:[%s22195_s24 + $0xff8] ss:$40 sps:$4 sm:$0xff]  }
 0x51c   : > { %11877 = vmatpush1.bf16.msra.mxu0 %v20459_v59  ;;  %v20521_v59 = vld [vmem:[%s22195_s24 + $0x654] ss:$40 sps:$4 sm:$0xff]  }
 0x51d   : > { %11791 = vmatpush1.bf16.msra.mxu1 %v20456_v56  ;;  %11878 = vmatprep.subr.bf16.mxu0 %v20467_v28  ;;  %v20518_v56 = vld [vmem:[%s22195_s24 + $0x104c] ss:$40 sps:$4 sm:$0xff]   ;;  %v23676_v28 = vsub.s32 0, %v23663_v42 }
 0x51e   : > { %11792 = vmatprep.subr.bf16.mxu1 %v20464_v27  ;;  %v1363_v27 = vld [vmem:[%s23668_s16] ss:$4 sm:$0xff] }
 0x520   : > { %11879 = vmatpush1.bf16.msra.mxu0 %v20465_v62  ;;  %v20516_v62 = vld [vmem:[%s22195_s24 + $0x1048] ss:$40 sps:$4 sm:$0xff]  }
 0x521   : > { %11793 = vmatpush1.bf16.msra.mxu1 %v20462_v61  ;;  %11880 = vmatprep.subr.bf16.mxu0 %v20473_v1  ;;  %v23679_v61 = vsub.s32 1, %v23663_v42  ;;  %v17185_v1 = vld [vmem:[%s23668_s16 + $0x1] ss:$4 sm:$0xff] }
 0x522   : > { %11794 = vmatprep.subr.bf16.mxu1 %v20470_v0  ;;  %v20519_v0 = vld [vmem:[%s22195_s24 + $0x650] ss:$40 sps:$4 sm:$0xff]  }
 0x524   : > { %11881 = vmatpush1.bf16.msra.mxu0 %v20471_v3  ;;  %v20527_v3 = vld [vmem:[%s22195_s24 + $0x6a4] ss:$40 sps:$4 sm:$0xff]  }
 0x525   : > { %11795 = vmatpush1.bf16.msra.mxu1 %v20468_v2  ;;  %11882 = vmatprep.subr.bf16.mxu0 %v20479_v5  ;;  %v20524_v2 = vld [vmem:[%s22195_s24 + $0x109c] ss:$40 sps:$4 sm:$0xff]   ;;  %v8225_v5 = vrot.slane %v17185_v1, %v23676_v28 }
 0x526   : > { %11796 = vmatprep.subr.bf16.mxu1 %v20476_v4  ;;  %v1371_v4 = vrot.slane %v1363_v27, %v23676_v28 }
 0x528   : > { %11883 = vmatpush1.bf16.msra.mxu0 %v20477_v7  ;;  %v8229_v7 = vrot.slane %v17185_v1, %v23679_v61  ;;  %v20554_v1 = vld [vmem:[%s22195_s24 + $0x122c] ss:$40 sps:$4 sm:$0xff]  }
 0x529   : > { %11797 = vmatpush1.bf16.msra.mxu1 %v20474_v6  ;;  %11884 = vmatprep.subr.bf16.mxu0 %v20485_v12  ;;  %v1375_v6 = vrot.slane %v1363_v27, %v23679_v61  ;;  %v20525_v12 = vld [vmem:[%s22195_s24 + $0x6a0] ss:$40 sps:$4 sm:$0xff]   ;;  %v20551_v27 = vld [vmem:[%s22195_s24 + $0x7e4] ss:$40 sps:$4 sm:$0xff]  }
 0x52a   : > { %11798 = vmatprep.subr.bf16.mxu1 %v20482_v8  ;;  %v20522_v8 = vld [vmem:[%s22195_s24 + $0x1098] ss:$40 sps:$4 sm:$0xff]  }
 0x52c   : > { %11885 = vmatpush1.bf16.msra.mxu0 %v20483_v14  ;;  %v20533_v14 = vld [vmem:[%s22195_s24 + $0x6f4] ss:$40 sps:$4 sm:$0xff]  }
 0x52d   : > { %11799 = vmatpush1.bf16.msra.mxu1 %v20480_v13  ;;  %11886 = vmatprep.subr.bf16.mxu0 %v20491_v57  ;;  %v20530_v13 = vld [vmem:[%s22195_s24 + $0x10ec] ss:$40 sps:$4 sm:$0xff]   ;;  %v18329_v57 = vadd.f32 %v22860_v45, %v1371_v4 }
 0x52e   : > { %11800 = vmatprep.subr.bf16.mxu1 %v20488_v15 }
 0x530   : > { %11887 = vmatpush1.bf16.msra.mxu0 %v20489_v17 }
 0x531   : > { %11801 = vmatpush1.bf16.msra.mxu1 %v20486_v58  ;;  %11899 = vmatprep.subr.bf16.mxu0 %v20497_v19 }
 0x532   : > { %11813 = vmatprep.subr.bf16.mxu1 %v20494_v18  ;;  %v18330_v18 = vadd.f32 %v22864_v47, %v1375_v6  ;;  %v20539_v47 = vld [vmem:[%s22195_s24 + $0x744] ss:$40 sps:$4 sm:$0xff]  }
 0x533   : > { %11889 = vmatmul.mubr.bf16.vlgmr.msra.gmra.mrb[12].mxu0 %v23153_v11 }
 0x534   : > { %11803 = vmatmul.mubr.bf16.vlgmr.msra.gmra.mrb[12].mxu1 %v23323_v51  ;;  %11900 = vmatpush1.bf16.msra.mxu0 %v20495_v21  ;;  %v20528_v21 = vld [vmem:[%s22195_s24 + $0x10e8] ss:$40 sps:$4 sm:$0xff]  }
 0x535   : > { %11814 = vmatpush1.bf16.msra.mxu1 %v20492_v20  ;;  %11901 = vmatprep.subr.bf16.mxu0 %v20503_v34  ;;  %v18331_v34 = vadd.f32 %v22868_v49, %v1371_v4  ;;  %v20555_v4 = vld [vmem:[%s22195_s24 + $0x830] ss:$40 sps:$4 sm:$0xff]  }
 0x536   : > { %11815 = vmatprep.subr.bf16.mxu1 %v20500_v9  ;;  %11845 = vmatprep.mubr.bf16.mxu1 %v23341_v60  ;;  %v20531_v9 = vld [vmem:[%s22195_s24 + $0x6f0] ss:$40 sps:$4 sm:$0xff]  }
 0x537   : > { %11931 = vmatprep.mubr.bf16.mxu0 %v23161_v16 }
 0x538   : > { %11902 = vmatpush1.bf16.msra.mxu0 %v20501_v36 }
 0x539   : > { %11816 = vmatpush1.bf16.msra.mxu1 %v20498_v35  ;;  %11903 = vmatprep.subr.bf16.mxu0 %v20509_v38  ;;  %v18332_v38 = vadd.f32 %v22874_v53, %v1375_v6  ;;  %v20545_v53 = vld [vmem:[%s22195_s24 + $0x794] ss:$40 sps:$4 sm:$0xff]   ;;  %v20563_v6 = vld [vmem:[%s22195_s24 + $0x884] ss:$40 sps:$4 sm:$0xff]  }
 0x53a   : > { %11817 = vmatprep.subr.bf16.mxu1 %v20506_v37  ;;  %v20536_v37 = vld [vmem:[%s22195_s24 + $0x113c] ss:$40 sps:$4 sm:$0xff]  }
 0x53c   : > { %11904 = vmatpush1.bf16.msra.mxu0 %v20507_v39 }
 0x53d   : > { %11818 = vmatpush1.bf16.msra.mxu1 %v20504_v55  ;;  %11905 = vmatprep.subr.bf16.mxu0 %v20515_v41  ;;  %v20537_v41 = vld [vmem:[%s22195_s24 + $0x740] ss:$40 sps:$4 sm:$0xff]  }
 0x53e   : > { %11819 = vmatprep.subr.bf16.mxu1 %v20512_v40  ;;  %v20534_v40 = vld [vmem:[%s22195_s24 + $0x1138] ss:$40 sps:$4 sm:$0xff]  }
 0x540   : > { %11906 = vmatpush1.bf16.msra.mxu0 %v20513_v44  ;;  %v20540_v44 = vld [vmem:[%s22195_s24 + $0x1188] ss:$40 sps:$4 sm:$0xff]  }
 0x541   : > { %11820 = vmatpush1.bf16.msra.mxu1 %v20510_v43  ;;  %11907 = vmatprep.subr.bf16.mxu0 %v20521_v59  ;;  %v20542_v43 = vld [vmem:[%s22195_s24 + $0x118c] ss:$40 sps:$4 sm:$0xff]   ;;  %v20548_v59 = vld [vmem:[%s22195_s24 + $0x11dc] ss:$40 sps:$4 sm:$0xff]  }
 0x542   : > { %11821 = vmatprep.subr.bf16.mxu1 %v20518_v56  ;;  %v20543_v56 = vld [vmem:[%s22195_s24 + $0x790] ss:$40 sps:$4 sm:$0xff]  }
 0x544   : > { %11908 = vmatpush1.bf16.msra.mxu0 %v20519_v0  ;;  %v20549_v0 = vld [vmem:[%s22195_s24 + $0x7e0] ss:$40 sps:$4 sm:$0xff]  }
 0x545   : > { %11822 = vmatpush1.bf16.msra.mxu1 %v20516_v62  ;;  %11909 = vmatprep.subr.bf16.mxu0 %v20527_v3  ;;  %v20546_v62 = vld [vmem:[%s22195_s24 + $0x11d8] ss:$40 sps:$4 sm:$0xff]   ;;  %v20552_v3 = vld [vmem:[%s22195_s24 + $0x1228] ss:$40 sps:$4 sm:$0xff]  }
 0x546   : > { %11823 = vmatprep.subr.bf16.mxu1 %v20524_v2  ;;  %v20557_v2 = vld [vmem:[%s22195_s24 + $0x834] ss:$40 sps:$4 sm:$0xff]  }
 0x547   : > { %v11675_v15 = vpop.f32.mrb[8].mxu1 }
 0x548   : > { %v18349_v58 = vadd.f32 %v11675_v15, %v8225_v5  ;;  %v11677_v17 = vpop.f32.mrb[9].mxu1  ;;  %11910 = vmatpush1.bf16.msra.mxu0 %v20525_v12  ;;  %v20566_v12 = vld [vmem:[%s22195_s24 + $0x12cc] ss:$40 sps:$4 sm:$0xff]   ;;  %v20567_v15 = vld [vmem:[%s22195_s24 + $0x8d0] ss:$40 sps:$4 sm:$0xff]  }
 0x549   : > { %v18350_v19 = vadd.f32 %v11677_v17, %v8229_v7  ;;  %v11679_v20 = vpop.f32.mrb[10].mxu1  ;;  %11824 = vmatpush1.bf16.msra.mxu1 %v20522_v8  ;;  %11911 = vmatprep.subr.bf16.mxu0 %v20533_v14  ;;  %v20561_v8 = vld [vmem:[%s22195_s24 + $0x880] ss:$40 sps:$4 sm:$0xff]  }
 0x54a   : > { %v23699_v35 = vmul.f32 %v18349_v58, %v18329_v57  ;;  %v18351_v36 = vadd.f32 %v11679_v20, %v8225_v5  ;;  %v11681_v45 = vpop.f32.mrb[11].mxu1  ;;  %11825 = vmatprep.subr.bf16.mxu1 %v20530_v13  ;;  %v20560_v5 = vld [vmem:[%s22195_s24 + $0x127c] ss:$40 sps:$4 sm:$0xff]   ;;  %v20564_v14 = vld [vmem:[%s22195_s24 + $0x12c8] ss:$40 sps:$4 sm:$0xff]  }
 0x54b   : > { %v23704_v52 = vmul.f32 %v18350_v19, %v18330_v18  ;;  %v18352_v55 = vadd.f32 %v11681_v45, %v8229_v7  ;;  %v20558_v7 = vld [vmem:[%s22195_s24 + $0x1278] ss:$40 sps:$4 sm:$0xff]   ;;  %v20569_v13 = vld [vmem:[%s22195_s24 + $0x8d4] ss:$40 sps:$4 sm:$0xff]   ;;  %v20575_v58 = vld [vmem:[%s22195_s24 + $0x924] ss:$40 sps:$4 sm:$0xff]  }
 0x54c   : > { %v23706_v39 = vmul.f32 %v18351_v36, %v18331_v34  ;;  %11912 = vmatpush1.bf16.msra.mxu0 %v20531_v9  ;;  %v20572_v57 = vld [vmem:[%s22195_s24 + $0x131c] ss:$40 sps:$4 sm:$0xff]   ;;  %v20570_v17 = vld [vmem:[%s22195_s24 + $0x1318] ss:$40 sps:$4 sm:$0xff]   ;;  %v20578_v19 = vld [vmem:[%s22195_s24 + $0x136c] ss:$40 sps:$4 sm:$0xff]  }
 0x54d   : > { %v23708_v49 = vmul.f32 %v18352_v55, %v18332_v38  ;;  %11826 = vmatpush1.bf16.msra.mxu1 %v20528_v21  ;;  %11913 = vmatprep.subr.bf16.mxu0 %v20539_v47  ;;  %v20573_v18 = vld [vmem:[%s22195_s24 + $0x920] ss:$40 sps:$4 sm:$0xff]   ;;  %v20581_v20 = vld [vmem:[%s22195_s24 + $0x974] ss:$40 sps:$4 sm:$0xff]   ;;  %v20579_v9 = vld [vmem:[%s22195_s24 + $0x970] ss:$40 sps:$4 sm:$0xff]  }
 0x54e   : > { %11827 = vmatprep.subr.bf16.mxu1 %v20536_v37  ;;  %v20576_v21 = vld [vmem:[%s22195_s24 + $0x1368] ss:$40 sps:$4 sm:$0xff]   ;;  %v20584_v34 = vld [vmem:[%s22195_s24 + $0x13bc] ss:$40 sps:$4 sm:$0xff]   ;;  %v20582_v45 = vld [vmem:[%s22195_s24 + $0x13b8] ss:$40 sps:$4 sm:$0xff]  }
 0x54f   : > { %v20587_v36 = vld [vmem:[%s22195_s24 + $0x9c4] ss:$40 sps:$4 sm:$0xff]   ;;  %v20585_v37 = vld [vmem:[%s22195_s24 + $0x9c0] ss:$40 sps:$4 sm:$0xff]   ;;  %v20590_v47 = vld [vmem:[%s22195_s24 + $0xa14] ss:$40 sps:$4 sm:$0xff]  }
 0x550   : > { %11914 = vmatpush1.bf16.msra.mxu0 %v20537_v41  ;;  %v20593_v38 = vld [vmem:[%s22195_s24 + $0x1c] ss:$40 sps:$4 sm:$0xff]   ;;  %v20588_v55 = vld [vmem:[%s22195_s24 + $0xa10] ss:$40 sps:$4 sm:$0xff]  }
 0x551   : > { %11828 = vmatpush1.bf16.msra.mxu1 %v20534_v40  ;;  %11915 = vmatprep.subr.bf16.mxu0 %v20545_v53  ;;  %v20591_v40 = vld [vmem:[%s22195_s24 + $0x18] ss:$40 sps:$4 sm:$0xff]   ;;  %v20596_v41 = vld [vmem:[%s22195_s24 + $0xa64] ss:$40 sps:$4 sm:$0xff]  }
 0x552   : > { %11829 = vmatprep.subr.bf16.mxu1 %v20542_v43  ;;  %v20599_v43 = vld [vmem:[%s22195_s24 + $0x6c] ss:$40 sps:$4 sm:$0xff]   ;;  %v20594_v53 = vld [vmem:[%s22195_s24 + $0xa60] ss:$40 sps:$4 sm:$0xff]  }
 0x554   : > { %11916 = vmatpush1.bf16.msra.mxu0 %v20543_v56  ;;  %v20602_v56 = vld [vmem:[%s22195_s24 + $0xab4] ss:$40 sps:$4 sm:$0xff]  }
 0x555   : > { %11830 = vmatpush1.bf16.msra.mxu1 %v20540_v44  ;;  %11917 = vmatprep.subr.bf16.mxu0 %v20551_v27  ;;  %v20597_v44 = vld [vmem:[%s22195_s24 + $0x68] ss:$40 sps:$4 sm:$0xff]  }
 0x556   : > { %11831 = vmatprep.subr.bf16.mxu1 %v20548_v59  ;;  %v20605_v59 = vld [vmem:[%s22195_s24 + $0xbc] ss:$40 sps:$4 sm:$0xff]   ;;  %v20600_v27 = vld [vmem:[%s22195_s24 + $0xab0] ss:$40 sps:$4 sm:$0xff]  }
 0x558   : > { %11918 = vmatpush1.bf16.msra.mxu0 %v20549_v0  ;;  %v20608_v0 = vld [vmem:[%s22195_s24 + $0xb04] ss:$40 sps:$4 sm:$0xff]  }
 0x559   : > { %11832 = vmatpush1.bf16.msra.mxu1 %v20546_v62  ;;  %11919 = vmatprep.subr.bf16.mxu0 %v20557_v2  ;;  %v20603_v62 = vld [vmem:[%s22195_s24 + $0xb8] ss:$40 sps:$4 sm:$0xff]  }
 0x55a   : > { %11833 = vmatprep.subr.bf16.mxu1 %v20554_v1  ;;  %v20611_v1 = vld [vmem:[%s22195_s24 + $0x10c] ss:$40 sps:$4 sm:$0xff]   ;;  %v20606_v2 = vld [vmem:[%s22195_s24 + $0xb00] ss:$40 sps:$4 sm:$0xff]  }
 0x55c   : > { %11920 = vmatpush1.bf16.msra.mxu0 %v20555_v4  ;;  %v20614_v4 = vld [vmem:[%s22195_s24 + $0xb54] ss:$40 sps:$4 sm:$0xff]  }
 0x55d   : > { %11834 = vmatpush1.bf16.msra.mxu1 %v20552_v3  ;;  %11921 = vmatprep.subr.bf16.mxu0 %v20563_v6  ;;  %v20609_v3 = vld [vmem:[%s22195_s24 + $0x108] ss:$40 sps:$4 sm:$0xff]  }
 0x55e   : > { %11835 = vmatprep.subr.bf16.mxu1 %v20560_v5  ;;  %v20617_v5 = vld [vmem:[%s22195_s24 + $0x15c] ss:$40 sps:$4 sm:$0xff]   ;;  %v20612_v6 = vld [vmem:[%s22195_s24 + $0xb50] ss:$40 sps:$4 sm:$0xff]  }
 0x560   : > { %11922 = vmatpush1.bf16.msra.mxu0 %v20561_v8  ;;  %v20620_v8 = vld [vmem:[%s22195_s24 + $0xba4] ss:$40 sps:$4 sm:$0xff]  }
 0x561   : > { %11836 = vmatpush1.bf16.msra.mxu1 %v20558_v7  ;;  %11923 = vmatprep.subr.bf16.mxu0 %v20569_v13  ;;  %v20615_v7 = vld [vmem:[%s22195_s24 + $0x158] ss:$40 sps:$4 sm:$0xff]  }
 0x562   : > { %11837 = vmatprep.subr.bf16.mxu1 %v20566_v12  ;;  %v20623_v12 = vld [vmem:[%s22195_s24 + $0x1ac] ss:$40 sps:$4 sm:$0xff]   ;;  %v20618_v13 = vld [vmem:[%s22195_s24 + $0xba0] ss:$40 sps:$4 sm:$0xff]  }
 0x564   : > { %11924 = vmatpush1.bf16.msra.mxu0 %v20567_v15  ;;  %v20626_v15 = vld [vmem:[%s22195_s24 + $0xbf4] ss:$40 sps:$4 sm:$0xff]  }
 0x565   : > { %11838 = vmatpush1.bf16.msra.mxu1 %v20564_v14  ;;  %11925 = vmatprep.subr.bf16.mxu0 %v20575_v58  ;;  %v20621_v14 = vld [vmem:[%s22195_s24 + $0x1a8] ss:$40 sps:$4 sm:$0xff]  }
 0x566   : > { %11839 = vmatprep.subr.bf16.mxu1 %v20572_v57  ;;  %v20629_v57 = vld [vmem:[%s22195_s24 + $0x1fc] ss:$40 sps:$4 sm:$0xff]   ;;  %v20624_v58 = vld [vmem:[%s22195_s24 + $0xbf0] ss:$40 sps:$4 sm:$0xff]  }
 0x568   : > { %11926 = vmatpush1.bf16.msra.mxu0 %v20573_v18  ;;  %v20632_v18 = vld [vmem:[%s22195_s24 + $0xc44] ss:$40 sps:$4 sm:$0xff]  }
 0x569   : > { %11840 = vmatpush1.bf16.msra.mxu1 %v20570_v17  ;;  %11927 = vmatprep.subr.bf16.mxu0 %v20581_v20  ;;  %v20627_v17 = vld [vmem:[%s22195_s24 + $0x1f8] ss:$40 sps:$4 sm:$0xff]  }
 0x56a   : > { %11841 = vmatprep.subr.bf16.mxu1 %v20578_v19  ;;  %v20635_v19 = vld [vmem:[%s22195_s24 + $0x24c] ss:$40 sps:$4 sm:$0xff]   ;;  %v20630_v20 = vld [vmem:[%s22195_s24 + $0xc40] ss:$40 sps:$4 sm:$0xff]  }
 0x56c   : > { %11928 = vmatpush1.bf16.msra.mxu0 %v20579_v9  ;;  %v20638_v9 = vld [vmem:[%s22195_s24 + $0xc94] ss:$40 sps:$4 sm:$0xff]  }
 0x56d   : > { %11842 = vmatpush1.bf16.msra.mxu1 %v20576_v21  ;;  %11929 = vmatprep.subr.bf16.mxu0 %v20587_v36  ;;  %v20633_v21 = vld [vmem:[%s22195_s24 + $0x248] ss:$40 sps:$4 sm:$0xff]  }
 0x56e   : > { %11843 = vmatprep.subr.bf16.mxu1 %v20584_v34  ;;  %v20641_v34 = vld [vmem:[%s22195_s24 + $0x29c] ss:$40 sps:$4 sm:$0xff]   ;;  %v20636_v36 = vld [vmem:[%s22195_s24 + $0xc90] ss:$40 sps:$4 sm:$0xff]  }
 0x570   : > { %11930 = vmatpush1.bf16.msra.mxu0 %v20585_v37  ;;  %v20644_v37 = vld [vmem:[%s22195_s24 + $0xce4] ss:$40 sps:$4 sm:$0xff]  }
 0x571   : > { %11844 = vmatpush1.bf16.msra.mxu1 %v20582_v45  ;;  %11942 = vmatprep.subr.bf16.mxu0 %v20590_v47  ;;  %v20639_v45 = vld [vmem:[%s22195_s24 + $0x298] ss:$40 sps:$4 sm:$0xff]   ;;  %v20647_v47 = vld [vmem:[%s22195_s24 + $0x2ec] ss:$40 sps:$4 sm:$0xff]  }
 0x572   : > { %12028 = vmatprep.subr.bf16.mxu1 %v20593_v38  ;;  %v20642_v38 = vld [vmem:[%s22195_s24 + $0xce0] ss:$40 sps:$4 sm:$0xff]  }
 0x573   : > { %11932 = vmatmul.mubr.bf16.vlgmr.msra.gmra.mrb[12].mxu0 %v23233_v26 }
 0x574   : > { %11846 = vmatmul.mubr.bf16.vlgmr.msra.gmra.mrb[12].mxu1 %v23429_v10  ;;  %11943 = vmatpush1.bf16.msra.mxu0 %v20588_v55  ;;  %v20645_v55 = vld [vmem:[%s22195_s24 + $0x2e8] ss:$40 sps:$4 sm:$0xff]  }
 0x575   : > { %12029 = vmatpush1.bf16.msra.mxu1 %v20591_v40  ;;  %11944 = vmatprep.subr.bf16.mxu0 %v20596_v41  ;;  %v20650_v40 = vld [vmem:[%s22195_s24 + $0xd34] ss:$40 sps:$4 sm:$0xff]  }
 0x576   : > { %12030 = vmatprep.subr.bf16.mxu1 %v20599_v43  ;;  %11974 = vmatprep.mubr.bf16.mxu0 %v23251_v31  ;;  %v20653_v41 = vld [vmem:[%s22195_s24 + $0x33c] ss:$40 sps:$4 sm:$0xff]   ;;  %v20648_v43 = vld [vmem:[%s22195_s24 + $0xd30] ss:$40 sps:$4 sm:$0xff]  }
 0x577   : > { %12060 = vmatprep.mubr.bf16.mxu1 %v23072_v63 }
 0x578   : > { %11945 = vmatpush1.bf16.msra.mxu0 %v20594_v53  ;;  %v20651_v53 = vld [vmem:[%s22195_s24 + $0x338] ss:$40 sps:$4 sm:$0xff]  }
 0x579   : > { %12031 = vmatpush1.bf16.msra.mxu1 %v20597_v44  ;;  %11946 = vmatprep.subr.bf16.mxu0 %v20602_v56  ;;  %v20656_v44 = vld [vmem:[%s22195_s24 + $0xd84] ss:$40 sps:$4 sm:$0xff]  }
 0x57a   : > { %12032 = vmatprep.subr.bf16.mxu1 %v20605_v59  ;;  %v20659_v56 = vld [vmem:[%s22195_s24 + $0x38c] ss:$40 sps:$4 sm:$0xff]   ;;  %v20654_v59 = vld [vmem:[%s22195_s24 + $0xd80] ss:$40 sps:$4 sm:$0xff]  }
 0x57c   : > { %11947 = vmatpush1.bf16.msra.mxu0 %v20600_v27  ;;  %v20657_v27 = vld [vmem:[%s22195_s24 + $0x388] ss:$40 sps:$4 sm:$0xff]  }
 0x57d   : > { %12033 = vmatpush1.bf16.msra.mxu1 %v20603_v62  ;;  %11948 = vmatprep.subr.bf16.mxu0 %v20608_v0  ;;  %v20662_v62 = vld [vmem:[%s22195_s24 + $0xdd4] ss:$40 sps:$4 sm:$0xff]  }
 0x57e   : > { %12034 = vmatprep.subr.bf16.mxu1 %v20611_v1  ;;  %v20665_v0 = vld [vmem:[%s22195_s24 + $0x3dc] ss:$40 sps:$4 sm:$0xff]   ;;  %v20660_v1 = vld [vmem:[%s22195_s24 + $0xdd0] ss:$40 sps:$4 sm:$0xff]  }
 0x580   : > { %11949 = vmatpush1.bf16.msra.mxu0 %v20606_v2  ;;  %v20663_v2 = vld [vmem:[%s22195_s24 + $0x3d8] ss:$40 sps:$4 sm:$0xff]  }
 0x581   : > { %12035 = vmatpush1.bf16.msra.mxu1 %v20609_v3  ;;  %11950 = vmatprep.subr.bf16.mxu0 %v20614_v4  ;;  %v20668_v3 = vld [vmem:[%s22195_s24 + $0xe24] ss:$40 sps:$4 sm:$0xff]  }
 0x582   : > { %12036 = vmatprep.subr.bf16.mxu1 %v20617_v5  ;;  %v20671_v4 = vld [vmem:[%s22195_s24 + $0x42c] ss:$40 sps:$4 sm:$0xff]   ;;  %v20666_v5 = vld [vmem:[%s22195_s24 + $0xe20] ss:$40 sps:$4 sm:$0xff]  }
 0x584   : > { %11951 = vmatpush1.bf16.msra.mxu0 %v20612_v6  ;;  %v20669_v6 = vld [vmem:[%s22195_s24 + $0x428] ss:$40 sps:$4 sm:$0xff]  }
 0x585   : > { %12037 = vmatpush1.bf16.msra.mxu1 %v20615_v7  ;;  %11952 = vmatprep.subr.bf16.mxu0 %v20620_v8  ;;  %v20674_v7 = vld [vmem:[%s22195_s24 + $0xe74] ss:$40 sps:$4 sm:$0xff]  }
 0x586   : > { %12038 = vmatprep.subr.bf16.mxu1 %v20623_v12  ;;  %v20677_v8 = vld [vmem:[%s22195_s24 + $0x47c] ss:$40 sps:$4 sm:$0xff]   ;;  %v20672_v12 = vld [vmem:[%s22195_s24 + $0xe70] ss:$40 sps:$4 sm:$0xff]  }
 0x588   : > { %11953 = vmatpush1.bf16.msra.mxu0 %v20618_v13  ;;  %v20675_v13 = vld [vmem:[%s22195_s24 + $0x478] ss:$40 sps:$4 sm:$0xff]  }
 0x589   : > { %12039 = vmatpush1.bf16.msra.mxu1 %v20621_v14  ;;  %11954 = vmatprep.subr.bf16.mxu0 %v20626_v15  ;;  %v20680_v14 = vld [vmem:[%s22195_s24 + $0xec4] ss:$40 sps:$4 sm:$0xff]  }
 0x58a   : > { %12040 = vmatprep.subr.bf16.mxu1 %v20629_v57  ;;  %v20683_v15 = vld [vmem:[%s22195_s24 + $0x4cc] ss:$40 sps:$4 sm:$0xff]   ;;  %v20678_v57 = vld [vmem:[%s22195_s24 + $0xec0] ss:$40 sps:$4 sm:$0xff]  }
 0x58c   : > { %11955 = vmatpush1.bf16.msra.mxu0 %v20624_v58  ;;  %v20681_v58 = vld [vmem:[%s22195_s24 + $0x4c8] ss:$40 sps:$4 sm:$0xff]  }
 0x58d   : > { %12041 = vmatpush1.bf16.msra.mxu1 %v20627_v17  ;;  %11956 = vmatprep.subr.bf16.mxu0 %v20632_v18  ;;  %v20686_v17 = vld [vmem:[%s22195_s24 + $0xf14] ss:$40 sps:$4 sm:$0xff]  }
 0x58e   : > { %12042 = vmatprep.subr.bf16.mxu1 %v20635_v19  ;;  %v20689_v18 = vld [vmem:[%s22195_s24 + $0x51c] ss:$40 sps:$4 sm:$0xff]   ;;  %v20684_v19 = vld [vmem:[%s22195_s24 + $0xf10] ss:$40 sps:$4 sm:$0xff]  }
 0x590   : > { %11957 = vmatpush1.bf16.msra.mxu0 %v20630_v20  ;;  %v20687_v20 = vld [vmem:[%s22195_s24 + $0x518] ss:$40 sps:$4 sm:$0xff]  }
 0x591   : > { %12043 = vmatpush1.bf16.msra.mxu1 %v20633_v21  ;;  %11958 = vmatprep.subr.bf16.mxu0 %v20638_v9  ;;  %v20692_v21 = vld [vmem:[%s22195_s24 + $0xf64] ss:$40 sps:$4 sm:$0xff]  }
 0x592   : > { %12044 = vmatprep.subr.bf16.mxu1 %v20641_v34  ;;  %v20695_v9 = vld [vmem:[%s22195_s24 + $0x56c] ss:$40 sps:$4 sm:$0xff]   ;;  %v20690_v34 = vld [vmem:[%s22195_s24 + $0xf60] ss:$40 sps:$4 sm:$0xff]  }
 0x594   : > { %11959 = vmatpush1.bf16.msra.mxu0 %v20636_v36  ;;  %v20693_v36 = vld [vmem:[%s22195_s24 + $0x568] ss:$40 sps:$4 sm:$0xff]  }
 0x595   : > { %12045 = vmatpush1.bf16.msra.mxu1 %v20639_v45  ;;  %11960 = vmatprep.subr.bf16.mxu0 %v20644_v37  ;;  %v20698_v45 = vld [vmem:[%s22195_s24 + $0xfb4] ss:$40 sps:$4 sm:$0xff]  }
 0x596   : > { %12046 = vmatprep.subr.bf16.mxu1 %v20647_v47  ;;  %v20701_v37 = vld [vmem:[%s22195_s24 + $0x5bc] ss:$40 sps:$4 sm:$0xff]   ;;  %v20696_v47 = vld [vmem:[%s22195_s24 + $0xfb0] ss:$40 sps:$4 sm:$0xff]  }
 0x598   : > { %11961 = vmatpush1.bf16.msra.mxu0 %v20642_v38  ;;  %v20699_v38 = vld [vmem:[%s22195_s24 + $0x5b8] ss:$40 sps:$4 sm:$0xff]  }
 0x599   : > { %12047 = vmatpush1.bf16.msra.mxu1 %v20645_v55  ;;  %11962 = vmatprep.subr.bf16.mxu0 %v20650_v40  ;;  %v20704_v55 = vld [vmem:[%s22195_s24 + $0x1004] ss:$40 sps:$4 sm:$0xff]  }
 0x59a   : > { %12048 = vmatprep.subr.bf16.mxu1 %v20653_v41  ;;  %v20707_v40 = vld [vmem:[%s22195_s24 + $0x60c] ss:$40 sps:$4 sm:$0xff]   ;;  %v20702_v41 = vld [vmem:[%s22195_s24 + $0x1000] ss:$40 sps:$4 sm:$0xff]  }
 0x59c   : > { %11963 = vmatpush1.bf16.msra.mxu0 %v20648_v43  ;;  %v20705_v43 = vld [vmem:[%s22195_s24 + $0x608] ss:$40 sps:$4 sm:$0xff]  }
 0x59d   : > { %12049 = vmatpush1.bf16.msra.mxu1 %v20651_v53  ;;  %11964 = vmatprep.subr.bf16.mxu0 %v20656_v44  ;;  %v20710_v53 = vld [vmem:[%s22195_s24 + $0x1054] ss:$40 sps:$4 sm:$0xff]  }
 0x59e   : > { %12050 = vmatprep.subr.bf16.mxu1 %v20659_v56  ;;  %v20713_v44 = vld [vmem:[%s22195_s24 + $0x65c] ss:$40 sps:$4 sm:$0xff]   ;;  %v20708_v56 = vld [vmem:[%s22195_s24 + $0x1050] ss:$40 sps:$4 sm:$0xff]  }
 0x5a0   : > { %11965 = vmatpush1.bf16.msra.mxu0 %v20654_v59  ;;  %v20711_v59 = vld [vmem:[%s22195_s24 + $0x658] ss:$40 sps:$4 sm:$0xff]  }
 0x5a1   : > { %12051 = vmatpush1.bf16.msra.mxu1 %v20657_v27  ;;  %11966 = vmatprep.subr.bf16.mxu0 %v20662_v62  ;;  %v20716_v27 = vld [vmem:[%s22195_s24 + $0x10a4] ss:$40 sps:$4 sm:$0xff]  }
 0x5a2   : > { %12052 = vmatprep.subr.bf16.mxu1 %v20665_v0  ;;  %v20719_v62 = vld [vmem:[%s22195_s24 + $0x6ac] ss:$40 sps:$4 sm:$0xff]   ;;  %v20714_v0 = vld [vmem:[%s22195_s24 + $0x10a0] ss:$40 sps:$4 sm:$0xff]  }
 0x5a4   : > { %11967 = vmatpush1.bf16.msra.mxu0 %v20660_v1  ;;  %v20717_v1 = vld [vmem:[%s22195_s24 + $0x6a8] ss:$40 sps:$4 sm:$0xff]  }
 0x5a5   : > { %12053 = vmatpush1.bf16.msra.mxu1 %v20663_v2  ;;  %11968 = vmatprep.subr.bf16.mxu0 %v20668_v3  ;;  %v20722_v2 = vld [vmem:[%s22195_s24 + $0x10f4] ss:$40 sps:$4 sm:$0xff]  }
 0x5a6   : > { %12054 = vmatprep.subr.bf16.mxu1 %v20671_v4  ;;  %v20725_v3 = vld [vmem:[%s22195_s24 + $0x6fc] ss:$40 sps:$4 sm:$0xff]  }
 0x5a8   : > { %11969 = vmatpush1.bf16.msra.mxu0 %v20666_v5 }
 0x5a9   : > { %12055 = vmatpush1.bf16.msra.mxu1 %v20669_v6  ;;  %11970 = vmatprep.subr.bf16.mxu0 %v20674_v7  ;;  %v20720_v7 = vld [vmem:[%s22195_s24 + $0x10f0] ss:$40 sps:$4 sm:$0xff]  }
 0x5aa   : > { %12056 = vmatprep.subr.bf16.mxu1 %v20677_v8  ;;  %v20723_v8 = vld [vmem:[%s22195_s24 + $0x6f8] ss:$40 sps:$4 sm:$0xff]  }
 0x5ac   : > { %11971 = vmatpush1.bf16.msra.mxu0 %v20672_v12 }
 0x5ad   : > { %12057 = vmatpush1.bf16.msra.mxu1 %v20675_v13  ;;  %11972 = vmatprep.subr.bf16.mxu0 %v20680_v14  ;;  %v20728_v13 = vld [vmem:[%s22195_s24 + $0x1144] ss:$40 sps:$4 sm:$0xff]  }
 0x5ae   : > { %12058 = vmatprep.subr.bf16.mxu1 %v20683_v15  ;;  %v20731_v14 = vld [vmem:[%s22195_s24 + $0x74c] ss:$40 sps:$4 sm:$0xff]   ;;  %v20726_v15 = vld [vmem:[%s22195_s24 + $0x1140] ss:$40 sps:$4 sm:$0xff]  }
 0x5b0   : > { %11973 = vmatpush1.bf16.msra.mxu0 %v20678_v57  ;;  %v20729_v57 = vld [vmem:[%s22195_s24 + $0x748] ss:$40 sps:$4 sm:$0xff]  }
 0x5b1   : > { %12059 = vmatpush1.bf16.msra.mxu1 %v20681_v58  ;;  %11985 = vmatprep.subr.bf16.mxu0 %v20686_v17  ;;  %v20734_v58 = vld [vmem:[%s22195_s24 + $0x1194] ss:$40 sps:$4 sm:$0xff]  }
 0x5b2   : > { %12071 = vmatprep.subr.bf16.mxu1 %v20689_v18  ;;  %v20737_v17 = vld [vmem:[%s22195_s24 + $0x79c] ss:$40 sps:$4 sm:$0xff]   ;;  %v20732_v18 = vld [vmem:[%s22195_s24 + $0x1190] ss:$40 sps:$4 sm:$0xff]  }
 0x5b3   : > { %11975 = vmatmul.mubr.bf16.vlgmr.msra.gmra.mrb[12].mxu0 %v23323_v51 }
 0x5b4   : > { %12061 = vmatmul.mubr.bf16.vlgmr.msra.gmra.mrb[16].mxu1 %v23153_v11  ;;  %11986 = vmatpush1.bf16.msra.mxu0 %v20684_v19  ;;  %v20735_v19 = vld [vmem:[%s22195_s24 + $0x798] ss:$40 sps:$4 sm:$0xff]  }
 0x5b5   : > { %12072 = vmatpush1.bf16.msra.mxu1 %v20687_v20  ;;  %11987 = vmatprep.subr.bf16.mxu0 %v20692_v21  ;;  %v20740_v20 = vld [vmem:[%s22195_s24 + $0x11e4] ss:$40 sps:$4 sm:$0xff]  }
 0x5b6   : > { %12073 = vmatprep.subr.bf16.mxu1 %v20695_v9  ;;  %12017 = vmatprep.mubr.bf16.mxu0 %v23341_v60  ;;  %v20743_v21 = vld [vmem:[%s22195_s24 + $0x7ec] ss:$40 sps:$4 sm:$0xff]   ;;  %v20738_v9 = vld [vmem:[%s22195_s24 + $0x11e0] ss:$40 sps:$4 sm:$0xff]  }
 0x5b7   : > { %12103 = vmatprep.mubr.bf16.mxu1 %v23161_v16 }
 0x5b8   : > { %11988 = vmatpush1.bf16.msra.mxu0 %v20690_v34  ;;  %v20741_v34 = vld [vmem:[%s22195_s24 + $0x7e8] ss:$40 sps:$4 sm:$0xff]  }
 0x5b9   : > { %12074 = vmatpush1.bf16.msra.mxu1 %v20693_v36  ;;  %11989 = vmatprep.subr.bf16.mxu0 %v20698_v45  ;;  %v20746_v36 = vld [vmem:[%s22195_s24 + $0x1234] ss:$40 sps:$4 sm:$0xff]  }
 0x5ba   : > { %12075 = vmatprep.subr.bf16.mxu1 %v20701_v37  ;;  %v20749_v45 = vld [vmem:[%s22195_s24 + $0x83c] ss:$40 sps:$4 sm:$0xff]   ;;  %v20744_v37 = vld [vmem:[%s22195_s24 + $0x1230] ss:$40 sps:$4 sm:$0xff]  }
 0x5bc   : > { %11990 = vmatpush1.bf16.msra.mxu0 %v20696_v47  ;;  %v20747_v47 = vld [vmem:[%s22195_s24 + $0x838] ss:$40 sps:$4 sm:$0xff]  }
 0x5bd   : > { %12076 = vmatpush1.bf16.msra.mxu1 %v20699_v38  ;;  %11991 = vmatprep.subr.bf16.mxu0 %v20704_v55  ;;  %v20752_v38 = vld [vmem:[%s22195_s24 + $0x1284] ss:$40 sps:$4 sm:$0xff]  }
 0x5be   : > { %12077 = vmatprep.subr.bf16.mxu1 %v20707_v40  ;;  %v20755_v55 = vld [vmem:[%s22195_s24 + $0x88c] ss:$40 sps:$4 sm:$0xff]   ;;  %v20750_v40 = vld [vmem:[%s22195_s24 + $0x1280] ss:$40 sps:$4 sm:$0xff]  }
 0x5c0   : > { %11992 = vmatpush1.bf16.msra.mxu0 %v20702_v41  ;;  %v20753_v41 = vld [vmem:[%s22195_s24 + $0x888] ss:$40 sps:$4 sm:$0xff]  }
 0x5c1   : > { %12078 = vmatpush1.bf16.msra.mxu1 %v20705_v43  ;;  %11993 = vmatprep.subr.bf16.mxu0 %v20710_v53  ;;  %v20758_v43 = vld [vmem:[%s22195_s24 + $0x12d4] ss:$40 sps:$4 sm:$0xff]  }
 0x5c2   : > { %12079 = vmatprep.subr.bf16.mxu1 %v20713_v44  ;;  %v20761_v53 = vld [vmem:[%s22195_s24 + $0x8dc] ss:$40 sps:$4 sm:$0xff]   ;;  %v20756_v44 = vld [vmem:[%s22195_s24 + $0x12d0] ss:$40 sps:$4 sm:$0xff]  }
 0x5c4   : > { %11994 = vmatpush1.bf16.msra.mxu0 %v20708_v56  ;;  %v20759_v56 = vld [vmem:[%s22195_s24 + $0x8d8] ss:$40 sps:$4 sm:$0xff]  }
 0x5c5   : > { %12080 = vmatpush1.bf16.msra.mxu1 %v20711_v59  ;;  %11995 = vmatprep.subr.bf16.mxu0 %v20716_v27  ;;  %v20764_v59 = vld [vmem:[%s22195_s24 + $0x1324] ss:$40 sps:$4 sm:$0xff]  }
 0x5c6   : > { %12081 = vmatprep.subr.bf16.mxu1 %v20719_v62  ;;  %v23842_v4 = vpop.f32.mrb[8].mxu0  ;;  %v20767_v27 = vld [vmem:[%s22195_s24 + $0x92c] ss:$40 sps:$4 sm:$0xff]   ;;  %v20762_v62 = vld [vmem:[%s22195_s24 + $0x1320] ss:$40 sps:$4 sm:$0xff]  }
 0x5c7   : > { %v23844_v5 = vpop.f32.mrb[9].mxu0 }
 0x5c8   : > { %v23846_v6 = vpop.f32.mrb[10].mxu0  ;;  %11996 = vmatpush1.bf16.msra.mxu0 %v20714_v0  ;;  %v20765_v0 = vld [vmem:[%s22195_s24 + $0x928] ss:$40 sps:$4 sm:$0xff]  }
 0x5c9   : > { %12082 = vmatpush1.bf16.msra.mxu1 %v20717_v1  ;;  %v23850_v12 = vpop.f32.mrb[11].mxu0  ;;  %11997 = vmatprep.subr.bf16.mxu0 %v20722_v2  ;;  %v20770_v1 = vld [vmem:[%s22195_s24 + $0x1374] ss:$40 sps:$4 sm:$0xff]  }
 0x5ca   : > { %12083 = vmatprep.subr.bf16.mxu1 %v20725_v3  ;;  %v20773_v2 = vld [vmem:[%s22195_s24 + $0x97c] ss:$40 sps:$4 sm:$0xff]   ;;  %v20768_v3 = vld [vmem:[%s22195_s24 + $0x1370] ss:$40 sps:$4 sm:$0xff]  }
 0x5cc   : > { %11998 = vmatpush1.bf16.msra.mxu0 %v20720_v7  ;;  %v20771_v7 = vld [vmem:[%s22195_s24 + $0x978] ss:$40 sps:$4 sm:$0xff]  }
 0x5cd   : > { %12084 = vmatpush1.bf16.msra.mxu1 %v20723_v8  ;;  %11999 = vmatprep.subr.bf16.mxu0 %v20728_v13  ;;  %v20776_v8 = vld [vmem:[%s22195_s24 + $0x13c4] ss:$40 sps:$4 sm:$0xff]  }
 0x5ce   : > { %12085 = vmatprep.subr.bf16.mxu1 %v20731_v14  ;;  %v20779_v13 = vld [vmem:[%s22195_s24 + $0x9cc] ss:$40 sps:$4 sm:$0xff]   ;;  %v20774_v14 = vld [vmem:[%s22195_s24 + $0x13c0] ss:$40 sps:$4 sm:$0xff]  }
 0x5d0   : > { %12000 = vmatpush1.bf16.msra.mxu0 %v20726_v15  ;;  %v20777_v15 = vld [vmem:[%s22195_s24 + $0x9c8] ss:$40 sps:$4 sm:$0xff]  }
 0x5d1   : > { %12086 = vmatpush1.bf16.msra.mxu1 %v20729_v57  ;;  %12001 = vmatprep.subr.bf16.mxu0 %v20734_v58  ;;  %v20782_v57 = vld [vmem:[%s22195_s24 + $0xa1c] ss:$40 sps:$4 sm:$0xff]  }
 0x5d2   : > { %12087 = vmatprep.subr.bf16.mxu1 %v20737_v17  ;;  %v20785_v58 = vld [vmem:[%s22195_s24 + $0x24] ss:$40 sps:$4 sm:$0xff]   ;;  %v20780_v17 = vld [vmem:[%s22195_s24 + $0xa18] ss:$40 sps:$4 sm:$0xff]  }
 0x5d4   : > { %12002 = vmatpush1.bf16.msra.mxu0 %v20732_v18  ;;  %v20783_v18 = vld [vmem:[%s22195_s24 + $0x20] ss:$40 sps:$4 sm:$0xff]  }
 0x5d5   : > { %12088 = vmatpush1.bf16.msra.mxu1 %v20735_v19  ;;  %12003 = vmatprep.subr.bf16.mxu0 %v20740_v20  ;;  %v20788_v19 = vld [vmem:[%s22195_s24 + $0xa6c] ss:$40 sps:$4 sm:$0xff]  }
 0x5d6   : > { %12089 = vmatprep.subr.bf16.mxu1 %v20743_v21  ;;  %v20791_v20 = vld [vmem:[%s22195_s24 + $0x74] ss:$40 sps:$4 sm:$0xff]   ;;  %v20786_v21 = vld [vmem:[%s22195_s24 + $0xa68] ss:$40 sps:$4 sm:$0xff]  }
 0x5d8   : > { %12004 = vmatpush1.bf16.msra.mxu0 %v20738_v9  ;;  %v20789_v9 = vld [vmem:[%s22195_s24 + $0x70] ss:$40 sps:$4 sm:$0xff]  }
 0x5d9   : > { %12090 = vmatpush1.bf16.msra.mxu1 %v20741_v34  ;;  %12005 = vmatprep.subr.bf16.mxu0 %v20746_v36  ;;  %v20794_v34 = vld [vmem:[%s22195_s24 + $0xabc] ss:$40 sps:$4 sm:$0xff]  }
 0x5da   : > { %12091 = vmatprep.subr.bf16.mxu1 %v20749_v45  ;;  %v20797_v36 = vld [vmem:[%s22195_s24 + $0xc4] ss:$40 sps:$4 sm:$0xff]   ;;  %v20792_v45 = vld [vmem:[%s22195_s24 + $0xab8] ss:$40 sps:$4 sm:$0xff]  }
 0x5dc   : > { %12006 = vmatpush1.bf16.msra.mxu0 %v20744_v37  ;;  %v20795_v37 = vld [vmem:[%s22195_s24 + $0xc0] ss:$40 sps:$4 sm:$0xff]  }
 0x5dd   : > { %12092 = vmatpush1.bf16.msra.mxu1 %v20747_v47  ;;  %12007 = vmatprep.subr.bf16.mxu0 %v20752_v38  ;;  %v20800_v47 = vld [vmem:[%s22195_s24 + $0xb0c] ss:$40 sps:$4 sm:$0xff]  }
 0x5de   : > { %12093 = vmatprep.subr.bf16.mxu1 %v20755_v55  ;;  %v20803_v38 = vld [vmem:[%s22195_s24 + $0x114] ss:$40 sps:$4 sm:$0xff]   ;;  %v20798_v55 = vld [vmem:[%s22195_s24 + $0xb08] ss:$40 sps:$4 sm:$0xff]  }
 0x5e0   : > { %12008 = vmatpush1.bf16.msra.mxu0 %v20750_v40  ;;  %v20801_v40 = vld [vmem:[%s22195_s24 + $0x110] ss:$40 sps:$4 sm:$0xff]  }
 0x5e1   : > { %12094 = vmatpush1.bf16.msra.mxu1 %v20753_v41  ;;  %12009 = vmatprep.subr.bf16.mxu0 %v20758_v43  ;;  %v20809_v41 = vld [vmem:[%s22195_s24 + $0x164] ss:$40 sps:$4 sm:$0xff]   ;;  %v20804_v43 = vld [vmem:[%s22195_s24 + $0xb58] ss:$40 sps:$4 sm:$0xff]  }
 0x5e2   : > { %12095 = vmatprep.subr.bf16.mxu1 %v20761_v53  ;;  %v20807_v53 = vld [vmem:[%s22195_s24 + $0x160] ss:$40 sps:$4 sm:$0xff]  }
 0x5e4   : > { %12010 = vmatpush1.bf16.msra.mxu0 %v20756_v44  ;;  %v20812_v44 = vld [vmem:[%s22195_s24 + $0xbac] ss:$40 sps:$4 sm:$0xff]  }
 0x5e5   : > { %12096 = vmatpush1.bf16.msra.mxu1 %v20759_v56  ;;  %12011 = vmatprep.subr.bf16.mxu0 %v20764_v59  ;;  %v20815_v56 = vld [vmem:[%s22195_s24 + $0x1b4] ss:$40 sps:$4 sm:$0xff]   ;;  %v20810_v59 = vld [vmem:[%s22195_s24 + $0xba8] ss:$40 sps:$4 sm:$0xff]  }
 0x5e6   : > { %12097 = vmatprep.subr.bf16.mxu1 %v20767_v27  ;;  %v20813_v27 = vld [vmem:[%s22195_s24 + $0x1b0] ss:$40 sps:$4 sm:$0xff]  }
 0x5e8   : > { %12012 = vmatpush1.bf16.msra.mxu0 %v20762_v62  ;;  %v20818_v62 = vld [vmem:[%s22195_s24 + $0xbfc] ss:$40 sps:$4 sm:$0xff]  }
 0x5e9   : > { %12098 = vmatpush1.bf16.msra.mxu1 %v20765_v0  ;;  %12013 = vmatprep.subr.bf16.mxu0 %v20770_v1  ;;  %v20821_v0 = vld [vmem:[%s22195_s24 + $0x204] ss:$40 sps:$4 sm:$0xff]   ;;  %v20816_v1 = vld [vmem:[%s22195_s24 + $0xbf8] ss:$40 sps:$4 sm:$0xff]  }
 0x5ea   : > { %12099 = vmatprep.subr.bf16.mxu1 %v20773_v2  ;;  %v20819_v2 = vld [vmem:[%s22195_s24 + $0x200] ss:$40 sps:$4 sm:$0xff]  }
 0x5ec   : > { %12014 = vmatpush1.bf16.msra.mxu0 %v20768_v3  ;;  %v20824_v3 = vld [vmem:[%s22195_s24 + $0xc4c] ss:$40 sps:$4 sm:$0xff]  }
 0x5ed   : > { %12100 = vmatpush1.bf16.msra.mxu1 %v20771_v7  ;;  %12015 = vmatprep.subr.bf16.mxu0 %v20776_v8  ;;  %v20827_v7 = vld [vmem:[%s22195_s24 + $0x254] ss:$40 sps:$4 sm:$0xff]   ;;  %v20822_v8 = vld [vmem:[%s22195_s24 + $0xc48] ss:$40 sps:$4 sm:$0xff]  }
 0x5ee   : > { %12101 = vmatprep.subr.bf16.mxu1 %v20779_v13  ;;  %v20825_v13 = vld [vmem:[%s22195_s24 + $0x250] ss:$40 sps:$4 sm:$0xff]  }
 0x5f0   : > { %12016 = vmatpush1.bf16.msra.mxu0 %v20774_v14  ;;  %v20830_v14 = vld [vmem:[%s22195_s24 + $0xc9c] ss:$40 sps:$4 sm:$0xff]  }
 0x5f1   : > { %12102 = vmatpush1.bf16.msra.mxu1 %v20777_v15  ;;  %12200 = vmatprep.subr.bf16.mxu0 %v20785_v58  ;;  %v20833_v15 = vld [vmem:[%s22195_s24 + $0x2a4] ss:$40 sps:$4 sm:$0xff]   ;;  %v20831_v58 = vld [vmem:[%s22195_s24 + $0x2a0] ss:$40 sps:$4 sm:$0xff]  }
 0x5f2   : > { %12114 = vmatprep.subr.bf16.mxu1 %v20782_v57  ;;  %v20828_v57 = vld [vmem:[%s22195_s24 + $0xc98] ss:$40 sps:$4 sm:$0xff]  }
 0x5f3   : > { %12018 = vmatmul.mubr.bf16.vlgmr.msra.gmra.mrb[12].mxu0 %v23429_v10 }
 0x5f4   : > { %12104 = vmatmul.mubr.bf16.vlgmr.msra.gmra.mrb[16].mxu1 %v23233_v26  ;;  %12201 = vmatpush1.bf16.msra.mxu0 %v20783_v18  ;;  %v20839_v18 = vld [vmem:[%s22195_s24 + $0x2f4] ss:$40 sps:$4 sm:$0xff]  }
 0x5f5   : > { %12115 = vmatpush1.bf16.msra.mxu1 %v20780_v17  ;;  %12202 = vmatprep.subr.bf16.mxu0 %v20791_v20  ;;  %v20836_v17 = vld [vmem:[%s22195_s24 + $0xcec] ss:$40 sps:$4 sm:$0xff]   ;;  %v20837_v20 = vld [vmem:[%s22195_s24 + $0x2f0] ss:$40 sps:$4 sm:$0xff]  }
 0x5f6   : > { %12116 = vmatprep.subr.bf16.mxu1 %v20788_v19  ;;  %12146 = vmatprep.mubr.bf16.mxu1 %v23251_v31  ;;  %v20834_v19 = vld [vmem:[%s22195_s24 + $0xce8] ss:$40 sps:$4 sm:$0xff]  }
 0x5f7   : > { %12232 = vmatprep.mubr.bf16.mxu0 %v23072_v63  ;;  %v20806_v63 = vld [vmem:[%s22195_s24 + $0xb5c] ss:$40 sps:$4 sm:$0xff]  }
 0x5f8   : > { %12203 = vmatpush1.bf16.msra.mxu0 %v20789_v9  ;;  %v20845_v9 = vld [vmem:[%s22195_s24 + $0x344] ss:$40 sps:$4 sm:$0xff]  }
 0x5f9   : > { %12117 = vmatpush1.bf16.msra.mxu1 %v20786_v21  ;;  %12204 = vmatprep.subr.bf16.mxu0 %v20797_v36  ;;  %v20842_v21 = vld [vmem:[%s22195_s24 + $0xd3c] ss:$40 sps:$4 sm:$0xff]   ;;  %v20843_v36 = vld [vmem:[%s22195_s24 + $0x340] ss:$40 sps:$4 sm:$0xff]  }
 0x5fa   : > { %12118 = vmatprep.subr.bf16.mxu1 %v20794_v34  ;;  %v20840_v34 = vld [vmem:[%s22195_s24 + $0xd38] ss:$40 sps:$4 sm:$0xff]  }
 0x5fc   : > { %12205 = vmatpush1.bf16.msra.mxu0 %v20795_v37  ;;  %v20851_v37 = vld [vmem:[%s22195_s24 + $0x394] ss:$40 sps:$4 sm:$0xff]  }
 0x5fd   : > { %12119 = vmatpush1.bf16.msra.mxu1 %v20792_v45  ;;  %12206 = vmatprep.subr.bf16.mxu0 %v20803_v38  ;;  %v20848_v45 = vld [vmem:[%s22195_s24 + $0xd8c] ss:$40 sps:$4 sm:$0xff]   ;;  %v20849_v38 = vld [vmem:[%s22195_s24 + $0x390] ss:$40 sps:$4 sm:$0xff]  }
 0x5fe   : > { %12120 = vmatprep.subr.bf16.mxu1 %v20800_v47  ;;  %v20846_v47 = vld [vmem:[%s22195_s24 + $0xd88] ss:$40 sps:$4 sm:$0xff]  }
 0x600   : > { %12207 = vmatpush1.bf16.msra.mxu0 %v20801_v40  ;;  %v20857_v40 = vld [vmem:[%s22195_s24 + $0x3e4] ss:$40 sps:$4 sm:$0xff]  }
 0x601   : > { %12121 = vmatpush1.bf16.msra.mxu1 %v20798_v55  ;;  %12208 = vmatprep.subr.bf16.mxu0 %v20809_v41  ;;  %v20854_v55 = vld [vmem:[%s22195_s24 + $0xddc] ss:$40 sps:$4 sm:$0xff]   ;;  %v20855_v41 = vld [vmem:[%s22195_s24 + $0x3e0] ss:$40 sps:$4 sm:$0xff]  }
 0x602   : > { %12122 = vmatprep.subr.bf16.mxu1 %v20806_v63  ;;  %v20852_v63 = vld [vmem:[%s22195_s24 + $0xdd8] ss:$40 sps:$4 sm:$0xff]  }
 0x604   : > { %12209 = vmatpush1.bf16.msra.mxu0 %v20807_v53  ;;  %v20863_v53 = vld [vmem:[%s22195_s24 + $0x434] ss:$40 sps:$4 sm:$0xff]  }
 0x605   : > { %12123 = vmatpush1.bf16.msra.mxu1 %v20804_v43  ;;  %12210 = vmatprep.subr.bf16.mxu0 %v20815_v56  ;;  %v20860_v43 = vld [vmem:[%s22195_s24 + $0xe2c] ss:$40 sps:$4 sm:$0xff]   ;;  %v20861_v56 = vld [vmem:[%s22195_s24 + $0x430] ss:$40 sps:$4 sm:$0xff]  }
 0x606   : > { %12124 = vmatprep.subr.bf16.mxu1 %v20812_v44  ;;  %v20858_v44 = vld [vmem:[%s22195_s24 + $0xe28] ss:$40 sps:$4 sm:$0xff]  }
 0x608   : > { %12211 = vmatpush1.bf16.msra.mxu0 %v20813_v27  ;;  %v20869_v27 = vld [vmem:[%s22195_s24 + $0x484] ss:$40 sps:$4 sm:$0xff]  }
 0x609   : > { %12125 = vmatpush1.bf16.msra.mxu1 %v20810_v59  ;;  %12212 = vmatprep.subr.bf16.mxu0 %v20821_v0  ;;  %v20866_v59 = vld [vmem:[%s22195_s24 + $0xe7c] ss:$40 sps:$4 sm:$0xff]   ;;  %v20867_v0 = vld [vmem:[%s22195_s24 + $0x480] ss:$40 sps:$4 sm:$0xff]  }
 0x60a   : > { %12126 = vmatprep.subr.bf16.mxu1 %v20818_v62  ;;  %v20864_v62 = vld [vmem:[%s22195_s24 + $0xe78] ss:$40 sps:$4 sm:$0xff]  }
 0x60c   : > { %12213 = vmatpush1.bf16.msra.mxu0 %v20819_v2  ;;  %v20875_v2 = vld [vmem:[%s22195_s24 + $0x4d4] ss:$40 sps:$4 sm:$0xff]  }
 0x60d   : > { %12127 = vmatpush1.bf16.msra.mxu1 %v20816_v1  ;;  %12214 = vmatprep.subr.bf16.mxu0 %v20827_v7  ;;  %v20872_v1 = vld [vmem:[%s22195_s24 + $0xecc] ss:$40 sps:$4 sm:$0xff]   ;;  %v20873_v7 = vld [vmem:[%s22195_s24 + $0x4d0] ss:$40 sps:$4 sm:$0xff]  }
 0x60e   : > { %12128 = vmatprep.subr.bf16.mxu1 %v20824_v3  ;;  %v20870_v3 = vld [vmem:[%s22195_s24 + $0xec8] ss:$40 sps:$4 sm:$0xff]  }
 0x610   : > { %12215 = vmatpush1.bf16.msra.mxu0 %v20825_v13  ;;  %v20881_v13 = vld [vmem:[%s22195_s24 + $0x524] ss:$40 sps:$4 sm:$0xff]  }
 0x611   : > { %12129 = vmatpush1.bf16.msra.mxu1 %v20822_v8  ;;  %12216 = vmatprep.subr.bf16.mxu0 %v20833_v15  ;;  %v20878_v8 = vld [vmem:[%s22195_s24 + $0xf1c] ss:$40 sps:$4 sm:$0xff]   ;;  %v20879_v15 = vld [vmem:[%s22195_s24 + $0x520] ss:$40 sps:$4 sm:$0xff]  }
 0x612   : > { %12130 = vmatprep.subr.bf16.mxu1 %v20830_v14  ;;  %v20876_v14 = vld [vmem:[%s22195_s24 + $0xf18] ss:$40 sps:$4 sm:$0xff]  }
 0x614   : > { %12217 = vmatpush1.bf16.msra.mxu0 %v20831_v58  ;;  %v20887_v58 = vld [vmem:[%s22195_s24 + $0x574] ss:$40 sps:$4 sm:$0xff]  }
 0x615   : > { %12131 = vmatpush1.bf16.msra.mxu1 %v20828_v57  ;;  %12218 = vmatprep.subr.bf16.mxu0 %v20839_v18  ;;  %v20884_v57 = vld [vmem:[%s22195_s24 + $0xf6c] ss:$40 sps:$4 sm:$0xff]   ;;  %v20885_v18 = vld [vmem:[%s22195_s24 + $0x570] ss:$40 sps:$4 sm:$0xff]  }
 0x616   : > { %12132 = vmatprep.subr.bf16.mxu1 %v20836_v17  ;;  %v20882_v17 = vld [vmem:[%s22195_s24 + $0xf68] ss:$40 sps:$4 sm:$0xff]  }
 0x618   : > { %12219 = vmatpush1.bf16.msra.mxu0 %v20837_v20  ;;  %v20893_v20 = vld [vmem:[%s22195_s24 + $0x5c4] ss:$40 sps:$4 sm:$0xff]  }
 0x619   : > { %12133 = vmatpush1.bf16.msra.mxu1 %v20834_v19  ;;  %12220 = vmatprep.subr.bf16.mxu0 %v20845_v9  ;;  %v20890_v19 = vld [vmem:[%s22195_s24 + $0xfbc] ss:$40 sps:$4 sm:$0xff]   ;;  %v20896_v9 = vld [vmem:[%s22195_s24 + $0x100c] ss:$40 sps:$4 sm:$0xff]  }
 0x61a   : > { %12134 = vmatprep.subr.bf16.mxu1 %v20842_v21  ;;  %v20891_v21 = vld [vmem:[%s22195_s24 + $0x5c0] ss:$40 sps:$4 sm:$0xff]  }
 0x61c   : > { %12221 = vmatpush1.bf16.msra.mxu0 %v20843_v36  ;;  %v20894_v36 = vld [vmem:[%s22195_s24 + $0x1008] ss:$40 sps:$4 sm:$0xff]  }
 0x61d   : > { %12135 = vmatpush1.bf16.msra.mxu1 %v20840_v34  ;;  %12222 = vmatprep.subr.bf16.mxu0 %v20851_v37  ;;  %v20899_v34 = vld [vmem:[%s22195_s24 + $0x614] ss:$40 sps:$4 sm:$0xff]   ;;  %v20905_v37 = vld [vmem:[%s22195_s24 + $0x664] ss:$40 sps:$4 sm:$0xff]  }
 0x61e   : > { %12136 = vmatprep.subr.bf16.mxu1 %v20848_v45  ;;  %v20897_v45 = vld [vmem:[%s22195_s24 + $0x610] ss:$40 sps:$4 sm:$0xff]  }
 0x620   : > { %12223 = vmatpush1.bf16.msra.mxu0 %v20849_v38  ;;  %v23985_v38 = vsub.s32 3, %v23663_v42 }
 0x621   : > { %12137 = vmatpush1.bf16.msra.mxu1 %v20846_v47  ;;  %12224 = vmatprep.subr.bf16.mxu0 %v20857_v40  ;;  %v23982_v47 = vsub.s32 2, %v23663_v42  ;;  %v20903_v40 = vld [vmem:[%s22195_s24 + $0x660] ss:$40 sps:$4 sm:$0xff]  }
 0x622   : > { %12138 = vmatprep.subr.bf16.mxu1 %v20854_v55  ;;  %v20900_v55 = vld [vmem:[%s22195_s24 + $0x1058] ss:$40 sps:$4 sm:$0xff]  }
 0x624   : > { %12225 = vmatpush1.bf16.msra.mxu0 %v20855_v41  ;;  %v20911_v41 = vld [vmem:[%s22195_s24 + $0x6b4] ss:$40 sps:$4 sm:$0xff]  }
 0x625   : > { %12139 = vmatpush1.bf16.msra.mxu1 %v20852_v63  ;;  %12226 = vmatprep.subr.bf16.mxu0 %v20863_v53  ;;  %v20908_v63 = vld [vmem:[%s22195_s24 + $0x10ac] ss:$40 sps:$4 sm:$0xff]   ;;  %v20909_v53 = vld [vmem:[%s22195_s24 + $0x6b0] ss:$40 sps:$4 sm:$0xff]  }
 0x626   : > { %12140 = vmatprep.subr.bf16.mxu1 %v20860_v43  ;;  %v20906_v43 = vld [vmem:[%s22195_s24 + $0x10a8] ss:$40 sps:$4 sm:$0xff]  }
 0x628   : > { %12227 = vmatpush1.bf16.msra.mxu0 %v20861_v56 }
 0x629   : > { %12141 = vmatpush1.bf16.msra.mxu1 %v20858_v44  ;;  %12228 = vmatprep.subr.bf16.mxu0 %v20869_v27  ;;  %v21821_v44 = vld [vmem:[%s23668_s16] ss:$4 sm:$0xff] }
 0x62a   : > { %12142 = vmatprep.subr.bf16.mxu1 %v20866_v59  ;;  %v1379_v56 = vrot.slane %v21821_v44, %v23982_v47  ;;  %v21822_v59 = vld [vmem:[%s23668_s16 + $0x1] ss:$4 sm:$0xff] }
 0x62b   : > { %v8233_v27 = vrot.slane %v21822_v59, %v23982_v47 }
 0x62c   : > { %12229 = vmatpush1.bf16.msra.mxu0 %v20867_v0  ;;  %v8237_v0 = vrot.slane %v21822_v59, %v23985_v38  ;;  %v20936_v59 = vld [vmem:[%s22195_s24 + $0x1238] ss:$40 sps:$4 sm:$0xff]  }
 0x62d   : > { %12143 = vmatpush1.bf16.msra.mxu1 %v20864_v62  ;;  %12230 = vmatprep.subr.bf16.mxu0 %v20875_v2  ;;  %v1383_v62 = vrot.slane %v21821_v44, %v23985_v38  ;;  %v20917_v2 = vld [vmem:[%s22195_s24 + $0x704] ss:$40 sps:$4 sm:$0xff]  }
 0x62e   : > { %12144 = vmatprep.subr.bf16.mxu1 %v20872_v1  ;;  %v20914_v1 = vld [vmem:[%s22195_s24 + $0x10fc] ss:$40 sps:$4 sm:$0xff]  }
 0x62f   : > { %v20938_v44 = vld [vmem:[%s22195_s24 + $0x123c] ss:$40 sps:$4 sm:$0xff]  }
 0x630   : > { %12231 = vmatpush1.bf16.msra.mxu0 %v20873_v7  ;;  %v20912_v7 = vld [vmem:[%s22195_s24 + $0x10f8] ss:$40 sps:$4 sm:$0xff]  }
 0x631   : > { %12145 = vmatpush1.bf16.msra.mxu1 %v20870_v3  ;;  %12243 = vmatprep.subr.bf16.mxu0 %v20881_v13  ;;  %v18333_v13 = vadd.f32 %v22862_v46, %v1379_v56  ;;  %v20920_v46 = vld [vmem:[%s22195_s24 + $0x114c] ss:$40 sps:$4 sm:$0xff]  }
 0x632   : > { %12157 = vmatprep.subr.bf16.mxu1 %v20878_v8  ;;  %v20915_v8 = vld [vmem:[%s22195_s24 + $0x700] ss:$40 sps:$4 sm:$0xff]  }
 0x633   : > { %12233 = vmatmul.mubr.bf16.vlgmr.msra.gmra.mrb[16].mxu0 %v23153_v11  ;;  %v20888_v11 = vld [vmem:[%s22195_s24 + $0xfb8] ss:$40 sps:$4 sm:$0xff]  }
 0x634   : > { %12147 = vmatmul.mubr.bf16.vlgmr.msra.gmra.mrb[16].mxu1 %v23323_v51  ;;  %12244 = vmatpush1.bf16.msra.mxu0 %v20879_v15 }
 0x635   : > { %12158 = vmatpush1.bf16.msra.mxu1 %v20876_v14  ;;  %12245 = vmatprep.subr.bf16.mxu0 %v20887_v58 }
 0x636   : > { %12159 = vmatprep.subr.bf16.mxu1 %v20884_v57  ;;  %12189 = vmatprep.mubr.bf16.mxu1 %v23341_v60  ;;  %v18334_v57 = vadd.f32 %v22866_v48, %v1383_v62  ;;  %v18336_v48 = vadd.f32 %v22876_v54, %v1383_v62  ;;  %v20929_v54 = vld [vmem:[%s22195_s24 + $0x7a4] ss:$40 sps:$4 sm:$0xff]  }
 0x637   : > { %12275 = vmatprep.mubr.bf16.mxu0 %v23161_v16  ;;  %v20902_v16 = vld [vmem:[%s22195_s24 + $0x105c] ss:$40 sps:$4 sm:$0xff]   ;;  %v20944_v62 = vld [vmem:[%s22195_s24 + $0x128c] ss:$40 sps:$4 sm:$0xff]  }
 0x638   : > { %12246 = vmatpush1.bf16.msra.mxu0 %v20885_v18  ;;  %v18335_v18 = vadd.f32 %v22870_v50, %v1379_v56  ;;  %v20941_v56 = vld [vmem:[%s22195_s24 + $0x844] ss:$40 sps:$4 sm:$0xff]  }
 0x639   : > { %12160 = vmatpush1.bf16.msra.mxu1 %v20882_v17  ;;  %12247 = vmatprep.subr.bf16.mxu0 %v20893_v20 }
 0x63a   : > { %12161 = vmatprep.subr.bf16.mxu1 %v20890_v19 }
 0x63c   : > { %12248 = vmatpush1.bf16.msra.mxu0 %v20891_v21  ;;  %v20923_v21 = vld [vmem:[%s22195_s24 + $0x754] ss:$40 sps:$4 sm:$0xff]  }
 0x63d   : > { %12162 = vmatpush1.bf16.msra.mxu1 %v20888_v11  ;;  %12249 = vmatprep.subr.bf16.mxu0 %v20899_v34 }
 0x63e   : > { %12163 = vmatprep.subr.bf16.mxu1 %v20896_v9 }
 0x640   : > { %12250 = vmatpush1.bf16.msra.mxu0 %v20897_v45  ;;  %v20918_v45 = vld [vmem:[%s22195_s24 + $0x1148] ss:$40 sps:$4 sm:$0xff]  }
 0x641   : > { %12164 = vmatpush1.bf16.msra.mxu1 %v20894_v36  ;;  %12251 = vmatprep.subr.bf16.mxu0 %v20905_v37  ;;  %v20926_v37 = vld [vmem:[%s22195_s24 + $0x119c] ss:$40 sps:$4 sm:$0xff]  }
 0x642   : > { %12165 = vmatprep.subr.bf16.mxu1 %v20902_v16  ;;  %v20921_v16 = vld [vmem:[%s22195_s24 + $0x750] ss:$40 sps:$4 sm:$0xff]  }
 0x644   : > { %12252 = vmatpush1.bf16.msra.mxu0 %v20903_v40  ;;  %v20927_v40 = vld [vmem:[%s22195_s24 + $0x7a0] ss:$40 sps:$4 sm:$0xff]  }
 0x645   : > { %12166 = vmatpush1.bf16.msra.mxu1 %v20900_v55  ;;  %12253 = vmatprep.subr.bf16.mxu0 %v20911_v41  ;;  %v20924_v55 = vld [vmem:[%s22195_s24 + $0x1198] ss:$40 sps:$4 sm:$0xff]   ;;  %v20935_v41 = vld [vmem:[%s22195_s24 + $0x7f4] ss:$40 sps:$4 sm:$0xff]  }
 0x646   : > { %12167 = vmatprep.subr.bf16.mxu1 %v20908_v63  ;;  %v20932_v63 = vld [vmem:[%s22195_s24 + $0x11ec] ss:$40 sps:$4 sm:$0xff]  }
 0x647   : > { %v11847_v3 = vpop.f32.mrb[12].mxu1 }
 0x648   : > { %v18353_v14 = vadd.f32 %v11847_v3, %v8233_v27  ;;  %v11849_v15 = vpop.f32.mrb[13].mxu1  ;;  %12254 = vmatpush1.bf16.msra.mxu0 %v20909_v53  ;;  %v20933_v53 = vld [vmem:[%s22195_s24 + $0x7f0] ss:$40 sps:$4 sm:$0xff]   ;;  %v20950_v3 = vld [vmem:[%s22195_s24 + $0x12dc] ss:$40 sps:$4 sm:$0xff]  }
 0x649   : > { %v18354_v58 = vadd.f32 %v11849_v15, %v8237_v0  ;;  %v11851_v17 = vpop.f32.mrb[14].mxu1  ;;  %12168 = vmatpush1.bf16.msra.mxu1 %v20906_v43  ;;  %12255 = vmatprep.subr.bf16.mxu0 %v20917_v2  ;;  %v20930_v43 = vld [vmem:[%s22195_s24 + $0x11e8] ss:$40 sps:$4 sm:$0xff]   ;;  %v20959_v15 = vld [vmem:[%s22195_s24 + $0x934] ss:$40 sps:$4 sm:$0xff]  }
 0x64a   : > { %v24006_v19 = vmul.f32 %v18353_v14, %v18333_v13  ;;  %v18355_v20 = vadd.f32 %v11851_v17, %v8233_v27  ;;  %v11853_v11 = vpop.f32.mrb[15].mxu1  ;;  %12169 = vmatprep.subr.bf16.mxu1 %v20914_v1  ;;  %v20939_v27 = vld [vmem:[%s22195_s24 + $0x840] ss:$40 sps:$4 sm:$0xff]   ;;  %v20945_v2 = vld [vmem:[%s22195_s24 + $0x890] ss:$40 sps:$4 sm:$0xff]  }
 0x64b   : > { %v24011_v9 = vmul.f32 %v18354_v58, %v18334_v57  ;;  %v18356_v34 = vadd.f32 %v11853_v11, %v8237_v0  ;;  %v20947_v0 = vld [vmem:[%s22195_s24 + $0x894] ss:$40 sps:$4 sm:$0xff]   ;;  %v20942_v1 = vld [vmem:[%s22195_s24 + $0x1288] ss:$40 sps:$4 sm:$0xff]  }
 0x64c   : > { %v24013_v36 = vmul.f32 %v18355_v20, %v18335_v18  ;;  %12256 = vmatpush1.bf16.msra.mxu0 %v20915_v8  ;;  %v20948_v8 = vld [vmem:[%s22195_s24 + $0x12d8] ss:$40 sps:$4 sm:$0xff]   ;;  %v20956_v14 = vld [vmem:[%s22195_s24 + $0x132c] ss:$40 sps:$4 sm:$0xff]   ;;  %v20954_v57 = vld [vmem:[%s22195_s24 + $0x1328] ss:$40 sps:$4 sm:$0xff]  }
 0x64d   : > { %v24015_v50 = vmul.f32 %v18356_v34, %v18336_v48  ;;  %12170 = vmatpush1.bf16.msra.mxu1 %v20912_v7  ;;  %12257 = vmatprep.subr.bf16.mxu0 %v20923_v21  ;;  %v20953_v7 = vld [vmem:[%s22195_s24 + $0x8e4] ss:$40 sps:$4 sm:$0xff]   ;;  %v20951_v13 = vld [vmem:[%s22195_s24 + $0x8e0] ss:$40 sps:$4 sm:$0xff]   ;;  %v20957_v58 = vld [vmem:[%s22195_s24 + $0x930] ss:$40 sps:$4 sm:$0xff]  }
 0x64e   : > { %12171 = vmatprep.subr.bf16.mxu1 %v20920_v46  ;;  %v20962_v17 = vld [vmem:[%s22195_s24 + $0x137c] ss:$40 sps:$4 sm:$0xff]   ;;  %v20960_v20 = vld [vmem:[%s22195_s24 + $0x1378] ss:$40 sps:$4 sm:$0xff]   ;;  %v20968_v46 = vld [vmem:[%s22195_s24 + $0x13cc] ss:$40 sps:$4 sm:$0xff]  }
 0x64f   : > { %v20965_v18 = vld [vmem:[%s22195_s24 + $0x984] ss:$40 sps:$4 sm:$0xff]   ;;  %v20963_v11 = vld [vmem:[%s22195_s24 + $0x980] ss:$40 sps:$4 sm:$0xff]   ;;  %v20971_v21 = vld [vmem:[%s22195_s24 + $0x9d4] ss:$40 sps:$4 sm:$0xff]  }
 0x650   : > { %12258 = vmatpush1.bf16.msra.mxu0 %v20921_v16  ;;  %v20966_v48 = vld [vmem:[%s22195_s24 + $0x13c8] ss:$40 sps:$4 sm:$0xff]   ;;  %v20977_v16 = vld [vmem:[%s23895_s17 + $0x4] ss:$40 sps:$4 sm:$0xff]  }
 0x651   : > { %12172 = vmatpush1.bf16.msra.mxu1 %v20918_v45  ;;  %12259 = vmatprep.subr.bf16.mxu0 %v20929_v54  ;;  %v20969_v34 = vld [vmem:[%s22195_s24 + $0x9d0] ss:$40 sps:$4 sm:$0xff]   ;;  %v20974_v45 = vld [vmem:[%s22195_s24 + $0xa24] ss:$40 sps:$4 sm:$0xff]   ;;  %v20975_v54 = vld [vmem:[%s23895_s17] ss:$40 sps:$4 sm:$0xff]  }
 0x652   : > { %12173 = vmatprep.subr.bf16.mxu1 %v20926_v37  ;;  %v20972_v37 = vld [vmem:[%s22195_s24 + $0xa20] ss:$40 sps:$4 sm:$0xff]  }
 0x654   : > { %12260 = vmatpush1.bf16.msra.mxu0 %v20927_v40  ;;  %v20983_v40 = vld [vmem:[%s23895_s17 + $0x54] ss:$40 sps:$4 sm:$0xff]  }
 0x655   : > { %12174 = vmatpush1.bf16.msra.mxu1 %v20924_v55  ;;  %12261 = vmatprep.subr.bf16.mxu0 %v20935_v41  ;;  %v20980_v55 = vld [vmem:[%s22195_s24 + $0xa74] ss:$40 sps:$4 sm:$0xff]   ;;  %v20978_v41 = vld [vmem:[%s22195_s24 + $0xa70] ss:$40 sps:$4 sm:$0xff]  }
 0x656   : > { %12175 = vmatprep.subr.bf16.mxu1 %v20932_v63  ;;  %v21071_v63 = vld [vmem:[%s24842_s2 + $0x4] ss:$24 sps:$4 sm:$0xff]  }
 0x658   : > { %12262 = vmatpush1.bf16.msra.mxu0 %v20933_v53  ;;  %v20986_v53 = vld [vmem:[%s22195_s24 + $0xac4] ss:$40 sps:$4 sm:$0xff]  }
 0x659   : > { %12176 = vmatpush1.bf16.msra.mxu1 %v20930_v43  ;;  %12263 = vmatprep.subr.bf16.mxu0 %v20941_v56  ;;  %v20981_v43 = vld [vmem:[%s23895_s17 + $0x50] ss:$40 sps:$4 sm:$0xff]   ;;  %v20987_v56 = vld [vmem:[%s23895_s17 + $0xa0] ss:$40 sps:$4 sm:$0xff]  }
 0x65a   : > { %12177 = vmatprep.subr.bf16.mxu1 %v20938_v44  ;;  %v20989_v44 = vld [vmem:[%s23895_s17 + $0xa4] ss:$40 sps:$4 sm:$0xff]  }
 0x65c   : > { %12264 = vmatpush1.bf16.msra.mxu0 %v20939_v27  ;;  %v20995_v27 = vld [vmem:[%s23895_s17 + $0xf4] ss:$40 sps:$4 sm:$0xff]  }
 0x65d   : > { %12178 = vmatpush1.bf16.msra.mxu1 %v20936_v59  ;;  %12265 = vmatprep.subr.bf16.mxu0 %v20947_v0  ;;  %v20992_v59 = vld [vmem:[%s22195_s24 + $0xb14] ss:$40 sps:$4 sm:$0xff]   ;;  %v20998_v0 = vld [vmem:[%s22195_s24 + $0xb64] ss:$40 sps:$4 sm:$0xff]  }
 0x65e   : > { %12179 = vmatprep.subr.bf16.mxu1 %v20944_v62  ;;  %v20990_v62 = vld [vmem:[%s22195_s24 + $0xb10] ss:$40 sps:$4 sm:$0xff]  }
 0x660   : > { %12266 = vmatpush1.bf16.msra.mxu0 %v20945_v2  ;;  %v20996_v2 = vld [vmem:[%s22195_s24 + $0xb60] ss:$40 sps:$4 sm:$0xff]  }
 0x661   : > { %12180 = vmatpush1.bf16.msra.mxu1 %v20942_v1  ;;  %12267 = vmatprep.subr.bf16.mxu0 %v20953_v7  ;;  %v21001_v1 = vld [vmem:[%s23895_s17 + $0x144] ss:$40 sps:$4 sm:$0xff]   ;;  %v21004_v7 = vld [vmem:[%s22195_s24 + $0xbb4] ss:$40 sps:$4 sm:$0xff]  }
 0x662   : > { %12181 = vmatprep.subr.bf16.mxu1 %v20950_v3  ;;  %v20999_v3 = vld [vmem:[%s23895_s17 + $0x140] ss:$40 sps:$4 sm:$0xff]  }
 0x664   : > { %12268 = vmatpush1.bf16.msra.mxu0 %v20951_v13  ;;  %v21002_v13 = vld [vmem:[%s22195_s24 + $0xbb0] ss:$40 sps:$4 sm:$0xff]  }
 0x665   : > { %12182 = vmatpush1.bf16.msra.mxu1 %v20948_v8  ;;  %12269 = vmatprep.subr.bf16.mxu0 %v20959_v15  ;;  %v21007_v8 = vld [vmem:[%s23895_s17 + $0x194] ss:$40 sps:$4 sm:$0xff]   ;;  %v21010_v15 = vld [vmem:[%s22195_s24 + $0xc04] ss:$40 sps:$4 sm:$0xff]  }
 0x666   : > { %12183 = vmatprep.subr.bf16.mxu1 %v20956_v14  ;;  %v21005_v14 = vld [vmem:[%s23895_s17 + $0x190] ss:$40 sps:$4 sm:$0xff]  }
 0x668   : > { %12270 = vmatpush1.bf16.msra.mxu0 %v20957_v58  ;;  %v21008_v58 = vld [vmem:[%s22195_s24 + $0xc00] ss:$40 sps:$4 sm:$0xff]  }
 0x669   : > { %12184 = vmatpush1.bf16.msra.mxu1 %v20954_v57  ;;  %12271 = vmatprep.subr.bf16.mxu0 %v20965_v18  ;;  %v21013_v57 = vld [vmem:[%s23895_s17 + $0x1e4] ss:$40 sps:$4 sm:$0xff]   ;;  %v21016_v18 = vld [vmem:[%s22195_s24 + $0xc54] ss:$40 sps:$4 sm:$0xff]  }
 0x66a   : > { %12185 = vmatprep.subr.bf16.mxu1 %v20962_v17  ;;  %v21011_v17 = vld [vmem:[%s23895_s17 + $0x1e0] ss:$40 sps:$4 sm:$0xff]  }
 0x66c   : > { %12272 = vmatpush1.bf16.msra.mxu0 %v20963_v11  ;;  %v21014_v11 = vld [vmem:[%s22195_s24 + $0xc50] ss:$40 sps:$4 sm:$0xff]  }
 0x66d   : > { %12186 = vmatpush1.bf16.msra.mxu1 %v20960_v20  ;;  %12273 = vmatprep.subr.bf16.mxu0 %v20971_v21  ;;  %v21019_v20 = vld [vmem:[%s23895_s17 + $0x234] ss:$40 sps:$4 sm:$0xff]   ;;  %v21022_v21 = vld [vmem:[%s22195_s24 + $0xca4] ss:$40 sps:$4 sm:$0xff]  }
 0x66e   : > { %12187 = vmatprep.subr.bf16.mxu1 %v20968_v46  ;;  %v21017_v46 = vld [vmem:[%s23895_s17 + $0x230] ss:$40 sps:$4 sm:$0xff]  }
 0x670   : > { %12274 = vmatpush1.bf16.msra.mxu0 %v20969_v34  ;;  %v21020_v34 = vld [vmem:[%s22195_s24 + $0xca0] ss:$40 sps:$4 sm:$0xff]  }
 0x671   : > { %12188 = vmatpush1.bf16.msra.mxu1 %v20966_v48  ;;  %12286 = vmatprep.subr.bf16.mxu0 %v20974_v45  ;;  %v21025_v48 = vld [vmem:[%s23895_s17 + $0x284] ss:$40 sps:$4 sm:$0xff]   ;;  %v21023_v45 = vld [vmem:[%s23895_s17 + $0x280] ss:$40 sps:$4 sm:$0xff]  }
 0x672   : > { %15344 = vmatprep.subr.bf16.mxu1 %v20977_v16  ;;  %v21028_v16 = vld [vmem:[%s22195_s24 + $0xcf4] ss:$40 sps:$4 sm:$0xff]  }
 0x673   : > { %12276 = vmatmul.mubr.bf16.vlgmr.msra.gmra.mrb[16].mxu0 %v23233_v26  ;;  %v20984_v26 = vld [vmem:[%s22195_s24 + $0xac0] ss:$40 sps:$4 sm:$0xff]  }
 0x674   : > { %12190 = vmatmul.mubr.bf16.vlgmr.msra.gmra.mrb[16].mxu1 %v23429_v10  ;;  %12287 = vmatpush1.bf16.msra.mxu0 %v20972_v37  ;;  %v21031_v37 = vld [vmem:[%s23895_s17 + $0x2d4] ss:$40 sps:$4 sm:$0xff]  }
 0x675   : > { %15345 = vmatpush1.bf16.msra.mxu1 %v20975_v54  ;;  %12288 = vmatprep.subr.bf16.mxu0 %v20980_v55  ;;  %v21026_v54 = vld [vmem:[%s22195_s24 + $0xcf0] ss:$40 sps:$4 sm:$0xff]  }
 0x676   : > { %15346 = vmatprep.subr.bf16.mxu1 %v20983_v40  ;;  %12318 = vmatprep.mubr.bf16.mxu0 %v23251_v31  ;;  %v20993_v31 = vld [vmem:[%s23895_s17 + $0xf0] ss:$40 sps:$4 sm:$0xff]   ;;  %v21034_v40 = vld [vmem:[%s22195_s24 + $0xd44] ss:$40 sps:$4 sm:$0xff]  }
 0x677   : > { %15376 = vmatprep.mubr.bf16.mxu1 %v21071_v63  ;;  %v21029_v55 = vld [vmem:[%s23895_s17 + $0x2d0] ss:$40 sps:$4 sm:$0xff]   ;;  %v21037_v63 = vld [vmem:[%s23895_s17 + $0x324] ss:$40 sps:$4 sm:$0xff]  }
 0x678   : > { %12289 = vmatpush1.bf16.msra.mxu0 %v20978_v41  ;;  %v21032_v41 = vld [vmem:[%s22195_s24 + $0xd40] ss:$40 sps:$4 sm:$0xff]  }
 0x679   : > { %15347 = vmatpush1.bf16.msra.mxu1 %v20981_v43  ;;  %12290 = vmatprep.subr.bf16.mxu0 %v20986_v53  ;;  %v21035_v43 = vld [vmem:[%s23895_s17 + $0x320] ss:$40 sps:$4 sm:$0xff]   ;;  %v21040_v53 = vld [vmem:[%s22195_s24 + $0xd94] ss:$40 sps:$4 sm:$0xff]  }
 0x67a   : > { %15348 = vmatprep.subr.bf16.mxu1 %v20989_v44  ;;  %v21043_v44 = vld [vmem:[%s23895_s17 + $0x374] ss:$40 sps:$4 sm:$0xff]  }
 0x67c   : > { %12291 = vmatpush1.bf16.msra.mxu0 %v20984_v26  ;;  %v21038_v26 = vld [vmem:[%s22195_s24 + $0xd90] ss:$40 sps:$4 sm:$0xff]  }
 0x67d   : > { %15349 = vmatpush1.bf16.msra.mxu1 %v20987_v56  ;;  %12292 = vmatprep.subr.bf16.mxu0 %v20992_v59  ;;  %v21041_v56 = vld [vmem:[%s23895_s17 + $0x370] ss:$40 sps:$4 sm:$0xff]   ;;  %v21046_v59 = vld [vmem:[%s22195_s24 + $0xde4] ss:$40 sps:$4 sm:$0xff]  }
 0x67e   : > { %15350 = vmatprep.subr.bf16.mxu1 %v20995_v27  ;;  %v21049_v27 = vld [vmem:[%s23895_s17 + $0x3c4] ss:$40 sps:$4 sm:$0xff]  }
 0x680   : > { %12293 = vmatpush1.bf16.msra.mxu0 %v20990_v62  ;;  %v21044_v62 = vld [vmem:[%s22195_s24 + $0xde0] ss:$40 sps:$4 sm:$0xff]  }
 0x681   : > { %15351 = vmatpush1.bf16.msra.mxu1 %v20993_v31  ;;  %12294 = vmatprep.subr.bf16.mxu0 %v20998_v0  ;;  %v21047_v31 = vld [vmem:[%s23895_s17 + $0x3c0] ss:$40 sps:$4 sm:$0xff]   ;;  %v21052_v0 = vld [vmem:[%s22195_s24 + $0xe34] ss:$40 sps:$4 sm:$0xff]  }
 0x682   : > { %15352 = vmatprep.subr.bf16.mxu1 %v21001_v1  ;;  %v21055_v1 = vld [vmem:[%s23895_s17 + $0x414] ss:$40 sps:$4 sm:$0xff]  }
 0x684   : > { %12295 = vmatpush1.bf16.msra.mxu0 %v20996_v2  ;;  %v21050_v2 = vld [vmem:[%s22195_s24 + $0xe30] ss:$40 sps:$4 sm:$0xff]  }
 0x685   : > { %15353 = vmatpush1.bf16.msra.mxu1 %v20999_v3  ;;  %12296 = vmatprep.subr.bf16.mxu0 %v21004_v7  ;;  %v21053_v3 = vld [vmem:[%s23895_s17 + $0x410] ss:$40 sps:$4 sm:$0xff]   ;;  %v21058_v7 = vld [vmem:[%s22195_s24 + $0xe84] ss:$40 sps:$4 sm:$0xff]  }
 0x686   : > { %15354 = vmatprep.subr.bf16.mxu1 %v21007_v8  ;;  %v21061_v8 = vld [vmem:[%s23895_s17 + $0x464] ss:$40 sps:$4 sm:$0xff]  }
 0x688   : > { %12297 = vmatpush1.bf16.msra.mxu0 %v21002_v13  ;;  %v21056_v13 = vld [vmem:[%s22195_s24 + $0xe80] ss:$40 sps:$4 sm:$0xff]  }
 0x689   : > { %15355 = vmatpush1.bf16.msra.mxu1 %v21005_v14  ;;  %12298 = vmatprep.subr.bf16.mxu0 %v21010_v15  ;;  %v21059_v14 = vld [vmem:[%s23895_s17 + $0x460] ss:$40 sps:$4 sm:$0xff]   ;;  %v21064_v15 = vld [vmem:[%s22195_s24 + $0xed4] ss:$40 sps:$4 sm:$0xff]  }
 0x68a   : > { %15356 = vmatprep.subr.bf16.mxu1 %v21013_v57  ;;  %v21067_v57 = vld [vmem:[%s23895_s17 + $0x4b4] ss:$40 sps:$4 sm:$0xff]  }
 0x68c   : > { %12299 = vmatpush1.bf16.msra.mxu0 %v21008_v58  ;;  %v21062_v58 = vld [vmem:[%s22195_s24 + $0xed0] ss:$40 sps:$4 sm:$0xff]  }
 0x68d   : > { %15357 = vmatpush1.bf16.msra.mxu1 %v21011_v17  ;;  %12300 = vmatprep.subr.bf16.mxu0 %v21016_v18  ;;  %v21065_v17 = vld [vmem:[%s23895_s17 + $0x4b0] ss:$40 sps:$4 sm:$0xff]   ;;  %v21070_v18 = vld [vmem:[%s22195_s24 + $0xf24] ss:$40 sps:$4 sm:$0xff]  }
 0x68e   : > { %15358 = vmatprep.subr.bf16.mxu1 %v21019_v20  ;;  %v21075_v20 = vld [vmem:[%s23895_s17 + $0x504] ss:$40 sps:$4 sm:$0xff]  }
 0x690   : > { %12301 = vmatpush1.bf16.msra.mxu0 %v21014_v11  ;;  %v24126_v11 = vld [vmem:[%s24842_s2] ss:$24 sps:$4 sm:$0xff]  }
 0x691   : > { %15359 = vmatpush1.bf16.msra.mxu1 %v21017_v46  ;;  %12302 = vmatprep.subr.bf16.mxu0 %v21022_v21  ;;  %v21068_v46 = vld [vmem:[%s22195_s24 + $0xf20] ss:$40 sps:$4 sm:$0xff]  }
 0x692   : > { %15360 = vmatprep.subr.bf16.mxu1 %v21025_v48  ;;  %v21073_v21 = vld [vmem:[%s23895_s17 + $0x500] ss:$40 sps:$4 sm:$0xff]   ;;  %v21079_v48 = vld [vmem:[%s22195_s24 + $0xf74] ss:$40 sps:$4 sm:$0xff]  }
 0x694   : > { %12303 = vmatpush1.bf16.msra.mxu0 %v21020_v34  ;;  %v21082_v34 = vld [vmem:[%s23895_s17 + $0x554] ss:$40 sps:$4 sm:$0xff]  }
 0x695   : > { %15361 = vmatpush1.bf16.msra.mxu1 %v21023_v45  ;;  %12304 = vmatprep.subr.bf16.mxu0 %v21028_v16  ;;  %v24135_v45 = vld [vmem:[%s24842_s2 + $0xc] ss:$24 sps:$4 sm:$0xff]   ;;  %v21077_v16 = vld [vmem:[%s22195_s24 + $0xf70] ss:$40 sps:$4 sm:$0xff]  }
 0x696   : > { %15362 = vmatprep.subr.bf16.mxu1 %v21031_v37  ;;  %v21080_v37 = vld [vmem:[%s23895_s17 + $0x550] ss:$40 sps:$4 sm:$0xff]  }
 0x698   : > { %12305 = vmatpush1.bf16.msra.mxu0 %v21026_v54  ;;  %v21085_v54 = vld [vmem:[%s22195_s24 + $0xfc4] ss:$40 sps:$4 sm:$0xff]  }
 0x699   : > { %15363 = vmatpush1.bf16.msra.mxu1 %v21029_v55  ;;  %12306 = vmatprep.subr.bf16.mxu0 %v21034_v40  ;;  %v21088_v55 = vld [vmem:[%s23895_s17 + $0x5a4] ss:$40 sps:$4 sm:$0xff]   ;;  %v21086_v40 = vld [vmem:[%s23895_s17 + $0x5a0] ss:$40 sps:$4 sm:$0xff]  }
 0x69a   : > { %15364 = vmatprep.subr.bf16.mxu1 %v21037_v63  ;;  %v21091_v63 = vld [vmem:[%s22195_s24 + $0x1014] ss:$40 sps:$4 sm:$0xff]  }
 0x69c   : > { %12307 = vmatpush1.bf16.msra.mxu0 %v21032_v41  ;;  %v21094_v41 = vld [vmem:[%s23895_s17 + $0x5f4] ss:$40 sps:$4 sm:$0xff]  }
 0x69d   : > { %15365 = vmatpush1.bf16.msra.mxu1 %v21035_v43  ;;  %12308 = vmatprep.subr.bf16.mxu0 %v21040_v53  ;;  %v21089_v43 = vld [vmem:[%s22195_s24 + $0x1010] ss:$40 sps:$4 sm:$0xff]   ;;  %v21097_v53 = vld [vmem:[%s22195_s24 + $0x1064] ss:$40 sps:$4 sm:$0xff]  }
 0x69e   : > { %15366 = vmatprep.subr.bf16.mxu1 %v21043_v44  ;;  %v21100_v44 = vld [vmem:[%s23895_s17 + $0x644] ss:$40 sps:$4 sm:$0xff]  }
 0x6a0   : > { %12309 = vmatpush1.bf16.msra.mxu0 %v21038_v26  ;;  %v24154_v26 = vsub.s32 4, %v23663_v42 }
 0x6a1   : > { %15367 = vmatpush1.bf16.msra.mxu1 %v21041_v56  ;;  %12310 = vmatprep.subr.bf16.mxu0 %v21046_v59  ;;  %v24157_v56 = vsub.s32 5, %v23663_v42  ;;  %v21095_v59 = vld [vmem:[%s22195_s24 + $0x1060] ss:$40 sps:$4 sm:$0xff]  }
 0x6a2   : > { %15368 = vmatprep.subr.bf16.mxu1 %v21049_v27  ;;  %v21098_v27 = vld [vmem:[%s23895_s17 + $0x640] ss:$40 sps:$4 sm:$0xff]  }
 0x6a4   : > { %12311 = vmatpush1.bf16.msra.mxu0 %v21044_v62  ;;  %v21103_v62 = vld [vmem:[%s22195_s24 + $0x10b4] ss:$40 sps:$4 sm:$0xff]  }
 0x6a5   : > { %15369 = vmatpush1.bf16.msra.mxu1 %v21047_v31  ;;  %12312 = vmatprep.subr.bf16.mxu0 %v21052_v0  ;;  %v21106_v31 = vld [vmem:[%s23895_s17 + $0x694] ss:$40 sps:$4 sm:$0xff]   ;;  %v21101_v0 = vld [vmem:[%s22195_s24 + $0x10b0] ss:$40 sps:$4 sm:$0xff]  }
 0x6a6   : > { %15370 = vmatprep.subr.bf16.mxu1 %v21055_v1  ;;  %v21104_v1 = vld [vmem:[%s23895_s17 + $0x690] ss:$40 sps:$4 sm:$0xff]  }
 0x6a8   : > { %12313 = vmatpush1.bf16.msra.mxu0 %v21050_v2  ;;  %v24166_v2 = vld [vmem:[%s23668_s16] ss:$4 sm:$0xff] }
 0x6a9   : > { %15371 = vmatpush1.bf16.msra.mxu1 %v21053_v3  ;;  %12314 = vmatprep.subr.bf16.mxu0 %v21058_v7  ;;  %v1387_v3 = vrot.slane %v24166_v2, %v24154_v26  ;;  %v24171_v7 = vld [vmem:[%s23668_s16 + $0x1] ss:$4 sm:$0xff] }
 0x6aa   : > { %15372 = vmatprep.subr.bf16.mxu1 %v21061_v8  ;;  %v8241_v8 = vrot.slane %v24171_v7, %v24154_v26 }
 0x6ac   : > { %12315 = vmatpush1.bf16.msra.mxu0 %v21056_v13  ;;  %v1391_v13 = vrot.slane %v24166_v2, %v24157_v56 }
 0x6ad   : > { %15373 = vmatpush1.bf16.msra.mxu1 %v21059_v14  ;;  %12316 = vmatprep.subr.bf16.mxu0 %v21064_v15  ;;  %v8245_v14 = vrot.slane %v24171_v7, %v24157_v56  ;;  %v21109_v15 = vld [vmem:[%s22195_s24 + $0x1104] ss:$40 sps:$4 sm:$0xff]  }
 0x6ae   : > { %15374 = vmatprep.subr.bf16.mxu1 %v21067_v57  ;;  %v21112_v57 = vld [vmem:[%s23895_s17 + $0x6e4] ss:$40 sps:$4 sm:$0xff]  }
 0x6b0   : > { %12317 = vmatpush1.bf16.msra.mxu0 %v21062_v58 }
 0x6b1   : > { %15375 = vmatpush1.bf16.msra.mxu1 %v21065_v17  ;;  %12329 = vmatprep.subr.bf16.mxu0 %v21070_v18  ;;  %v21107_v17 = vld [vmem:[%s22195_s24 + $0x1100] ss:$40 sps:$4 sm:$0xff]  }
 0x6b2   : > { %15387 = vmatprep.subr.bf16.mxu1 %v21075_v20  ;;  %v21110_v18 = vld [vmem:[%s23895_s17 + $0x6e0] ss:$40 sps:$4 sm:$0xff]   ;;  %v18337_v20 = vadd.f32 %v23371_v22, %v1387_v3  ;;  %v21115_v22 = vld [vmem:[%s22195_s24 + $0x1154] ss:$40 sps:$4 sm:$0xff]  }
 0x6b3   : > { %12319 = vmatmul.mubr.bf16.vlgmr.msra.gmra.mrb[16].mxu0 %v23323_v51  ;;  %v21083_v51 = vld [vmem:[%s22195_s24 + $0xfc0] ss:$40 sps:$4 sm:$0xff]  }
 0x6b4   : > { %15377 = vmatmul.mubr.bf16.vlgmr.msra.gmra.mrb[20].mxu1 %v24126_v11  ;;  %12330 = vmatpush1.bf16.msra.mxu0 %v21068_v46 }
 0x6b5   : > { %15388 = vmatpush1.bf16.msra.mxu1 %v21073_v21  ;;  %12331 = vmatprep.subr.bf16.mxu0 %v21079_v48  ;;  %v18338_v48 = vadd.f32 %v23375_v24, %v1391_v13  ;;  %v18340_v24 = vadd.f32 %v23385_v32, %v1391_v13  ;;  %v21124_v32 = vld [vmem:[%s23895_s17 + $0x784] ss:$40 sps:$4 sm:$0xff]   ;;  %v21131_v13 = vld [vmem:[%s22195_s24 + $0x1240] ss:$40 sps:$4 sm:$0xff]  }
 0x6b6   : > { %15389 = vmatprep.subr.bf16.mxu1 %v21082_v34  ;;  %12361 = vmatprep.mubr.bf16.mxu0 %v23341_v60  ;;  %v21092_v60 = vld [vmem:[%s23895_s17 + $0x5f0] ss:$40 sps:$4 sm:$0xff]  }
 0x6b7   : > { %15419 = vmatprep.mubr.bf16.mxu1 %v24135_v45 }
 0x6b8   : > { %12332 = vmatpush1.bf16.msra.mxu0 %v21077_v16 }
 0x6b9   : > { %15390 = vmatpush1.bf16.msra.mxu1 %v21080_v37  ;;  %12333 = vmatprep.subr.bf16.mxu0 %v21085_v54  ;;  %v18339_v37 = vadd.f32 %v23379_v29, %v1387_v3  ;;  %v21133_v3 = vld [vmem:[%s22195_s24 + $0x1244] ss:$40 sps:$4 sm:$0xff]  }
 0x6ba   : > { %15391 = vmatprep.subr.bf16.mxu1 %v21088_v55 }
 0x6bc   : > { %12334 = vmatpush1.bf16.msra.mxu0 %v21083_v51 }
 0x6bd   : > { %15392 = vmatpush1.bf16.msra.mxu1 %v21086_v40  ;;  %12335 = vmatprep.subr.bf16.mxu0 %v21091_v63  ;;  %v21118_v40 = vld [vmem:[%s23895_s17 + $0x734] ss:$40 sps:$4 sm:$0xff]  }
 0x6be   : > { %15393 = vmatprep.subr.bf16.mxu1 %v21094_v41 }
 0x6c0   : > { %12336 = vmatpush1.bf16.msra.mxu0 %v21089_v43 }
 0x6c1   : > { %15394 = vmatpush1.bf16.msra.mxu1 %v21092_v60  ;;  %12337 = vmatprep.subr.bf16.mxu0 %v21097_v53  ;;  %v21113_v60 = vld [vmem:[%s22195_s24 + $0x1150] ss:$40 sps:$4 sm:$0xff]  }
 0x6c2   : > { %15395 = vmatprep.subr.bf16.mxu1 %v21100_v44  ;;  %v21116_v53 = vld [vmem:[%s23895_s17 + $0x730] ss:$40 sps:$4 sm:$0xff]   ;;  %v21121_v44 = vld [vmem:[%s22195_s24 + $0x11a4] ss:$40 sps:$4 sm:$0xff]  }
 0x6c4   : > { %12338 = vmatpush1.bf16.msra.mxu0 %v21095_v59  ;;  %v21119_v59 = vld [vmem:[%s22195_s24 + $0x11a0] ss:$40 sps:$4 sm:$0xff]  }
 0x6c5   : > { %15396 = vmatpush1.bf16.msra.mxu1 %v21098_v27  ;;  %12339 = vmatprep.subr.bf16.mxu0 %v21103_v62  ;;  %v21122_v27 = vld [vmem:[%s23895_s17 + $0x780] ss:$40 sps:$4 sm:$0xff]   ;;  %v21127_v62 = vld [vmem:[%s22195_s24 + $0x11f4] ss:$40 sps:$4 sm:$0xff]  }
 0x6c6   : > { %15397 = vmatprep.subr.bf16.mxu1 %v21106_v31  ;;  %v12019_v58 = vpop.f32.mrb[12].mxu0  ;;  %v21130_v31 = vld [vmem:[%s23895_s17 + $0x7d4] ss:$40 sps:$4 sm:$0xff]  }
 0x6c7   : > { %v18357_v46 = vadd.f32 %v12019_v58, %v8241_v8  ;;  %v12021_v21 = vpop.f32.mrb[13].mxu0  ;;  %v21137_v58 = vld [vmem:[%s22195_s24 + $0x1290] ss:$40 sps:$4 sm:$0xff]  }
 0x6c8   : > { %v18358_v34 = vadd.f32 %v12021_v21, %v8245_v14  ;;  %v12023_v16 = vpop.f32.mrb[14].mxu0  ;;  %12340 = vmatpush1.bf16.msra.mxu0 %v21101_v0  ;;  %v21125_v0 = vld [vmem:[%s22195_s24 + $0x11f0] ss:$40 sps:$4 sm:$0xff]   ;;  %v21146_v21 = vld [vmem:[%s23895_s17 + $0x8c0] ss:$40 sps:$4 sm:$0xff]  }
 0x6c9   : > { %15398 = vmatpush1.bf16.msra.mxu1 %v21104_v1  ;;  %v24186_v54 = vmul.f32 %v18357_v46, %v18337_v20  ;;  %v18359_v55 = vadd.f32 %v12023_v16, %v8241_v8  ;;  %v12025_v51 = vpop.f32.mrb[15].mxu0  ;;  %12341 = vmatprep.subr.bf16.mxu0 %v21109_v15  ;;  %v21128_v1 = vld [vmem:[%s23895_s17 + $0x7d0] ss:$40 sps:$4 sm:$0xff]   ;;  %v21136_v8 = vld [vmem:[%s23895_s17 + $0x824] ss:$40 sps:$4 sm:$0xff]  }
 0x6ca   : > { %15399 = vmatprep.subr.bf16.mxu1 %v21112_v57  ;;  %v24191_v63 = vmul.f32 %v18358_v34, %v18338_v48  ;;  %v18360_v41 = vadd.f32 %v12025_v51, %v8245_v14  ;;  %v21134_v14 = vld [vmem:[%s23895_s17 + $0x820] ss:$40 sps:$4 sm:$0xff]   ;;  %v21139_v15 = vld [vmem:[%s22195_s24 + $0x1294] ss:$40 sps:$4 sm:$0xff]   ;;  %v21148_v20 = vld [vmem:[%s23895_s17 + $0x8c4] ss:$40 sps:$4 sm:$0xff]  }
 0x6cb   : > { %v24193_v43 = vmul.f32 %v18359_v55, %v18339_v37  ;;  %v21142_v57 = vld [vmem:[%s23895_s17 + $0x874] ss:$40 sps:$4 sm:$0xff]   ;;  %v21143_v46 = vld [vmem:[%s22195_s24 + $0x12e0] ss:$40 sps:$4 sm:$0xff]   ;;  %v21149_v16 = vld [vmem:[%s22195_s24 + $0x1330] ss:$40 sps:$4 sm:$0xff]  }
 0x6cc   : > { %v24195_v29 = vmul.f32 %v18360_v41, %v18340_v24  ;;  %12342 = vmatpush1.bf16.msra.mxu0 %v21107_v17  ;;  %v21140_v17 = vld [vmem:[%s23895_s17 + $0x870] ss:$40 sps:$4 sm:$0xff]   ;;  %v21151_v48 = vld [vmem:[%s22195_s24 + $0x1334] ss:$40 sps:$4 sm:$0xff]   ;;  %v21157_v55 = vld [vmem:[%s22195_s24 + $0x1384] ss:$40 sps:$4 sm:$0xff]  }
 0x6cd   : > { %15400 = vmatpush1.bf16.msra.mxu1 %v21110_v18  ;;  %12343 = vmatprep.subr.bf16.mxu0 %v21115_v22  ;;  %v21145_v18 = vld [vmem:[%s22195_s24 + $0x12e4] ss:$40 sps:$4 sm:$0xff]   ;;  %v21154_v34 = vld [vmem:[%s23895_s17 + $0x914] ss:$40 sps:$4 sm:$0xff]   ;;  %v21152_v37 = vld [vmem:[%s23895_s17 + $0x910] ss:$40 sps:$4 sm:$0xff]  }
 0x6ce   : > { %15401 = vmatprep.subr.bf16.mxu1 %v21118_v40  ;;  %v21160_v51 = vld [vmem:[%s23895_s17 + $0x964] ss:$40 sps:$4 sm:$0xff]   ;;  %v21155_v22 = vld [vmem:[%s22195_s24 + $0x1380] ss:$40 sps:$4 sm:$0xff]   ;;  %v21163_v24 = vld [vmem:[%s22195_s24 + $0x13d4] ss:$40 sps:$4 sm:$0xff]  }
 0x6cf   : > { %v21158_v40 = vld [vmem:[%s23895_s17 + $0x960] ss:$40 sps:$4 sm:$0xff]   ;;  %v21166_v41 = vld [vmem:[%s23895_s17 + $0x9b4] ss:$40 sps:$4 sm:$0xff]  }
 0x6d0   : > { %12344 = vmatpush1.bf16.msra.mxu0 %v21113_v60  ;;  %v21161_v60 = vld [vmem:[%s22195_s24 + $0x13d0] ss:$40 sps:$4 sm:$0xff]  }
 0x6d1   : > { %15402 = vmatpush1.bf16.msra.mxu1 %v21116_v53  ;;  %12345 = vmatprep.subr.bf16.mxu0 %v21121_v44  ;;  %v21164_v53 = vld [vmem:[%s23895_s17 + $0x9b0] ss:$40 sps:$4 sm:$0xff]   ;;  %v21171_v44 = vld [vmem:[%s23895_s17 + $0xa04] ss:$40 sps:$4 sm:$0xff]  }
 0x6d2   : > { %15403 = vmatprep.subr.bf16.mxu1 %v21124_v32  ;;  %v21174_v32 = vld [vmem:[%s23895_s17 + $0xc] ss:$40 sps:$4 sm:$0xff]  }
 0x6d4   : > { %12346 = vmatpush1.bf16.msra.mxu0 %v21119_v59  ;;  %v24236_v59 = vld [vmem:[%s24842_s2 + $0x8] ss:$24 sps:$4 sm:$0xff]  }
 0x6d5   : > { %15404 = vmatpush1.bf16.msra.mxu1 %v21122_v27  ;;  %12347 = vmatprep.subr.bf16.mxu0 %v21127_v62  ;;  %v21169_v27 = vld [vmem:[%s23895_s17 + $0xa00] ss:$40 sps:$4 sm:$0xff]  }
 0x6d6   : > { %15405 = vmatprep.subr.bf16.mxu1 %v21130_v31  ;;  %v21172_v62 = vld [vmem:[%s23895_s17 + $0x8] ss:$40 sps:$4 sm:$0xff]   ;;  %v21178_v31 = vld [vmem:[%s23895_s17 + $0xa54] ss:$40 sps:$4 sm:$0xff]  }
 0x6d8   : > { %12348 = vmatpush1.bf16.msra.mxu0 %v21125_v0  ;;  %v21181_v0 = vld [vmem:[%s23895_s17 + $0x5c] ss:$40 sps:$4 sm:$0xff]  }
 0x6d9   : > { %15406 = vmatpush1.bf16.msra.mxu1 %v21128_v1  ;;  %12349 = vmatprep.subr.bf16.mxu0 %v21133_v3  ;;  %v24245_v1 = vld [vmem:[%s24842_s2 + $0x14] ss:$24 sps:$4 sm:$0xff]   ;;  %v21176_v3 = vld [vmem:[%s23895_s17 + $0xa50] ss:$40 sps:$4 sm:$0xff]  }
 0x6da   : > { %15407 = vmatprep.subr.bf16.mxu1 %v21136_v8  ;;  %v21179_v8 = vld [vmem:[%s23895_s17 + $0x58] ss:$40 sps:$4 sm:$0xff]  }
 0x6dc   : > { %12350 = vmatpush1.bf16.msra.mxu0 %v21131_v13  ;;  %v21184_v13 = vld [vmem:[%s23895_s17 + $0xaa4] ss:$40 sps:$4 sm:$0xff]  }
 0x6dd   : > { %15408 = vmatpush1.bf16.msra.mxu1 %v21134_v14  ;;  %12351 = vmatprep.subr.bf16.mxu0 %v21139_v15  ;;  %v21187_v14 = vld [vmem:[%s23895_s17 + $0xac] ss:$40 sps:$4 sm:$0xff]   ;;  %v21182_v15 = vld [vmem:[%s23895_s17 + $0xaa0] ss:$40 sps:$4 sm:$0xff]  }
 0x6de   : > { %15409 = vmatprep.subr.bf16.mxu1 %v21142_v57  ;;  %v21185_v57 = vld [vmem:[%s23895_s17 + $0xa8] ss:$40 sps:$4 sm:$0xff]  }
 0x6e0   : > { %12352 = vmatpush1.bf16.msra.mxu0 %v21137_v58  ;;  %v21190_v58 = vld [vmem:[%s23895_s17 + $0xaf4] ss:$40 sps:$4 sm:$0xff]  }
 0x6e1   : > { %15410 = vmatpush1.bf16.msra.mxu1 %v21140_v17  ;;  %12353 = vmatprep.subr.bf16.mxu0 %v21145_v18  ;;  %v21193_v17 = vld [vmem:[%s23895_s17 + $0xfc] ss:$40 sps:$4 sm:$0xff]   ;;  %v21188_v18 = vld [vmem:[%s23895_s17 + $0xaf0] ss:$40 sps:$4 sm:$0xff]  }
 0x6e2   : > { %15411 = vmatprep.subr.bf16.mxu1 %v21148_v20  ;;  %v21191_v20 = vld [vmem:[%s23895_s17 + $0xf8] ss:$40 sps:$4 sm:$0xff]  }
 0x6e4   : > { %12354 = vmatpush1.bf16.msra.mxu0 %v21143_v46  ;;  %v21196_v46 = vld [vmem:[%s23895_s17 + $0xb44] ss:$40 sps:$4 sm:$0xff]  }
 0x6e5   : > { %15412 = vmatpush1.bf16.msra.mxu1 %v21146_v21  ;;  %12355 = vmatprep.subr.bf16.mxu0 %v21151_v48  ;;  %v21199_v21 = vld [vmem:[%s23895_s17 + $0x14c] ss:$40 sps:$4 sm:$0xff]   ;;  %v21194_v48 = vld [vmem:[%s23895_s17 + $0xb40] ss:$40 sps:$4 sm:$0xff]  }
 0x6e6   : > { %15413 = vmatprep.subr.bf16.mxu1 %v21154_v34  ;;  %v21197_v34 = vld [vmem:[%s23895_s17 + $0x148] ss:$40 sps:$4 sm:$0xff]  }
 0x6e8   : > { %12356 = vmatpush1.bf16.msra.mxu0 %v21149_v16  ;;  %v21202_v16 = vld [vmem:[%s23895_s17 + $0xb94] ss:$40 sps:$4 sm:$0xff]  }
 0x6e9   : > { %15414 = vmatpush1.bf16.msra.mxu1 %v21152_v37  ;;  %12357 = vmatprep.subr.bf16.mxu0 %v21157_v55  ;;  %v21205_v37 = vld [vmem:[%s23895_s17 + $0x19c] ss:$40 sps:$4 sm:$0xff]   ;;  %v21200_v55 = vld [vmem:[%s23895_s17 + $0xb90] ss:$40 sps:$4 sm:$0xff]  }
 0x6ea   : > { %15415 = vmatprep.subr.bf16.mxu1 %v21160_v51  ;;  %v21203_v51 = vld [vmem:[%s23895_s17 + $0x198] ss:$40 sps:$4 sm:$0xff]  }
 0x6ec   : > { %12358 = vmatpush1.bf16.msra.mxu0 %v21155_v22  ;;  %v21208_v22 = vld [vmem:[%s23895_s17 + $0xbe4] ss:$40 sps:$4 sm:$0xff]  }
 0x6ed   : > { %15416 = vmatpush1.bf16.msra.mxu1 %v21158_v40  ;;  %12359 = vmatprep.subr.bf16.mxu0 %v21163_v24  ;;  %v21211_v40 = vld [vmem:[%s23895_s17 + $0x1ec] ss:$40 sps:$4 sm:$0xff]   ;;  %v21206_v24 = vld [vmem:[%s23895_s17 + $0xbe0] ss:$40 sps:$4 sm:$0xff]  }
 0x6ee   : > { %15417 = vmatprep.subr.bf16.mxu1 %v21166_v41  ;;  %v21209_v41 = vld [vmem:[%s23895_s17 + $0x1e8] ss:$40 sps:$4 sm:$0xff]  }
 0x6f0   : > { %12360 = vmatpush1.bf16.msra.mxu0 %v21161_v60  ;;  %v21214_v60 = vld [vmem:[%s23895_s17 + $0xc34] ss:$40 sps:$4 sm:$0xff]  }
 0x6f1   : > { %15418 = vmatpush1.bf16.msra.mxu1 %v21164_v53  ;;  %15473 = vmatprep.subr.bf16.mxu0 %v21174_v32  ;;  %v21217_v53 = vld [vmem:[%s23895_s17 + $0x23c] ss:$40 sps:$4 sm:$0xff]   ;;  %v21215_v32 = vld [vmem:[%s23895_s17 + $0x238] ss:$40 sps:$4 sm:$0xff]  }
 0x6f2   : > { %15430 = vmatprep.subr.bf16.mxu1 %v21171_v44  ;;  %v21212_v44 = vld [vmem:[%s23895_s17 + $0xc30] ss:$40 sps:$4 sm:$0xff]  }
 0x6f3   : > { %12362 = vmatmul.mubr.bf16.vlgmr.msra.gmra.mrb[16].mxu0 %v23429_v10  ;;  %v24257_v10 = vld [vmem:[%s24842_s2 + $0x4] ss:$24 sps:$4 sm:$0xff]  }
 0x6f4   : > { %15420 = vmatmul.mubr.bf16.vlgmr.msra.gmra.mrb[20].mxu1 %v24236_v59  ;;  %15474 = vmatpush1.bf16.msra.mxu0 %v21172_v62  ;;  %v21223_v62 = vld [vmem:[%s23895_s17 + $0x28c] ss:$40 sps:$4 sm:$0xff]  }
 0x6f5   : > { %15431 = vmatpush1.bf16.msra.mxu1 %v21169_v27  ;;  %15475 = vmatprep.subr.bf16.mxu0 %v21181_v0  ;;  %v21220_v27 = vld [vmem:[%s23895_s17 + $0xc84] ss:$40 sps:$4 sm:$0xff]   ;;  %v21221_v0 = vld [vmem:[%s23895_s17 + $0x288] ss:$40 sps:$4 sm:$0xff]  }
 0x6f6   : > { %15432 = vmatprep.subr.bf16.mxu1 %v21178_v31  ;;  %15462 = vmatprep.mubr.bf16.mxu1 %v24245_v1  ;;  %v21218_v31 = vld [vmem:[%s23895_s17 + $0xc80] ss:$40 sps:$4 sm:$0xff]  }
 0x6f7   : > { %15505 = vmatprep.mubr.bf16.mxu0 %v24257_v10 }
 0x6f8   : > { %15476 = vmatpush1.bf16.msra.mxu0 %v21179_v8  ;;  %v21229_v8 = vld [vmem:[%s23895_s17 + $0x2dc] ss:$40 sps:$4 sm:$0xff]  }
 0x6f9   : > { %15433 = vmatpush1.bf16.msra.mxu1 %v21176_v3  ;;  %15477 = vmatprep.subr.bf16.mxu0 %v21187_v14  ;;  %v21226_v3 = vld [vmem:[%s23895_s17 + $0xcd4] ss:$40 sps:$4 sm:$0xff]   ;;  %v21227_v14 = vld [vmem:[%s23895_s17 + $0x2d8] ss:$40 sps:$4 sm:$0xff]  }
 0x6fa   : > { %15434 = vmatprep.subr.bf16.mxu1 %v21184_v13  ;;  %v21224_v13 = vld [vmem:[%s23895_s17 + $0xcd0] ss:$40 sps:$4 sm:$0xff]  }
 0x6fc   : > { %15478 = vmatpush1.bf16.msra.mxu0 %v21185_v57  ;;  %v21235_v57 = vld [vmem:[%s23895_s17 + $0x32c] ss:$40 sps:$4 sm:$0xff]  }
 0x6fd   : > { %15435 = vmatpush1.bf16.msra.mxu1 %v21182_v15  ;;  %15479 = vmatprep.subr.bf16.mxu0 %v21193_v17  ;;  %v21232_v15 = vld [vmem:[%s23895_s17 + $0xd24] ss:$40 sps:$4 sm:$0xff]   ;;  %v21233_v17 = vld [vmem:[%s23895_s17 + $0x328] ss:$40 sps:$4 sm:$0xff]  }
 0x6fe   : > { %15436 = vmatprep.subr.bf16.mxu1 %v21190_v58  ;;  %v21230_v58 = vld [vmem:[%s23895_s17 + $0xd20] ss:$40 sps:$4 sm:$0xff]  }
 0x700   : > { %15480 = vmatpush1.bf16.msra.mxu0 %v21191_v20  ;;  %v21241_v20 = vld [vmem:[%s23895_s17 + $0x37c] ss:$40 sps:$4 sm:$0xff]  }
 0x701   : > { %15437 = vmatpush1.bf16.msra.mxu1 %v21188_v18  ;;  %15481 = vmatprep.subr.bf16.mxu0 %v21199_v21  ;;  %v21238_v18 = vld [vmem:[%s23895_s17 + $0xd74] ss:$40 sps:$4 sm:$0xff]   ;;  %v21239_v21 = vld [vmem:[%s23895_s17 + $0x378] ss:$40 sps:$4 sm:$0xff]  }
 0x702   : > { %15438 = vmatprep.subr.bf16.mxu1 %v21196_v46  ;;  %v21236_v46 = vld [vmem:[%s23895_s17 + $0xd70] ss:$40 sps:$4 sm:$0xff]  }
 0x704   : > { %15482 = vmatpush1.bf16.msra.mxu0 %v21197_v34  ;;  %v21247_v34 = vld [vmem:[%s23895_s17 + $0x3cc] ss:$40 sps:$4 sm:$0xff]  }
 0x705   : > { %15439 = vmatpush1.bf16.msra.mxu1 %v21194_v48  ;;  %15483 = vmatprep.subr.bf16.mxu0 %v21205_v37  ;;  %v21244_v48 = vld [vmem:[%s23895_s17 + $0xdc4] ss:$40 sps:$4 sm:$0xff]   ;;  %v21245_v37 = vld [vmem:[%s23895_s17 + $0x3c8] ss:$40 sps:$4 sm:$0xff]  }
 0x706   : > { %15440 = vmatprep.subr.bf16.mxu1 %v21202_v16  ;;  %v21242_v16 = vld [vmem:[%s23895_s17 + $0xdc0] ss:$40 sps:$4 sm:$0xff]  }
 0x708   : > { %15484 = vmatpush1.bf16.msra.mxu0 %v21203_v51  ;;  %v21253_v51 = vld [vmem:[%s23895_s17 + $0x41c] ss:$40 sps:$4 sm:$0xff]  }
 0x709   : > { %15441 = vmatpush1.bf16.msra.mxu1 %v21200_v55  ;;  %15485 = vmatprep.subr.bf16.mxu0 %v21211_v40  ;;  %v21250_v55 = vld [vmem:[%s23895_s17 + $0xe14] ss:$40 sps:$4 sm:$0xff]   ;;  %v21251_v40 = vld [vmem:[%s23895_s17 + $0x418] ss:$40 sps:$4 sm:$0xff]  }
 0x70a   : > { %15442 = vmatprep.subr.bf16.mxu1 %v21208_v22  ;;  %v21248_v22 = vld [vmem:[%s23895_s17 + $0xe10] ss:$40 sps:$4 sm:$0xff]  }
 0x70c   : > { %15486 = vmatpush1.bf16.msra.mxu0 %v21209_v41  ;;  %v21259_v41 = vld [vmem:[%s23895_s17 + $0x46c] ss:$40 sps:$4 sm:$0xff]  }
 0x70d   : > { %15443 = vmatpush1.bf16.msra.mxu1 %v21206_v24  ;;  %15487 = vmatprep.subr.bf16.mxu0 %v21217_v53  ;;  %v21256_v24 = vld [vmem:[%s23895_s17 + $0xe64] ss:$40 sps:$4 sm:$0xff]   ;;  %v21257_v53 = vld [vmem:[%s23895_s17 + $0x468] ss:$40 sps:$4 sm:$0xff]  }
 0x70e   : > { %15444 = vmatprep.subr.bf16.mxu1 %v21214_v60  ;;  %v21254_v60 = vld [vmem:[%s23895_s17 + $0xe60] ss:$40 sps:$4 sm:$0xff]  }
 0x710   : > { %15488 = vmatpush1.bf16.msra.mxu0 %v21215_v32  ;;  %v21265_v32 = vld [vmem:[%s23895_s17 + $0x4bc] ss:$40 sps:$4 sm:$0xff]  }
 0x711   : > { %15445 = vmatpush1.bf16.msra.mxu1 %v21212_v44  ;;  %15489 = vmatprep.subr.bf16.mxu0 %v21223_v62  ;;  %v21262_v44 = vld [vmem:[%s23895_s17 + $0xeb4] ss:$40 sps:$4 sm:$0xff]   ;;  %v21263_v62 = vld [vmem:[%s23895_s17 + $0x4b8] ss:$40 sps:$4 sm:$0xff]  }
 0x712   : > { %15446 = vmatprep.subr.bf16.mxu1 %v21220_v27  ;;  %v21260_v27 = vld [vmem:[%s23895_s17 + $0xeb0] ss:$40 sps:$4 sm:$0xff]  }
 0x714   : > { %15490 = vmatpush1.bf16.msra.mxu0 %v21221_v0  ;;  %v21274_v0 = vld [vmem:[%s23895_s17 + $0x14] ss:$40 sps:$4 sm:$0xff]  }
 0x715   : > { %15447 = vmatpush1.bf16.msra.mxu1 %v21218_v31  ;;  %15491 = vmatprep.subr.bf16.mxu0 %v21229_v8  ;;  %v21271_v31 = vld [vmem:[%s23895_s17 + $0x50c] ss:$40 sps:$4 sm:$0xff]   ;;  %v21269_v8 = vld [vmem:[%s23895_s17 + $0x508] ss:$40 sps:$4 sm:$0xff]  }
 0x716   : > { %15448 = vmatprep.subr.bf16.mxu1 %v21226_v3  ;;  %v24319_v3 = vld [vmem:[%s24842_s2 + $0x10] ss:$24 sps:$4 sm:$0xff]  }
 0x718   : > { %15492 = vmatpush1.bf16.msra.mxu0 %v21227_v14  ;;  %v21277_v14 = vld [vmem:[%s23895_s17 + $0x55c] ss:$40 sps:$4 sm:$0xff]  }
 0x719   : > { %15449 = vmatpush1.bf16.msra.mxu1 %v21224_v13  ;;  %15493 = vmatprep.subr.bf16.mxu0 %v21235_v57  ;;  %v21272_v13 = vld [vmem:[%s23895_s17 + $0x10] ss:$40 sps:$4 sm:$0xff]  }
 0x71a   : > { %15450 = vmatprep.subr.bf16.mxu1 %v21232_v15  ;;  %v21280_v15 = vld [vmem:[%s23895_s17 + $0x64] ss:$40 sps:$4 sm:$0xff]   ;;  %v21275_v57 = vld [vmem:[%s23895_s17 + $0x558] ss:$40 sps:$4 sm:$0xff]  }
 0x71c   : > { %15494 = vmatpush1.bf16.msra.mxu0 %v21233_v17  ;;  %v21283_v17 = vld [vmem:[%s23895_s17 + $0x5ac] ss:$40 sps:$4 sm:$0xff]  }
 0x71d   : > { %15451 = vmatpush1.bf16.msra.mxu1 %v21230_v58  ;;  %15495 = vmatprep.subr.bf16.mxu0 %v21241_v20  ;;  %v21278_v58 = vld [vmem:[%s23895_s17 + $0x60] ss:$40 sps:$4 sm:$0xff]   ;;  %v21284_v20 = vld [vmem:[%s23895_s17 + $0xb0] ss:$40 sps:$4 sm:$0xff]  }
 0x71e   : > { %15452 = vmatprep.subr.bf16.mxu1 %v21238_v18  ;;  %v21286_v18 = vld [vmem:[%s23895_s17 + $0xb4] ss:$40 sps:$4 sm:$0xff]  }
 0x720   : > { %15496 = vmatpush1.bf16.msra.mxu0 %v21239_v21  ;;  %v21292_v21 = vld [vmem:[%s23895_s17 + $0x104] ss:$40 sps:$4 sm:$0xff]  }
 0x721   : > { %15453 = vmatpush1.bf16.msra.mxu1 %v21236_v46  ;;  %15497 = vmatprep.subr.bf16.mxu0 %v21247_v34  ;;  %v21289_v46 = vld [vmem:[%s23895_s17 + $0x5fc] ss:$40 sps:$4 sm:$0xff]   ;;  %v21295_v34 = vld [vmem:[%s23895_s17 + $0x64c] ss:$40 sps:$4 sm:$0xff]  }
 0x722   : > { %15454 = vmatprep.subr.bf16.mxu1 %v21244_v48  ;;  %v21287_v48 = vld [vmem:[%s23895_s17 + $0x5f8] ss:$40 sps:$4 sm:$0xff]  }
 0x724   : > { %15498 = vmatpush1.bf16.msra.mxu0 %v21245_v37  ;;  %v24342_v37 = vsub.s32 6, %v23663_v42 }
 0x725   : > { %15455 = vmatpush1.bf16.msra.mxu1 %v21242_v16  ;;  %15499 = vmatprep.subr.bf16.mxu0 %v21253_v51  ;;  %v21298_v16 = vld [vmem:[%s23895_s17 + $0x154] ss:$40 sps:$4 sm:$0xff]   ;;  %v21293_v51 = vld [vmem:[%s23895_s17 + $0x648] ss:$40 sps:$4 sm:$0xff]  }
 0x726   : > { %15456 = vmatprep.subr.bf16.mxu1 %v21250_v55  ;;  %v24345_v55 = vsub.s32 7, %v23663_v42 }
 0x728   : > { %15500 = vmatpush1.bf16.msra.mxu0 %v21251_v40  ;;  %v21301_v40 = vld [vmem:[%s23895_s17 + $0x69c] ss:$40 sps:$4 sm:$0xff]   ;;  %v1399_v42 = vrot.slane %v24166_v2, %v24345_v55 }
 0x729   : > { %15457 = vmatpush1.bf16.msra.mxu1 %v21248_v22  ;;  %15501 = vmatprep.subr.bf16.mxu0 %v21259_v41  ;;  %v21296_v22 = vld [vmem:[%s23895_s17 + $0x150] ss:$40 sps:$4 sm:$0xff]   ;;  %v1395_v41 = vrot.slane %v24166_v2, %v24342_v37 }
 0x72a   : > { %15458 = vmatprep.subr.bf16.mxu1 %v21256_v24  ;;  %v21304_v24 = vld [vmem:[%s23895_s17 + $0x1a4] ss:$40 sps:$4 sm:$0xff]  }
 0x72c   : > { %15502 = vmatpush1.bf16.msra.mxu0 %v21257_v53  ;;  %v8253_v53 = vrot.slane %v24171_v7, %v24345_v55 }
 0x72d   : > { %15459 = vmatpush1.bf16.msra.mxu1 %v21254_v60  ;;  %15503 = vmatprep.subr.bf16.mxu0 %v21265_v32  ;;  %v8249_v60 = vrot.slane %v24171_v7, %v24342_v37  ;;  %v21302_v32 = vld [vmem:[%s23895_s17 + $0x1a0] ss:$40 sps:$4 sm:$0xff]  }
 0x72e   : > { %15460 = vmatprep.subr.bf16.mxu1 %v21262_v44  ;;  %v21299_v44 = vld [vmem:[%s23895_s17 + $0x698] ss:$40 sps:$4 sm:$0xff]   ;;  %v21305_v7 = vld [vmem:[%s23895_s17 + $0x6e8] ss:$40 sps:$4 sm:$0xff]  }
 0x730   : > { %15504 = vmatpush1.bf16.msra.mxu0 %v21263_v62  ;;  %v21310_v62 = vld [vmem:[%s23895_s17 + $0x1f4] ss:$40 sps:$4 sm:$0xff]  }
 0x731   : > { %15461 = vmatpush1.bf16.msra.mxu1 %v21260_v27  ;;  %15516 = vmatprep.subr.bf16.mxu0 %v21271_v31  ;;  %v21307_v27 = vld [vmem:[%s23895_s17 + $0x6ec] ss:$40 sps:$4 sm:$0xff]  }
 0x732   : > { %15602 = vmatprep.subr.bf16.mxu1 %v21274_v0  ;;  %v18341_v0 = vadd.f32 %v23373_v23, %v1395_v41 }
 0x733   : > { %15506 = vmatmul.mubr.bf16.vlgmr.msra.gmra.mrb[20].mxu0 %v24126_v11  ;;  %v21281_v11 = vld [vmem:[%s23895_s17 + $0x5a8] ss:$40 sps:$4 sm:$0xff]  }
 0x734   : > { %15463 = vmatmul.mubr.bf16.vlgmr.msra.gmra.mrb[20].mxu1 %v24319_v3  ;;  %15517 = vmatpush1.bf16.msra.mxu0 %v21269_v8 }
 0x735   : > { %15603 = vmatpush1.bf16.msra.mxu1 %v21272_v13  ;;  %15518 = vmatprep.subr.bf16.mxu0 %v21277_v14  ;;  %v18342_v13 = vadd.f32 %v23377_v25, %v1399_v42  ;;  %v21316_v25 = vld [vmem:[%s23895_s17 + $0x244] ss:$40 sps:$4 sm:$0xff]  }
 0x736   : > { %15604 = vmatprep.subr.bf16.mxu1 %v21280_v15  ;;  %15548 = vmatprep.mubr.bf16.mxu0 %v24135_v45  ;;  %v21290_v45 = vld [vmem:[%s23895_s17 + $0x100] ss:$40 sps:$4 sm:$0xff]  }
 0x737   : > { %15634 = vmatprep.mubr.bf16.mxu1 %v24257_v10 }
 0x738   : > { %15519 = vmatpush1.bf16.msra.mxu0 %v21275_v57  ;;  %v21308_v57 = vld [vmem:[%s23895_s17 + $0x1f0] ss:$40 sps:$4 sm:$0xff]  }
 0x739   : > { %15605 = vmatpush1.bf16.msra.mxu1 %v21278_v58  ;;  %15520 = vmatprep.subr.bf16.mxu0 %v21283_v17  ;;  %v18343_v58 = vadd.f32 %v23381_v30, %v1395_v41  ;;  %v21323_v41 = vld [vmem:[%s23895_s17 + $0x7d8] ss:$40 sps:$4 sm:$0xff]  }
 0x73a   : > { %15606 = vmatprep.subr.bf16.mxu1 %v21286_v18 }
 0x73c   : > { %15521 = vmatpush1.bf16.msra.mxu0 %v21281_v11  ;;  %v21313_v11 = vld [vmem:[%s23895_s17 + $0x73c] ss:$40 sps:$4 sm:$0xff]  }
 0x73d   : > { %15607 = vmatpush1.bf16.msra.mxu1 %v21284_v20  ;;  %15522 = vmatprep.subr.bf16.mxu0 %v21289_v46  ;;  %v18344_v20 = vadd.f32 %v23387_v33, %v1399_v42  ;;  %v21322_v33 = vld [vmem:[%s23895_s17 + $0x294] ss:$40 sps:$4 sm:$0xff]  }
 0x73e   : > { %15608 = vmatprep.subr.bf16.mxu1 %v21292_v21  ;;  %v21331_v42 = vld [vmem:[%s23895_s17 + $0x82c] ss:$40 sps:$4 sm:$0xff]  }
 0x740   : > { %15523 = vmatpush1.bf16.msra.mxu0 %v21287_v48 }
 0x741   : > { %15609 = vmatpush1.bf16.msra.mxu1 %v21290_v45  ;;  %15524 = vmatprep.subr.bf16.mxu0 %v21295_v34  ;;  %v21311_v45 = vld [vmem:[%s23895_s17 + $0x738] ss:$40 sps:$4 sm:$0xff]  }
 0x742   : > { %15610 = vmatprep.subr.bf16.mxu1 %v21298_v16  ;;  %v21314_v34 = vld [vmem:[%s23895_s17 + $0x240] ss:$40 sps:$4 sm:$0xff]   ;;  %v21319_v16 = vld [vmem:[%s23895_s17 + $0x78c] ss:$40 sps:$4 sm:$0xff]  }
 0x744   : > { %15525 = vmatpush1.bf16.msra.mxu0 %v21293_v51  ;;  %v21317_v51 = vld [vmem:[%s23895_s17 + $0x788] ss:$40 sps:$4 sm:$0xff]  }
 0x745   : > { %15611 = vmatpush1.bf16.msra.mxu1 %v21296_v22  ;;  %15526 = vmatprep.subr.bf16.mxu0 %v21301_v40  ;;  %v21320_v22 = vld [vmem:[%s23895_s17 + $0x290] ss:$40 sps:$4 sm:$0xff]   ;;  %v21325_v40 = vld [vmem:[%s23895_s17 + $0x7dc] ss:$40 sps:$4 sm:$0xff]  }
 0x746   : > { %15612 = vmatprep.subr.bf16.mxu1 %v21304_v24  ;;  %v21328_v24 = vld [vmem:[%s23895_s17 + $0x2e4] ss:$40 sps:$4 sm:$0xff]  }
 0x747   : > { %v12191_v31 = vpop.f32.mrb[16].mxu1 }
 0x748   : > { %v18361_v8 = vadd.f32 %v12191_v31, %v8249_v60  ;;  %v12193_v2 = vpop.f32.mrb[17].mxu1  ;;  %15527 = vmatpush1.bf16.msra.mxu0 %v21299_v44  ;;  %v21329_v44 = vld [vmem:[%s23895_s17 + $0x828] ss:$40 sps:$4 sm:$0xff]   ;;  %v21335_v31 = vld [vmem:[%s23895_s17 + $0x878] ss:$40 sps:$4 sm:$0xff]  }
 0x749   : > { %v18362_v14 = vadd.f32 %v12193_v2, %v8253_v53  ;;  %v12195_v15 = vpop.f32.mrb[18].mxu1  ;;  %15613 = vmatpush1.bf16.msra.mxu1 %v21302_v32  ;;  %15528 = vmatprep.subr.bf16.mxu0 %v21307_v27  ;;  %v21332_v32 = vld [vmem:[%s23895_s17 + $0x330] ss:$40 sps:$4 sm:$0xff]   ;;  %v21337_v27 = vld [vmem:[%s23895_s17 + $0x87c] ss:$40 sps:$4 sm:$0xff]  }
 0x74a   : > { %v24368_v17 = vmul.f32 %v18361_v8, %v18341_v0  ;;  %v18363_v18 = vadd.f32 %v12195_v15, %v8249_v60  ;;  %v12197_v23 = vpop.f32.mrb[19].mxu1  ;;  %15614 = vmatprep.subr.bf16.mxu1 %v21310_v62  ;;  %v21326_v60 = vld [vmem:[%s23895_s17 + $0x2e0] ss:$40 sps:$4 sm:$0xff]   ;;  %v21340_v62 = vld [vmem:[%s23895_s17 + $0x384] ss:$40 sps:$4 sm:$0xff]  }
 0x74b   : > { %v24373_v46 = vmul.f32 %v18362_v14, %v18342_v13  ;;  %v18364_v21 = vadd.f32 %v12197_v23, %v8253_v53  ;;  %v21334_v53 = vld [vmem:[%s23895_s17 + $0x334] ss:$40 sps:$4 sm:$0xff]   ;;  %v21338_v0 = vld [vmem:[%s23895_s17 + $0x380] ss:$40 sps:$4 sm:$0xff]   ;;  %v21344_v14 = vld [vmem:[%s23895_s17 + $0x3d0] ss:$40 sps:$4 sm:$0xff]  }
 0x74c   : > { %v24375_v48 = vmul.f32 %v18363_v18, %v18343_v58  ;;  %15529 = vmatpush1.bf16.msra.mxu0 %v21305_v7  ;;  %v21343_v8 = vld [vmem:[%s23895_s17 + $0x8cc] ss:$40 sps:$4 sm:$0xff]   ;;  %v21341_v13 = vld [vmem:[%s23895_s17 + $0x8c8] ss:$40 sps:$4 sm:$0xff]   ;;  %v21349_v15 = vld [vmem:[%s23895_s17 + $0x91c] ss:$40 sps:$4 sm:$0xff]  }
 0x74d   : > { %v24377_v30 = vmul.f32 %v18364_v21, %v18344_v20  ;;  %15615 = vmatpush1.bf16.msra.mxu1 %v21308_v57  ;;  %15530 = vmatprep.subr.bf16.mxu0 %v21313_v11  ;;  %v21346_v2 = vld [vmem:[%s23895_s17 + $0x3d4] ss:$40 sps:$4 sm:$0xff]   ;;  %v21352_v7 = vld [vmem:[%s23895_s17 + $0x424] ss:$40 sps:$4 sm:$0xff]   ;;  %v21347_v57 = vld [vmem:[%s23895_s17 + $0x918] ss:$40 sps:$4 sm:$0xff]  }
 0x74e   : > { %15616 = vmatprep.subr.bf16.mxu1 %v21316_v25  ;;  %v21350_v58 = vld [vmem:[%s23895_s17 + $0x420] ss:$40 sps:$4 sm:$0xff]   ;;  %v21355_v18 = vld [vmem:[%s23895_s17 + $0x96c] ss:$40 sps:$4 sm:$0xff]   ;;  %v21356_v25 = vld [vmem:[%s23895_s17 + $0x470] ss:$40 sps:$4 sm:$0xff]  }
 0x74f   : > { %v21358_v23 = vld [vmem:[%s23895_s17 + $0x474] ss:$40 sps:$4 sm:$0xff]   ;;  %v21353_v11 = vld [vmem:[%s23895_s17 + $0x968] ss:$40 sps:$4 sm:$0xff]   ;;  %v21364_v21 = vld [vmem:[%s23895_s17 + $0x4c4] ss:$40 sps:$4 sm:$0xff]  }
 0x750   : > { %15531 = vmatpush1.bf16.msra.mxu0 %v21311_v45  ;;  %v21361_v20 = vld [vmem:[%s23895_s17 + $0x9bc] ss:$40 sps:$4 sm:$0xff]   ;;  %v21359_v45 = vld [vmem:[%s23895_s17 + $0x9b8] ss:$40 sps:$4 sm:$0xff]  }
 0x751   : > { %15617 = vmatpush1.bf16.msra.mxu1 %v21314_v34  ;;  %15532 = vmatprep.subr.bf16.mxu0 %v21319_v16  ;;  %v21362_v34 = vld [vmem:[%s23895_s17 + $0x4c0] ss:$40 sps:$4 sm:$0xff]   ;;  %v21367_v16 = vld [vmem:[%s23895_s17 + $0xa0c] ss:$40 sps:$4 sm:$0xff]  }
 0x752   : > { %15618 = vmatprep.subr.bf16.mxu1 %v21322_v33  ;;  %v21370_v33 = vld [vmem:[%s23895_s17 + $0x514] ss:$40 sps:$4 sm:$0xff]  }
 0x754   : > { %15533 = vmatpush1.bf16.msra.mxu0 %v21317_v51  ;;  %v21365_v51 = vld [vmem:[%s23895_s17 + $0xa08] ss:$40 sps:$4 sm:$0xff]  }
 0x755   : > { %15619 = vmatpush1.bf16.msra.mxu1 %v21320_v22  ;;  %15534 = vmatprep.subr.bf16.mxu0 %v21325_v40  ;;  %v21368_v22 = vld [vmem:[%s23895_s17 + $0x510] ss:$40 sps:$4 sm:$0xff]   ;;  %v21373_v40 = vld [vmem:[%s23895_s17 + $0xa5c] ss:$40 sps:$4 sm:$0xff]  }
 0x756   : > { %15620 = vmatprep.subr.bf16.mxu1 %v21328_v24  ;;  %v21376_v24 = vld [vmem:[%s23895_s17 + $0x564] ss:$40 sps:$4 sm:$0xff]  }
 0x758   : > { %15535 = vmatpush1.bf16.msra.mxu0 %v21323_v41  ;;  %v24423_v41 = vld [vmem:[%s24842_s2] ss:$24 sps:$4 sm:$0xff]  }
 0x759   : > { %15621 = vmatpush1.bf16.msra.mxu1 %v21326_v60  ;;  %15536 = vmatprep.subr.bf16.mxu0 %v21331_v42  ;;  %v21371_v60 = vld [vmem:[%s23895_s17 + $0xa58] ss:$40 sps:$4 sm:$0xff]  }
 0x75a   : > { %15622 = vmatprep.subr.bf16.mxu1 %v21334_v53  ;;  %v21374_v42 = vld [vmem:[%s23895_s17 + $0x560] ss:$40 sps:$4 sm:$0xff]   ;;  %v21379_v53 = vld [vmem:[%s23895_s17 + $0xaac] ss:$40 sps:$4 sm:$0xff]  }
 0x75c   : > { %15537 = vmatpush1.bf16.msra.mxu0 %v21329_v44  ;;  %v21382_v44 = vld [vmem:[%s23895_s17 + $0x5b4] ss:$40 sps:$4 sm:$0xff]  }
 0x75d   : > { %15623 = vmatpush1.bf16.msra.mxu1 %v21332_v32  ;;  %15538 = vmatprep.subr.bf16.mxu0 %v21337_v27  ;;  %v24434_v32 = vld [vmem:[%s24842_s2 + $0xc] ss:$24 sps:$4 sm:$0xff]   ;;  %v21377_v27 = vld [vmem:[%s23895_s17 + $0xaa8] ss:$40 sps:$4 sm:$0xff]  }
 0x75e   : > { %15624 = vmatprep.subr.bf16.mxu1 %v21340_v62  ;;  %v21380_v62 = vld [vmem:[%s23895_s17 + $0x5b0] ss:$40 sps:$4 sm:$0xff]  }
 0x760   : > { %15539 = vmatpush1.bf16.msra.mxu0 %v21335_v31  ;;  %v21385_v31 = vld [vmem:[%s23895_s17 + $0xafc] ss:$40 sps:$4 sm:$0xff]  }
 0x761   : > { %15625 = vmatpush1.bf16.msra.mxu1 %v21338_v0  ;;  %15540 = vmatprep.subr.bf16.mxu0 %v21343_v8  ;;  %v21388_v0 = vld [vmem:[%s23895_s17 + $0x604] ss:$40 sps:$4 sm:$0xff]   ;;  %v21383_v8 = vld [vmem:[%s23895_s17 + $0xaf8] ss:$40 sps:$4 sm:$0xff]  }
 0x762   : > { %15626 = vmatprep.subr.bf16.mxu1 %v21346_v2  ;;  %v21386_v2 = vld [vmem:[%s23895_s17 + $0x600] ss:$40 sps:$4 sm:$0xff]  }
 0x764   : > { %15541 = vmatpush1.bf16.msra.mxu0 %v21341_v13  ;;  %v21391_v13 = vld [vmem:[%s23895_s17 + $0xb4c] ss:$40 sps:$4 sm:$0xff]  }
 0x765   : > { %15627 = vmatpush1.bf16.msra.mxu1 %v21344_v14  ;;  %15542 = vmatprep.subr.bf16.mxu0 %v21349_v15  ;;  %v21394_v14 = vld [vmem:[%s23895_s17 + $0x654] ss:$40 sps:$4 sm:$0xff]   ;;  %v21389_v15 = vld [vmem:[%s23895_s17 + $0xb48] ss:$40 sps:$4 sm:$0xff]  }
 0x766   : > { %15628 = vmatprep.subr.bf16.mxu1 %v21352_v7  ;;  %v21392_v7 = vld [vmem:[%s23895_s17 + $0x650] ss:$40 sps:$4 sm:$0xff]  }
 0x768   : > { %15543 = vmatpush1.bf16.msra.mxu0 %v21347_v57  ;;  %v21397_v57 = vld [vmem:[%s23895_s17 + $0xb9c] ss:$40 sps:$4 sm:$0xff]  }
 0x769   : > { %15629 = vmatpush1.bf16.msra.mxu1 %v21350_v58  ;;  %15544 = vmatprep.subr.bf16.mxu0 %v21355_v18  ;;  %v21400_v58 = vld [vmem:[%s23895_s17 + $0x6a4] ss:$40 sps:$4 sm:$0xff]   ;;  %v21395_v18 = vld [vmem:[%s23895_s17 + $0xb98] ss:$40 sps:$4 sm:$0xff]  }
 0x76a   : > { %15630 = vmatprep.subr.bf16.mxu1 %v21358_v23  ;;  %v21398_v23 = vld [vmem:[%s23895_s17 + $0x6a0] ss:$40 sps:$4 sm:$0xff]  }
 0x76c   : > { %15545 = vmatpush1.bf16.msra.mxu0 %v21353_v11  ;;  %v21403_v11 = vld [vmem:[%s23895_s17 + $0xbec] ss:$40 sps:$4 sm:$0xff]  }
 0x76d   : > { %15631 = vmatpush1.bf16.msra.mxu1 %v21356_v25  ;;  %15546 = vmatprep.subr.bf16.mxu0 %v21361_v20  ;;  %v21406_v25 = vld [vmem:[%s23895_s17 + $0x6f4] ss:$40 sps:$4 sm:$0xff]   ;;  %v21401_v20 = vld [vmem:[%s23895_s17 + $0xbe8] ss:$40 sps:$4 sm:$0xff]  }
 0x76e   : > { %15632 = vmatprep.subr.bf16.mxu1 %v21364_v21  ;;  %v21404_v21 = vld [vmem:[%s23895_s17 + $0x6f0] ss:$40 sps:$4 sm:$0xff]  }
 0x770   : > { %15547 = vmatpush1.bf16.msra.mxu0 %v21359_v45  ;;  %v21409_v45 = vld [vmem:[%s23895_s17 + $0xc3c] ss:$40 sps:$4 sm:$0xff]  }
 0x771   : > { %15633 = vmatpush1.bf16.msra.mxu1 %v21362_v34  ;;  %15559 = vmatprep.subr.bf16.mxu0 %v21367_v16  ;;  %v21412_v34 = vld [vmem:[%s23895_s17 + $0x744] ss:$40 sps:$4 sm:$0xff]   ;;  %v21407_v16 = vld [vmem:[%s23895_s17 + $0xc38] ss:$40 sps:$4 sm:$0xff]  }
 0x772   : > { %15645 = vmatprep.subr.bf16.mxu1 %v21370_v33  ;;  %v21410_v33 = vld [vmem:[%s23895_s17 + $0x740] ss:$40 sps:$4 sm:$0xff]  }
 0x773   : > { %15549 = vmatmul.mubr.bf16.vlgmr.msra.gmra.mrb[20].mxu0 %v24236_v59 }
 0x774   : > { %15635 = vmatmul.mubr.bf16.vlgmr.msra.gmra.mrb[24].mxu1 %v24423_v41  ;;  %15560 = vmatpush1.bf16.msra.mxu0 %v21365_v51  ;;  %v21415_v51 = vld [vmem:[%s23895_s17 + $0xc8c] ss:$40 sps:$4 sm:$0xff]  }
 0x775   : > { %15646 = vmatpush1.bf16.msra.mxu1 %v21368_v22  ;;  %15561 = vmatprep.subr.bf16.mxu0 %v21373_v40  ;;  %v21418_v22 = vld [vmem:[%s23895_s17 + $0x794] ss:$40 sps:$4 sm:$0xff]   ;;  %v21413_v40 = vld [vmem:[%s23895_s17 + $0xc88] ss:$40 sps:$4 sm:$0xff]  }
 0x776   : > { %15647 = vmatprep.subr.bf16.mxu1 %v21376_v24  ;;  %15591 = vmatprep.mubr.bf16.mxu0 %v24245_v1  ;;  %v21416_v24 = vld [vmem:[%s23895_s17 + $0x790] ss:$40 sps:$4 sm:$0xff]  }
 0x777   : > { %15677 = vmatprep.mubr.bf16.mxu1 %v24434_v32 }
 0x778   : > { %15562 = vmatpush1.bf16.msra.mxu0 %v21371_v60  ;;  %v21421_v60 = vld [vmem:[%s23895_s17 + $0xcdc] ss:$40 sps:$4 sm:$0xff]  }
 0x779   : > { %15648 = vmatpush1.bf16.msra.mxu1 %v21374_v42  ;;  %15563 = vmatprep.subr.bf16.mxu0 %v21379_v53  ;;  %v21424_v42 = vld [vmem:[%s23895_s17 + $0x7e4] ss:$40 sps:$4 sm:$0xff]   ;;  %v21419_v53 = vld [vmem:[%s23895_s17 + $0xcd8] ss:$40 sps:$4 sm:$0xff]  }
 0x77a   : > { %15649 = vmatprep.subr.bf16.mxu1 %v21382_v44  ;;  %v21422_v44 = vld [vmem:[%s23895_s17 + $0x7e0] ss:$40 sps:$4 sm:$0xff]  }
 0x77c   : > { %15564 = vmatpush1.bf16.msra.mxu0 %v21377_v27  ;;  %v21427_v27 = vld [vmem:[%s23895_s17 + $0xd2c] ss:$40 sps:$4 sm:$0xff]  }
 0x77d   : > { %15650 = vmatpush1.bf16.msra.mxu1 %v21380_v62  ;;  %15565 = vmatprep.subr.bf16.mxu0 %v21385_v31  ;;  %v21430_v62 = vld [vmem:[%s23895_s17 + $0x834] ss:$40 sps:$4 sm:$0xff]   ;;  %v21425_v31 = vld [vmem:[%s23895_s17 + $0xd28] ss:$40 sps:$4 sm:$0xff]  }
 0x77e   : > { %15651 = vmatprep.subr.bf16.mxu1 %v21388_v0  ;;  %v21428_v0 = vld [vmem:[%s23895_s17 + $0x830] ss:$40 sps:$4 sm:$0xff]  }
 0x780   : > { %15566 = vmatpush1.bf16.msra.mxu0 %v21383_v8  ;;  %v21433_v8 = vld [vmem:[%s23895_s17 + $0xd7c] ss:$40 sps:$4 sm:$0xff]  }
 0x781   : > { %15652 = vmatpush1.bf16.msra.mxu1 %v21386_v2  ;;  %15567 = vmatprep.subr.bf16.mxu0 %v21391_v13  ;;  %v21436_v2 = vld [vmem:[%s23895_s17 + $0x884] ss:$40 sps:$4 sm:$0xff]   ;;  %v21431_v13 = vld [vmem:[%s23895_s17 + $0xd78] ss:$40 sps:$4 sm:$0xff]  }
 0x782   : > { %15653 = vmatprep.subr.bf16.mxu1 %v21394_v14  ;;  %v21434_v14 = vld [vmem:[%s23895_s17 + $0x880] ss:$40 sps:$4 sm:$0xff]  }
 0x784   : > { %15568 = vmatpush1.bf16.msra.mxu0 %v21389_v15  ;;  %v21439_v15 = vld [vmem:[%s23895_s17 + $0xdcc] ss:$40 sps:$4 sm:$0xff]  }
 0x785   : > { %15654 = vmatpush1.bf16.msra.mxu1 %v21392_v7  ;;  %15569 = vmatprep.subr.bf16.mxu0 %v21397_v57  ;;  %v21442_v7 = vld [vmem:[%s23895_s17 + $0x8d4] ss:$40 sps:$4 sm:$0xff]   ;;  %v21437_v57 = vld [vmem:[%s23895_s17 + $0xdc8] ss:$40 sps:$4 sm:$0xff]  }
 0x786   : > { %15655 = vmatprep.subr.bf16.mxu1 %v21400_v58  ;;  %v21440_v58 = vld [vmem:[%s23895_s17 + $0x8d0] ss:$40 sps:$4 sm:$0xff]  }
 0x788   : > { %15570 = vmatpush1.bf16.msra.mxu0 %v21395_v18  ;;  %v21445_v18 = vld [vmem:[%s23895_s17 + $0xe1c] ss:$40 sps:$4 sm:$0xff]  }
 0x789   : > { %15656 = vmatpush1.bf16.msra.mxu1 %v21398_v23  ;;  %15571 = vmatprep.subr.bf16.mxu0 %v21403_v11  ;;  %v21448_v23 = vld [vmem:[%s23895_s17 + $0x924] ss:$40 sps:$4 sm:$0xff]   ;;  %v21443_v11 = vld [vmem:[%s23895_s17 + $0xe18] ss:$40 sps:$4 sm:$0xff]  }
 0x78a   : > { %15657 = vmatprep.subr.bf16.mxu1 %v21406_v25  ;;  %v21446_v25 = vld [vmem:[%s23895_s17 + $0x920] ss:$40 sps:$4 sm:$0xff]  }
 0x78c   : > { %15572 = vmatpush1.bf16.msra.mxu0 %v21401_v20  ;;  %v21451_v20 = vld [vmem:[%s23895_s17 + $0xe6c] ss:$40 sps:$4 sm:$0xff]  }
 0x78d   : > { %15658 = vmatpush1.bf16.msra.mxu1 %v21404_v21  ;;  %15573 = vmatprep.subr.bf16.mxu0 %v21409_v45  ;;  %v21454_v21 = vld [vmem:[%s23895_s17 + $0x974] ss:$40 sps:$4 sm:$0xff]   ;;  %v21449_v45 = vld [vmem:[%s23895_s17 + $0xe68] ss:$40 sps:$4 sm:$0xff]  }
 0x78e   : > { %15659 = vmatprep.subr.bf16.mxu1 %v21412_v34  ;;  %v21452_v34 = vld [vmem:[%s23895_s17 + $0x970] ss:$40 sps:$4 sm:$0xff]  }
 0x790   : > { %15574 = vmatpush1.bf16.msra.mxu0 %v21407_v16  ;;  %v21457_v16 = vld [vmem:[%s23895_s17 + $0xebc] ss:$40 sps:$4 sm:$0xff]  }
 0x791   : > { %15660 = vmatpush1.bf16.msra.mxu1 %v21410_v33  ;;  %15575 = vmatprep.subr.bf16.mxu0 %v21415_v51  ;;  %v21460_v33 = vld [vmem:[%s23895_s17 + $0x9c4] ss:$40 sps:$4 sm:$0xff]   ;;  %v21455_v51 = vld [vmem:[%s23895_s17 + $0xeb8] ss:$40 sps:$4 sm:$0xff]  }
 0x792   : > { %15661 = vmatprep.subr.bf16.mxu1 %v21418_v22  ;;  %v21458_v22 = vld [vmem:[%s23895_s17 + $0x9c0] ss:$40 sps:$4 sm:$0xff]  }
 0x794   : > { %15576 = vmatpush1.bf16.msra.mxu0 %v21413_v40  ;;  %v21463_v40 = vld [vmem:[%s23895_s17 + $0xa14] ss:$40 sps:$4 sm:$0xff]  }
 0x795   : > { %15662 = vmatpush1.bf16.msra.mxu1 %v21416_v24  ;;  %15577 = vmatprep.subr.bf16.mxu0 %v21421_v60  ;;  %v21466_v24 = vld [vmem:[%s23895_s17 + $0x1c] ss:$40 sps:$4 sm:$0xff]   ;;  %v21461_v60 = vld [vmem:[%s23895_s17 + $0xa10] ss:$40 sps:$4 sm:$0xff]  }
 0x796   : > { %15663 = vmatprep.subr.bf16.mxu1 %v21424_v42  ;;  %v21464_v42 = vld [vmem:[%s23895_s17 + $0x18] ss:$40 sps:$4 sm:$0xff]  }
 0x798   : > { %15578 = vmatpush1.bf16.msra.mxu0 %v21419_v53  ;;  %v21469_v53 = vld [vmem:[%s23895_s17 + $0xa64] ss:$40 sps:$4 sm:$0xff]  }
 0x799   : > { %15664 = vmatpush1.bf16.msra.mxu1 %v21422_v44  ;;  %15579 = vmatprep.subr.bf16.mxu0 %v21427_v27  ;;  %v21472_v44 = vld [vmem:[%s23895_s17 + $0x6c] ss:$40 sps:$4 sm:$0xff]   ;;  %v21467_v27 = vld [vmem:[%s23895_s17 + $0xa60] ss:$40 sps:$4 sm:$0xff]  }
 0x79a   : > { %15665 = vmatprep.subr.bf16.mxu1 %v21430_v62  ;;  %v21470_v62 = vld [vmem:[%s23895_s17 + $0x68] ss:$40 sps:$4 sm:$0xff]  }
 0x79c   : > { %15580 = vmatpush1.bf16.msra.mxu0 %v21425_v31  ;;  %v21475_v31 = vld [vmem:[%s23895_s17 + $0xab4] ss:$40 sps:$4 sm:$0xff]  }
 0x79d   : > { %15666 = vmatpush1.bf16.msra.mxu1 %v21428_v0  ;;  %15581 = vmatprep.subr.bf16.mxu0 %v21433_v8  ;;  %v21478_v0 = vld [vmem:[%s23895_s17 + $0xbc] ss:$40 sps:$4 sm:$0xff]   ;;  %v21476_v8 = vld [vmem:[%s23895_s17 + $0xb8] ss:$40 sps:$4 sm:$0xff]  }
 0x79e   : > { %15667 = vmatprep.subr.bf16.mxu1 %v21436_v2  ;;  %v21481_v2 = vld [vmem:[%s23895_s17 + $0xb04] ss:$40 sps:$4 sm:$0xff]  }
 0x7a0   : > { %15582 = vmatpush1.bf16.msra.mxu0 %v21431_v13  ;;  %v21484_v13 = vld [vmem:[%s23895_s17 + $0x10c] ss:$40 sps:$4 sm:$0xff]  }
 0x7a1   : > { %15668 = vmatpush1.bf16.msra.mxu1 %v21434_v14  ;;  %15583 = vmatprep.subr.bf16.mxu0 %v21439_v15  ;;  %v21482_v14 = vld [vmem:[%s23895_s17 + $0x108] ss:$40 sps:$4 sm:$0xff]   ;;  %v21490_v15 = vld [vmem:[%s23895_s17 + $0x15c] ss:$40 sps:$4 sm:$0xff]  }
 0x7a2   : > { %15669 = vmatprep.subr.bf16.mxu1 %v21442_v7  ;;  %v16212_v7 = vld [vmem:[%s23668_s16 + $0x20] ss:$4 sm:$0x3] }
 0x7a4   : > { %15584 = vmatpush1.bf16.msra.mxu0 %v21437_v57  ;;  %v21485_v57 = vld [vmem:[%s23895_s17 + $0xb50] ss:$40 sps:$4 sm:$0xff]  }
 0x7a5   : > { %15670 = vmatpush1.bf16.msra.mxu1 %v21440_v58  ;;  %15585 = vmatprep.subr.bf16.mxu0 %v21445_v18  ;;  %v21488_v58 = vld [vmem:[%s23895_s17 + $0x158] ss:$40 sps:$4 sm:$0xff]  }
 0x7a6   : > { %15671 = vmatprep.subr.bf16.mxu1 %v21448_v23  ;;  %v17186_v18 = vld [vmem:[%s23668_s16 + $0x21] ss:$4 sm:$0x3] }
 0x7a7   : > { %v21493_v23 = vld [vmem:[%s23895_s17 + $0xba4] ss:$40 sps:$4 sm:$0xff]  }
 0x7a8   : > { %15586 = vmatpush1.bf16.msra.mxu0 %v21443_v11  ;;  %v21496_v11 = vld [vmem:[%s23895_s17 + $0x1ac] ss:$40 sps:$4 sm:$0xff]  }
 0x7a9   : > { %15672 = vmatpush1.bf16.msra.mxu1 %v21446_v25  ;;  %15587 = vmatprep.subr.bf16.mxu0 %v21451_v20  ;;  %v1403_v25 = vrot.slane %v16212_v7, %v23676_v28  ;;  %v8257_v20 = vrot.slane %v17186_v18, %v23676_v28 }
 0x7aa   : > { %15673 = vmatprep.subr.bf16.mxu1 %v21454_v21  ;;  %v1407_v21 = vrot.slane %v16212_v7, %v23679_v61  ;;  %v21511_v7 = vld [vmem:[%s23895_s17 + $0xc94] ss:$40 sps:$4 sm:$0xff]  }
 0x7ac   : > { %15588 = vmatpush1.bf16.msra.mxu0 %v21449_v45  ;;  %v8261_v45 = vrot.slane %v17186_v18, %v23679_v61  ;;  %v21517_v18 = vld [vmem:[%s23895_s17 + $0xce4] ss:$40 sps:$4 sm:$0xff]  }
 0x7ad   : > { %15674 = vmatpush1.bf16.msra.mxu1 %v21452_v34  ;;  %15589 = vmatprep.subr.bf16.mxu0 %v21457_v16  ;;  %v21491_v34 = vld [vmem:[%s23895_s17 + $0xba0] ss:$40 sps:$4 sm:$0xff]  }
 0x7ae   : > { %15675 = vmatprep.subr.bf16.mxu1 %v21460_v33  ;;  %v21494_v16 = vld [vmem:[%s23895_s17 + $0x1a8] ss:$40 sps:$4 sm:$0xff]   ;;  %v21499_v33 = vld [vmem:[%s23895_s17 + $0xbf4] ss:$40 sps:$4 sm:$0xff]  }
 0x7b0   : > { %15590 = vmatpush1.bf16.msra.mxu0 %v21455_v51  ;;  %v21502_v51 = vld [vmem:[%s23895_s17 + $0x1fc] ss:$40 sps:$4 sm:$0xff]  }
 0x7b1   : > { %15676 = vmatpush1.bf16.msra.mxu1 %v21458_v22  ;;  %15731 = vmatprep.subr.bf16.mxu0 %v21466_v24 }
 0x7b2   : > { %15688 = vmatprep.subr.bf16.mxu1 %v21463_v40  ;;  %v18345_v40 = vadd.f32 %v23842_v4, %v1403_v25 }
 0x7b3   : > { %15592 = vmatmul.mubr.bf16.vlgmr.msra.gmra.mrb[20].mxu0 %v24319_v3 }
 0x7b4   : > { %15678 = vmatmul.mubr.bf16.vlgmr.msra.gmra.mrb[24].mxu1 %v24236_v59  ;;  %15732 = vmatpush1.bf16.msra.mxu0 %v21464_v42  ;;  %v21473_v59 = vld [vmem:[%s23895_s17 + $0xab0] ss:$40 sps:$4 sm:$0xff]   ;;  %v18346_v42 = vadd.f32 %v23844_v5, %v1407_v21  ;;  %v21508_v5 = vld [vmem:[%s23895_s17 + $0x24c] ss:$40 sps:$4 sm:$0xff]  }
 0x7b5   : > { %15689 = vmatpush1.bf16.msra.mxu1 %v21461_v60  ;;  %15733 = vmatprep.subr.bf16.mxu0 %v21472_v44 }
 0x7b6   : > { %15690 = vmatprep.subr.bf16.mxu1 %v21469_v53  ;;  %15720 = vmatprep.mubr.bf16.mxu1 %v24245_v1  ;;  %v21479_v1 = vld [vmem:[%s23895_s17 + $0xb00] ss:$40 sps:$4 sm:$0xff]  }
 0x7b7   : > { %15763 = vmatprep.mubr.bf16.mxu0 %v24257_v10  ;;  %v21487_v10 = vld [vmem:[%s23895_s17 + $0xb54] ss:$40 sps:$4 sm:$0xff]  }
 0x7b8   : > { %15734 = vmatpush1.bf16.msra.mxu0 %v21470_v62  ;;  %v21500_v62 = vld [vmem:[%s23895_s17 + $0x1f8] ss:$40 sps:$4 sm:$0xff]  }
 0x7b9   : > { %15691 = vmatpush1.bf16.msra.mxu1 %v21467_v27  ;;  %15735 = vmatprep.subr.bf16.mxu0 %v21478_v0  ;;  %v21497_v27 = vld [vmem:[%s23895_s17 + $0xbf0] ss:$40 sps:$4 sm:$0xff]  }
 0x7ba   : > { %15692 = vmatprep.subr.bf16.mxu1 %v21475_v31  ;;  %v18347_v31 = vadd.f32 %v23846_v6, %v1403_v25  ;;  %v21518_v25 = vld [vmem:[%s23895_s17 + $0x2e8] ss:$40 sps:$4 sm:$0xff]  }
 0x7bc   : > { %15736 = vmatpush1.bf16.msra.mxu0 %v21476_v8  ;;  %v21505_v8 = vld [vmem:[%s23895_s17 + $0xc44] ss:$40 sps:$4 sm:$0xff]  }
 0x7bd   : > { %15693 = vmatpush1.bf16.msra.mxu1 %v21473_v59  ;;  %15737 = vmatprep.subr.bf16.mxu0 %v21484_v13 }
 0x7be   : > { %15694 = vmatprep.subr.bf16.mxu1 %v21481_v2  ;;  %v18348_v2 = vadd.f32 %v23850_v12, %v1407_v21  ;;  %v21514_v12 = vld [vmem:[%s23895_s17 + $0x29c] ss:$40 sps:$4 sm:$0xff]  }
 0x7bf   : > { %v21526_v21 = vld [vmem:[%s23895_s17 + $0x33c] ss:$40 sps:$4 sm:$0xff]  }
 0x7c0   : > { %15738 = vmatpush1.bf16.msra.mxu0 %v21482_v14 }
 0x7c1   : > { %15695 = vmatpush1.bf16.msra.mxu1 %v21479_v1  ;;  %15739 = vmatprep.subr.bf16.mxu0 %v21490_v15  ;;  %v21506_v15 = vld [vmem:[%s23895_s17 + $0x248] ss:$40 sps:$4 sm:$0xff]  }
 0x7c2   : > { %15696 = vmatprep.subr.bf16.mxu1 %v21487_v10  ;;  %v21503_v10 = vld [vmem:[%s23895_s17 + $0xc40] ss:$40 sps:$4 sm:$0xff]  }
 0x7c4   : > { %15740 = vmatpush1.bf16.msra.mxu0 %v21488_v58  ;;  %v21512_v58 = vld [vmem:[%s23895_s17 + $0x298] ss:$40 sps:$4 sm:$0xff]  }
 0x7c5   : > { %15697 = vmatpush1.bf16.msra.mxu1 %v21485_v57  ;;  %15741 = vmatprep.subr.bf16.mxu0 %v21496_v11  ;;  %v21509_v57 = vld [vmem:[%s23895_s17 + $0xc90] ss:$40 sps:$4 sm:$0xff]   ;;  %v21515_v11 = vld [vmem:[%s23895_s17 + $0xce0] ss:$40 sps:$4 sm:$0xff]  }
 0x7c6   : > { %15698 = vmatprep.subr.bf16.mxu1 %v21493_v23  ;;  %v12363_v22 = vpop.f32.mrb[16].mxu0  ;;  %v21520_v23 = vld [vmem:[%s23895_s17 + $0x2ec] ss:$40 sps:$4 sm:$0xff]  }
 0x7c7   : > { %v18365_v24 = vadd.f32 %v12363_v22, %v8257_v20  ;;  %v12365_v60 = vpop.f32.mrb[17].mxu0  ;;  %v21530_v22 = vld [vmem:[%s23895_s17 + $0x388] ss:$40 sps:$4 sm:$0xff]  }
 0x7c8   : > { %v18366_v53 = vadd.f32 %v12365_v60, %v8261_v45  ;;  %v12367_v44 = vpop.f32.mrb[18].mxu0  ;;  %15742 = vmatpush1.bf16.msra.mxu0 %v21494_v16  ;;  %v21529_v16 = vld [vmem:[%s23895_s17 + $0xd84] ss:$40 sps:$4 sm:$0xff]   ;;  %v21533_v60 = vld [vmem:[%s23895_s17 + $0xdd0] ss:$40 sps:$4 sm:$0xff]  }
 0x7c9   : > { %15699 = vmatpush1.bf16.msra.mxu1 %v21491_v34  ;;  %v24532_v0 = vmul.f32 %v18365_v24, %v18345_v40  ;;  %v18367_v59 = vadd.f32 %v12367_v44, %v8257_v20  ;;  %v12369_v4 = vpop.f32.mrb[19].mxu0  ;;  %15743 = vmatprep.subr.bf16.mxu0 %v21502_v51  ;;  %v21523_v20 = vld [vmem:[%s23895_s17 + $0xd34] ss:$40 sps:$4 sm:$0xff]   ;;  %v21524_v34 = vld [vmem:[%s23895_s17 + $0x338] ss:$40 sps:$4 sm:$0xff]  }
 0x7ca   : > { %15700 = vmatprep.subr.bf16.mxu1 %v21499_v33  ;;  %v24537_v13 = vmul.f32 %v18366_v53, %v18346_v42  ;;  %v18368_v1 = vadd.f32 %v12369_v4, %v8261_v45  ;;  %v21521_v45 = vld [vmem:[%s23895_s17 + $0xd30] ss:$40 sps:$4 sm:$0xff]   ;;  %v21532_v33 = vld [vmem:[%s23895_s17 + $0x38c] ss:$40 sps:$4 sm:$0xff]   ;;  %v21527_v51 = vld [vmem:[%s23895_s17 + $0xd80] ss:$40 sps:$4 sm:$0xff]  }
 0x7cb   : > { %v24539_v14 = vmul.f32 %v18367_v59, %v18347_v31  ;;  %v21535_v40 = vld [vmem:[%s23895_s17 + $0xdd4] ss:$40 sps:$4 sm:$0xff]   ;;  %v21536_v42 = vld [vmem:[%s23895_s17 + $0x3d8] ss:$40 sps:$4 sm:$0xff]   ;;  %v21541_v53 = vld [vmem:[%s23895_s17 + $0xe24] ss:$40 sps:$4 sm:$0xff]  }
 0x7cc   : > { %v24541_v6 = vmul.f32 %v18368_v1, %v18348_v2  ;;  %15744 = vmatpush1.bf16.msra.mxu0 %v21500_v62  ;;  %v21538_v24 = vld [vmem:[%s23895_s17 + $0x3dc] ss:$40 sps:$4 sm:$0xff]   ;;  %v21544_v44 = vld [vmem:[%s23895_s17 + $0x42c] ss:$40 sps:$4 sm:$0xff]   ;;  %v21542_v62 = vld [vmem:[%s23895_s17 + $0x428] ss:$40 sps:$4 sm:$0xff]  }
 0x7cd   : > { %15701 = vmatpush1.bf16.msra.mxu1 %v21497_v27  ;;  %15745 = vmatprep.subr.bf16.mxu0 %v21508_v5  ;;  %v21539_v27 = vld [vmem:[%s23895_s17 + $0xe20] ss:$40 sps:$4 sm:$0xff]   ;;  %v21547_v31 = vld [vmem:[%s23895_s17 + $0xe74] ss:$40 sps:$4 sm:$0xff]   ;;  %v21545_v4 = vld [vmem:[%s23895_s17 + $0xe70] ss:$40 sps:$4 sm:$0xff]  }
 0x7ce   : > { %15702 = vmatprep.subr.bf16.mxu1 %v21505_v8  ;;  %v21550_v59 = vld [vmem:[%s23895_s17 + $0x47c] ss:$40 sps:$4 sm:$0xff]   ;;  %v21548_v8 = vld [vmem:[%s23895_s17 + $0x478] ss:$40 sps:$4 sm:$0xff]   ;;  %v21556_v2 = vld [vmem:[%s23895_s17 + $0x4cc] ss:$40 sps:$4 sm:$0xff]  }
 0x7cf   : > { %v21553_v5 = vld [vmem:[%s23895_s17 + $0xec4] ss:$40 sps:$4 sm:$0xff]   ;;  %v21551_v1 = vld [vmem:[%s23895_s17 + $0xec0] ss:$40 sps:$4 sm:$0xff]  }
 0x7d0   : > { %15746 = vmatpush1.bf16.msra.mxu0 %v21506_v15  ;;  %v21559_v15 = vld [vmem:[%s23895_s17 + $0x51c] ss:$40 sps:$4 sm:$0xff]  }
 0x7d1   : > { %15703 = vmatpush1.bf16.msra.mxu1 %v21503_v10  ;;  %15747 = vmatprep.subr.bf16.mxu0 %v21514_v12  ;;  %v21554_v10 = vld [vmem:[%s23895_s17 + $0x4c8] ss:$40 sps:$4 sm:$0xff]   ;;  %v21557_v12 = vld [vmem:[%s23895_s17 + $0x518] ss:$40 sps:$4 sm:$0xff]  }
 0x7d2   : > { %15704 = vmatprep.subr.bf16.mxu1 %v21511_v7  ;;  %v21562_v7 = vld [vmem:[%s23895_s17 + $0x24] ss:$40 sps:$4 sm:$0xff]  }
 0x7d4   : > { %15748 = vmatpush1.bf16.msra.mxu0 %v21512_v58  ;;  %v21565_v58 = vld [vmem:[%s23895_s17 + $0x56c] ss:$40 sps:$4 sm:$0xff]  }
 0x7d5   : > { %15705 = vmatpush1.bf16.msra.mxu1 %v21509_v57  ;;  %15749 = vmatprep.subr.bf16.mxu0 %v21520_v23  ;;  %v21560_v57 = vld [vmem:[%s23895_s17 + $0x20] ss:$40 sps:$4 sm:$0xff]  }
 0x7d6   : > { %15706 = vmatprep.subr.bf16.mxu1 %v21517_v18  ;;  %v21568_v18 = vld [vmem:[%s23895_s17 + $0x74] ss:$40 sps:$4 sm:$0xff]   ;;  %v21563_v23 = vld [vmem:[%s23895_s17 + $0x568] ss:$40 sps:$4 sm:$0xff]  }
 0x7d8   : > { %15750 = vmatpush1.bf16.msra.mxu0 %v21518_v25  ;;  %v21571_v25 = vld [vmem:[%s23895_s17 + $0x5bc] ss:$40 sps:$4 sm:$0xff]  }
 0x7d9   : > { %15707 = vmatpush1.bf16.msra.mxu1 %v21515_v11  ;;  %15751 = vmatprep.subr.bf16.mxu0 %v21526_v21  ;;  %v21566_v11 = vld [vmem:[%s23895_s17 + $0x70] ss:$40 sps:$4 sm:$0xff]  }
 0x7da   : > { %15708 = vmatprep.subr.bf16.mxu1 %v21523_v20  ;;  %v21574_v20 = vld [vmem:[%s23895_s17 + $0xc4] ss:$40 sps:$4 sm:$0xff]   ;;  %v21569_v21 = vld [vmem:[%s23895_s17 + $0x5b8] ss:$40 sps:$4 sm:$0xff]  }
 0x7dc   : > { %15752 = vmatpush1.bf16.msra.mxu0 %v21524_v34  ;;  %v21577_v34 = vld [vmem:[%s23895_s17 + $0x60c] ss:$40 sps:$4 sm:$0xff]  }
 0x7dd   : > { %15709 = vmatpush1.bf16.msra.mxu1 %v21521_v45  ;;  %15753 = vmatprep.subr.bf16.mxu0 %v21532_v33  ;;  %v21572_v45 = vld [vmem:[%s23895_s17 + $0xc0] ss:$40 sps:$4 sm:$0xff]  }
 0x7de   : > { %15710 = vmatprep.subr.bf16.mxu1 %v21529_v16  ;;  %v21580_v16 = vld [vmem:[%s23895_s17 + $0x114] ss:$40 sps:$4 sm:$0xff]   ;;  %v21575_v33 = vld [vmem:[%s23895_s17 + $0x608] ss:$40 sps:$4 sm:$0xff]  }
 0x7e0   : > { %15754 = vmatpush1.bf16.msra.mxu0 %v21530_v22  ;;  %v21583_v22 = vld [vmem:[%s23895_s17 + $0x65c] ss:$40 sps:$4 sm:$0xff]  }
 0x7e1   : > { %15711 = vmatpush1.bf16.msra.mxu1 %v21527_v51  ;;  %15755 = vmatprep.subr.bf16.mxu0 %v21538_v24  ;;  %v21578_v51 = vld [vmem:[%s23895_s17 + $0x110] ss:$40 sps:$4 sm:$0xff]  }
 0x7e2   : > { %15712 = vmatprep.subr.bf16.mxu1 %v21535_v40  ;;  %v21586_v40 = vld [vmem:[%s23895_s17 + $0x164] ss:$40 sps:$4 sm:$0xff]   ;;  %v21581_v24 = vld [vmem:[%s23895_s17 + $0x658] ss:$40 sps:$4 sm:$0xff]  }
 0x7e4   : > { %15756 = vmatpush1.bf16.msra.mxu0 %v21536_v42  ;;  %v24604_v42 = vld [vmem:[%s23668_s16 + $0x2] ss:$4 sm:$0xff] }
 0x7e5   : > { %15713 = vmatpush1.bf16.msra.mxu1 %v21533_v60  ;;  %15757 = vmatprep.subr.bf16.mxu0 %v21544_v44  ;;  %v21584_v60 = vld [vmem:[%s23895_s17 + $0x160] ss:$40 sps:$4 sm:$0xff]   ;;  %v21592_v44 = vld [vmem:[%s23895_s17 + $0x1b4] ss:$40 sps:$4 sm:$0xff]  }
 0x7e6   : > { %15714 = vmatprep.subr.bf16.mxu1 %v21541_v53  ;;  %v21589_v53 = vld [vmem:[%s23895_s17 + $0x6ac] ss:$40 sps:$4 sm:$0xff]  }
 0x7e8   : > { %15758 = vmatpush1.bf16.msra.mxu0 %v21542_v62  ;;  %v12871_v62 = vrot.slane %v24604_v42, %v23679_v61 }
 0x7e9   : > { %15715 = vmatpush1.bf16.msra.mxu1 %v21539_v27  ;;  %15759 = vmatprep.subr.bf16.mxu0 %v21550_v59  ;;  %v12867_v27 = vrot.slane %v24604_v42, %v23676_v28  ;;  %v21590_v59 = vld [vmem:[%s23895_s17 + $0x1b0] ss:$40 sps:$4 sm:$0xff]  }
 0x7ea   : > { %15716 = vmatprep.subr.bf16.mxu1 %v21547_v31  ;;  %v21587_v31 = vld [vmem:[%s23895_s17 + $0x6a8] ss:$40 sps:$4 sm:$0xff]  }
 0x7ec   : > { %15760 = vmatpush1.bf16.msra.mxu0 %v21548_v8  ;;  %v21598_v8 = vld [vmem:[%s23895_s17 + $0x204] ss:$40 sps:$4 sm:$0xff]  }
 0x7ed   : > { %15717 = vmatpush1.bf16.msra.mxu1 %v21545_v4  ;;  %15761 = vmatprep.subr.bf16.mxu0 %v21556_v2  ;;  %v21595_v4 = vld [vmem:[%s23895_s17 + $0x6fc] ss:$40 sps:$4 sm:$0xff]  }
 0x7ee   : > { %15718 = vmatprep.subr.bf16.mxu1 %v21553_v5 }
 0x7f0   : > { %15762 = vmatpush1.bf16.msra.mxu0 %v21554_v10 }
 0x7f1   : > { %15719 = vmatpush1.bf16.msra.mxu1 %v21551_v1  ;;  %15774 = vmatprep.subr.bf16.mxu0 %v21559_v15 }
 0x7f2   : > { %15860 = vmatprep.subr.bf16.mxu1 %v21562_v7  ;;  %v21593_v7 = vld [vmem:[%s23895_s17 + $0x6f8] ss:$40 sps:$4 sm:$0xff]  }
 0x7f3   : > { %15764 = vmatmul.mubr.bf16.vlgmr.msra.gmra.mrb[24].mxu0 %v24423_v41 }
 0x7f4   : > { %15721 = vmatmul.mubr.bf16.vlgmr.msra.gmra.mrb[24].mxu1 %v24319_v3  ;;  %15775 = vmatpush1.bf16.msra.mxu0 %v21557_v12  ;;  %v21828_v3 = vld [vmem:[%s24842_s2 + $0x4] ss:$24 sps:$4 sm:$0xff]   ;;  %v21596_v12 = vld [vmem:[%s23895_s17 + $0x200] ss:$40 sps:$4 sm:$0xff]  }
 0x7f5   : > { %15861 = vmatpush1.bf16.msra.mxu1 %v21560_v57  ;;  %15776 = vmatprep.subr.bf16.mxu0 %v21565_v58 }
 0x7f6   : > { %15862 = vmatprep.subr.bf16.mxu1 %v21568_v18  ;;  %15806 = vmatprep.mubr.bf16.mxu0 %v24434_v32 }
 0x7f7   : > { %15892 = vmatprep.mubr.bf16.mxu1 %v21828_v3 }
 0x7f8   : > { %15777 = vmatpush1.bf16.msra.mxu0 %v21563_v23  ;;  %v21601_v23 = vld [vmem:[%s23895_s17 + $0x74c] ss:$40 sps:$4 sm:$0xff]  }
 0x7f9   : > { %15863 = vmatpush1.bf16.msra.mxu1 %v21566_v11  ;;  %15778 = vmatprep.subr.bf16.mxu0 %v21571_v25  ;;  %v21604_v11 = vld [vmem:[%s23895_s17 + $0x254] ss:$40 sps:$4 sm:$0xff]  }
 0x7fa   : > { %15864 = vmatprep.subr.bf16.mxu1 %v21574_v20 }
 0x7fc   : > { %15779 = vmatpush1.bf16.msra.mxu0 %v21569_v21  ;;  %v21599_v21 = vld [vmem:[%s23895_s17 + $0x748] ss:$40 sps:$4 sm:$0xff]  }
 0x7fd   : > { %15865 = vmatpush1.bf16.msra.mxu1 %v21572_v45  ;;  %15780 = vmatprep.subr.bf16.mxu0 %v21577_v34  ;;  %v21602_v45 = vld [vmem:[%s23895_s17 + $0x250] ss:$40 sps:$4 sm:$0xff]   ;;  %v21607_v34 = vld [vmem:[%s23895_s17 + $0x79c] ss:$40 sps:$4 sm:$0xff]  }
 0x7fe   : > { %15866 = vmatprep.subr.bf16.mxu1 %v21580_v16  ;;  %v21608_v16 = vld [vmem:[%s23895_s17 + $0x2a0] ss:$40 sps:$4 sm:$0xff]  }
 0x800   : > { %15781 = vmatpush1.bf16.msra.mxu0 %v21575_v33  ;;  %v21616_v33 = vld [vmem:[%s23895_s17 + $0x2f4] ss:$40 sps:$4 sm:$0xff]  }
 0x801   : > { %15867 = vmatpush1.bf16.msra.mxu1 %v21578_v51  ;;  %15782 = vmatprep.subr.bf16.mxu0 %v21583_v22  ;;  %v21611_v51 = vld [vmem:[%s23895_s17 + $0x7e8] ss:$40 sps:$4 sm:$0xff]  }
 0x802   : > { %15868 = vmatprep.subr.bf16.mxu1 %v21586_v40  ;;  %v21614_v22 = vld [vmem:[%s23895_s17 + $0x2f0] ss:$40 sps:$4 sm:$0xff]   ;;  %v21619_v40 = vld [vmem:[%s23895_s17 + $0x83c] ss:$40 sps:$4 sm:$0xff]  }
 0x804   : > { %15783 = vmatpush1.bf16.msra.mxu0 %v21581_v24  ;;  %v21622_v24 = vld [vmem:[%s23895_s17 + $0x344] ss:$40 sps:$4 sm:$0xff]  }
 0x805   : > { %15869 = vmatpush1.bf16.msra.mxu1 %v21584_v60  ;;  %15784 = vmatprep.subr.bf16.mxu0 %v21589_v53  ;;  %v21617_v60 = vld [vmem:[%s23895_s17 + $0x838] ss:$40 sps:$4 sm:$0xff]  }
 0x806   : > { %15870 = vmatprep.subr.bf16.mxu1 %v21592_v44  ;;  %v21620_v53 = vld [vmem:[%s23895_s17 + $0x340] ss:$40 sps:$4 sm:$0xff]   ;;  %v21625_v44 = vld [vmem:[%s23895_s17 + $0x88c] ss:$40 sps:$4 sm:$0xff]  }
 0x807   : > { %v15464_v5 = vpop.f32.mrb[20].mxu1 }
 0x808   : > { %v18369_v2 = vadd.f32 %v15464_v5, %v12867_v27  ;;  %v15466_v1 = vpop.f32.mrb[21].mxu1  ;;  %15785 = vmatpush1.bf16.msra.mxu0 %v21587_v31  ;;  %v21626_v31 = vld [vmem:[%s23895_s17 + $0x390] ss:$40 sps:$4 sm:$0xff]   ;;  %v21632_v5 = vld [vmem:[%s23895_s17 + $0x3e0] ss:$40 sps:$4 sm:$0xff]  }
 0x809   : > { %v18370_v10 = vadd.f32 %v15466_v1, %v12871_v62  ;;  %v15468_v15 = vpop.f32.mrb[22].mxu1  ;;  %15871 = vmatpush1.bf16.msra.mxu1 %v21590_v59  ;;  %15786 = vmatprep.subr.bf16.mxu0 %v21595_v4  ;;  %v21631_v59 = vld [vmem:[%s23895_s17 + $0x8dc] ss:$40 sps:$4 sm:$0xff]  }
 0x80a   : > { %v24619_v57 = vmul.f32 %v18369_v2, %v23699_v35  ;;  %v18371_v58 = vadd.f32 %v15468_v15, %v12867_v27  ;;  %v15470_v18 = vpop.f32.mrb[23].mxu1  ;;  %15872 = vmatprep.subr.bf16.mxu1 %v21598_v8  ;;  %v21628_v27 = vld [vmem:[%s23895_s17 + $0x394] ss:$40 sps:$4 sm:$0xff]   ;;  %v21634_v4 = vld [vmem:[%s23895_s17 + $0x3e4] ss:$40 sps:$4 sm:$0xff]  }
 0x80b   : > { %v24624_v25 = vmul.f32 %v18370_v10, %v23704_v52  ;;  %v18372_v20 = vadd.f32 %v15470_v18, %v12871_v62  ;;  %v21610_v52 = vld [vmem:[%s23895_s17 + $0x2a4] ss:$40 sps:$4 sm:$0xff]   ;;  %v21623_v62 = vld [vmem:[%s23895_s17 + $0x888] ss:$40 sps:$4 sm:$0xff]   ;;  %v21629_v8 = vld [vmem:[%s23895_s17 + $0x8d8] ss:$40 sps:$4 sm:$0xff]  }
 0x80c   : > { %v24627_v3 = vmul.f32 %v18371_v58, %v23706_v39  ;;  %15787 = vmatpush1.bf16.msra.mxu0 %v21593_v7  ;;  %v21605_v39 = vld [vmem:[%s23895_s17 + $0x798] ss:$40 sps:$4 sm:$0xff]   ;;  %v21637_v2 = vld [vmem:[%s23895_s17 + $0x92c] ss:$40 sps:$4 sm:$0xff]   ;;  %v21635_v10 = vld [vmem:[%s23895_s17 + $0x928] ss:$40 sps:$4 sm:$0xff]  }
 0x80d   : > { %v24630_v35 = vmul.f32 %v18372_v20, %v23708_v49  ;;  %15873 = vmatpush1.bf16.msra.mxu1 %v21596_v12  ;;  %15788 = vmatprep.subr.bf16.mxu0 %v21601_v23  ;;  %v21613_v49 = vld [vmem:[%s23895_s17 + $0x7ec] ss:$40 sps:$4 sm:$0xff]   ;;  %v21638_v15 = vld [vmem:[%s23895_s17 + $0x430] ss:$40 sps:$4 sm:$0xff]   ;;  %v21643_v7 = vld [vmem:[%s23895_s17 + $0x97c] ss:$40 sps:$4 sm:$0xff]  }
 0x80e   : > { %15874 = vmatprep.subr.bf16.mxu1 %v21604_v11  ;;  %v21640_v1 = vld [vmem:[%s23895_s17 + $0x434] ss:$40 sps:$4 sm:$0xff]   ;;  %v21646_v12 = vld [vmem:[%s23895_s17 + $0x484] ss:$40 sps:$4 sm:$0xff]   ;;  %v21641_v58 = vld [vmem:[%s23895_s17 + $0x978] ss:$40 sps:$4 sm:$0xff]  }
 0x80f   : > { %v21644_v18 = vld [vmem:[%s23895_s17 + $0x480] ss:$40 sps:$4 sm:$0xff]   ;;  %v21649_v23 = vld [vmem:[%s23895_s17 + $0x9cc] ss:$40 sps:$4 sm:$0xff]  }
 0x810   : > { %15789 = vmatpush1.bf16.msra.mxu0 %v21599_v21  ;;  %v21652_v11 = vld [vmem:[%s23895_s17 + $0x4d4] ss:$40 sps:$4 sm:$0xff]   ;;  %v21647_v20 = vld [vmem:[%s23895_s17 + $0x9c8] ss:$40 sps:$4 sm:$0xff]  }
 0x811   : > { %15875 = vmatpush1.bf16.msra.mxu1 %v21602_v45  ;;  %15790 = vmatprep.subr.bf16.mxu0 %v21607_v34  ;;  %v21650_v21 = vld [vmem:[%s23895_s17 + $0x4d0] ss:$40 sps:$4 sm:$0xff]   ;;  %v21655_v45 = vld [vmem:[%s23895_s17 + $0xa1c] ss:$40 sps:$4 sm:$0xff]  }
 0x812   : > { %15876 = vmatprep.subr.bf16.mxu1 %v21610_v52  ;;  %v21658_v34 = vld [vmem:[%s23895_s17 + $0x524] ss:$40 sps:$4 sm:$0xff]   ;;  %v21653_v52 = vld [vmem:[%s23895_s17 + $0xa18] ss:$40 sps:$4 sm:$0xff]  }
 0x814   : > { %15791 = vmatpush1.bf16.msra.mxu0 %v21605_v39  ;;  %v21656_v39 = vld [vmem:[%s23895_s17 + $0x520] ss:$40 sps:$4 sm:$0xff]  }
 0x815   : > { %15877 = vmatpush1.bf16.msra.mxu1 %v21608_v16  ;;  %15792 = vmatprep.subr.bf16.mxu0 %v21613_v49  ;;  %v21661_v16 = vld [vmem:[%s23895_s17 + $0xa6c] ss:$40 sps:$4 sm:$0xff]  }
 0x816   : > { %15878 = vmatprep.subr.bf16.mxu1 %v21616_v33  ;;  %v21664_v49 = vld [vmem:[%s23895_s17 + $0x574] ss:$40 sps:$4 sm:$0xff]   ;;  %v24675_v33 = vld [vmem:[%s24842_s2 + $0x8] ss:$24 sps:$4 sm:$0xff]  }
 0x818   : > { %15793 = vmatpush1.bf16.msra.mxu0 %v21611_v51  ;;  %v21659_v51 = vld [vmem:[%s23895_s17 + $0xa68] ss:$40 sps:$4 sm:$0xff]  }
 0x819   : > { %15879 = vmatpush1.bf16.msra.mxu1 %v21614_v22  ;;  %15794 = vmatprep.subr.bf16.mxu0 %v21619_v40  ;;  %v21662_v22 = vld [vmem:[%s23895_s17 + $0x570] ss:$40 sps:$4 sm:$0xff]   ;;  %v21667_v40 = vld [vmem:[%s23895_s17 + $0xabc] ss:$40 sps:$4 sm:$0xff]  }
 0x81a   : > { %15880 = vmatprep.subr.bf16.mxu1 %v21622_v24  ;;  %v21670_v24 = vld [vmem:[%s23895_s17 + $0x5c4] ss:$40 sps:$4 sm:$0xff]  }
 0x81c   : > { %15795 = vmatpush1.bf16.msra.mxu0 %v21617_v60  ;;  %v24686_v60 = vld [vmem:[%s24842_s2 + $0x14] ss:$24 sps:$4 sm:$0xff]  }
 0x81d   : > { %15881 = vmatpush1.bf16.msra.mxu1 %v21620_v53  ;;  %15796 = vmatprep.subr.bf16.mxu0 %v21625_v44  ;;  %v21668_v53 = vld [vmem:[%s23895_s17 + $0x5c0] ss:$40 sps:$4 sm:$0xff]   ;;  %v21673_v44 = vld [vmem:[%s23895_s17 + $0xb0c] ss:$40 sps:$4 sm:$0xff]  }
 0x81e   : > { %15882 = vmatprep.subr.bf16.mxu1 %v21628_v27  ;;  %v21676_v27 = vld [vmem:[%s23895_s17 + $0x614] ss:$40 sps:$4 sm:$0xff]  }
 0x820   : > { %15797 = vmatpush1.bf16.msra.mxu0 %v21623_v62  ;;  %v21671_v62 = vld [vmem:[%s23895_s17 + $0xb08] ss:$40 sps:$4 sm:$0xff]  }
 0x821   : > { %15883 = vmatpush1.bf16.msra.mxu1 %v21626_v31  ;;  %15798 = vmatprep.subr.bf16.mxu0 %v21631_v59  ;;  %v21674_v31 = vld [vmem:[%s23895_s17 + $0x610] ss:$40 sps:$4 sm:$0xff]   ;;  %v21682_v59 = vld [vmem:[%s23895_s17 + $0x664] ss:$40 sps:$4 sm:$0xff]  }
 0x822   : > { %15884 = vmatprep.subr.bf16.mxu1 %v21634_v4  ;;  %v21677_v4 = vld [vmem:[%s23895_s17 + $0xb58] ss:$40 sps:$4 sm:$0xff]  }
 0x824   : > { %15799 = vmatpush1.bf16.msra.mxu0 %v21629_v8  ;;  %v21680_v8 = vld [vmem:[%s23895_s17 + $0x660] ss:$40 sps:$4 sm:$0xff]  }
 0x825   : > { %15885 = vmatpush1.bf16.msra.mxu1 %v21632_v5  ;;  %15800 = vmatprep.subr.bf16.mxu0 %v21637_v2  ;;  %v21685_v5 = vld [vmem:[%s23895_s17 + $0xbac] ss:$40 sps:$4 sm:$0xff]  }
 0x826   : > { %15886 = vmatprep.subr.bf16.mxu1 %v21640_v1  ;;  %v21688_v2 = vld [vmem:[%s23895_s17 + $0x6b4] ss:$40 sps:$4 sm:$0xff]   ;;  %v21683_v1 = vld [vmem:[%s23895_s17 + $0xba8] ss:$40 sps:$4 sm:$0xff]  }
 0x828   : > { %15801 = vmatpush1.bf16.msra.mxu0 %v21635_v10  ;;  %v21686_v10 = vld [vmem:[%s23895_s17 + $0x6b0] ss:$40 sps:$4 sm:$0xff]  }
 0x829   : > { %15887 = vmatpush1.bf16.msra.mxu1 %v21638_v15  ;;  %15802 = vmatprep.subr.bf16.mxu0 %v21643_v7  ;;  %v21691_v15 = vld [vmem:[%s23895_s17 + $0xbfc] ss:$40 sps:$4 sm:$0xff]  }
 0x82a   : > { %15888 = vmatprep.subr.bf16.mxu1 %v21646_v12  ;;  %v21694_v7 = vld [vmem:[%s23895_s17 + $0x704] ss:$40 sps:$4 sm:$0xff]   ;;  %v21689_v12 = vld [vmem:[%s23895_s17 + $0xbf8] ss:$40 sps:$4 sm:$0xff]  }
 0x82c   : > { %15803 = vmatpush1.bf16.msra.mxu0 %v21641_v58  ;;  %v21692_v58 = vld [vmem:[%s23895_s17 + $0x700] ss:$40 sps:$4 sm:$0xff]  }
 0x82d   : > { %15889 = vmatpush1.bf16.msra.mxu1 %v21644_v18  ;;  %15804 = vmatprep.subr.bf16.mxu0 %v21649_v23  ;;  %v21697_v18 = vld [vmem:[%s23895_s17 + $0xc4c] ss:$40 sps:$4 sm:$0xff]  }
 0x82e   : > { %15890 = vmatprep.subr.bf16.mxu1 %v21652_v11  ;;  %v21700_v23 = vld [vmem:[%s23895_s17 + $0x754] ss:$40 sps:$4 sm:$0xff]   ;;  %v21695_v11 = vld [vmem:[%s23895_s17 + $0xc48] ss:$40 sps:$4 sm:$0xff]  }
 0x830   : > { %15805 = vmatpush1.bf16.msra.mxu0 %v21647_v20  ;;  %v21698_v20 = vld [vmem:[%s23895_s17 + $0x750] ss:$40 sps:$4 sm:$0xff]  }
 0x831   : > { %15891 = vmatpush1.bf16.msra.mxu1 %v21650_v21  ;;  %15817 = vmatprep.subr.bf16.mxu0 %v21655_v45  ;;  %v21703_v21 = vld [vmem:[%s23895_s17 + $0xc9c] ss:$40 sps:$4 sm:$0xff]  }
 0x832   : > { %15903 = vmatprep.subr.bf16.mxu1 %v21658_v34  ;;  %v21706_v45 = vld [vmem:[%s23895_s17 + $0x7a4] ss:$40 sps:$4 sm:$0xff]   ;;  %v21701_v34 = vld [vmem:[%s23895_s17 + $0xc98] ss:$40 sps:$4 sm:$0xff]  }
 0x833   : > { %15807 = vmatmul.mubr.bf16.vlgmr.msra.gmra.mrb[24].mxu0 %v24675_v33 }
 0x834   : > { %15893 = vmatmul.mubr.bf16.vlgmr.msra.gmra.mrb[28].mxu1 %v24423_v41  ;;  %15818 = vmatpush1.bf16.msra.mxu0 %v21653_v52  ;;  %v21665_v41 = vld [vmem:[%s23895_s17 + $0xab8] ss:$40 sps:$4 sm:$0xff]  }
 0x835   : > { %15904 = vmatpush1.bf16.msra.mxu1 %v21656_v39  ;;  %15819 = vmatprep.subr.bf16.mxu0 %v21661_v16  ;;  %v21704_v52 = vld [vmem:[%s23895_s17 + $0x7a0] ss:$40 sps:$4 sm:$0xff]   ;;  %v21709_v39 = vld [vmem:[%s23895_s17 + $0xcec] ss:$40 sps:$4 sm:$0xff]  }
 0x836   : > { %15905 = vmatprep.subr.bf16.mxu1 %v21664_v49  ;;  %15849 = vmatprep.mubr.bf16.mxu0 %v24686_v60  ;;  %v21712_v16 = vld [vmem:[%s23895_s17 + $0x7f4] ss:$40 sps:$4 sm:$0xff]   ;;  %v21707_v49 = vld [vmem:[%s23895_s17 + $0xce8] ss:$40 sps:$4 sm:$0xff]  }
 0x837   : > { %15935 = vmatprep.mubr.bf16.mxu1 %v24434_v32  ;;  %v21679_v32 = vld [vmem:[%s23895_s17 + $0xb5c] ss:$40 sps:$4 sm:$0xff]  }
 0x838   : > { %15820 = vmatpush1.bf16.msra.mxu0 %v21659_v51  ;;  %v21710_v51 = vld [vmem:[%s23895_s17 + $0x7f0] ss:$40 sps:$4 sm:$0xff]  }
 0x839   : > { %15906 = vmatpush1.bf16.msra.mxu1 %v21662_v22  ;;  %15821 = vmatprep.subr.bf16.mxu0 %v21667_v40  ;;  %v21715_v22 = vld [vmem:[%s23895_s17 + $0xd3c] ss:$40 sps:$4 sm:$0xff]  }
 0x83a   : > { %15907 = vmatprep.subr.bf16.mxu1 %v21670_v24  ;;  %v21718_v40 = vld [vmem:[%s23895_s17 + $0x844] ss:$40 sps:$4 sm:$0xff]   ;;  %v21713_v24 = vld [vmem:[%s23895_s17 + $0xd38] ss:$40 sps:$4 sm:$0xff]  }
 0x83c   : > { %15822 = vmatpush1.bf16.msra.mxu0 %v21665_v41  ;;  %v21716_v41 = vld [vmem:[%s23895_s17 + $0x840] ss:$40 sps:$4 sm:$0xff]  }
 0x83d   : > { %15908 = vmatpush1.bf16.msra.mxu1 %v21668_v53  ;;  %15823 = vmatprep.subr.bf16.mxu0 %v21673_v44  ;;  %v21721_v53 = vld [vmem:[%s23895_s17 + $0xd8c] ss:$40 sps:$4 sm:$0xff]  }
 0x83e   : > { %15909 = vmatprep.subr.bf16.mxu1 %v21676_v27  ;;  %v21724_v44 = vld [vmem:[%s23895_s17 + $0x894] ss:$40 sps:$4 sm:$0xff]   ;;  %v21719_v27 = vld [vmem:[%s23895_s17 + $0xd88] ss:$40 sps:$4 sm:$0xff]  }
 0x840   : > { %15824 = vmatpush1.bf16.msra.mxu0 %v21671_v62  ;;  %v21722_v62 = vld [vmem:[%s23895_s17 + $0x890] ss:$40 sps:$4 sm:$0xff]  }
 0x841   : > { %15910 = vmatpush1.bf16.msra.mxu1 %v21674_v31  ;;  %15825 = vmatprep.subr.bf16.mxu0 %v21679_v32  ;;  %v21727_v31 = vld [vmem:[%s23895_s17 + $0xddc] ss:$40 sps:$4 sm:$0xff]  }
 0x842   : > { %15911 = vmatprep.subr.bf16.mxu1 %v21682_v59  ;;  %v21730_v32 = vld [vmem:[%s23895_s17 + $0x8e4] ss:$40 sps:$4 sm:$0xff]   ;;  %v21725_v59 = vld [vmem:[%s23895_s17 + $0xdd8] ss:$40 sps:$4 sm:$0xff]  }
 0x844   : > { %15826 = vmatpush1.bf16.msra.mxu0 %v21677_v4  ;;  %v21728_v4 = vld [vmem:[%s23895_s17 + $0x8e0] ss:$40 sps:$4 sm:$0xff]  }
 0x845   : > { %15912 = vmatpush1.bf16.msra.mxu1 %v21680_v8  ;;  %15827 = vmatprep.subr.bf16.mxu0 %v21685_v5  ;;  %v21733_v8 = vld [vmem:[%s23895_s17 + $0xe2c] ss:$40 sps:$4 sm:$0xff]  }
 0x846   : > { %15913 = vmatprep.subr.bf16.mxu1 %v21688_v2  ;;  %v21736_v5 = vld [vmem:[%s23895_s17 + $0x934] ss:$40 sps:$4 sm:$0xff]   ;;  %v21731_v2 = vld [vmem:[%s23895_s17 + $0xe28] ss:$40 sps:$4 sm:$0xff]  }
 0x848   : > { %15828 = vmatpush1.bf16.msra.mxu0 %v21683_v1  ;;  %v21734_v1 = vld [vmem:[%s23895_s17 + $0x930] ss:$40 sps:$4 sm:$0xff]  }
 0x849   : > { %15914 = vmatpush1.bf16.msra.mxu1 %v21686_v10  ;;  %15829 = vmatprep.subr.bf16.mxu0 %v21691_v15  ;;  %v21739_v10 = vld [vmem:[%s23895_s17 + $0xe7c] ss:$40 sps:$4 sm:$0xff]  }
 0x84a   : > { %15915 = vmatprep.subr.bf16.mxu1 %v21694_v7  ;;  %v21742_v15 = vld [vmem:[%s23895_s17 + $0x984] ss:$40 sps:$4 sm:$0xff]   ;;  %v21737_v7 = vld [vmem:[%s23895_s17 + $0xe78] ss:$40 sps:$4 sm:$0xff]  }
 0x84c   : > { %15830 = vmatpush1.bf16.msra.mxu0 %v21689_v12  ;;  %v21740_v12 = vld [vmem:[%s23895_s17 + $0x980] ss:$40 sps:$4 sm:$0xff]  }
 0x84d   : > { %15916 = vmatpush1.bf16.msra.mxu1 %v21692_v58  ;;  %15831 = vmatprep.subr.bf16.mxu0 %v21697_v18  ;;  %v21745_v58 = vld [vmem:[%s23895_s17 + $0xecc] ss:$40 sps:$4 sm:$0xff]  }
 0x84e   : > { %15917 = vmatprep.subr.bf16.mxu1 %v21700_v23  ;;  %v21748_v18 = vld [vmem:[%s23895_s17 + $0x9d4] ss:$40 sps:$4 sm:$0xff]   ;;  %v21743_v23 = vld [vmem:[%s23895_s17 + $0xec8] ss:$40 sps:$4 sm:$0xff]  }
 0x850   : > { %15832 = vmatpush1.bf16.msra.mxu0 %v21695_v11  ;;  %v21746_v11 = vld [vmem:[%s23895_s17 + $0x9d0] ss:$40 sps:$4 sm:$0xff]  }
 0x851   : > { %15918 = vmatpush1.bf16.msra.mxu1 %v21698_v20  ;;  %15833 = vmatprep.subr.bf16.mxu0 %v21703_v21  ;;  %v21751_v20 = vld [vmem:[%s23895_s17 + $0xa24] ss:$40 sps:$4 sm:$0xff]   ;;  %v21749_v21 = vld [vmem:[%s23895_s17 + $0xa20] ss:$40 sps:$4 sm:$0xff]  }
 0x852   : > { %15919 = vmatprep.subr.bf16.mxu1 %v21706_v45  ;;  %v21754_v45 = vld [vmem:[%s23895_s17 + $0xa74] ss:$40 sps:$4 sm:$0xff]  }
 0x854   : > { %15834 = vmatpush1.bf16.msra.mxu0 %v21701_v34  ;;  %v24750_v34 = vld [vmem:[%s24842_s2 + $0x10] ss:$24 sps:$4 sm:$0xff]  }
 0x855   : > { %15920 = vmatpush1.bf16.msra.mxu1 %v21704_v52  ;;  %15835 = vmatprep.subr.bf16.mxu0 %v21709_v39  ;;  %v21752_v52 = vld [vmem:[%s23895_s17 + $0xa70] ss:$40 sps:$4 sm:$0xff]   ;;  %v21757_v39 = vld [vmem:[%s23895_s17 + $0xac4] ss:$40 sps:$4 sm:$0xff]  }
 0x856   : > { %15921 = vmatprep.subr.bf16.mxu1 %v21712_v16  ;;  %v21755_v16 = vld [vmem:[%s23895_s17 + $0xac0] ss:$40 sps:$4 sm:$0xff]  }
 0x858   : > { %15836 = vmatpush1.bf16.msra.mxu0 %v21707_v49  ;;  %v21760_v49 = vld [vmem:[%s23895_s17 + $0xb14] ss:$40 sps:$4 sm:$0xff]  }
 0x859   : > { %15922 = vmatpush1.bf16.msra.mxu1 %v21710_v51  ;;  %15837 = vmatprep.subr.bf16.mxu0 %v21715_v22  ;;  %v21758_v51 = vld [vmem:[%s23895_s17 + $0xb10] ss:$40 sps:$4 sm:$0xff]   ;;  %v21763_v22 = vld [vmem:[%s23895_s17 + $0xb64] ss:$40 sps:$4 sm:$0xff]  }
 0x85a   : > { %15923 = vmatprep.subr.bf16.mxu1 %v21718_v40  ;;  %v21766_v40 = vld [vmem:[%s23895_s17 + $0xbb4] ss:$40 sps:$4 sm:$0xff]  }
 0x85c   : > { %15838 = vmatpush1.bf16.msra.mxu0 %v21713_v24  ;;  %v12879_v24 = vrot.slane %v24604_v42, %v23985_v38 }
 0x85d   : > { %15924 = vmatpush1.bf16.msra.mxu1 %v21716_v41  ;;  %15839 = vmatprep.subr.bf16.mxu0 %v21721_v53  ;;  %v21764_v41 = vld [vmem:[%s23895_s17 + $0xbb0] ss:$40 sps:$4 sm:$0xff]   ;;  %v21769_v53 = vld [vmem:[%s23895_s17 + $0xc04] ss:$40 sps:$4 sm:$0xff]  }
 0x85e   : > { %15925 = vmatprep.subr.bf16.mxu1 %v21724_v44 }
 0x860   : > { %15840 = vmatpush1.bf16.msra.mxu0 %v21719_v27 }
 0x861   : > { %15926 = vmatpush1.bf16.msra.mxu1 %v21722_v62  ;;  %15841 = vmatprep.subr.bf16.mxu0 %v21727_v31 }
 0x862   : > { %15927 = vmatprep.subr.bf16.mxu1 %v21730_v32 }
 0x864   : > { %15842 = vmatpush1.bf16.msra.mxu0 %v21725_v59  ;;  %v21767_v59 = vld [vmem:[%s23895_s17 + $0xc00] ss:$40 sps:$4 sm:$0xff]  }
 0x865   : > { %15928 = vmatpush1.bf16.msra.mxu1 %v21728_v4  ;;  %15843 = vmatprep.subr.bf16.mxu0 %v21733_v8 }
 0x866   : > { %15929 = vmatprep.subr.bf16.mxu1 %v21736_v5  ;;  %v21772_v5 = vld [vmem:[%s23895_s17 + $0xc54] ss:$40 sps:$4 sm:$0xff]  }
 0x868   : > { %15844 = vmatpush1.bf16.msra.mxu0 %v21731_v2 }
 0x869   : > { %15930 = vmatpush1.bf16.msra.mxu1 %v21734_v1  ;;  %15845 = vmatprep.subr.bf16.mxu0 %v21739_v10 }
 0x86a   : > { %15931 = vmatprep.subr.bf16.mxu1 %v21742_v15 }
 0x86c   : > { %15846 = vmatpush1.bf16.msra.mxu0 %v21737_v7 }
 0x86d   : > { %15932 = vmatpush1.bf16.msra.mxu1 %v21740_v12  ;;  %15847 = vmatprep.subr.bf16.mxu0 %v21745_v58 }
 0x86e   : > { %15933 = vmatprep.subr.bf16.mxu1 %v21748_v18  ;;  %v21784_v18 = vld [vmem:[%s23895_s17 + $0xd94] ss:$40 sps:$4 sm:$0xff]  }
 0x870   : > { %15848 = vmatpush1.bf16.msra.mxu0 %v21743_v23  ;;  %v21787_v23 = vld [vmem:[%s23895_s17 + $0xde4] ss:$40 sps:$4 sm:$0xff]  }
 0x871   : > { %15934 = vmatpush1.bf16.msra.mxu1 %v21746_v11  ;;  %v21785_v11 = vld [vmem:[%s23895_s17 + $0xde0] ss:$40 sps:$4 sm:$0xff]  }
 0x872   : > { %15946 = vmatprep.subr.bf16.mxu1 %v21751_v20  ;;  %v21790_v20 = vld [vmem:[%s23895_s17 + $0xe34] ss:$40 sps:$4 sm:$0xff]  }
 0x873   : > { %15850 = vmatmul.mubr.bf16.vlgmr.msra.gmra.mrb[24].mxu0 %v24750_v34 }
 0x874   : > { %15936 = vmatmul.mubr.bf16.vlgmr.msra.gmra.mrb[28].mxu1 %v24675_v33  ;;  %v21761_v33 = vld [vmem:[%s23895_s17 + $0xb60] ss:$40 sps:$4 sm:$0xff]  }
 0x875   : > { %15947 = vmatpush1.bf16.msra.mxu1 %v21749_v21  ;;  %15978 = vmatprep.mubr.bf16.mxu1 %v24686_v60  ;;  %v12875_v60 = vrot.slane %v24604_v42, %v23982_v47  ;;  %v21788_v21 = vld [vmem:[%s23895_s17 + $0xe30] ss:$40 sps:$4 sm:$0xff]  }
 0x876   : > { %15948 = vmatprep.subr.bf16.mxu1 %v21754_v45  ;;  %v21793_v45 = vld [vmem:[%s23895_s17 + $0xe84] ss:$40 sps:$4 sm:$0xff]  }
 0x879   : > { %15949 = vmatpush1.bf16.msra.mxu1 %v21752_v52  ;;  %v21791_v52 = vld [vmem:[%s23895_s17 + $0xe80] ss:$40 sps:$4 sm:$0xff]  }
 0x87a   : > { %15950 = vmatprep.subr.bf16.mxu1 %v21757_v39  ;;  %v21796_v39 = vld [vmem:[%s23895_s17 + $0xed4] ss:$40 sps:$4 sm:$0xff]  }
 0x87d   : > { %15951 = vmatpush1.bf16.msra.mxu1 %v21755_v16  ;;  %v21794_v16 = vld [vmem:[%s23895_s17 + $0xed0] ss:$40 sps:$4 sm:$0xff]  }
 0x87e   : > { %15952 = vmatprep.subr.bf16.mxu1 %v21760_v49  ;;  %v12883_v49 = vrot.slane %v24604_v42, %v24154_v26 }
 0x881   : > { %15953 = vmatpush1.bf16.msra.mxu1 %v21758_v51  ;;  %v12887_v51 = vrot.slane %v24604_v42, %v24157_v56 }
 0x882   : > { %15954 = vmatprep.subr.bf16.mxu1 %v21763_v22 }
 0x885   : > { %15955 = vmatpush1.bf16.msra.mxu1 %v21761_v33 }
 0x886   : > { %15956 = vmatprep.subr.bf16.mxu1 %v21766_v40  ;;  %v15593_v44 = vpop.f32.mrb[20].mxu0 }
 0x887   : > { %v18373_v27 = vadd.f32 %v15593_v44, %v12875_v60  ;;  %v15595_v62 = vpop.f32.mrb[21].mxu0 }
 0x888   : > { %v18374_v31 = vadd.f32 %v15595_v62, %v12879_v24  ;;  %v15597_v32 = vpop.f32.mrb[22].mxu0 }
 0x889   : > { %15957 = vmatpush1.bf16.msra.mxu1 %v21764_v41  ;;  %v16011_v4 = vmul.f32 %v18373_v27, %v24006_v19  ;;  %v18375_v47 = vadd.f32 %v15597_v32, %v12875_v60  ;;  %v15599_v8 = vpop.f32.mrb[23].mxu0  ;;  %v21770_v19 = vld [vmem:[%s23895_s17 + $0xc50] ss:$40 sps:$4 sm:$0xff]  }
 0x88a   : > { %15958 = vmatprep.subr.bf16.mxu1 %v21769_v53  ;;  %v16012_v38 = vmul.f32 %v18374_v31, %v24011_v9  ;;  %v18376_v2 = vadd.f32 %v15599_v8, %v12879_v24  ;;  %v21775_v9 = vld [vmem:[%s23895_s17 + $0xca4] ss:$40 sps:$4 sm:$0xff]  }
 0x88b   : > { %v16029_v1 = vadd.f32 %v16011_v4, %v24619_v57  ;;  %v16021_v10 = vmul.f32 %v18375_v47, %v24013_v36  ;;  %v21773_v57 = vld [vmem:[%s23895_s17 + $0xca0] ss:$40 sps:$4 sm:$0xff]   ;;  %v21778_v36 = vld [vmem:[%s23895_s17 + $0xcf4] ss:$40 sps:$4 sm:$0xff]   ;;  %v12891_v4 = vrot.slane %v24604_v42, %v24342_v37  ;;  %v12895_v47 = vrot.slane %v24604_v42, %v24345_v55 }
 0x88c   : > { %v16030_v15 = vadd.f32 %v16012_v38, %v24624_v25  ;;  %v16022_v7 = vmul.f32 %v18376_v2, %v24015_v50  ;;  %v21776_v50 = vld [vmem:[%s23895_s17 + $0xcf0] ss:$40 sps:$4 sm:$0xff]   ;;  %v21781_v25 = vld [vmem:[%s23895_s17 + $0xd44] ss:$40 sps:$4 sm:$0xff]  }
 0x88d   : > { %15959 = vmatpush1.bf16.msra.mxu1 %v21767_v59  ;;  %v16031_v12 = vadd.f32 %v16021_v10, %v24627_v3  ;;  %v21779_v3 = vld [vmem:[%s23895_s17 + $0xd40] ss:$40 sps:$4 sm:$0xff]  }
 0x88e   : > { %15960 = vmatprep.subr.bf16.mxu1 %v21772_v5  ;;  %v16032_v58 = vadd.f32 %v16022_v7, %v24630_v35  ;;  %v21782_v35 = vld [vmem:[%s23895_s17 + $0xd90] ss:$40 sps:$4 sm:$0xff]   ;;  %s16210_s17 = sshll.u32 %s22183_s30, 5  ;;  %s18328_s30 = sshll.u32 (%p24864_p2), %s22026_s28, 4 }
 0x88f   : > { %s16062_s8 = scalar_lea.vmem (%p24864_p2), %s24847_s7, %s18328_s30 }
 0x891   : > { %15961 = vmatpush1.bf16.msra.mxu1 %v21770_v19 }
 0x892   : > { %15962 = vmatprep.subr.bf16.mxu1 %v21775_v9 }
 0x895   : > { %15963 = vmatpush1.bf16.msra.mxu1 %v21773_v57 }
 0x896   : > { %15964 = vmatprep.subr.bf16.mxu1 %v21778_v36 }
 0x899   : > { %15965 = vmatpush1.bf16.msra.mxu1 %v21776_v50 }
 0x89a   : > { %15966 = vmatprep.subr.bf16.mxu1 %v21781_v25 }
 0x89d   : > { %15967 = vmatpush1.bf16.msra.mxu1 %v21779_v3 }
 0x89e   : > { %15968 = vmatprep.subr.bf16.mxu1 %v21784_v18 }
 0x8a1   : > { %15969 = vmatpush1.bf16.msra.mxu1 %v21782_v35 }
 0x8a2   : > { %15970 = vmatprep.subr.bf16.mxu1 %v21787_v23 }
 0x8a5   : > { %15971 = vmatpush1.bf16.msra.mxu1 %v21785_v11 }
 0x8a6   : > { %15972 = vmatprep.subr.bf16.mxu1 %v21790_v20 }
 0x8a9   : > { %15973 = vmatpush1.bf16.msra.mxu1 %v21788_v21 }
 0x8aa   : > { %15974 = vmatprep.subr.bf16.mxu1 %v21793_v45 }
 0x8ad   : > { %15975 = vmatpush1.bf16.msra.mxu1 %v21791_v52 }
 0x8ae   : > { %15976 = vmatprep.subr.bf16.mxu1 %v21796_v39 }
 0x8b1   : > { %15977 = vmatpush1.bf16.msra.mxu1 %v21794_v16 }
 0x8b4   : > { %15979 = vmatmul.mubr.bf16.vlgmr.msra.gmra.mrb[28].mxu1 %v24750_v34 }
 0x8c7   : > { %v15722_v22 = vpop.f32.mrb[24].mxu1 }
 0x8c8   : > { %v18377_v33 = vadd.f32 %v15722_v22, %v12883_v49  ;;  %v15724_v40 = vpop.f32.mrb[25].mxu1 }
 0x8c9   : > { %v18378_v60 = vadd.f32 %v15724_v40, %v12887_v51  ;;  %v15726_v24 = vpop.f32.mrb[26].mxu1 }
 0x8ca   : > { %v16013_v41 = vmul.f32 %v18377_v33, %v24186_v54  ;;  %v18379_v53 = vadd.f32 %v15726_v24, %v12883_v49  ;;  %v15728_v44 = vpop.f32.mrb[27].mxu1 }
 0x8cb   : > { %v16014_v27 = vmul.f32 %v18378_v60, %v24191_v63  ;;  %v18380_v62 = vadd.f32 %v15728_v44, %v12887_v51 }
 0x8cc   : > { %v16033_v31 = vadd.f32 %v16029_v1, %v16013_v41  ;;  %v16023_v34 = vmul.f32 %v18379_v53, %v24193_v43 }
 0x8cd   : > { %v16034_v32 = vadd.f32 %v16030_v15, %v16014_v27  ;;  %v16024_v26 = vmul.f32 %v18380_v62, %v24195_v29 }
 0x8ce   : > { %v16035_v59 = vadd.f32 %v16031_v12, %v16023_v34  ;;  %v17836_v12 = vld [vmem:[%s23668_s16 + $0x22] ss:$4 sm:$0x3]  ;;  %s384_s16 = scalar_lea.vmem [#allocation7], %s16210_s17 }
 0x8cf   : > { %v16036_v56 = vadd.f32 %v16032_v58, %v16024_v26  ;;  %v12899_v9 = vrot.slane %v17836_v12, %v23676_v28  ;;  %v12903_v58 = vrot.slane %v17836_v12, %v23679_v61 }
 0x946   : > { %v15851_v54 = vpop.f32.mrb[24].mxu0 }
 0x947   : > { %v18381_v8 = vadd.f32 %v15851_v54, %v12891_v4  ;;  %v15853_v5 = vpop.f32.mrb[25].mxu0 }
 0x948   : > { %v18382_v63 = vadd.f32 %v15853_v5, %v12895_v47  ;;  %v15855_v38 = vpop.f32.mrb[26].mxu0 }
 0x949   : > { %v16015_v2 = vmul.f32 %v18381_v8, %v24368_v17  ;;  %v18383_v43 = vadd.f32 %v15855_v38, %v12891_v4  ;;  %v15857_v1 = vpop.f32.mrb[27].mxu0 }
 0x94a   : > { %v16016_v29 = vmul.f32 %v18382_v63, %v24373_v46  ;;  %v18384_v10 = vadd.f32 %v15857_v1, %v12895_v47 }
 0x94b   : > { %v16037_v15 = vadd.f32 %v16033_v31, %v16015_v2  ;;  %v16025_v37 = vmul.f32 %v18383_v43, %v24375_v48 }
 0x94c   : > { %v16038_v7 = vadd.f32 %v16034_v32, %v16016_v29  ;;  %v16026_v55 = vmul.f32 %v18384_v10, %v24377_v30 }
 0x94d   : > { %v16039_v42 = vadd.f32 %v16035_v59, %v16025_v37 }
 0x94e   : > { %v16040_v19 = vadd.f32 %v16036_v56, %v16026_v55 }
 0x987   : > { %v15980_v17 = vpop.f32.mrb[28].mxu1 }
 0x988   : > { %v18385_v57 = vadd.f32 %v15980_v17, %v12899_v9  ;;  %v15982_v36 = vpop.f32.mrb[29].mxu1 }
 0x989   : > { %v18386_v50 = vadd.f32 %v15982_v36, %v12903_v58  ;;  %v15984_v46 = vpop.f32.mrb[30].mxu1 }
 0x98a   : > { %v16017_v25 = vmul.f32 %v18385_v57, %v24532_v0  ;;  %v18387_v3 = vadd.f32 %v15984_v46, %v12899_v9  ;;  %v15986_v48 = vpop.f32.mrb[31].mxu1 }
 0x98b   : > { %v16018_v18 = vmul.f32 %v18386_v50, %v24537_v13  ;;  %v18388_v30 = vadd.f32 %v15986_v48, %v12903_v58 }
 0x98c   : > { %v16041_v35 = vadd.f32 %v16037_v15, %v16017_v25  ;;  %v16027_v23 = vmul.f32 %v18387_v3, %v24539_v14 }
 0x98d   : > { %v16042_v11 = vadd.f32 %v16038_v7, %v16018_v18  ;;  %v16028_v28 = vmul.f32 %v18388_v30, %v24541_v6  ;;  %16059 = sbr.rel (!%p24864_p2) target bundleno = 2460 (0x99c), region = 64 }
 0x98e   : > { %v16045_v61 = vmul.f32 0.2, %v16041_v35  ;;  %v16043_v20 = vadd.f32 %v16039_v42, %v16027_v23 }
 0x98f   : > { %v16046_v21 = vmul.f32 0.2, %v16042_v11  ;;  %v16044_v45 = vadd.f32 %v16040_v19, %v16028_v28 }
 0x990   : > { %16049 = vst [vmem:[%s384_s16] sm:$0xff] %v16045_v61  ;;  %v16047_v52 = vmul.f32 0.2, %v16043_v20 }
 0x991   : > { %16050 = vst [vmem:[%s384_s16 + $0x8] sm:$0xff] %v16046_v21  ;;  %v16048_v0 = vmul.f32 0.2, %v16044_v45 }
 0x992   : > { %16051 = vst [vmem:[%s384_s16 + $0x10] sm:$0xff] %v16047_v52 }
 0x993   : > { %16052 = vst [vmem:[%s384_s16 + $0x18] sm:$0xff] %v16048_v0 }
 0x997   : > { %v16075_v13 = vld [vmem:[%s384_s16] sm:$0xff] }
 0x998   : > { %v16077_v14 = vld [vmem:[%s384_s16 + $0x8] sm:$0xff]  ;;  %16076 = vst [vmem:[%s16062_s8] sm:$0xff] %v16075_v13 }
 0x999   : > { %v16079_v39 = vld [vmem:[%s384_s16 + $0x10] sm:$0xff]  ;;  %16078 = vst [vmem:[%s16062_s8 + $0x8] sm:$0xff] %v16077_v14 }
 0x99a   : > { %v16081_v6 = vld [vmem:[%s384_s16 + $0x18] sm:$0xff]  ;;  %16080 = vst [vmem:[%s16062_s8 + $0x40] sm:$0xff] %v16079_v39 }
 0x99b   : > { %16082 = vst [vmem:[%s16062_s8 + $0x48] sm:$0xff] %v16081_v6 }
 0x99c PF: > { %s24865_s27 = sld [smem:[#allocation11_spill]]  ;;  %s24866_s11 = sld [smem:[#allocation10_spill]] }
 0x99d   : > { %s24867_s26 = sld [smem:[#allocation12_spill]]  ;;  %s24868_s24 = smov %s21952_s25 }
 0x9a2   : > { %p20_p4 = scmp.ge.s32.totalorder %s24865_s27, 6   ;;  %s24869_s25 = smov %s24866_s11 }
 0x9a4   :  { %22 = sbr.rel (!%p20_p4) target bundleno = 7 (0x7), region = 143 }
 0x9ab   :  { %16098 = vsyncpa [#allocation3], 1 }
 0x9ac   :  { %16100 = vsyncpa [#allocation3 + $0x1], 1 }
 0x9ad   :  { %16101 = vsyncpa [#allocation5], 1 }
 0x9ae   :  { %16103 = vsyncpa [#allocation5 + $0x1], 1 }

</bundles_post_ra>
